<compile_context>
chip_gen: v5e
topology: v5e:2x2
jax: 0.10.0
libtpu: 0.0.40
codegen_flags: <defaults>
</compile_context>

<pallas_src>
import math
from functools import partial

import jax
import jax.numpy as jnp
from jax.experimental import pallas as pl
from jax.experimental.pallas import tpu as pltpu


# ----------------------------------------------------------------------------
# Fused conv kernel: in-VMEM im2col + single MXU matmul + bias + PReLU
# (+ optional fused residual add).  Row-tiled path.
# ----------------------------------------------------------------------------
def _make_conv_kernel(kh, kw, th, wo, cin, cout, has_res):
    m = th * wo
    k = kh * kw * cin

    def kernel(xm_ref, xh_ref, w_ref, b_ref, a_ref, *rest):
        if has_res:
            res_ref, o_ref = rest
        else:
            (o_ref,) = rest
        # TH main rows + (KH-1) halo rows of the padded NHWC input tile.
        x = jnp.concatenate([xm_ref[0], xh_ref[0]], axis=0)        # (th+kh-1, wp, cin)
        # im2col entirely in VMEM: KH*KW shifted views -> (m, k) patch matrix.
        parts = []
        for ky in range(kh):
            for kx in range(kw):
                parts.append(x[ky:ky + th, kx:kx + wo, :])         # (th, wo, cin)
        patches = jnp.concatenate(parts, axis=-1).reshape(m, k)    # bf16
        y = jnp.dot(patches, w_ref[...], preferred_element_type=jnp.float32)
        y = y + b_ref[...]                                         # (m, cout) + (1, cout)
        y = jnp.where(y > 0.0, y, a_ref[...] * y)                  # PReLU in f32
        if has_res:
            y = y + res_ref[0].astype(jnp.float32)                 # fused skip-add
        o_ref[0] = y.astype(o_ref.dtype)

    return kernel


def _choose_row_tile(ho, wo, halo):
    """Pick the output-row tile TH (and padded output row count)."""
    # Target ~1024 patch-matrix rows per grid step, multiple of 16 so
    # block/halo constraints hold when tiling.
    cap = max(16, ((1024 // max(wo, 1)) // 16) * 16)
    if ho <= cap:
        th = ho if (halo < 2 or ho % 2 == 0) else ho + 1   # even when halo == 2
        return th, th
    th = cap
    ho_pad = ((ho + th - 1) // th) * th
    return th, ho_pad


def _fused_conv(x, layer, *, kh, kw, pad, out_dtype=jnp.bfloat16, residual=None):
    """x: (B, H, W, Cin) NHWC.  layer: {'w': (K, Cout) bf16, 'b','a': (1, Cout) f32}.
    Stride-1 convolution; returns (B, Ho, Wo, Cout) in out_dtype."""
    B, H, W, cin = x.shape
    K, cout = layer["w"].shape
    assert K == kh * kw * cin, (K, kh, kw, cin)
    ho = H + 2 * pad - kh + 1
    wo = W + 2 * pad - kw + 1
    halo = kh - 1
    th, ho_pad = _choose_row_tile(ho, wo, halo)
    nb = ho_pad // th
    hp = ho_pad + halo            # padded-input rows the kernel may touch
    wp = W + 2 * pad              # == wo + kw - 1

    # Single spatial pad in bf16 (+ extra bottom rows so row tiling is exact).
    extra_bottom = hp - (H + 2 * pad)
    xp = jnp.pad(x.astype(jnp.bfloat16),
                 ((0, 0), (pad, pad + extra_bottom), (pad, pad), (0, 0)))

    step = th // halo if halo > 0 else 1   # halo-block stride (th divisible by halo)
    kernel = _make_conv_kernel(kh, kw, th, wo, cin, cout, residual is not None)

    in_specs = [
        pl.BlockSpec((1, th, wp, cin), lambda b, j: (b, j, 0, 0)),
        pl.BlockSpec((1, halo, wp, cin), lambda b, j: (b, (j + 1) * step, 0, 0)),
        pl.BlockSpec((K, cout), lambda b, j: (0, 0)),
        pl.BlockSpec((1, cout), lambda b, j: (0, 0)),
        pl.BlockSpec((1, cout), lambda b, j: (0, 0)),
    ]
    args = [xp, xp, layer["w"], layer["b"], layer["a"]]
    if residual is not None:
        r = residual.astype(jnp.bfloat16).reshape(B, ho * wo, cout)
        if ho_pad > ho:
            r = jnp.pad(r, ((0, 0), (0, (ho_pad - ho) * wo), (0, 0)))
        in_specs.append(pl.BlockSpec((1, th * wo, cout), lambda b, j: (b, j, 0)))
        args.append(r)

    out = pl.pallas_call(
        kernel,
        out_shape=jax.ShapeDtypeStruct((B, ho_pad * wo, cout), out_dtype),
        grid=(B, nb),
        in_specs=in_specs,
        out_specs=pl.BlockSpec((1, th * wo, cout), lambda b, j: (b, j, 0)),
        compiler_params=pltpu.CompilerParams(
            dimension_semantics=("parallel", "parallel"),
            vmem_limit_bytes=64 * 1024 * 1024),
    )(*args)

    out = out.reshape(B, ho_pad, wo, cout)
    if ho_pad > ho:
        out = out[:, :ho]
    return out


# ----------------------------------------------------------------------------
# Fully-fused 8x(conv3x3 + PReLU) residual stack: one pallas_call per batch.
# Used when the whole (H, W, C) feature map fits comfortably in VMEM.
# ----------------------------------------------------------------------------
def _make_convblock_kernel(H, W, C, n_layers):
    m = H * W
    k = 9 * C

    def kernel(x_ref, w_ref, b_ref, a_ref, o_ref, xpad):
        # xpad: (H+2, W+2, C) bf16 scratch with a permanent zero border.
        xpad[...] = jnp.zeros_like(xpad)
        x0 = x_ref[0]                                              # (H, W, C) bf16
        xpad[1:H + 1, 1:W + 1, :] = x0
        for l in range(n_layers):
            parts = []
            for ky in range(3):
                for kx in range(3):
                    parts.append(xpad[ky:ky + H, kx:kx + W, :])    # (H, W, C)
            patches = jnp.concatenate(parts, axis=-1).reshape(m, k)
            y = jnp.dot(patches, w_ref[l], preferred_element_type=jnp.float32)
            y = y + b_ref[l]
            y = jnp.where(y > 0.0, y, a_ref[l] * y)                # PReLU in f32
            if l < n_layers - 1:
                xpad[1:H + 1, 1:W + 1, :] = y.reshape(H, W, C).astype(xpad.dtype)
            else:
                out = y.reshape(H, W, C) + x0.astype(jnp.float32)  # residual add
                o_ref[0] = out.astype(o_ref.dtype)

    return kernel


def _convblock_stack(feat, prep):
    """convblock(feat) + feat, feat: (B, H, W, C) NHWC bf16."""
    B, H, W, C = feat.shape
    patch_bytes = H * W * 9 * C * 2
    act_f32_bytes = H * W * C * 4
    if patch_bytes <= 3 * 1024 * 1024 and act_f32_bytes <= 2 * 1024 * 1024:
        kernel = _make_convblock_kernel(H, W, C, 8)
        out = pl.pallas_call(
            kernel,
            out_shape=jax.ShapeDtypeStruct((B, H, W, C), jnp.bfloat16),
            grid=(B,),
            in_specs=[
                pl.BlockSpec((1, H, W, C), lambda b: (b, 0, 0, 0)),
                pl.BlockSpec((8, 9 * C, C), lambda b: (0, 0, 0)),
                pl.BlockSpec((8, 1, C), lambda b: (0, 0, 0)),
                pl.BlockSpec((8, 1, C), lambda b: (0, 0, 0)),
            ],
            out_specs=pl.BlockSpec((1, H, W, C), lambda b: (b, 0, 0, 0)),
            scratch_shapes=[pltpu.VMEM((H + 2, W + 2, C), jnp.bfloat16)],
            compiler_params=pltpu.CompilerParams(
                dimension_semantics=("parallel",),
                vmem_limit_bytes=64 * 1024 * 1024),
        )(feat.astype(jnp.bfloat16), prep["cb_w"], prep["cb_b"], prep["cb_a"])
        return out
    # Fallback: per-layer row-tiled kernels; skip-add fused into the last one.
    res = feat
    for i in range(7):
        res = _fused_conv(res, prep["cb_%d" % i], kh=3, kw=3, pad=1)
    return _fused_conv(res, prep["cb_7"], kh=3, kw=3, pad=1, residual=feat)


# ----------------------------------------------------------------------------
# Host-side layout glue (plain JAX)
# ----------------------------------------------------------------------------
def _space_to_depth_s2(x):
    """Rewrite the input of a 3x3/stride-2/pad-1 conv as the input of a
    stride-1 2x2 conv over the 4 even/odd row/col phases (EE, EO, OE, OO)."""
    B, H, W, C = x.shape
    ho = (H - 1) // 2 + 1
    wo = (W - 1) // 2 + 1
    pad_b = 2 * ho + 1 - H
    pad_r = 2 * wo + 1 - W
    xp = jnp.pad(x, ((0, 0), (1, pad_b), (1, pad_r), (0, 0)))
    ee = xp[:, 0::2, 0::2, :]
    eo = xp[:, 0::2, 1::2, :]
    oe = xp[:, 1::2, 0::2, :]
    oo = xp[:, 1::2, 1::2, :]
    return jnp.concatenate([ee, eo, oe, oo], axis=-1)   # (B, ho+1, wo+1, 4C)


def _resize_bilinear_nchw(x, out_h, out_w):
    """F.interpolate(mode='bilinear', align_corners=False, antialias=False)."""
    B, C, H, W = x.shape
    if out_h == H and out_w == W:
        return x

    def axis(out_size, in_size):
        scale = in_size / out_size
        src = (jnp.arange(out_size, dtype=jnp.float32) + 0.5) * scale - 0.5
        src = jnp.maximum(src, 0.0)
        i0 = jnp.minimum(jnp.floor(src).astype(jnp.int32), in_size - 1)
        i1 = jnp.minimum(i0 + 1, in_size - 1)
        w = src - i0.astype(jnp.float32)
        return i0, i1, w

    y0, y1, wy = axis(out_h, H)
    x0, x1, wx = axis(out_w, W)
    wy = wy[None, None, :, None]
    rows = x[:, :, y0, :] * (1.0 - wy) + x[:, :, y1, :] * wy
    out = rows[:, :, :, x0] * (1.0 - wx) + rows[:, :, :, x1] * wx
    return out


# ----------------------------------------------------------------------------
# One-time parameter preparation (flatten, rearrange, cast to bf16)
# ----------------------------------------------------------------------------
def _prep_conv3x3(p):
    w, b, a = p["w"], p["b"], p["a"]
    cout, cin = w.shape[0], w.shape[1]
    wf = jnp.transpose(w, (2, 3, 1, 0)).reshape(9 * cin, cout)   # (ky,kx,i) x o
    return {"w": wf.astype(jnp.bfloat16),
            "b": b.reshape(1, cout).astype(jnp.float32),
            "a": a.reshape(1, cout).astype(jnp.float32)}


def _prep_conv_s2(p):
    """3x3/stride-2/pad-1 conv -> equivalent 2x2/stride-1 conv over the
    space-to-depth phases [EE, EO, OE, OO]."""
    w, b, a = p["w"], p["b"], p["a"]
    cout, cin = w.shape[0], w.shape[1]
    wt = jnp.transpose(w, (2, 3, 1, 0))                # (ky, kx, cin, cout)
    w2 = jnp.zeros((2, 2, 4, cin, cout), jnp.float32)  # (dy, dx, phase, i, o)
    w2 = w2.at[0, 0, 0].set(wt[0, 0])
    w2 = w2.at[0, 0, 1].set(wt[0, 1])
    w2 = w2.at[0, 0, 2].set(wt[1, 0])
    w2 = w2.at[0, 0, 3].set(wt[1, 1])
    w2 = w2.at[0, 1, 0].set(wt[0, 2])
    w2 = w2.at[0, 1, 2].set(wt[1, 2])
    w2 = w2.at[1, 0, 0].set(wt[2, 0])
    w2 = w2.at[1, 0, 1].set(wt[2, 1])
    w2 = w2.at[1, 1, 0].set(wt[2, 2])
    wf = w2.reshape(2 * 2 * 4 * cin, cout)
    return {"w": wf.astype(jnp.bfloat16),
            "b": b.reshape(1, cout).astype(jnp.float32),
            "a": a.reshape(1, cout).astype(jnp.float32)}


def _prep_lastconv(wt, b):
    """ConvTranspose2d(c, 5, 4, 2, 1) -> single 3x3/pad-1 conv producing the 4
    sub-pixel phases (20 channels); removes the deconv zero-insertion."""
    cin = wt.shape[0]
    w20 = jnp.zeros((3, 3, cin, 4, 5), jnp.float32)    # (ky, kx, i, phase, o)
    for ky in range(3):
        for kx in range(3):
            if ky < 2 and kx < 2:      # phase EE -> out[2m, 2n]
                w20 = w20.at[ky, kx, :, 0, :].set(wt[:, :, 3 - 2 * ky, 3 - 2 * kx])
            if ky < 2 and kx >= 1:     # phase EO -> out[2m, 2n+1]
                w20 = w20.at[ky, kx, :, 1, :].set(wt[:, :, 3 - 2 * ky, 4 - 2 * kx])
            if ky >= 1 and kx < 2:     # phase OE -> out[2m+1, 2n]
                w20 = w20.at[ky, kx, :, 2, :].set(wt[:, :, 4 - 2 * ky, 3 - 2 * kx])
            if ky >= 1 and kx >= 1:    # phase OO -> out[2m+1, 2n+1]
                w20 = w20.at[ky, kx, :, 3, :].set(wt[:, :, 4 - 2 * ky, 4 - 2 * kx])
    wf = w20.reshape(9 * cin, 20)
    b20 = jnp.tile(b.reshape(1, 5), (4, 1)).reshape(1, 20)
    return {"w": wf.astype(jnp.bfloat16),
            "b": b20.astype(jnp.float32),
            "a": jnp.ones((1, 20), jnp.float32)}       # identity "PReLU"


def prepare_params(params):
    prep = {
        "conv0_0": _prep_conv_s2(params["conv0_0"]),
        "conv0_1": _prep_conv_s2(params["conv0_1"]),
        "last": _prep_lastconv(params["last_w"], params["last_b"]),
    }
    for i in range(8):
        prep["cb_%d" % i] = _prep_conv3x3(params["cb_%d" % i])
    # Stacked copies of the conv-block params for the fully-fused stack kernel.
    prep["cb_w"] = jnp.stack([prep["cb_%d" % i]["w"] for i in range(8)])  # (8, 9C, C) bf16
    prep["cb_b"] = jnp.stack([prep["cb_%d" % i]["b"] for i in range(8)])  # (8, 1, C) f32
    prep["cb_a"] = jnp.stack([prep["cb_%d" % i]["a"] for i in range(8)])  # (8, 1, C) f32
    return prep


# ----------------------------------------------------------------------------
# IFBlock forward
# ----------------------------------------------------------------------------
@partial(jax.jit, static_argnames=("scale",))
def ifblock_forward(prep, x, flow, scale):
    """x: (B, Cx, H, W) NCHW, flow: (B, 4, H, W) NCHW or None, scale: number."""
    B, Cx, H, W = x.shape
    if scale != 1:
        x = _resize_bilinear_nchw(x, int(H / scale), int(W / scale))
    if flow is not None:
        fh, fw = flow.shape[2], flow.shape[3]
        flow = _resize_bilinear_nchw(flow, int(fh / scale), int(fw / scale)) * (1.0 / scale)
        x = jnp.concatenate([x, flow], axis=1)

    feat = jnp.transpose(x, (0, 2, 3, 1))     # NCHW -> NHWC (internal layout)

    # conv0: two stride-2 convs, each as space-to-depth + fused 2x2 conv
    feat = _fused_conv(_space_to_depth_s2(feat), prep["conv0_0"], kh=2, kw=2, pad=0)
    feat = _fused_conv(_space_to_depth_s2(feat), prep["conv0_1"], kh=2, kw=2, pad=0)

    # 8 residual conv blocks + skip-add; single fused kernel when it fits VMEM
    feat = _convblock_stack(feat, prep)

    # ConvTranspose2d(c, 5, 4, 2, 1) via sub-pixel 3x3 conv + phase interleave
    tmp20 = _fused_conv(feat, prep["last"], kh=3, kw=3, pad=1, out_dtype=jnp.float32)
    Bq, h, w, _ = tmp20.shape
    tmp = tmp20.reshape(Bq, h, w, 2, 2, 5)
    tmp = jnp.transpose(tmp, (0, 1, 3, 2, 4, 5)).reshape(Bq, 2 * h, 2 * w, 5)
    tmp = jnp.transpose(tmp, (0, 3, 1, 2))    # NHWC -> NCHW

    th_, tw_ = tmp.shape[2], tmp.shape[3]
    tmp = _resize_bilinear_nchw(tmp, int(th_ * scale * 2), int(tw_ * scale * 2))
    flow_out = tmp[:, :4] * (scale * 2)
    mask = tmp[:, 4:5]
    return flow_out, mask


# ----------------------------------------------------------------------------
# Deterministic synthetic parameter init (shapes from IFBlock.__init__)
# ----------------------------------------------------------------------------
def init_params(key, in_planes, c):
    def conv_params(k, cin, cout, ks):
        k1, k2 = jax.random.split(k)
        fan_in = cin * ks * ks
        w = jax.random.normal(k1, (cout, cin, ks, ks), jnp.float32) / math.sqrt(fan_in)
        b = jax.random.normal(k2, (cout,), jnp.float32) * 0.01
        a = jnp.full((cout,), 0.25, jnp.float32)   # PReLU init (PyTorch default)
        return {"w": w, "b": b, "a": a}

    keys = jax.random.split(key, 11)
    params = {
        "conv0_0": conv_params(keys[0], in_planes, c // 2, 3),
        "conv0_1": conv_params(keys[1], c // 2, c, 3),
    }
    for i in range(8):
        params["cb_%d" % i] = conv_params(keys[2 + i], c, c, 3)
    k1, k2 = jax.random.split(keys[10])
    # ConvTranspose2d(c, 5, 4, 2, 1): weight (Cin=c, Cout=5, 4, 4), bias (5,)
    params["last_w"] = jax.random.normal(k1, (c, 5, 4, 4), jnp.float32) / math.sqrt(c * 16)
    params["last_b"] = jax.random.normal(k2, (5,), jnp.float32) * 0.01
    return params


if __name__ == "__main__":
    key = jax.random.PRNGKey(0)
    kx, kf, kp = jax.random.split(key, 3)

    # x has 6 channels, flow has 4 -> IFBlock(in_planes=10, c=32), scale=2
    x = jax.random.normal(kx, (2, 6, 32, 32), jnp.float32)
    flow = jax.random.normal(kf, (2, 4, 32, 32), jnp.float32)
    in_planes, c, scale = 10, 32, 2

    params = init_params(kp, in_planes, c)
    prep = prepare_params(params)

    flow_out, mask = ifblock_forward(prep, x, flow, scale=scale)
    jax.block_until_ready((flow_out, mask))

    assert flow_out.shape == (2, 4, 32, 32), flow_out.shape
    assert mask.shape == (2, 1, 32, 32), mask.shape
    assert bool(jnp.isfinite(flow_out).all()) and bool(jnp.isfinite(mask).all())
    print("KERNEL_OK")
</pallas_src>

<mosaic_0001>
module attributes {stable_mosaic.version = 11 : i64} {
  func.func @kernel(%arg0: i32, %arg1: i32, %arg2: memref<1x8x9x40xbf16, #tpu.memory_space<vmem>>, %arg3: memref<1x1x9x40xbf16, #tpu.memory_space<vmem>>, %arg4: memref<160x16xbf16, #tpu.memory_space<vmem>>, %arg5: memref<1x16xf32, #tpu.memory_space<vmem>>, %arg6: memref<1x16xf32, #tpu.memory_space<vmem>>, %arg7: memref<1x64x16xbf16, #tpu.memory_space<vmem>>) attributes {dimension_semantics = [#tpu.dimension_semantics<parallel>, #tpu.dimension_semantics<parallel>], iteration_bounds = array<i64: 2, 1>, scalar_prefetch = 0 : i64, scratch_operands = 0 : i64, tpu.core_type = #tpu.core_type<tc>, window_params = [{transform_indices = @transform_0, window_bounds = array<i64: 1, 8, 9, 40>}, {transform_indices = @transform_1, window_bounds = array<i64: 1, 1, 9, 40>}, {pipeline_mode = #tpu.pipeline_mode<synchronous>, transform_indices = @transform_2, window_bounds = array<i64: 160, 16>}, {pipeline_mode = #tpu.pipeline_mode<synchronous>, transform_indices = @transform_3, window_bounds = array<i64: 1, 16>}, {pipeline_mode = #tpu.pipeline_mode<synchronous>, transform_indices = @transform_4, window_bounds = array<i64: 1, 16>}, {transform_indices = @transform_5, window_bounds = array<i64: 1, 64, 16>}]} {
    %c0 = arith.constant 0 : index
    %c0_0 = arith.constant 0 : index
    %c0_1 = arith.constant 0 : index
    %c0_2 = arith.constant 0 : index
    %0 = vector.load %arg2[%c0, %c0_0, %c0_1, %c0_2] : memref<1x8x9x40xbf16, #tpu.memory_space<vmem>>, vector<1x8x9x40xbf16>
    %1 = vector.shape_cast %0 : vector<1x8x9x40xbf16> to vector<8x9x40xbf16>
    %c0_3 = arith.constant 0 : index
    %c0_4 = arith.constant 0 : index
    %c0_5 = arith.constant 0 : index
    %c0_6 = arith.constant 0 : index
    %2 = vector.load %arg3[%c0_3, %c0_4, %c0_5, %c0_6] : memref<1x1x9x40xbf16, #tpu.memory_space<vmem>>, vector<1x1x9x40xbf16>
    %3 = vector.shape_cast %2 : vector<1x1x9x40xbf16> to vector<1x9x40xbf16>
    %4 = tpu.concatenate %1, %3 in 0 : vector<8x9x40xbf16>, vector<1x9x40xbf16> -> vector<9x9x40xbf16>
    %5 = vector.extract_strided_slice %4 {offsets = [0, 0, 0], sizes = [8, 8, 40], strides = [1, 1, 1]} : vector<9x9x40xbf16> to vector<8x8x40xbf16>
    %6 = vector.extract_strided_slice %4 {offsets = [0, 1, 0], sizes = [8, 8, 40], strides = [1, 1, 1]} : vector<9x9x40xbf16> to vector<8x8x40xbf16>
    %7 = vector.extract_strided_slice %4 {offsets = [1, 0, 0], sizes = [8, 8, 40], strides = [1, 1, 1]} : vector<9x9x40xbf16> to vector<8x8x40xbf16>
    %8 = vector.extract_strided_slice %4 {offsets = [1, 1, 0], sizes = [8, 8, 40], strides = [1, 1, 1]} : vector<9x9x40xbf16> to vector<8x8x40xbf16>
    %9 = tpu.concatenate %5, %6, %7, %8 in 2 : vector<8x8x40xbf16>, vector<8x8x40xbf16>, vector<8x8x40xbf16>, vector<8x8x40xbf16> -> vector<8x8x160xbf16>
    %10 = vector.shape_cast %9 : vector<8x8x160xbf16> to vector<64x160xbf16>
    %c0_7 = arith.constant 0 : index
    %c0_8 = arith.constant 0 : index
    %11 = vector.load %arg4[%c0_7, %c0_8] : memref<160x16xbf16, #tpu.memory_space<vmem>>, vector<160x16xbf16>
    %cst = arith.constant dense<0.000000e+00> : vector<64x16xf32>
    %12 = tpu.matmul %10, %11, %cst {dimension_numbers = #tpu.dot_dimension_numbers<[1], [0], [0], [1], [0, 0, 1, 1], [], []>} : vector<64x160xbf16>, vector<160x16xbf16>, vector<64x16xf32> -> vector<64x16xf32>
    %c0_9 = arith.constant 0 : index
    %c0_10 = arith.constant 0 : index
    %13 = vector.load %arg5[%c0_9, %c0_10] : memref<1x16xf32, #tpu.memory_space<vmem>>, vector<1x16xf32>
    %14 = vector.broadcast %13 : vector<1x16xf32> to vector<64x16xf32>
    %15 = arith.addf %12, %14 : vector<64x16xf32>
    %cst_11 = arith.constant 0.000000e+00 : f32
    %16 = vector.broadcast %cst_11 : f32 to vector<64x16xf32>
    %17 = arith.cmpf ogt, %15, %16 : vector<64x16xf32>
    %c0_12 = arith.constant 0 : index
    %c0_13 = arith.constant 0 : index
    %18 = vector.load %arg6[%c0_12, %c0_13] : memref<1x16xf32, #tpu.memory_space<vmem>>, vector<1x16xf32>
    %19 = vector.broadcast %18 : vector<1x16xf32> to vector<64x16xf32>
    %20 = arith.mulf %19, %15 : vector<64x16xf32>
    %21 = arith.select %17, %15, %20 : vector<64x16xi1>, vector<64x16xf32>
    %22 = arith.truncf %21 : vector<64x16xf32> to vector<64x16xbf16>
    %c0_14 = arith.constant 0 : index
    %c0_15 = arith.constant 0 : index
    %c0_16 = arith.constant 0 : index
    %23 = vector.load %arg7[%c0_14, %c0_15, %c0_16] : memref<1x64x16xbf16, #tpu.memory_space<vmem>>, vector<1x64x16xbf16>
    %24 = vector.shape_cast %23 : vector<1x64x16xbf16> to vector<64x16xbf16>
    %25 = vector.shape_cast %22 : vector<64x16xbf16> to vector<1x64x16xbf16>
    tpu.vector_store %arg7[%c0_14, %c0_15, %c0_16], %25 {strides = array<i32>} : memref<1x64x16xbf16, #tpu.memory_space<vmem>>, vector<1x64x16xbf16>,
    return
  }
  func.func @transform_0(%arg0: i32, %arg1: i32) -> (i32, i32, i32, i32) {
    %c0_i32 = arith.constant 0 : i32
    %c0_i32_0 = arith.constant 0 : i32
    %c0_i32_1 = arith.constant 0 : i32
    return %arg0, %arg1, %c0_i32, %c0_i32_0 : i32, i32, i32, i32
  }
  func.func @transform_1(%arg0: i32, %arg1: i32) -> (i32, i32, i32, i32) {
    %c1_i32 = arith.constant 1 : i32
    %0 = arith.addi %arg1, %c1_i32 : i32
    %c8_i32 = arith.constant 8 : i32
    %1 = arith.muli %0, %c8_i32 : i32
    %c0_i32 = arith.constant 0 : i32
    %c0_i32_0 = arith.constant 0 : i32
    %c0_i32_1 = arith.constant 0 : i32
    return %arg0, %1, %c0_i32, %c0_i32_0 : i32, i32, i32, i32
  }
  func.func @transform_2(%arg0: i32, %arg1: i32) -> (i32, i32) {
    %c0_i32 = arith.constant 0 : i32
    %c0_i32_0 = arith.constant 0 : i32
    %c0_i32_1 = arith.constant 0 : i32
    return %c0_i32, %c0_i32_0 : i32, i32
  }
  func.func @transform_3(%arg0: i32, %arg1: i32) -> (i32, i32) {
    %c0_i32 = arith.constant 0 : i32
    %c0_i32_0 = arith.constant 0 : i32
    %c0_i32_1 = arith.constant 0 : i32
    return %c0_i32, %c0_i32_0 : i32, i32
  }
  func.func @transform_4(%arg0: i32, %arg1: i32) -> (i32, i32) {
    %c0_i32 = arith.constant 0 : i32
    %c0_i32_0 = arith.constant 0 : i32
    %c0_i32_1 = arith.constant 0 : i32
    return %c0_i32, %c0_i32_0 : i32, i32
  }
  func.func @transform_5(%arg0: i32, %arg1: i32) -> (i32, i32, i32) {
    %c0_i32 = arith.constant 0 : i32
    %c0_i32_0 = arith.constant 0 : i32
    return %arg0, %arg1, %c0_i32 : i32, i32, i32
  }
}

module attributes {stable_mosaic.version = 11 : i64} {
  func.func @kernel(%arg0: i32, %arg1: i32, %arg2: memref<1x4x5x64xbf16, #tpu.memory_space<vmem>>, %arg3: memref<1x1x5x64xbf16, #tpu.memory_space<vmem>>, %arg4: memref<256x32xbf16, #tpu.memory_space<vmem>>, %arg5: memref<1x32xf32, #tpu.memory_space<vmem>>, %arg6: memref<1x32xf32, #tpu.memory_space<vmem>>, %arg7: memref<1x16x32xbf16, #tpu.memory_space<vmem>>) attributes {dimension_semantics = [#tpu.dimension_semantics<parallel>, #tpu.dimension_semantics<parallel>], iteration_bounds = array<i64: 2, 1>, scalar_prefetch = 0 : i64, scratch_operands = 0 : i64, tpu.core_type = #tpu.core_type<tc>, window_params = [{transform_indices = @transform_0, window_bounds = array<i64: 1, 4, 5, 64>}, {transform_indices = @transform_1, window_bounds = array<i64: 1, 1, 5, 64>}, {pipeline_mode = #tpu.pipeline_mode<synchronous>, transform_indices = @transform_2, window_bounds = array<i64: 256, 32>}, {pipeline_mode = #tpu.pipeline_mode<synchronous>, transform_indices = @transform_3, window_bounds = array<i64: 1, 32>}, {pipeline_mode = #tpu.pipeline_mode<synchronous>, transform_indices = @transform_4, window_bounds = array<i64: 1, 32>}, {transform_indices = @transform_5, window_bounds = array<i64: 1, 16, 32>}]} {
    %c0 = arith.constant 0 : index
    %c0_0 = arith.constant 0 : index
    %c0_1 = arith.constant 0 : index
    %c0_2 = arith.constant 0 : index
    %0 = vector.load %arg2[%c0, %c0_0, %c0_1, %c0_2] : memref<1x4x5x64xbf16, #tpu.memory_space<vmem>>, vector<1x4x5x64xbf16>
    %1 = vector.shape_cast %0 : vector<1x4x5x64xbf16> to vector<4x5x64xbf16>
    %c0_3 = arith.constant 0 : index
    %c0_4 = arith.constant 0 : index
    %c0_5 = arith.constant 0 : index
    %c0_6 = arith.constant 0 : index
    %2 = vector.load %arg3[%c0_3, %c0_4, %c0_5, %c0_6] : memref<1x1x5x64xbf16, #tpu.memory_space<vmem>>, vector<1x1x5x64xbf16>
    %3 = vector.shape_cast %2 : vector<1x1x5x64xbf16> to vector<1x5x64xbf16>
    %4 = tpu.concatenate %1, %3 in 0 : vector<4x5x64xbf16>, vector<1x5x64xbf16> -> vector<5x5x64xbf16>
    %5 = vector.extract_strided_slice %4 {offsets = [0, 0, 0], sizes = [4, 4, 64], strides = [1, 1, 1]} : vector<5x5x64xbf16> to vector<4x4x64xbf16>
    %6 = vector.extract_strided_slice %4 {offsets = [0, 1, 0], sizes = [4, 4, 64], strides = [1, 1, 1]} : vector<5x5x64xbf16> to vector<4x4x64xbf16>
    %7 = vector.extract_strided_slice %4 {offsets = [1, 0, 0], sizes = [4, 4, 64], strides = [1, 1, 1]} : vector<5x5x64xbf16> to vector<4x4x64xbf16>
    %8 = vector.extract_strided_slice %4 {offsets = [1, 1, 0], sizes = [4, 4, 64], strides = [1, 1, 1]} : vector<5x5x64xbf16> to vector<4x4x64xbf16>
    %9 = tpu.concatenate %5, %6, %7, %8 in 2 : vector<4x4x64xbf16>, vector<4x4x64xbf16>, vector<4x4x64xbf16>, vector<4x4x64xbf16> -> vector<4x4x256xbf16>
    %10 = vector.shape_cast %9 : vector<4x4x256xbf16> to vector<16x256xbf16>
    %c0_7 = arith.constant 0 : index
    %c0_8 = arith.constant 0 : index
    %11 = vector.load %arg4[%c0_7, %c0_8] : memref<256x32xbf16, #tpu.memory_space<vmem>>, vector<256x32xbf16>
    %cst = arith.constant dense<0.000000e+00> : vector<16x32xf32>
    %12 = tpu.matmul %10, %11, %cst {dimension_numbers = #tpu.dot_dimension_numbers<[1], [0], [0], [1], [0, 0, 1, 1], [], []>} : vector<16x256xbf16>, vector<256x32xbf16>, vector<16x32xf32> -> vector<16x32xf32>
    %c0_9 = arith.constant 0 : index
    %c0_10 = arith.constant 0 : index
    %13 = vector.load %arg5[%c0_9, %c0_10] : memref<1x32xf32, #tpu.memory_space<vmem>>, vector<1x32xf32>
    %14 = vector.broadcast %13 : vector<1x32xf32> to vector<16x32xf32>
    %15 = arith.addf %12, %14 : vector<16x32xf32>
    %cst_11 = arith.constant 0.000000e+00 : f32
    %16 = vector.broadcast %cst_11 : f32 to vector<16x32xf32>
    %17 = arith.cmpf ogt, %15, %16 : vector<16x32xf32>
    %c0_12 = arith.constant 0 : index
    %c0_13 = arith.constant 0 : index
    %18 = vector.load %arg6[%c0_12, %c0_13] : memref<1x32xf32, #tpu.memory_space<vmem>>, vector<1x32xf32>
    %19 = vector.broadcast %18 : vector<1x32xf32> to vector<16x32xf32>
    %20 = arith.mulf %19, %15 : vector<16x32xf32>
    %21 = arith.select %17, %15, %20 : vector<16x32xi1>, vector<16x32xf32>
    %22 = arith.truncf %21 : vector<16x32xf32> to vector<16x32xbf16>
    %c0_14 = arith.constant 0 : index
    %c0_15 = arith.constant 0 : index
    %c0_16 = arith.constant 0 : index
    %23 = vector.load %arg7[%c0_14, %c0_15, %c0_16] : memref<1x16x32xbf16, #tpu.memory_space<vmem>>, vector<1x16x32xbf16>
    %24 = vector.shape_cast %23 : vector<1x16x32xbf16> to vector<16x32xbf16>
    %25 = vector.shape_cast %22 : vector<16x32xbf16> to vector<1x16x32xbf16>
    tpu.vector_store %arg7[%c0_14, %c0_15, %c0_16], %25 {strides = array<i32>} : memref<1x16x32xbf16, #tpu.memory_space<vmem>>, vector<1x16x32xbf16>,
    return
  }
  func.func @transform_0(%arg0: i32, %arg1: i32) -> (i32, i32, i32, i32) {
    %c0_i32 = arith.constant 0 : i32
    %c0_i32_0 = arith.constant 0 : i32
    %c0_i32_1 = arith.constant 0 : i32
    return %arg0, %arg1, %c0_i32, %c0_i32_0 : i32, i32, i32, i32
  }
  func.func @transform_1(%arg0: i32, %arg1: i32) -> (i32, i32, i32, i32) {
    %c1_i32 = arith.constant 1 : i32
    %0 = arith.addi %arg1, %c1_i32 : i32
    %c4_i32 = arith.constant 4 : i32
    %1 = arith.muli %0, %c4_i32 : i32
    %c0_i32 = arith.constant 0 : i32
    %c0_i32_0 = arith.constant 0 : i32
    %c0_i32_1 = arith.constant 0 : i32
    return %arg0, %1, %c0_i32, %c0_i32_0 : i32, i32, i32, i32
  }
  func.func @transform_2(%arg0: i32, %arg1: i32) -> (i32, i32) {
    %c0_i32 = arith.constant 0 : i32
    %c0_i32_0 = arith.constant 0 : i32
    %c0_i32_1 = arith.constant 0 : i32
    return %c0_i32, %c0_i32_0 : i32, i32
  }
  func.func @transform_3(%arg0: i32, %arg1: i32) -> (i32, i32) {
    %c0_i32 = arith.constant 0 : i32
    %c0_i32_0 = arith.constant 0 : i32
    %c0_i32_1 = arith.constant 0 : i32
    return %c0_i32, %c0_i32_0 : i32, i32
  }
  func.func @transform_4(%arg0: i32, %arg1: i32) -> (i32, i32) {
    %c0_i32 = arith.constant 0 : i32
    %c0_i32_0 = arith.constant 0 : i32
    %c0_i32_1 = arith.constant 0 : i32
    return %c0_i32, %c0_i32_0 : i32, i32
  }
  func.func @transform_5(%arg0: i32, %arg1: i32) -> (i32, i32, i32) {
    %c0_i32 = arith.constant 0 : i32
    %c0_i32_0 = arith.constant 0 : i32
    return %arg0, %arg1, %c0_i32 : i32, i32, i32
  }
}

module attributes {stable_mosaic.version = 11 : i64} {
  func.func @kernel(%arg0: i32, %arg1: memref<1x4x4x32xbf16, #tpu.memory_space<vmem>>, %arg2: memref<8x288x32xbf16, #tpu.memory_space<vmem>>, %arg3: memref<8x1x32xf32, #tpu.memory_space<vmem>>, %arg4: memref<8x1x32xf32, #tpu.memory_space<vmem>>, %arg5: memref<1x4x4x32xbf16, #tpu.memory_space<vmem>>, %arg6: memref<6x6x32xbf16, #tpu.memory_space<vmem>>) attributes {dimension_semantics = [#tpu.dimension_semantics<parallel>], iteration_bounds = array<i64: 2>, scalar_prefetch = 0 : i64, scratch_operands = 1 : i64, tpu.core_type = #tpu.core_type<tc>, window_params = [{transform_indices = @transform_0, window_bounds = array<i64: 1, 4, 4, 32>}, {pipeline_mode = #tpu.pipeline_mode<synchronous>, transform_indices = @transform_1, window_bounds = array<i64: 8, 288, 32>}, {pipeline_mode = #tpu.pipeline_mode<synchronous>, transform_indices = @transform_2, window_bounds = array<i64: 8, 1, 32>}, {pipeline_mode = #tpu.pipeline_mode<synchronous>, transform_indices = @transform_3, window_bounds = array<i64: 8, 1, 32>}, {transform_indices = @transform_4, window_bounds = array<i64: 1, 4, 4, 32>}]} {
    %cst = arith.constant 0.000000e+00 : bf16
    %0 = vector.broadcast %cst : bf16 to vector<6x6x32xbf16>
    %c0 = arith.constant 0 : index
    %c0_0 = arith.constant 0 : index
    %c0_1 = arith.constant 0 : index
    %1 = vector.load %arg6[%c0, %c0_0, %c0_1] : memref<6x6x32xbf16, #tpu.memory_space<vmem>>, vector<6x6x32xbf16>
    tpu.vector_store %arg6[%c0, %c0_0, %c0_1], %0 {strides = array<i32>} : memref<6x6x32xbf16, #tpu.memory_space<vmem>>, vector<6x6x32xbf16>,
    %c0_2 = arith.constant 0 : index
    %c0_3 = arith.constant 0 : index
    %c0_4 = arith.constant 0 : index
    %c0_5 = arith.constant 0 : index
    %2 = vector.load %arg1[%c0_2, %c0_3, %c0_4, %c0_5] : memref<1x4x4x32xbf16, #tpu.memory_space<vmem>>, vector<1x4x4x32xbf16>
    %3 = vector.shape_cast %2 : vector<1x4x4x32xbf16> to vector<4x4x32xbf16>
    %c1 = arith.constant 1 : index
    %c1_6 = arith.constant 1 : index
    %c0_7 = arith.constant 0 : index
    %4 = vector.load %arg6[%c1, %c1_6, %c0_7] : memref<6x6x32xbf16, #tpu.memory_space<vmem>>, vector<4x4x32xbf16>
    tpu.vector_store %arg6[%c1, %c1_6, %c0_7], %3 {strides = array<i32>} : memref<6x6x32xbf16, #tpu.memory_space<vmem>>, vector<4x4x32xbf16>,
    %c0_8 = arith.constant 0 : index
    %c0_9 = arith.constant 0 : index
    %c0_10 = arith.constant 0 : index
    %5 = vector.load %arg6[%c0_8, %c0_9, %c0_10] : memref<6x6x32xbf16, #tpu.memory_space<vmem>>, vector<4x4x32xbf16>
    %c0_11 = arith.constant 0 : index
    %c1_12 = arith.constant 1 : index
    %c0_13 = arith.constant 0 : index
    %6 = vector.load %arg6[%c0_11, %c1_12, %c0_13] : memref<6x6x32xbf16, #tpu.memory_space<vmem>>, vector<4x4x32xbf16>
    %c0_14 = arith.constant 0 : index
    %c2 = arith.constant 2 : index
    %c0_15 = arith.constant 0 : index
    %7 = vector.load %arg6[%c0_14, %c2, %c0_15] : memref<6x6x32xbf16, #tpu.memory_space<vmem>>, vector<4x4x32xbf16>
    %c1_16 = arith.constant 1 : index
    %c0_17 = arith.constant 0 : index
    %c0_18 = arith.constant 0 : index
    %8 = vector.load %arg6[%c1_16, %c0_17, %c0_18] : memref<6x6x32xbf16, #tpu.memory_space<vmem>>, vector<4x4x32xbf16>
    %c1_19 = arith.constant 1 : index
    %c1_20 = arith.constant 1 : index
    %c0_21 = arith.constant 0 : index
    %9 = vector.load %arg6[%c1_19, %c1_20, %c0_21] : memref<6x6x32xbf16, #tpu.memory_space<vmem>>, vector<4x4x32xbf16>
    %c1_22 = arith.constant 1 : index
    %c2_23 = arith.constant 2 : index
    %c0_24 = arith.constant 0 : index
    %10 = vector.load %arg6[%c1_22, %c2_23, %c0_24] : memref<6x6x32xbf16, #tpu.memory_space<vmem>>, vector<4x4x32xbf16>
    %c2_25 = arith.constant 2 : index
    %c0_26 = arith.constant 0 : index
    %c0_27 = arith.constant 0 : index
    %11 = vector.load %arg6[%c2_25, %c0_26, %c0_27] : memref<6x6x32xbf16, #tpu.memory_space<vmem>>, vector<4x4x32xbf16>
    %c2_28 = arith.constant 2 : index
    %c1_29 = arith.constant 1 : index
    %c0_30 = arith.constant 0 : index
    %12 = vector.load %arg6[%c2_28, %c1_29, %c0_30] : memref<6x6x32xbf16, #tpu.memory_space<vmem>>, vector<4x4x32xbf16>
    %c2_31 = arith.constant 2 : index
    %c2_32 = arith.constant 2 : index
    %c0_33 = arith.constant 0 : index
    %13 = vector.load %arg6[%c2_31, %c2_32, %c0_33] : memref<6x6x32xbf16, #tpu.memory_space<vmem>>, vector<4x4x32xbf16>
    %14 = tpu.concatenate %5, %6, %7, %8, %9, %10, %11, %12, %13 in 2 : vector<4x4x32xbf16>, vector<4x4x32xbf16>, vector<4x4x32xbf16>, vector<4x4x32xbf16>, vector<4x4x32xbf16>, vector<4x4x32xbf16>, vector<4x4x32xbf16>, vector<4x4x32xbf16>, vector<4x4x32xbf16> -> vector<4x4x288xbf16>
    %15 = vector.shape_cast %14 : vector<4x4x288xbf16> to vector<16x288xbf16>
    %c0_34 = arith.constant 0 : index
    %c0_35 = arith.constant 0 : index
    %c0_36 = arith.constant 0 : index
    %16 = vector.load %arg2[%c0_34, %c0_35, %c0_36] : memref<8x288x32xbf16, #tpu.memory_space<vmem>>, vector<1x288x32xbf16>
    %17 = vector.shape_cast %16 : vector<1x288x32xbf16> to vector<288x32xbf16>
    %cst_37 = arith.constant dense<0.000000e+00> : vector<16x32xf32>
    %18 = tpu.matmul %15, %17, %cst_37 {dimension_numbers = #tpu.dot_dimension_numbers<[1], [0], [0], [1], [0, 0, 1, 1], [], []>} : vector<16x288xbf16>, vector<288x32xbf16>, vector<16x32xf32> -> vector<16x32xf32>
    %c0_38 = arith.constant 0 : index
    %c0_39 = arith.constant 0 : index
    %c0_40 = arith.constant 0 : index
    %19 = vector.load %arg3[%c0_38, %c0_39, %c0_40] : memref<8x1x32xf32, #tpu.memory_space<vmem>>, vector<1x1x32xf32>
    %20 = vector.shape_cast %19 : vector<1x1x32xf32> to vector<1x32xf32>
    %21 = vector.broadcast %20 : vector<1x32xf32> to vector<16x32xf32>
    %22 = arith.addf %18, %21 : vector<16x32xf32>
    %cst_41 = arith.constant 0.000000e+00 : f32
    %23 = vector.broadcast %cst_41 : f32 to vector<16x32xf32>
    %24 = arith.cmpf ogt, %22, %23 : vector<16x32xf32>
    %c0_42 = arith.constant 0 : index
    %c0_43 = arith.constant 0 : index
    %c0_44 = arith.constant 0 : index
    %25 = vector.load %arg4[%c0_42, %c0_43, %c0_44] : memref<8x1x32xf32, #tpu.memory_space<vmem>>, vector<1x1x32xf32>
    %26 = vector.shape_cast %25 : vector<1x1x32xf32> to vector<1x32xf32>
    %27 = vector.broadcast %26 : vector<1x32xf32> to vector<16x32xf32>
    %28 = arith.mulf %27, %22 : vector<16x32xf32>
    %29 = arith.select %24, %22, %28 : vector<16x32xi1>, vector<16x32xf32>
    %30 = vector.shape_cast %29 : vector<16x32xf32> to vector<4x4x32xf32>
    %31 = arith.truncf %30 : vector<4x4x32xf32> to vector<4x4x32xbf16>
    %c1_45 = arith.constant 1 : index
    %c1_46 = arith.constant 1 : index
    %c0_47 = arith.constant 0 : index
    %32 = vector.load %arg6[%c1_45, %c1_46, %c0_47] : memref<6x6x32xbf16, #tpu.memory_space<vmem>>, vector<4x4x32xbf16>
    tpu.vector_store %arg6[%c1_45, %c1_46, %c0_47], %31 {strides = array<i32>} : memref<6x6x32xbf16, #tpu.memory_space<vmem>>, vector<4x4x32xbf16>,
    %c0_48 = arith.constant 0 : index
    %c0_49 = arith.constant 0 : index
    %c0_50 = arith.constant 0 : index
    %33 = vector.load %arg6[%c0_48, %c0_49, %c0_50] : memref<6x6x32xbf16, #tpu.memory_space<vmem>>, vector<4x4x32xbf16>
    %c0_51 = arith.constant 0 : index
    %c1_52 = arith.constant 1 : index
    %c0_53 = arith.constant 0 : index
    %34 = vector.load %arg6[%c0_51, %c1_52, %c0_53] : memref<6x6x32xbf16, #tpu.memory_space<vmem>>, vector<4x4x32xbf16>
    %c0_54 = arith.constant 0 : index
    %c2_55 = arith.constant 2 : index
    %c0_56 = arith.constant 0 : index
    %35 = vector.load %arg6[%c0_54, %c2_55, %c0_56] : memref<6x6x32xbf16, #tpu.memory_space<vmem>>, vector<4x4x32xbf16>
    %c1_57 = arith.constant 1 : index
    %c0_58 = arith.constant 0 : index
    %c0_59 = arith.constant 0 : index
    %36 = vector.load %arg6[%c1_57, %c0_58, %c0_59] : memref<6x6x32xbf16, #tpu.memory_space<vmem>>, vector<4x4x32xbf16>
    %c1_60 = arith.constant 1 : index
    %c1_61 = arith.constant 1 : index
    %c0_62 = arith.constant 0 : index
    %37 = vector.load %arg6[%c1_60, %c1_61, %c0_62] : memref<6x6x32xbf16, #tpu.memory_space<vmem>>, vector<4x4x32xbf16>
    %c1_63 = arith.constant 1 : index
    %c2_64 = arith.constant 2 : index
    %c0_65 = arith.constant 0 : index
    %38 = vector.load %arg6[%c1_63, %c2_64, %c0_65] : memref<6x6x32xbf16, #tpu.memory_space<vmem>>, vector<4x4x32xbf16>
    %c2_66 = arith.constant 2 : index
    %c0_67 = arith.constant 0 : index
    %c0_68 = arith.constant 0 : index
    %39 = vector.load %arg6[%c2_66, %c0_67, %c0_68] : memref<6x6x32xbf16, #tpu.memory_space<vmem>>, vector<4x4x32xbf16>
    %c2_69 = arith.constant 2 : index
    %c1_70 = arith.constant 1 : index
    %c0_71 = arith.constant 0 : index
    %40 = vector.load %arg6[%c2_69, %c1_70, %c0_71] : memref<6x6x32xbf16, #tpu.memory_space<vmem>>, vector<4x4x32xbf16>
    %c2_72 = arith.constant 2 : index
    %c2_73 = arith.constant 2 : index
    %c0_74 = arith.constant 0 : index
    %41 = vector.load %arg6[%c2_72, %c2_73, %c0_74] : memref<6x6x32xbf16, #tpu.memory_space<vmem>>, vector<4x4x32xbf16>
    %42 = tpu.concatenate %33, %34, %35, %36, %37, %38, %39, %40, %41 in 2 : vector<4x4x32xbf16>, vector<4x4x32xbf16>, vector<4x4x32xbf16>, vector<4x4x32xbf16>, vector<4x4x32xbf16>, vector<4x4x32xbf16>, vector<4x4x32xbf16>, vector<4x4x32xbf16>, vector<4x4x32xbf16> -> vector<4x4x288xbf16>
    %43 = vector.shape_cast %42 : vector<4x4x288xbf16> to vector<16x288xbf16>
    %c1_75 = arith.constant 1 : index
    %c0_76 = arith.constant 0 : index
    %c0_77 = arith.constant 0 : index
    %44 = vector.load %arg2[%c1_75, %c0_76, %c0_77] : memref<8x288x32xbf16, #tpu.memory_space<vmem>>, vector<1x288x32xbf16>
    %45 = vector.shape_cast %44 : vector<1x288x32xbf16> to vector<288x32xbf16>
    %cst_78 = arith.constant dense<0.000000e+00> : vector<16x32xf32>
    %46 = tpu.matmul %43, %45, %cst_78 {dimension_numbers = #tpu.dot_dimension_numbers<[1], [0], [0], [1], [0, 0, 1, 1], [], []>} : vector<16x288xbf16>, vector<288x32xbf16>, vector<16x32xf32> -> vector<16x32xf32>
    %c1_79 = arith.constant 1 : index
    %c0_80 = arith.constant 0 : index
    %c0_81 = arith.constant 0 : index
    %47 = vector.load %arg3[%c1_79, %c0_80, %c0_81] : memref<8x1x32xf32, #tpu.memory_space<vmem>>, vector<1x1x32xf32>
    %48 = vector.shape_cast %47 : vector<1x1x32xf32> to vector<1x32xf32>
    %49 = vector.broadcast %48 : vector<1x32xf32> to vector<16x32xf32>
    %50 = arith.addf %46, %49 : vector<16x32xf32>
    %cst_82 = arith.constant 0.000000e+00 : f32
    %51 = vector.broadcast %cst_82 : f32 to vector<16x32xf32>
    %52 = arith.cmpf ogt, %50, %51 : vector<16x32xf32>
    %c1_83 = arith.constant 1 : index
    %c0_84 = arith.constant 0 : index
    %c0_85 = arith.constant 0 : index
    %53 = vector.load %arg4[%c1_83, %c0_84, %c0_85] : memref<8x1x32xf32, #tpu.memory_space<vmem>>, vector<1x1x32xf32>
    %54 = vector.shape_cast %53 : vector<1x1x32xf32> to vector<1x32xf32>
    %55 = vector.broadcast %54 : vector<1x32xf32> to vector<16x32xf32>
    %56 = arith.mulf %55, %50 : vector<16x32xf32>
    %57 = arith.select %52, %50, %56 : vector<16x32xi1>, vector<16x32xf32>
    %58 = vector.shape_cast %57 : vector<16x32xf32> to vector<4x4x32xf32>
    %59 = arith.truncf %58 : vector<4x4x32xf32> to vector<4x4x32xbf16>
    %c1_86 = arith.constant 1 : index
    %c1_87 = arith.constant 1 : index
    %c0_88 = arith.constant 0 : index
    %60 = vector.load %arg6[%c1_86, %c1_87, %c0_88] : memref<6x6x32xbf16, #tpu.memory_space<vmem>>, vector<4x4x32xbf16>
    tpu.vector_store %arg6[%c1_86, %c1_87, %c0_88], %59 {strides = array<i32>} : memref<6x6x32xbf16, #tpu.memory_space<vmem>>, vector<4x4x32xbf16>,
    %c0_89 = arith.constant 0 : index
    %c0_90 = arith.constant 0 : index
    %c0_91 = arith.constant 0 : index
    %61 = vector.load %arg6[%c0_89, %c0_90, %c0_91] : memref<6x6x32xbf16, #tpu.memory_space<vmem>>, vector<4x4x32xbf16>
    %c0_92 = arith.constant 0 : index
    %c1_93 = arith.constant 1 : index
    %c0_94 = arith.constant 0 : index
    %62 = vector.load %arg6[%c0_92, %c1_93, %c0_94] : memref<6x6x32xbf16, #tpu.memory_space<vmem>>, vector<4x4x32xbf16>
    %c0_95 = arith.constant 0 : index
    %c2_96 = arith.constant 2 : index
    %c0_97 = arith.constant 0 : index
    %63 = vector.load %arg6[%c0_95, %c2_96, %c0_97] : memref<6x6x32xbf16, #tpu.memory_space<vmem>>, vector<4x4x32xbf16>
    %c1_98 = arith.constant 1 : index
    %c0_99 = arith.constant 0 : index
    %c0_100 = arith.constant 0 : index
    %64 = vector.load %arg6[%c1_98, %c0_99, %c0_100] : memref<6x6x32xbf16, #tpu.memory_space<vmem>>, vector<4x4x32xbf16>
    %c1_101 = arith.constant 1 : index
    %c1_102 = arith.constant 1 : index
    %c0_103 = arith.constant 0 : index
    %65 = vector.load %arg6[%c1_101, %c1_102, %c0_103] : memref<6x6x32xbf16, #tpu.memory_space<vmem>>, vector<4x4x32xbf16>
    %c1_104 = arith.constant 1 : index
    %c2_105 = arith.constant 2 : index
    %c0_106 = arith.constant 0 : index
    %66 = vector.load %arg6[%c1_104, %c2_105, %c0_106] : memref<6x6x32xbf16, #tpu.memory_space<vmem>>, vector<4x4x32xbf16>
    %c2_107 = arith.constant 2 : index
    %c0_108 = arith.constant 0 : index
    %c0_109 = arith.constant 0 : index
    %67 = vector.load %arg6[%c2_107, %c0_108, %c0_109] : memref<6x6x32xbf16, #tpu.memory_space<vmem>>, vector<4x4x32xbf16>
    %c2_110 = arith.constant 2 : index
    %c1_111 = arith.constant 1 : index
    %c0_112 = arith.constant 0 : index
    %68 = vector.load %arg6[%c2_110, %c1_111, %c0_112] : memref<6x6x32xbf16, #tpu.memory_space<vmem>>, vector<4x4x32xbf16>
    %c2_113 = arith.constant 2 : index
    %c2_114 = arith.constant 2 : index
    %c0_115 = arith.constant 0 : index
    %69 = vector.load %arg6[%c2_113, %c2_114, %c0_115] : memref<6x6x32xbf16, #tpu.memory_space<vmem>>, vector<4x4x32xbf16>
    %70 = tpu.concatenate %61, %62, %63, %64, %65, %66, %67, %68, %69 in 2 : vector<4x4x32xbf16>, vector<4x4x32xbf16>, vector<4x4x32xbf16>, vector<4x4x32xbf16>, vector<4x4x32xbf16>, vector<4x4x32xbf16>, vector<4x4x32xbf16>, vector<4x4x32xbf16>, vector<4x4x32xbf16> -> vector<4x4x288xbf16>
    %71 = vector.shape_cast %70 : vector<4x4x288xbf16> to vector<16x288xbf16>
    %c2_116 = arith.constant 2 : index
    %c0_117 = arith.constant 0 : index
    %c0_118 = arith.constant 0 : index
    %72 = vector.load %arg2[%c2_116, %c0_117, %c0_118] : memref<8x288x32xbf16, #tpu.memory_space<vmem>>, vector<1x288x32xbf16>
    %73 = vector.shape_cast %72 : vector<1x288x32xbf16> to vector<288x32xbf16>
    %cst_119 = arith.constant dense<0.000000e+00> : vector<16x32xf32>
    %74 = tpu.matmul %71, %73, %cst_119 {dimension_numbers = #tpu.dot_dimension_numbers<[1], [0], [0], [1], [0, 0, 1, 1], [], []>} : vector<16x288xbf16>, vector<288x32xbf16>, vector<16x32xf32> -> vector<16x32xf32>
    %c2_120 = arith.constant 2 : index
    %c0_121 = arith.constant 0 : index
    %c0_122 = arith.constant 0 : index
    %75 = vector.load %arg3[%c2_120, %c0_121, %c0_122] : memref<8x1x32xf32, #tpu.memory_space<vmem>>, vector<1x1x32xf32>
    %76 = vector.shape_cast %75 : vector<1x1x32xf32> to vector<1x32xf32>
    %77 = vector.broadcast %76 : vector<1x32xf32> to vector<16x32xf32>
    %78 = arith.addf %74, %77 : vector<16x32xf32>
    %cst_123 = arith.constant 0.000000e+00 : f32
    %79 = vector.broadcast %cst_123 : f32 to vector<16x32xf32>
    %80 = arith.cmpf ogt, %78, %79 : vector<16x32xf32>
    %c2_124 = arith.constant 2 : index
    %c0_125 = arith.constant 0 : index
    %c0_126 = arith.constant 0 : index
    %81 = vector.load %arg4[%c2_124, %c0_125, %c0_126] : memref<8x1x32xf32, #tpu.memory_space<vmem>>, vector<1x1x32xf32>
    %82 = vector.shape_cast %81 : vector<1x1x32xf32> to vector<1x32xf32>
    %83 = vector.broadcast %82 : vector<1x32xf32> to vector<16x32xf32>
    %84 = arith.mulf %83, %78 : vector<16x32xf32>
    %85 = arith.select %80, %78, %84 : vector<16x32xi1>, vector<16x32xf32>
    %86 = vector.shape_cast %85 : vector<16x32xf32> to vector<4x4x32xf32>
    %87 = arith.truncf %86 : vector<4x4x32xf32> to vector<4x4x32xbf16>
    %c1_127 = arith.constant 1 : index
    %c1_128 = arith.constant 1 : index
    %c0_129 = arith.constant 0 : index
    %88 = vector.load %arg6[%c1_127, %c1_128, %c0_129] : memref<6x6x32xbf16, #tpu.memory_space<vmem>>, vector<4x4x32xbf16>
    tpu.vector_store %arg6[%c1_127, %c1_128, %c0_129], %87 {strides = array<i32>} : memref<6x6x32xbf16, #tpu.memory_space<vmem>>, vector<4x4x32xbf16>,
    %c0_130 = arith.constant 0 : index
    %c0_131 = arith.constant 0 : index
    %c0_132 = arith.constant 0 : index
    %89 = vector.load %arg6[%c0_130, %c0_131, %c0_132] : memref<6x6x32xbf16, #tpu.memory_space<vmem>>, vector<4x4x32xbf16>
    %c0_133 = arith.constant 0 : index
    %c1_134 = arith.constant 1 : index
    %c0_135 = arith.constant 0 : index
    %90 = vector.load %arg6[%c0_133, %c1_134, %c0_135] : memref<6x6x32xbf16, #tpu.memory_space<vmem>>, vector<4x4x32xbf16>
    %c0_136 = arith.constant 0 : index
    %c2_137 = arith.constant 2 : index
    %c0_138 = arith.constant 0 : index
    %91 = vector.load %arg6[%c0_136, %c2_137, %c0_138] : memref<6x6x32xbf16, #tpu.memory_space<vmem>>, vector<4x4x32xbf16>
    %c1_139 = arith.constant 1 : index
    %c0_140 = arith.constant 0 : index
    %c0_141 = arith.constant 0 : index
    %92 = vector.load %arg6[%c1_139, %c0_140, %c0_141] : memref<6x6x32xbf16, #tpu.memory_space<vmem>>, vector<4x4x32xbf16>
    %c1_142 = arith.constant 1 : index
    %c1_143 = arith.constant 1 : index
    %c0_144 = arith.constant 0 : index
    %93 = vector.load %arg6[%c1_142, %c1_143, %c0_144] : memref<6x6x32xbf16, #tpu.memory_space<vmem>>, vector<4x4x32xbf16>
    %c1_145 = arith.constant 1 : index
    %c2_146 = arith.constant 2 : index
    %c0_147 = arith.constant 0 : index
    %94 = vector.load %arg6[%c1_145, %c2_146, %c0_147] : memref<6x6x32xbf16, #tpu.memory_space<vmem>>, vector<4x4x32xbf16>
    %c2_148 = arith.constant 2 : index
    %c0_149 = arith.constant 0 : index
    %c0_150 = arith.constant 0 : index
    %95 = vector.load %arg6[%c2_148, %c0_149, %c0_150] : memref<6x6x32xbf16, #tpu.memory_space<vmem>>, vector<4x4x32xbf16>
    %c2_151 = arith.constant 2 : index
    %c1_152 = arith.constant 1 : index
    %c0_153 = arith.constant 0 : index
    %96 = vector.load %arg6[%c2_151, %c1_152, %c0_153] : memref<6x6x32xbf16, #tpu.memory_space<vmem>>, vector<4x4x32xbf16>
    %c2_154 = arith.constant 2 : index
    %c2_155 = arith.constant 2 : index
    %c0_156 = arith.constant 0 : index
    %97 = vector.load %arg6[%c2_154, %c2_155, %c0_156] : memref<6x6x32xbf16, #tpu.memory_space<vmem>>, vector<4x4x32xbf16>
    %98 = tpu.concatenate %89, %90, %91, %92, %93, %94, %95, %96, %97 in 2 : vector<4x4x32xbf16>, vector<4x4x32xbf16>, vector<4x4x32xbf16>, vector<4x4x32xbf16>, vector<4x4x32xbf16>, vector<4x4x32xbf16>, vector<4x4x32xbf16>, vector<4x4x32xbf16>, vector<4x4x32xbf16> -> vector<4x4x288xbf16>
    %99 = vector.shape_cast %98 : vector<4x4x288xbf16> to vector<16x288xbf16>
    %c3 = arith.constant 3 : index
    %c0_157 = arith.constant 0 : index
    %c0_158 = arith.constant 0 : index
    %100 = vector.load %arg2[%c3, %c0_157, %c0_158] : memref<8x288x32xbf16, #tpu.memory_space<vmem>>, vector<1x288x32xbf16>
    %101 = vector.shape_cast %100 : vector<1x288x32xbf16> to vector<288x32xbf16>
    %cst_159 = arith.constant dense<0.000000e+00> : vector<16x32xf32>
    %102 = tpu.matmul %99, %101, %cst_159 {dimension_numbers = #tpu.dot_dimension_numbers<[1], [0], [0], [1], [0, 0, 1, 1], [], []>} : vector<16x288xbf16>, vector<288x32xbf16>, vector<16x32xf32> -> vector<16x32xf32>
    %c3_160 = arith.constant 3 : index
    %c0_161 = arith.constant 0 : index
    %c0_162 = arith.constant 0 : index
    %103 = vector.load %arg3[%c3_160, %c0_161, %c0_162] : memref<8x1x32xf32, #tpu.memory_space<vmem>>, vector<1x1x32xf32>
    %104 = vector.shape_cast %103 : vector<1x1x32xf32> to vector<1x32xf32>
    %105 = vector.broadcast %104 : vector<1x32xf32> to vector<16x32xf32>
    %106 = arith.addf %102, %105 : vector<16x32xf32>
    %cst_163 = arith.constant 0.000000e+00 : f32
    %107 = vector.broadcast %cst_163 : f32 to vector<16x32xf32>
    %108 = arith.cmpf ogt, %106, %107 : vector<16x32xf32>
    %c3_164 = arith.constant 3 : index
    %c0_165 = arith.constant 0 : index
    %c0_166 = arith.constant 0 : index
    %109 = vector.load %arg4[%c3_164, %c0_165, %c0_166] : memref<8x1x32xf32, #tpu.memory_space<vmem>>, vector<1x1x32xf32>
    %110 = vector.shape_cast %109 : vector<1x1x32xf32> to vector<1x32xf32>
    %111 = vector.broadcast %110 : vector<1x32xf32> to vector<16x32xf32>
    %112 = arith.mulf %111, %106 : vector<16x32xf32>
    %113 = arith.select %108, %106, %112 : vector<16x32xi1>, vector<16x32xf32>
    %114 = vector.shape_cast %113 : vector<16x32xf32> to vector<4x4x32xf32>
    %115 = arith.truncf %114 : vector<4x4x32xf32> to vector<4x4x32xbf16>
    %c1_167 = arith.constant 1 : index
    %c1_168 = arith.constant 1 : index
    %c0_169 = arith.constant 0 : index
    %116 = vector.load %arg6[%c1_167, %c1_168, %c0_169] : memref<6x6x32xbf16, #tpu.memory_space<vmem>>, vector<4x4x32xbf16>
    tpu.vector_store %arg6[%c1_167, %c1_168, %c0_169], %115 {strides = array<i32>} : memref<6x6x32xbf16, #tpu.memory_space<vmem>>, vector<4x4x32xbf16>,
    %c0_170 = arith.constant 0 : index
    %c0_171 = arith.constant 0 : index
    %c0_172 = arith.constant 0 : index
    %117 = vector.load %arg6[%c0_170, %c0_171, %c0_172] : memref<6x6x32xbf16, #tpu.memory_space<vmem>>, vector<4x4x32xbf16>
    %c0_173 = arith.constant 0 : index
    %c1_174 = arith.constant 1 : index
    %c0_175 = arith.constant 0 : index
    %118 = vector.load %arg6[%c0_173, %c1_174, %c0_175] : memref<6x6x32xbf16, #tpu.memory_space<vmem>>, vector<4x4x32xbf16>
    %c0_176 = arith.constant 0 : index
    %c2_177 = arith.constant 2 : index
    %c0_178 = arith.constant 0 : index
    %119 = vector.load %arg6[%c0_176, %c2_177, %c0_178] : memref<6x6x32xbf16, #tpu.memory_space<vmem>>, vector<4x4x32xbf16>
    %c1_179 = arith.constant 1 : index
    %c0_180 = arith.constant 0 : index
    %c0_181 = arith.constant 0 : index
    %120 = vector.load %arg6[%c1_179, %c0_180, %c0_181] : memref<6x6x32xbf16, #tpu.memory_space<vmem>>, vector<4x4x32xbf16>
    %c1_182 = arith.constant 1 : index
    %c1_183 = arith.constant 1 : index
    %c0_184 = arith.constant 0 : index
    %121 = vector.load %arg6[%c1_182, %c1_183, %c0_184] : memref<6x6x32xbf16, #tpu.memory_space<vmem>>, vector<4x4x32xbf16>
    %c1_185 = arith.constant 1 : index
    %c2_186 = arith.constant 2 : index
    %c0_187 = arith.constant 0 : index
    %122 = vector.load %arg6[%c1_185, %c2_186, %c0_187] : memref<6x6x32xbf16, #tpu.memory_space<vmem>>, vector<4x4x32xbf16>
    %c2_188 = arith.constant 2 : index
    %c0_189 = arith.constant 0 : index
    %c0_190 = arith.constant 0 : index
    %123 = vector.load %arg6[%c2_188, %c0_189, %c0_190] : memref<6x6x32xbf16, #tpu.memory_space<vmem>>, vector<4x4x32xbf16>
    %c2_191 = arith.constant 2 : index
    %c1_192 = arith.constant 1 : index
    %c0_193 = arith.constant 0 : index
    %124 = vector.load %arg6[%c2_191, %c1_192, %c0_193] : memref<6x6x32xbf16, #tpu.memory_space<vmem>>, vector<4x4x32xbf16>
    %c2_194 = arith.constant 2 : index
    %c2_195 = arith.constant 2 : index
    %c0_196 = arith.constant 0 : index
    %125 = vector.load %arg6[%c2_194, %c2_195, %c0_196] : memref<6x6x32xbf16, #tpu.memory_space<vmem>>, vector<4x4x32xbf16>
    %126 = tpu.concatenate %117, %118, %119, %120, %121, %122, %123, %124, %125 in 2 : vector<4x4x32xbf16>, vector<4x4x32xbf16>, vector<4x4x32xbf16>, vector<4x4x32xbf16>, vector<4x4x32xbf16>, vector<4x4x32xbf16>, vector<4x4x32xbf16>, vector<4x4x32xbf16>, vector<4x4x32xbf16> -> vector<4x4x288xbf16>
    %127 = vector.shape_cast %126 : vector<4x4x288xbf16> to vector<16x288xbf16>
    %c4 = arith.constant 4 : index
    %c0_197 = arith.constant 0 : index
    %c0_198 = arith.constant 0 : index
    %128 = vector.load %arg2[%c4, %c0_197, %c0_198] : memref<8x288x32xbf16, #tpu.memory_space<vmem>>, vector<1x288x32xbf16>
    %129 = vector.shape_cast %128 : vector<1x288x32xbf16> to vector<288x32xbf16>
    %cst_199 = arith.constant dense<0.000000e+00> : vector<16x32xf32>
    %130 = tpu.matmul %127, %129, %cst_199 {dimension_numbers = #tpu.dot_dimension_numbers<[1], [0], [0], [1], [0, 0, 1, 1], [], []>} : vector<16x288xbf16>, vector<288x32xbf16>, vector<16x32xf32> -> vector<16x32xf32>
    %c4_200 = arith.constant 4 : index
    %c0_201 = arith.constant 0 : index
    %c0_202 = arith.constant 0 : index
    %131 = vector.load %arg3[%c4_200, %c0_201, %c0_202] : memref<8x1x32xf32, #tpu.memory_space<vmem>>, vector<1x1x32xf32>
    %132 = vector.shape_cast %131 : vector<1x1x32xf32> to vector<1x32xf32>
    %133 = vector.broadcast %132 : vector<1x32xf32> to vector<16x32xf32>
    %134 = arith.addf %130, %133 : vector<16x32xf32>
    %cst_203 = arith.constant 0.000000e+00 : f32
    %135 = vector.broadcast %cst_203 : f32 to vector<16x32xf32>
    %136 = arith.cmpf ogt, %134, %135 : vector<16x32xf32>
    %c4_204 = arith.constant 4 : index
    %c0_205 = arith.constant 0 : index
    %c0_206 = arith.constant 0 : index
    %137 = vector.load %arg4[%c4_204, %c0_205, %c0_206] : memref<8x1x32xf32, #tpu.memory_space<vmem>>, vector<1x1x32xf32>
    %138 = vector.shape_cast %137 : vector<1x1x32xf32> to vector<1x32xf32>
    %139 = vector.broadcast %138 : vector<1x32xf32> to vector<16x32xf32>
    %140 = arith.mulf %139, %134 : vector<16x32xf32>
    %141 = arith.select %136, %134, %140 : vector<16x32xi1>, vector<16x32xf32>
    %142 = vector.shape_cast %141 : vector<16x32xf32> to vector<4x4x32xf32>
    %143 = arith.truncf %142 : vector<4x4x32xf32> to vector<4x4x32xbf16>
    %c1_207 = arith.constant 1 : index
    %c1_208 = arith.constant 1 : index
    %c0_209 = arith.constant 0 : index
    %144 = vector.load %arg6[%c1_207, %c1_208, %c0_209] : memref<6x6x32xbf16, #tpu.memory_space<vmem>>, vector<4x4x32xbf16>
    tpu.vector_store %arg6[%c1_207, %c1_208, %c0_209], %143 {strides = array<i32>} : memref<6x6x32xbf16, #tpu.memory_space<vmem>>, vector<4x4x32xbf16>,
    %c0_210 = arith.constant 0 : index
    %c0_211 = arith.constant 0 : index
    %c0_212 = arith.constant 0 : index
    %145 = vector.load %arg6[%c0_210, %c0_211, %c0_212] : memref<6x6x32xbf16, #tpu.memory_space<vmem>>, vector<4x4x32xbf16>
    %c0_213 = arith.constant 0 : index
    %c1_214 = arith.constant 1 : index
    %c0_215 = arith.constant 0 : index
    %146 = vector.load %arg6[%c0_213, %c1_214, %c0_215] : memref<6x6x32xbf16, #tpu.memory_space<vmem>>, vector<4x4x32xbf16>
    %c0_216 = arith.constant 0 : index
    %c2_217 = arith.constant 2 : index
    %c0_218 = arith.constant 0 : index
    %147 = vector.load %arg6[%c0_216, %c2_217, %c0_218] : memref<6x6x32xbf16, #tpu.memory_space<vmem>>, vector<4x4x32xbf16>
    %c1_219 = arith.constant 1 : index
    %c0_220 = arith.constant 0 : index
    %c0_221 = arith.constant 0 : index
    %148 = vector.load %arg6[%c1_219, %c0_220, %c0_221] : memref<6x6x32xbf16, #tpu.memory_space<vmem>>, vector<4x4x32xbf16>
    %c1_222 = arith.constant 1 : index
    %c1_223 = arith.constant 1 : index
    %c0_224 = arith.constant 0 : index
    %149 = vector.load %arg6[%c1_222, %c1_223, %c0_224] : memref<6x6x32xbf16, #tpu.memory_space<vmem>>, vector<4x4x32xbf16>
    %c1_225 = arith.constant 1 : index
    %c2_226 = arith.constant 2 : index
    %c0_227 = arith.constant 0 : index
    %150 = vector.load %arg6[%c1_225, %c2_226, %c0_227] : memref<6x6x32xbf16, #tpu.memory_space<vmem>>, vector<4x4x32xbf16>
    %c2_228 = arith.constant 2 : index
    %c0_229 = arith.constant 0 : index
    %c0_230 = arith.constant 0 : index
    %151 = vector.load %arg6[%c2_228, %c0_229, %c0_230] : memref<6x6x32xbf16, #tpu.memory_space<vmem>>, vector<4x4x32xbf16>
    %c2_231 = arith.constant 2 : index
    %c1_232 = arith.constant 1 : index
    %c0_233 = arith.constant 0 : index
    %152 = vector.load %arg6[%c2_231, %c1_232, %c0_233] : memref<6x6x32xbf16, #tpu.memory_space<vmem>>, vector<4x4x32xbf16>
    %c2_234 = arith.constant 2 : index
    %c2_235 = arith.constant 2 : index
    %c0_236 = arith.constant 0 : index
    %153 = vector.load %arg6[%c2_234, %c2_235, %c0_236] : memref<6x6x32xbf16, #tpu.memory_space<vmem>>, vector<4x4x32xbf16>
    %154 = tpu.concatenate %145, %146, %147, %148, %149, %150, %151, %152, %153 in 2 : vector<4x4x32xbf16>, vector<4x4x32xbf16>, vector<4x4x32xbf16>, vector<4x4x32xbf16>, vector<4x4x32xbf16>, vector<4x4x32xbf16>, vector<4x4x32xbf16>, vector<4x4x32xbf16>, vector<4x4x32xbf16> -> vector<4x4x288xbf16>
    %155 = vector.shape_cast %154 : vector<4x4x288xbf16> to vector<16x288xbf16>
    %c5 = arith.constant 5 : index
    %c0_237 = arith.constant 0 : index
    %c0_238 = arith.constant 0 : index
    %156 = vector.load %arg2[%c5, %c0_237, %c0_238] : memref<8x288x32xbf16, #tpu.memory_space<vmem>>, vector<1x288x32xbf16>
    %157 = vector.shape_cast %156 : vector<1x288x32xbf16> to vector<288x32xbf16>
    %cst_239 = arith.constant dense<0.000000e+00> : vector<16x32xf32>
    %158 = tpu.matmul %155, %157, %cst_239 {dimension_numbers = #tpu.dot_dimension_numbers<[1], [0], [0], [1], [0, 0, 1, 1], [], []>} : vector<16x288xbf16>, vector<288x32xbf16>, vector<16x32xf32> -> vector<16x32xf32>
    %c5_240 = arith.constant 5 : index
    %c0_241 = arith.constant 0 : index
    %c0_242 = arith.constant 0 : index
    %159 = vector.load %arg3[%c5_240, %c0_241, %c0_242] : memref<8x1x32xf32, #tpu.memory_space<vmem>>, vector<1x1x32xf32>
    %160 = vector.shape_cast %159 : vector<1x1x32xf32> to vector<1x32xf32>
    %161 = vector.broadcast %160 : vector<1x32xf32> to vector<16x32xf32>
    %162 = arith.addf %158, %161 : vector<16x32xf32>
    %cst_243 = arith.constant 0.000000e+00 : f32
    %163 = vector.broadcast %cst_243 : f32 to vector<16x32xf32>
    %164 = arith.cmpf ogt, %162, %163 : vector<16x32xf32>
    %c5_244 = arith.constant 5 : index
    %c0_245 = arith.constant 0 : index
    %c0_246 = arith.constant 0 : index
    %165 = vector.load %arg4[%c5_244, %c0_245, %c0_246] : memref<8x1x32xf32, #tpu.memory_space<vmem>>, vector<1x1x32xf32>
    %166 = vector.shape_cast %165 : vector<1x1x32xf32> to vector<1x32xf32>
    %167 = vector.broadcast %166 : vector<1x32xf32> to vector<16x32xf32>
    %168 = arith.mulf %167, %162 : vector<16x32xf32>
    %169 = arith.select %164, %162, %168 : vector<16x32xi1>, vector<16x32xf32>
    %170 = vector.shape_cast %169 : vector<16x32xf32> to vector<4x4x32xf32>
    %171 = arith.truncf %170 : vector<4x4x32xf32> to vector<4x4x32xbf16>
    %c1_247 = arith.constant 1 : index
    %c1_248 = arith.constant 1 : index
    %c0_249 = arith.constant 0 : index
    %172 = vector.load %arg6[%c1_247, %c1_248, %c0_249] : memref<6x6x32xbf16, #tpu.memory_space<vmem>>, vector<4x4x32xbf16>
    tpu.vector_store %arg6[%c1_247, %c1_248, %c0_249], %171 {strides = array<i32>} : memref<6x6x32xbf16, #tpu.memory_space<vmem>>, vector<4x4x32xbf16>,
    %c0_250 = arith.constant 0 : index
    %c0_251 = arith.constant 0 : index
    %c0_252 = arith.constant 0 : index
    %173 = vector.load %arg6[%c0_250, %c0_251, %c0_252] : memref<6x6x32xbf16, #tpu.memory_space<vmem>>, vector<4x4x32xbf16>
    %c0_253 = arith.constant 0 : index
    %c1_254 = arith.constant 1 : index
    %c0_255 = arith.constant 0 : index
    %174 = vector.load %arg6[%c0_253, %c1_254, %c0_255] : memref<6x6x32xbf16, #tpu.memory_space<vmem>>, vector<4x4x32xbf16>
    %c0_256 = arith.constant 0 : index
    %c2_257 = arith.constant 2 : index
    %c0_258 = arith.constant 0 : index
    %175 = vector.load %arg6[%c0_256, %c2_257, %c0_258] : memref<6x6x32xbf16, #tpu.memory_space<vmem>>, vector<4x4x32xbf16>
    %c1_259 = arith.constant 1 : index
    %c0_260 = arith.constant 0 : index
    %c0_261 = arith.constant 0 : index
    %176 = vector.load %arg6[%c1_259, %c0_260, %c0_261] : memref<6x6x32xbf16, #tpu.memory_space<vmem>>, vector<4x4x32xbf16>
    %c1_262 = arith.constant 1 : index
    %c1_263 = arith.constant 1 : index
    %c0_264 = arith.constant 0 : index
    %177 = vector.load %arg6[%c1_262, %c1_263, %c0_264] : memref<6x6x32xbf16, #tpu.memory_space<vmem>>, vector<4x4x32xbf16>
    %c1_265 = arith.constant 1 : index
    %c2_266 = arith.constant 2 : index
    %c0_267 = arith.constant 0 : index
    %178 = vector.load %arg6[%c1_265, %c2_266, %c0_267] : memref<6x6x32xbf16, #tpu.memory_space<vmem>>, vector<4x4x32xbf16>
    %c2_268 = arith.constant 2 : index
    %c0_269 = arith.constant 0 : index
    %c0_270 = arith.constant 0 : index
    %179 = vector.load %arg6[%c2_268, %c0_269, %c0_270] : memref<6x6x32xbf16, #tpu.memory_space<vmem>>, vector<4x4x32xbf16>
    %c2_271 = arith.constant 2 : index
    %c1_272 = arith.constant 1 : index
    %c0_273 = arith.constant 0 : index
    %180 = vector.load %arg6[%c2_271, %c1_272, %c0_273] : memref<6x6x32xbf16, #tpu.memory_space<vmem>>, vector<4x4x32xbf16>
    %c2_274 = arith.constant 2 : index
    %c2_275 = arith.constant 2 : index
    %c0_276 = arith.constant 0 : index
    %181 = vector.load %arg6[%c2_274, %c2_275, %c0_276] : memref<6x6x32xbf16, #tpu.memory_space<vmem>>, vector<4x4x32xbf16>
    %182 = tpu.concatenate %173, %174, %175, %176, %177, %178, %179, %180, %181 in 2 : vector<4x4x32xbf16>, vector<4x4x32xbf16>, vector<4x4x32xbf16>, vector<4x4x32xbf16>, vector<4x4x32xbf16>, vector<4x4x32xbf16>, vector<4x4x32xbf16>, vector<4x4x32xbf16>, vector<4x4x32xbf16> -> vector<4x4x288xbf16>
    %183 = vector.shape_cast %182 : vector<4x4x288xbf16> to vector<16x288xbf16>
    %c6 = arith.constant 6 : index
    %c0_277 = arith.constant 0 : index
    %c0_278 = arith.constant 0 : index
    %184 = vector.load %arg2[%c6, %c0_277, %c0_278] : memref<8x288x32xbf16, #tpu.memory_space<vmem>>, vector<1x288x32xbf16>
    %185 = vector.shape_cast %184 : vector<1x288x32xbf16> to vector<288x32xbf16>
    %cst_279 = arith.constant dense<0.000000e+00> : vector<16x32xf32>
    %186 = tpu.matmul %183, %185, %cst_279 {dimension_numbers = #tpu.dot_dimension_numbers<[1], [0], [0], [1], [0, 0, 1, 1], [], []>} : vector<16x288xbf16>, vector<288x32xbf16>, vector<16x32xf32> -> vector<16x32xf32>
    %c6_280 = arith.constant 6 : index
    %c0_281 = arith.constant 0 : index
    %c0_282 = arith.constant 0 : index
    %187 = vector.load %arg3[%c6_280, %c0_281, %c0_282] : memref<8x1x32xf32, #tpu.memory_space<vmem>>, vector<1x1x32xf32>
    %188 = vector.shape_cast %187 : vector<1x1x32xf32> to vector<1x32xf32>
    %189 = vector.broadcast %188 : vector<1x32xf32> to vector<16x32xf32>
    %190 = arith.addf %186, %189 : vector<16x32xf32>
    %cst_283 = arith.constant 0.000000e+00 : f32
    %191 = vector.broadcast %cst_283 : f32 to vector<16x32xf32>
    %192 = arith.cmpf ogt, %190, %191 : vector<16x32xf32>
    %c6_284 = arith.constant 6 : index
    %c0_285 = arith.constant 0 : index
    %c0_286 = arith.constant 0 : index
    %193 = vector.load %arg4[%c6_284, %c0_285, %c0_286] : memref<8x1x32xf32, #tpu.memory_space<vmem>>, vector<1x1x32xf32>
    %194 = vector.shape_cast %193 : vector<1x1x32xf32> to vector<1x32xf32>
    %195 = vector.broadcast %194 : vector<1x32xf32> to vector<16x32xf32>
    %196 = arith.mulf %195, %190 : vector<16x32xf32>
    %197 = arith.select %192, %190, %196 : vector<16x32xi1>, vector<16x32xf32>
    %198 = vector.shape_cast %197 : vector<16x32xf32> to vector<4x4x32xf32>
    %199 = arith.truncf %198 : vector<4x4x32xf32> to vector<4x4x32xbf16>
    %c1_287 = arith.constant 1 : index
    %c1_288 = arith.constant 1 : index
    %c0_289 = arith.constant 0 : index
    %200 = vector.load %arg6[%c1_287, %c1_288, %c0_289] : memref<6x6x32xbf16, #tpu.memory_space<vmem>>, vector<4x4x32xbf16>
    tpu.vector_store %arg6[%c1_287, %c1_288, %c0_289], %199 {strides = array<i32>} : memref<6x6x32xbf16, #tpu.memory_space<vmem>>, vector<4x4x32xbf16>,
    %c0_290 = arith.constant 0 : index
    %c0_291 = arith.constant 0 : index
    %c0_292 = arith.constant 0 : index
    %201 = vector.load %arg6[%c0_290, %c0_291, %c0_292] : memref<6x6x32xbf16, #tpu.memory_space<vmem>>, vector<4x4x32xbf16>
    %c0_293 = arith.constant 0 : index
    %c1_294 = arith.constant 1 : index
    %c0_295 = arith.constant 0 : index
    %202 = vector.load %arg6[%c0_293, %c1_294, %c0_295] : memref<6x6x32xbf16, #tpu.memory_space<vmem>>, vector<4x4x32xbf16>
    %c0_296 = arith.constant 0 : index
    %c2_297 = arith.constant 2 : index
    %c0_298 = arith.constant 0 : index
    %203 = vector.load %arg6[%c0_296, %c2_297, %c0_298] : memref<6x6x32xbf16, #tpu.memory_space<vmem>>, vector<4x4x32xbf16>
    %c1_299 = arith.constant 1 : index
    %c0_300 = arith.constant 0 : index
    %c0_301 = arith.constant 0 : index
    %204 = vector.load %arg6[%c1_299, %c0_300, %c0_301] : memref<6x6x32xbf16, #tpu.memory_space<vmem>>, vector<4x4x32xbf16>
    %c1_302 = arith.constant 1 : index
    %c1_303 = arith.constant 1 : index
    %c0_304 = arith.constant 0 : index
    %205 = vector.load %arg6[%c1_302, %c1_303, %c0_304] : memref<6x6x32xbf16, #tpu.memory_space<vmem>>, vector<4x4x32xbf16>
    %c1_305 = arith.constant 1 : index
    %c2_306 = arith.constant 2 : index
    %c0_307 = arith.constant 0 : index
    %206 = vector.load %arg6[%c1_305, %c2_306, %c0_307] : memref<6x6x32xbf16, #tpu.memory_space<vmem>>, vector<4x4x32xbf16>
    %c2_308 = arith.constant 2 : index
    %c0_309 = arith.constant 0 : index
    %c0_310 = arith.constant 0 : index
    %207 = vector.load %arg6[%c2_308, %c0_309, %c0_310] : memref<6x6x32xbf16, #tpu.memory_space<vmem>>, vector<4x4x32xbf16>
    %c2_311 = arith.constant 2 : index
    %c1_312 = arith.constant 1 : index
    %c0_313 = arith.constant 0 : index
    %208 = vector.load %arg6[%c2_311, %c1_312, %c0_313] : memref<6x6x32xbf16, #tpu.memory_space<vmem>>, vector<4x4x32xbf16>
    %c2_314 = arith.constant 2 : index
    %c2_315 = arith.constant 2 : index
    %c0_316 = arith.constant 0 : index
    %209 = vector.load %arg6[%c2_314, %c2_315, %c0_316] : memref<6x6x32xbf16, #tpu.memory_space<vmem>>, vector<4x4x32xbf16>
    %210 = tpu.concatenate %201, %202, %203, %204, %205, %206, %207, %208, %209 in 2 : vector<4x4x32xbf16>, vector<4x4x32xbf16>, vector<4x4x32xbf16>, vector<4x4x32xbf16>, vector<4x4x32xbf16>, vector<4x4x32xbf16>, vector<4x4x32xbf16>, vector<4x4x32xbf16>, vector<4x4x32xbf16> -> vector<4x4x288xbf16>
    %211 = vector.shape_cast %210 : vector<4x4x288xbf16> to vector<16x288xbf16>
    %c7 = arith.constant 7 : index
    %c0_317 = arith.constant 0 : index
    %c0_318 = arith.constant 0 : index
    %212 = vector.load %arg2[%c7, %c0_317, %c0_318] : memref<8x288x32xbf16, #tpu.memory_space<vmem>>, vector<1x288x32xbf16>
    %213 = vector.shape_cast %212 : vector<1x288x32xbf16> to vector<288x32xbf16>
    %cst_319 = arith.constant dense<0.000000e+00> : vector<16x32xf32>
    %214 = tpu.matmul %211, %213, %cst_319 {dimension_numbers = #tpu.dot_dimension_numbers<[1], [0], [0], [1], [0, 0, 1, 1], [], []>} : vector<16x288xbf16>, vector<288x32xbf16>, vector<16x32xf32> -> vector<16x32xf32>
    %c7_320 = arith.constant 7 : index
    %c0_321 = arith.constant 0 : index
    %c0_322 = arith.constant 0 : index
    %215 = vector.load %arg3[%c7_320, %c0_321, %c0_322] : memref<8x1x32xf32, #tpu.memory_space<vmem>>, vector<1x1x32xf32>
    %216 = vector.shape_cast %215 : vector<1x1x32xf32> to vector<1x32xf32>
    %217 = vector.broadcast %216 : vector<1x32xf32> to vector<16x32xf32>
    %218 = arith.addf %214, %217 : vector<16x32xf32>
    %cst_323 = arith.constant 0.000000e+00 : f32
    %219 = vector.broadcast %cst_323 : f32 to vector<16x32xf32>
    %220 = arith.cmpf ogt, %218, %219 : vector<16x32xf32>
    %c7_324 = arith.constant 7 : index
    %c0_325 = arith.constant 0 : index
    %c0_326 = arith.constant 0 : index
    %221 = vector.load %arg4[%c7_324, %c0_325, %c0_326] : memref<8x1x32xf32, #tpu.memory_space<vmem>>, vector<1x1x32xf32>
    %222 = vector.shape_cast %221 : vector<1x1x32xf32> to vector<1x32xf32>
    %223 = vector.broadcast %222 : vector<1x32xf32> to vector<16x32xf32>
    %224 = arith.mulf %223, %218 : vector<16x32xf32>
    %225 = arith.select %220, %218, %224 : vector<16x32xi1>, vector<16x32xf32>
    %226 = vector.shape_cast %225 : vector<16x32xf32> to vector<4x4x32xf32>
    %227 = arith.extf %3 : vector<4x4x32xbf16> to vector<4x4x32xf32>
    %228 = arith.addf %226, %227 : vector<4x4x32xf32>
    %229 = arith.truncf %228 : vector<4x4x32xf32> to vector<4x4x32xbf16>
    %c0_327 = arith.constant 0 : index
    %c0_328 = arith.constant 0 : index
    %c0_329 = arith.constant 0 : index
    %c0_330 = arith.constant 0 : index
    %230 = vector.load %arg5[%c0_327, %c0_328, %c0_329, %c0_330] : memref<1x4x4x32xbf16, #tpu.memory_space<vmem>>, vector<1x4x4x32xbf16>
    %231 = vector.shape_cast %230 : vector<1x4x4x32xbf16> to vector<4x4x32xbf16>
    %232 = vector.shape_cast %229 : vector<4x4x32xbf16> to vector<1x4x4x32xbf16>
    tpu.vector_store %arg5[%c0_327, %c0_328, %c0_329, %c0_330], %232 {strides = array<i32>} : memref<1x4x4x32xbf16, #tpu.memory_space<vmem>>, vector<1x4x4x32xbf16>,
    return
  }
  func.func @transform_0(%arg0: i32) -> (i32, i32, i32, i32) {
    %c0_i32 = arith.constant 0 : i32
    %c0_i32_0 = arith.constant 0 : i32
    %c0_i32_1 = arith.constant 0 : i32
    %c0_i32_2 = arith.constant 0 : i32
    return %arg0, %c0_i32, %c0_i32_0, %c0_i32_1 : i32, i32, i32, i32
  }
  func.func @transform_1(%arg0: i32) -> (i32, i32, i32) {
    %c0_i32 = arith.constant 0 : i32
    %c0_i32_0 = arith.constant 0 : i32
    %c0_i32_1 = arith.constant 0 : i32
    %c0_i32_2 = arith.constant 0 : i32
    return %c0_i32, %c0_i32_0, %c0_i32_1 : i32, i32, i32
  }
  func.func @transform_2(%arg0: i32) -> (i32, i32, i32) {
    %c0_i32 = arith.constant 0 : i32
    %c0_i32_0 = arith.constant 0 : i32
    %c0_i32_1 = arith.constant 0 : i32
    %c0_i32_2 = arith.constant 0 : i32
    return %c0_i32, %c0_i32_0, %c0_i32_1 : i32, i32, i32
  }
  func.func @transform_3(%arg0: i32) -> (i32, i32, i32) {
    %c0_i32 = arith.constant 0 : i32
    %c0_i32_0 = arith.constant 0 : i32
    %c0_i32_1 = arith.constant 0 : i32
    %c0_i32_2 = arith.constant 0 : i32
    return %c0_i32, %c0_i32_0, %c0_i32_1 : i32, i32, i32
  }
  func.func @transform_4(%arg0: i32) -> (i32, i32, i32, i32) {
    %c0_i32 = arith.constant 0 : i32
    %c0_i32_0 = arith.constant 0 : i32
    %c0_i32_1 = arith.constant 0 : i32
    %c0_i32_2 = arith.constant 0 : i32
    return %arg0, %c0_i32, %c0_i32_0, %c0_i32_1 : i32, i32, i32, i32
  }
}

module attributes {stable_mosaic.version = 11 : i64} {
  func.func @kernel(%arg0: i32, %arg1: i32, %arg2: memref<1x4x6x32xbf16, #tpu.memory_space<vmem>>, %arg3: memref<1x2x6x32xbf16, #tpu.memory_space<vmem>>, %arg4: memref<288x20xbf16, #tpu.memory_space<vmem>>, %arg5: memref<1x20xf32, #tpu.memory_space<vmem>>, %arg6: memref<1x20xf32, #tpu.memory_space<vmem>>, %arg7: memref<1x16x20xf32, #tpu.memory_space<vmem>>) attributes {dimension_semantics = [#tpu.dimension_semantics<parallel>, #tpu.dimension_semantics<parallel>], iteration_bounds = array<i64: 2, 1>, scalar_prefetch = 0 : i64, scratch_operands = 0 : i64, tpu.core_type = #tpu.core_type<tc>, window_params = [{transform_indices = @transform_0, window_bounds = array<i64: 1, 4, 6, 32>}, {transform_indices = @transform_1, window_bounds = array<i64: 1, 2, 6, 32>}, {pipeline_mode = #tpu.pipeline_mode<synchronous>, transform_indices = @transform_2, window_bounds = array<i64: 288, 20>}, {pipeline_mode = #tpu.pipeline_mode<synchronous>, transform_indices = @transform_3, window_bounds = array<i64: 1, 20>}, {pipeline_mode = #tpu.pipeline_mode<synchronous>, transform_indices = @transform_4, window_bounds = array<i64: 1, 20>}, {transform_indices = @transform_5, window_bounds = array<i64: 1, 16, 20>}]} {
    %c0 = arith.constant 0 : index
    %c0_0 = arith.constant 0 : index
    %c0_1 = arith.constant 0 : index
    %c0_2 = arith.constant 0 : index
    %0 = vector.load %arg2[%c0, %c0_0, %c0_1, %c0_2] : memref<1x4x6x32xbf16, #tpu.memory_space<vmem>>, vector<1x4x6x32xbf16>
    %1 = vector.shape_cast %0 : vector<1x4x6x32xbf16> to vector<4x6x32xbf16>
    %c0_3 = arith.constant 0 : index
    %c0_4 = arith.constant 0 : index
    %c0_5 = arith.constant 0 : index
    %c0_6 = arith.constant 0 : index
    %2 = vector.load %arg3[%c0_3, %c0_4, %c0_5, %c0_6] : memref<1x2x6x32xbf16, #tpu.memory_space<vmem>>, vector<1x2x6x32xbf16>
    %3 = vector.shape_cast %2 : vector<1x2x6x32xbf16> to vector<2x6x32xbf16>
    %4 = tpu.concatenate %1, %3 in 0 : vector<4x6x32xbf16>, vector<2x6x32xbf16> -> vector<6x6x32xbf16>
    %5 = vector.extract_strided_slice %4 {offsets = [0, 0, 0], sizes = [4, 4, 32], strides = [1, 1, 1]} : vector<6x6x32xbf16> to vector<4x4x32xbf16>
    %6 = vector.extract_strided_slice %4 {offsets = [0, 1, 0], sizes = [4, 4, 32], strides = [1, 1, 1]} : vector<6x6x32xbf16> to vector<4x4x32xbf16>
    %7 = vector.extract_strided_slice %4 {offsets = [0, 2, 0], sizes = [4, 4, 32], strides = [1, 1, 1]} : vector<6x6x32xbf16> to vector<4x4x32xbf16>
    %8 = vector.extract_strided_slice %4 {offsets = [1, 0, 0], sizes = [4, 4, 32], strides = [1, 1, 1]} : vector<6x6x32xbf16> to vector<4x4x32xbf16>
    %9 = vector.extract_strided_slice %4 {offsets = [1, 1, 0], sizes = [4, 4, 32], strides = [1, 1, 1]} : vector<6x6x32xbf16> to vector<4x4x32xbf16>
    %10 = vector.extract_strided_slice %4 {offsets = [1, 2, 0], sizes = [4, 4, 32], strides = [1, 1, 1]} : vector<6x6x32xbf16> to vector<4x4x32xbf16>
    %11 = vector.extract_strided_slice %4 {offsets = [2, 0, 0], sizes = [4, 4, 32], strides = [1, 1, 1]} : vector<6x6x32xbf16> to vector<4x4x32xbf16>
    %12 = vector.extract_strided_slice %4 {offsets = [2, 1, 0], sizes = [4, 4, 32], strides = [1, 1, 1]} : vector<6x6x32xbf16> to vector<4x4x32xbf16>
    %13 = vector.extract_strided_slice %4 {offsets = [2, 2, 0], sizes = [4, 4, 32], strides = [1, 1, 1]} : vector<6x6x32xbf16> to vector<4x4x32xbf16>
    %14 = tpu.concatenate %5, %6, %7, %8, %9, %10, %11, %12, %13 in 2 : vector<4x4x32xbf16>, vector<4x4x32xbf16>, vector<4x4x32xbf16>, vector<4x4x32xbf16>, vector<4x4x32xbf16>, vector<4x4x32xbf16>, vector<4x4x32xbf16>, vector<4x4x32xbf16>, vector<4x4x32xbf16> -> vector<4x4x288xbf16>
    %15 = vector.shape_cast %14 : vector<4x4x288xbf16> to vector<16x288xbf16>
    %c0_7 = arith.constant 0 : index
    %c0_8 = arith.constant 0 : index
    %16 = vector.load %arg4[%c0_7, %c0_8] : memref<288x20xbf16, #tpu.memory_space<vmem>>, vector<288x20xbf16>
    %cst = arith.constant dense<0.000000e+00> : vector<16x20xf32>
    %17 = tpu.matmul %15, %16, %cst {dimension_numbers = #tpu.dot_dimension_numbers<[1], [0], [0], [1], [0, 0, 1, 1], [], []>} : vector<16x288xbf16>, vector<288x20xbf16>, vector<16x20xf32> -> vector<16x20xf32>
    %c0_9 = arith.constant 0 : index
    %c0_10 = arith.constant 0 : index
    %18 = vector.load %arg5[%c0_9, %c0_10] : memref<1x20xf32, #tpu.memory_space<vmem>>, vector<1x20xf32>
    %19 = vector.broadcast %18 : vector<1x20xf32> to vector<16x20xf32>
    %20 = arith.addf %17, %19 : vector<16x20xf32>
    %cst_11 = arith.constant 0.000000e+00 : f32
    %21 = vector.broadcast %cst_11 : f32 to vector<16x20xf32>
    %22 = arith.cmpf ogt, %20, %21 : vector<16x20xf32>
    %c0_12 = arith.constant 0 : index
    %c0_13 = arith.constant 0 : index
    %23 = vector.load %arg6[%c0_12, %c0_13] : memref<1x20xf32, #tpu.memory_space<vmem>>, vector<1x20xf32>
    %24 = vector.broadcast %23 : vector<1x20xf32> to vector<16x20xf32>
    %25 = arith.mulf %24, %20 : vector<16x20xf32>
    %26 = arith.select %22, %20, %25 : vector<16x20xi1>, vector<16x20xf32>
    %c0_14 = arith.constant 0 : index
    %c0_15 = arith.constant 0 : index
    %c0_16 = arith.constant 0 : index
    %27 = vector.load %arg7[%c0_14, %c0_15, %c0_16] : memref<1x16x20xf32, #tpu.memory_space<vmem>>, vector<1x16x20xf32>
    %28 = vector.shape_cast %27 : vector<1x16x20xf32> to vector<16x20xf32>
    %29 = vector.shape_cast %26 : vector<16x20xf32> to vector<1x16x20xf32>
    tpu.vector_store %arg7[%c0_14, %c0_15, %c0_16], %29 {strides = array<i32>} : memref<1x16x20xf32, #tpu.memory_space<vmem>>, vector<1x16x20xf32>,
    return
  }
  func.func @transform_0(%arg0: i32, %arg1: i32) -> (i32, i32, i32, i32) {
    %c0_i32 = arith.constant 0 : i32
    %c0_i32_0 = arith.constant 0 : i32
    %c0_i32_1 = arith.constant 0 : i32
    return %arg0, %arg1, %c0_i32, %c0_i32_0 : i32, i32, i32, i32
  }
  func.func @transform_1(%arg0: i32, %arg1: i32) -> (i32, i32, i32, i32) {
    %c1_i32 = arith.constant 1 : i32
    %0 = arith.addi %arg1, %c1_i32 : i32
    %c2_i32 = arith.constant 2 : i32
    %1 = arith.muli %0, %c2_i32 : i32
    %c0_i32 = arith.constant 0 : i32
    %c0_i32_0 = arith.constant 0 : i32
    %c0_i32_1 = arith.constant 0 : i32
    return %arg0, %1, %c0_i32, %c0_i32_0 : i32, i32, i32, i32
  }
  func.func @transform_2(%arg0: i32, %arg1: i32) -> (i32, i32) {
    %c0_i32 = arith.constant 0 : i32
    %c0_i32_0 = arith.constant 0 : i32
    %c0_i32_1 = arith.constant 0 : i32
    return %c0_i32, %c0_i32_0 : i32, i32
  }
  func.func @transform_3(%arg0: i32, %arg1: i32) -> (i32, i32) {
    %c0_i32 = arith.constant 0 : i32
    %c0_i32_0 = arith.constant 0 : i32
    %c0_i32_1 = arith.constant 0 : i32
    return %c0_i32, %c0_i32_0 : i32, i32
  }
  func.func @transform_4(%arg0: i32, %arg1: i32) -> (i32, i32) {
    %c0_i32 = arith.constant 0 : i32
    %c0_i32_0 = arith.constant 0 : i32
    %c0_i32_1 = arith.constant 0 : i32
    return %c0_i32, %c0_i32_0 : i32, i32
  }
  func.func @transform_5(%arg0: i32, %arg1: i32) -> (i32, i32, i32) {
    %c0_i32 = arith.constant 0 : i32
    %c0_i32_0 = arith.constant 0 : i32
    return %arg0, %arg1, %c0_i32 : i32, i32, i32
  }
}

</mosaic_0001>

<bundles_post_ra>
// kernel: ifblock_forward.5
= control target key start
LH: loop header
LB: loop body
LE: loop exit
PB: predicated region body
PF: predicated region fallthrough
CT: control target
= control target key end

     0   :  { %s897_s18 = smov 0   ;;  %s899_s19 = smov 0   ;;  %s1015_s0 = inlined_call_operand.vmem [shape: bf16[2,5,5,64], index: 0, kind: input, shape index: {}, may-alias: {0,1}]   ;;  %s1016_s1 = inlined_call_operand.vmem [shape: bf16[2,5,5,64], index: 1, kind: input, shape index: {}, may-alias: {0,1}]   ;;  %s1017_s2 = inlined_call_operand.vmem [shape: bf16[256,32], index: 2, kind: input, shape index: {}]   ;;  %s1018_s3 = inlined_call_operand.vmem [shape: f32[1,32], index: 3, kind: input, shape index: {}]   ;;  %s1019_s4 = inlined_call_operand.vmem [shape: f32[1,32], index: 4, kind: input, shape index: {}]   ;;  %s1020_s5 = inlined_call_operand.vmem [shape: bf16[2,16,32], index: 5, kind: output, shape index: {}]  }
   0x1   :  { %s901_s20 = smov 0  }
   0x2 LB: > { %s27_s21 = sadd.s32 1, %s860_s19  ;;  %p722_p0 = scmp.ge.s32.totalorder %s864_s20, 1  ;;  %s864_s20 = sphi %s901_s20, %s15_s20   ;;  %s860_s19 = sphi %s899_s19, %s1022_s19   ;;  %s856_s18 = sphi %s897_s18, %s1021_s18  }
   0x3   : > { %p29_p1 = scmp.ge.s32.totalorder %s27_s21, 2  ;;  %p239_p2 = scmp.lt.s32.totalorder %s864_s20, 3 }
   0x5   : > { %s1024_s21 = smov (%p29_p1, %s27_s21), 0  ;;  %p240_p3 = pnand %p722_p0, %p239_p2 }
   0x6   : > { %p294_p4 = scmp.lt.s32.totalorder (!%p240_p3), %s856_s18, 1  ;;  %s866_s17 = smov (!%p240_p3), 64  }
   0x7   : > { %243 = sbr.rel (%p240_p3) target bundleno = 307 (0x133), region = 40 }
   0xc   : > { %v803_v0 = vld [vmem:[%s1017_s2 + $0x38] sm:$0xff]  ;;  %v802_v2 = vld [vmem:[%s1017_s2 + $0x30] sm:$0xff]  ;;  %s1026_s18 = smov (!%p294_p4, %s856_s18), 1  ;;  %v801_v4 = vld [vmem:[%s1017_s2 + $0x28] sm:$0xff]  ;;  %vm394_vm0 = vcmask 523264   ;;  %vm418_vm1 = vcmask 1041408  }
   0xd   : > { %v811_v1 = vld [vmem:[%s1017_s2 + $0x78] sm:$0xff]  ;;  %570 = vmatpush.bf16.msra.mxu0 %v803_v0  ;;  %v810_v3 = vld [vmem:[%s1017_s2 + $0x70] sm:$0xff]  ;;  %s812_s30 = smul.u32 20, %s1026_s18  ;;  %v809_v5 = vld [vmem:[%s1017_s2 + $0x68] sm:$0xff]  ;;  %s795_s25 = sshll.u32 %s1026_s18, 3  ;;  %vm610_vm3 = vcmask 257024  }
   0xe   : > { %584 = vmatpush.bf16.msra.mxu1 %v811_v1  ;;  %v800_v41 = vld [vmem:[%s1017_s2 + $0x20] sm:$0xff]  ;;  %v799_v43 = vld [vmem:[%s1017_s2 + $0x18] sm:$0xff]  ;;  %v798_v45 = vld [vmem:[%s1017_s2 + $0x10] sm:$0xff]  ;;  %s327_s28 = scalar_lea.vmem %s1020_s5, %s795_s25 }
   0xf   : > { %s301_s8 = scalar_lea.vmem %s1015_s0, %s812_s30  ;;  %s794_s9 = sadd.s32 16, %s812_s30  ;;  %v808_v42 = vld [vmem:[%s1017_s2 + $0x60] sm:$0xff]  ;;  %v807_v44 = vld [vmem:[%s1017_s2 + $0x58] sm:$0xff]  ;;  %v806_v46 = vld [vmem:[%s1017_s2 + $0x50] sm:$0xff] }
  0x10   : > { %v939_v6 = vld [vmem:[%s301_s8 + $0xc] sm:$0x7]  ;;  %v941_v7 = vld [vmem:[%s301_s8 + $0x4] sm:$0x7]  ;;  %s316_s16 = scalar_lea.vmem %s1016_s1, %s794_s9  ;;  %v946_v8 = vld [vmem:[%s301_s8 + $0x8] sm:$0x7] }
  0x11   : > { %571 = vmatpush.bf16.msra.mxu0 %v802_v2  ;;  %v341_v9 = vunpack.c.l.b16 %v939_v6  ;;  %v339_v10 = vunpack.c.l.b16 %v941_v7  ;;  %v950_v11 = vld [vmem:[%s316_s16] sm:$0x7]  ;;  %v340_v12 = vunpack.c.l.b16 %v946_v8  ;;  %v797_v47 = vld [vmem:[%s1017_s2 + $0x8] sm:$0xff] }
  0x12   : > { %585 = vmatpush.bf16.msra.mxu1 %v810_v3  ;;  %v953_v13 = vld [vmem:[%s301_s8] sm:$0x7]  ;;  %v383_v14 = vunpack.c.l.b16 %v950_v11  ;;  %v805_v48 = vld [vmem:[%s1017_s2 + $0x48] sm:$0xff] }
  0x13   : > { %v338_v15 = vunpack.c.l.b16 %v953_v13  ;;  %v345_v16 = vpack.c.b16 %v341_v9, %v341_v9  ;;  %v343_v17 = vpack.c.b16 %v339_v10, %v339_v10  ;;  %v344_v18 = vpack.c.b16 %v340_v12, %v340_v12  ;;  %v796_v49 = vld [vmem:[%s1017_s2] sm:$0xff] }
  0x14   : > { %v384_v19 = vpack.c.b16 %v383_v14, %v383_v14  ;;  %v804_v50 = vld [vmem:[%s1017_s2 + $0x40] sm:$0xff] }
  0x15   : > { %572 = vmatpush.bf16.msra.mxu0 %v801_v4  ;;  %v342_v20 = vpack.c.b16 %v338_v15, %v338_v15  ;;  %v368_v21 = vshrl.u32 %v345_v16, 16  ;;  %v370_v22 = vshll.u32 %v345_v16, 16  ;;  %v354_v23 = vshrl.u32 %v343_v17, 16 }
  0x16   : > { %586 = vmatpush.bf16.msra.mxu1 %v809_v5  ;;  %v356_v24 = vshll.u32 %v343_v17, 16  ;;  %v388_v25 = vshll.u32 %v384_v19, 16  ;;  %v363_v26 = vshll.u32 %v344_v18, 16  ;;  %v386_v34 = vshrl.u32 %v384_v19, 16 }
  0x17   : > { %v372_v27 = vrot.slane %v370_v22, 1  ;;  %v347_v29 = vshrl.u32 %v342_v20, 16  ;;  %v349_v30 = vshll.u32 %v342_v20, 16  ;;  %v361_v36 = vshrl.u32 %v344_v18, 16 }
  0x18   : > { %v358_v28 = vrot.slane %v356_v24, 1  ;;  %v390_v35 = vrot.slane %v388_v25, 1  ;;  %v365_v37 = vrot.slane %v363_v26, 1 }
  0x19   : > { %v373_v31 = vor.u32 %v372_v27, %v368_v21  ;;  %v351_v33 = vrot.slane %v349_v30, 1  ;;  %573 = vmatpush.bf16.msra.mxu0 %v800_v41 }
  0x1a   : > { %v359_v32 = vor.u32 %v358_v28, %v354_v23  ;;  %v391_v39 = vor.u32 %v390_v35, %v386_v34  ;;  %v366_v40 = vor.u32 %v365_v37, %v361_v36  ;;  %587 = vmatpush.bf16.msra.mxu1 %v808_v42 }
  0x1b   : > { %380 = vrot.lane.b32.xlu1 %v373_v31, %s866_s17  ;;  %v352_v38 = vor.u32 %v351_v33, %v347_v29 }
  0x1c   : > { %376 = vrot.lane.b32.xlu0 %v359_v32, %s866_s17 }
  0x1d   : > { %374 = vrot.lane.b32.xlu2 %v352_v38, %s866_s17  ;;  %574 = vmatpush.bf16.msra.mxu0 %v799_v43 }
  0x1e   : > { %588 = vmatpush.bf16.msra.mxu1 %v807_v44 }
  0x21   : > { %575 = vmatpush.bf16.msra.mxu0 %v798_v45 }
  0x22   : > { %589 = vmatpush.bf16.msra.mxu1 %v806_v46 }
  0x23   : > { %392 = vrot.lane.b32.xlu1 %v391_v39, %s866_s17 }
  0x24   : > { %378 = vrot.lane.b32.xlu0 %v366_v40, %s866_s17 }
  0x25   : > { %576 = vmatpush.bf16.msra.mxu0 %v797_v47 }
  0x26   : > { %590 = vmatpush.bf16.msra.mxu1 %v805_v48 }
  0x29   : > { %577 = vmatpush.bf16.msra.mxu0 %v796_v49 }
  0x2a   : > { %591 = vmatpush.bf16.msra.mxu1 %v804_v50 }
  0x77   : > { %v375_v51 = vpop.permute.xlu2 %374 }
  0x78   : > { %v397_v55 = vsel %vm394_vm0, %v953_v13, %v375_v51 }
  0x8d   : > { %v381_v52 = vpop.permute.xlu1 %380 }
  0x8e   : > { %v377_v53 = vpop.permute.xlu0 %376  ;;  %v406_v58 = vsel %vm394_vm0, %v939_v6, %v381_v52 }
  0x8f   : > { %v400_v54 = vsel %vm394_vm0, %v941_v7, %v377_v53  ;;  %v416_v59 = vrot.slane %v406_v58, 6  ;;  %v840_v7 = vld [vmem:[%s1018_s3] ss:$0 sm:$0xff] }
  0x90   : > { %v414_v56 = vrot.slane %v400_v54, 6 }
  0x92   : > { %v420_v57 = vsel %vm418_vm1, %v397_v55, %v414_v56 }
  0x93   : > { %463 = vst [vmem:[#allocation1] ss:$4 sm:$0xff] %v420_v57 }
  0x95   : > { %v393_v60 = vpop.permute.xlu1 %392 }
  0x96   : > { %v379_v61 = vpop.permute.xlu0 %378  ;;  %v409_v62 = vsel %vm394_vm0, %v950_v11, %v393_v60  ;;  %v841_v11 = vld [vmem:[%s1019_s4] ss:$0 sm:$0xff] }
  0x97   : > { %v403_v63 = vsel %vm394_vm0, %v946_v8, %v379_v61  ;;  %v417_v0 = vrot.slane %v409_v62, 6 }
  0x98   : > { %v415_v1 = vrot.slane %v403_v63, 6  ;;  %v424_v2 = vsel %vm418_vm1, %v403_v63, %v416_v59 }
  0x99   : > { %467 = vst [vmem:[#allocation1 + $0x2] ss:$4 sm:$0xff] %v424_v2  ;;  %v426_v3 = vsel %vm418_vm1, %v406_v58, %v417_v0 }
  0x9a   : > { %v422_v4 = vsel %vm418_vm1, %v400_v54, %v415_v1  ;;  %469 = vst [vmem:[#allocation1 + $0x3] ss:$4 sm:$0xff] %v426_v3 }
  0x9b   : > { %465 = vst [vmem:[#allocation1 + $0x1] ss:$4 sm:$0xff] %v422_v4 }
  0xa2   : > { %v470_v5 = vld.sshfl [vmem:[#allocation1] sm:$0xff pattern:$0x73625140]  ;;  %v471_v6 = vld.sshfl [vmem:[#allocation1 + $0x8] sm:$0xff pattern:$0x73625140] }
  0xa3   : > { %578 = vmatmul.bf16.vlgmr.msra.gmra.mxu0 %v470_v5  ;;  %592 = vmatmul.bf16.vlgmr.msra.gmra.mxu1 %v471_v6 }
 0x120   : > { %v579_v8 = vpop.f32.mrf.mxu0  ;;  %v593_v9 = vpop.f32.mrf.mxu1 }
 0x121   : > { %v580_v10 = vadd.f32 %v840_v7, %v579_v8 }
 0x123   : > { %v594_v12 = vadd.f32 %v593_v9, %v580_v10 }
 0x125   : > { %vm598_vm2 = vcmp.gt.f32.partialorder %v594_v12, 0.0  ;;  %v604_v13 = vmul.f32 %v841_v11, %v594_v12 }
 0x127   : > { %v606_v14 = vsel %vm598_vm2, %v594_v12, %v604_v13 }
 0x128   : > { %v608_v15 = vpack.c.bf16 %v606_v14, %v606_v14  ;;  %v581_v16 = vpop.f32.mrf.mxu0  ;;  %v595_v18 = vpop.f32.mrf.mxu1 }
 0x129   : > { %v582_v17 = vadd.f32 %v840_v7, %v581_v16 }
 0x12a   : > { %611 = vst.msk [vmem:[%s327_s28] sm:$0xf] %vm610_vm3, %v608_v15 }
 0x12b   : > { %v596_v19 = vadd.f32 %v595_v18, %v582_v17 }
 0x12d   : > { %vm599_vm4 = vcmp.gt.f32.partialorder %v596_v19, 0.0  ;;  %v605_v20 = vmul.f32 %v841_v11, %v596_v19 }
 0x12f   : > { %v607_v21 = vsel %vm599_vm4, %v596_v19, %v605_v20 }
 0x130   : > { %v609_v22 = vpack.c.bf16 %v607_v21, %v607_v21 }
 0x132   : > { %612 = vst.msk [vmem:[%s327_s28 + $0x4] sm:$0xf] %vm610_vm3, %v609_v22 }
 0x133 PF: > { %s15_s20 = sadd.s32 1, %s864_s20   ;;  %s1021_s18 = smov %s860_s19 }
 0x134   : > { %p12_p5 = scmp.ge.s32.totalorder %s15_s20, 4   ;;  %s1022_s19 = smov %s1024_s21 }
 0x136   :  { %14 = sbr.rel (!%p12_p5) target bundleno = 2 (0x2), region = 76 }

// kernel: ifblock_forward.4
= control target key start
LH: loop header
LB: loop body
LE: loop exit
PB: predicated region body
PF: predicated region fallthrough
CT: control target
= control target key end

     0   :  { %s1101_s18 = smov 0   ;;  %s1103_s19 = smov 0   ;;  %s1343_s0 = inlined_call_operand.vmem [shape: bf16[2,9,9,40], index: 0, kind: input, shape index: {}, may-alias: {0,1}]   ;;  %s1344_s1 = inlined_call_operand.vmem [shape: bf16[2,9,9,40], index: 1, kind: input, shape index: {}, may-alias: {0,1}]   ;;  %s1345_s2 = inlined_call_operand.vmem [shape: bf16[160,16], index: 2, kind: input, shape index: {}]   ;;  %s1346_s3 = inlined_call_operand.vmem [shape: f32[1,16], index: 3, kind: input, shape index: {}]   ;;  %s1347_s4 = inlined_call_operand.vmem [shape: f32[1,16], index: 4, kind: input, shape index: {}]   ;;  %s1348_s5 = inlined_call_operand.vmem [shape: bf16[2,64,16], index: 5, kind: output, shape index: {}]  }
   0x1   :  { %s1105_s20 = smov 0  }
   0x2 LB: > { %s27_s21 = sadd.s32 1, %s1062_s19  ;;  %p933_p0 = scmp.ge.s32.totalorder %s1066_s20, 1  ;;  %s1066_s20 = sphi %s1105_s20, %s15_s20   ;;  %s1062_s19 = sphi %s1103_s19, %s1350_s19   ;;  %s1058_s18 = sphi %s1101_s18, %s1349_s18  }
   0x3   : > { %p29_p1 = scmp.ge.s32.totalorder %s27_s21, 2  ;;  %p243_p2 = scmp.lt.s32.totalorder %s1066_s20, 3 }
   0x5   : > { %s1352_s21 = smov (%p29_p1, %s27_s21), 0  ;;  %p244_p3 = pnand %p933_p0, %p243_p2 }
   0x6   : > { %p302_p4 = scmp.lt.s32.totalorder (!%p244_p3), %s1058_s18, 1  ;;  %s1068_s26 = smov (!%p244_p3), 80  }
   0x7   : > { %247 = sbr.rel (%p244_p3) target bundleno = 350 (0x15e), region = 40  ;;  %s1069_s27 = smov (!%p244_p3), 40  }
   0x8   : > { %s1070_s28 = smov (!%p244_p3), 120  }
   0xc   : > { %s1354_s18 = smov (!%p302_p4, %s1058_s18), 1  ;;  %vm523_vm0 = vcmask 326656   ;;  %vm702_vm1 = vcmask 261120   ;;  %vm548_vm2 = vcmask 654336   ;;  %vm565_vm3 = vcmask 982016  }
   0xd   : > { %s1012_s22 = smul.u32 72, %s1354_s18  ;;  %s990_s11 = sshll.u32 %s1354_s18, 5  ;;  %vm809_vm5 = vcmask 125952  }
   0xe   : > { %s1302_s14 = scalar_lea.vmem %s1348_s5, %s990_s11 }
   0xf   : > { %s1127_s25 = scalar_lea.vmem %s1343_s0, %s1012_s22  ;;  %s989_s29 = sadd.s32 64, %s1012_s22 }
  0x10   : > { %v1130_v0 = vld [vmem:[%s1127_s25 + $0x20] sm:$0xf]  ;;  %v350_v1 = vld [vmem:[%s1127_s25 + $0x24] sm:$0x1]  ;;  %v1134_v2 = vld [vmem:[%s1127_s25 + $0x18] sm:$0xf]  ;;  %s327_s7 = scalar_lea.vmem %s1344_s1, %s989_s29 }
  0x11   : > { %v1137_v3 = vunpack.c.l.b16 %v1130_v0  ;;  %v384_v4 = vunpack.c.l.b16 %v350_v1  ;;  %v348_v5 = vld [vmem:[%s1127_s25 + $0x1c] sm:$0x1]  ;;  %v1141_v6 = vunpack.c.l.b16 %v1134_v2  ;;  %v1144_v7 = vld [vmem:[%s1127_s25 + $0x28] sm:$0xf]  ;;  %v352_v8 = vld [vmem:[%s1127_s25 + $0x2c] sm:$0x1] }
  0x12   : > { %v382_v9 = vunpack.c.l.b16 %v348_v5  ;;  %v385_v10 = vunpack.c.l.b16 %v1144_v7  ;;  %v386_v11 = vunpack.c.l.b16 %v352_v8  ;;  %v1151_v15 = vld [vmem:[%s1127_s25 + $0x30] sm:$0xf]  ;;  %v354_v16 = vld [vmem:[%s1127_s25 + $0x34] sm:$0x1]  ;;  %v940_v33 = vld [vmem:[%s1127_s25] sm:$0xf] }
  0x13   : > { %v395_v12 = vpack.c.b16 %v384_v4, %v1137_v3  ;;  %v387_v24 = vunpack.c.l.b16 %v1151_v15  ;;  %v388_v25 = vunpack.c.l.b16 %v354_v16  ;;  %v991_v34 = vld [vmem:[%s1127_s25] sm:$0x10]  ;;  %v1164_v35 = vld [vmem:[%s1127_s25 + $0x8] sm:$0xf]  ;;  %v344_v36 = vld [vmem:[%s1127_s25 + $0xc] sm:$0x1] }
  0x14   : > { %v394_v13 = vpack.c.b16 %v382_v9, %v1141_v6  ;;  %v396_v14 = vpack.c.b16 %v386_v11, %v385_v10  ;;  %v477_v17 = vpack.c.b16 %v385_v10, %v385_v10  ;;  %v941_v37 = vor.u32 %v991_v34, %v940_v33  ;;  %v1172_v49 = vld [vmem:[%s1127_s25 + $0x10] sm:$0xf]  ;;  %v346_v50 = vld [vmem:[%s1127_s25 + $0x14] sm:$0x1]  ;;  %v1180_v59 = vld [vmem:[%s1127_s25 + $0x38] sm:$0xf] }
  0x15   : > { %v428_v18 = vshrl.u32 %v395_v12, 16  ;;  %v430_v19 = vshll.u32 %v395_v12, 16  ;;  %v397_v31 = vpack.c.b16 %v388_v25, %v387_v24  ;;  %v478_v32 = vpack.c.b16 %v387_v24, %v387_v24  ;;  %v356_v60 = vld [vmem:[%s1127_s25 + $0x3c] sm:$0x1]  ;;  %v357_v10 = vld [vmem:[%s327_s7] sm:$0xf] }
  0x16   : > { %v421_v20 = vshrl.u32 %v394_v13, 16  ;;  %v423_v21 = vshll.u32 %v394_v13, 16  ;;  %489 = vrot.lane.b32.xlu2 %v477_v17, %s1068_s26  ;;  %v437_v23 = vshll.u32 %v396_v14, 16  ;;  %v435_v29 = vshrl.u32 %v396_v14, 16  ;;  %v358_v11 = vld [vmem:[%s327_s7 + $0x4] sm:$0x1] }
  0x17   : > { %v432_v22 = vrot.slane %v430_v19, 1  ;;  %v444_v39 = vshll.u32 %v397_v31, 16  ;;  %v402_v40 = vshll.u32 %v941_v37, 16  ;;  %v377_v41 = vunpack.c.l.b16 %v1164_v35  ;;  %v999_v12 = vld [vmem:[%s1345_s2 + $0x38] sm:$0xff]  ;;  %v998_v13 = vld [vmem:[%s1345_s2 + $0x30] sm:$0xff]  ;;  %v996_v33 = vld [vmem:[%s1345_s2 + $0x20] sm:$0xff] }
  0x18   : > { %v425_v26 = vrot.slane %v423_v21, 1  ;;  %v439_v30 = vrot.slane %v437_v23, 1  ;;  %v378_v42 = vunpack.c.l.b16 %v344_v36  ;;  %v400_v43 = vshrl.u32 %v941_v37, 16  ;;  %1002 = vmatpush.bf16.msra.mxu2 %v999_v12  ;;  %715 = vmatpush.bf16.msra.mxu0 %v999_v12  ;;  %v995_v34 = vld [vmem:[%s1345_s2 + $0x18] sm:$0xff]  ;;  %v993_v36 = vld [vmem:[%s1345_s2 + $0x8] sm:$0xff] }
  0x19   : > { %v433_v27 = vor.u32 %v432_v22, %v428_v18  ;;  %v404_v44 = vrot.slane %v402_v40, 1  ;;  %v442_v45 = vshrl.u32 %v397_v31, 16  ;;  %v446_v46 = vrot.slane %v444_v39, 1 }
  0x1a   : > { %v1156_v28 = vor.u32 %v425_v26, %v421_v20  ;;  %v440_v38 = vor.u32 %v439_v30, %v435_v29  ;;  %v392_v48 = vpack.c.b16 %v378_v42, %v377_v41  ;;  %v379_v52 = vunpack.c.l.b16 %v1172_v49  ;;  %v997_v20 = vld [vmem:[%s1345_s2 + $0x28] sm:$0xff] }
  0x1b   : > { %463 = vrot.lane.b32.xlu1 %v433_v27, %s1069_s27  ;;  %v405_v47 = vor.u32 %v404_v44, %v400_v43  ;;  %v447_v51 = vor.u32 %v446_v46, %v442_v45  ;;  %v380_v53 = vunpack.c.l.b16 %v346_v50  ;;  %v473_v61 = vpack.c.b16 %v377_v41, %v377_v41 }
  0x1c   : > { %511 = vrot.lane.b32.xlu0 %v1156_v28, %s1070_s28  ;;  %v409_v54 = vshll.u32 %v392_v48, 16  ;;  %v474_v56 = vpack.c.b16 %v379_v52, %v379_v52  ;;  %v407_v57 = vshrl.u32 %v392_v48, 16  ;;  %v389_v1 = vunpack.c.l.b16 %v1180_v59  ;;  %1003 = vmatpush.bf16.msra.mxu2 %v998_v13 }
  0x1d   : > { %v393_v55 = vpack.c.b16 %v380_v53, %v379_v52  ;;  %v390_v4 = vunpack.c.l.b16 %v356_v60  ;;  %v472_v16 = vunpack.c.l.b16 %v357_v10  ;;  %v498_v17 = vunpack.c.l.b16 %v358_v11  ;;  %716 = vmatpush.bf16.msra.mxu0 %v998_v13 }
  0x1e   : > { %491 = vrot.lane.b32.xlu2 %v478_v32, %s1068_s26  ;;  %v411_v58 = vrot.slane %v409_v54, 1  ;;  %v479_v24 = vpack.c.b16 %v389_v1, %v389_v1  ;;  %v476_v31 = vpack.c.b16 %v1137_v3, %v1137_v3  ;;  %v475_v32 = vpack.c.b16 %v1141_v6, %v1141_v6  ;;  %v1001_v3 = vld [vmem:[%s1345_s2 + $0x48] sm:$0xff]  ;;  %v1000_v6 = vld [vmem:[%s1345_s2 + $0x40] sm:$0xff] }
  0x1f   : > { %v416_v62 = vshll.u32 %v393_v55, 16  ;;  %v414_v5 = vshrl.u32 %v393_v55, 16  ;;  %v398_v9 = vpack.c.b16 %v390_v4, %v389_v1  ;;  %v480_v19 = vpack.c.b16 %v472_v16, %v472_v16  ;;  %1010 = vmatpush.bf16.msra.mxu3 %v1001_v3  ;;  %750 = vmatpush.bf16.msra.mxu1 %v1001_v3 }
  0x20   : > { %v412_v63 = vor.u32 %v411_v58, %v407_v57  ;;  %v499_v21 = vpack.c.b16 %v498_v17, %v472_v16  ;;  %1004 = vmatpush.bf16.msra.mxu2 %v997_v20 }
  0x21   : > { %v418_v8 = vrot.slane %v416_v62, 1  ;;  %v451_v18 = vshll.u32 %v398_v9, 16  ;;  %v449_v22 = vshrl.u32 %v398_v9, 16  ;;  %717 = vmatpush.bf16.msra.mxu0 %v997_v20 }
  0x22   : > { %v503_v25 = vshll.u32 %v499_v21, 16 }
  0x23   : > { %465 = vrot.lane.b32.xlu1 %v440_v38, %s1069_s27  ;;  %v419_v14 = vor.u32 %v418_v8, %v414_v5  ;;  %v453_v23 = vrot.slane %v451_v18, 1  ;;  %1011 = vmatpush.bf16.msra.mxu3 %v1000_v6  ;;  %v341_v5 = vld [vmem:[%s1127_s25] sm:$0xf] }
  0x24   : > { %513 = vrot.lane.b32.xlu0 %v433_v27, %s1070_s28  ;;  %v501_v27 = vshrl.u32 %v499_v21, 16  ;;  %v505_v29 = vrot.slane %v503_v25, 1  ;;  %1005 = vmatpush.bf16.msra.mxu2 %v996_v33 }
  0x25   : > { %v454_v26 = vor.u32 %v453_v23, %v449_v22  ;;  %718 = vmatpush.bf16.msra.mxu0 %v996_v33  ;;  %751 = vmatpush.bf16.msra.mxu1 %v1000_v6 }
  0x26   : > { %455 = vrot.lane.b32.xlu2 %v405_v47, %s1069_s27  ;;  %v506_v30 = vor.u32 %v505_v29, %v501_v27 }
  0x28   : > { %1006 = vmatpush.bf16.msra.mxu2 %v995_v34 }
  0x29   : > { %719 = vmatpush.bf16.msra.mxu0 %v995_v34 }
  0x2b   : > { %517 = vrot.lane.b32.xlu1 %v447_v51, %s1070_s28 }
  0x2c   : > { %515 = vrot.lane.b32.xlu0 %v440_v38, %s1070_s28  ;;  %v992_v38 = vld [vmem:[%s1345_s2] sm:$0xff] }
  0x2e   : > { %483 = vrot.lane.b32.xlu2 %v474_v56, %s1068_s26 }
  0x33   : > { %481 = vrot.lane.b32.xlu1 %v473_v61, %s1068_s26 }
  0x34   : > { %457 = vrot.lane.b32.xlu0 %v412_v63, %s1069_s27 }
  0x36   : > { %467 = vrot.lane.b32.xlu2 %v447_v51, %s1069_s27 }
  0x3b   : > { %509 = vrot.lane.b32.xlu1 %v419_v14, %s1070_s28 }
  0x3c   : > { %507 = vrot.lane.b32.xlu0 %v412_v63, %s1070_s28 }
  0x3e   : > { %495 = vrot.lane.b32.xlu2 %v480_v19, %s1068_s26 }
  0x43   : > { %493 = vrot.lane.b32.xlu1 %v479_v24, %s1068_s26 }
  0x44   : > { %469 = vrot.lane.b32.xlu0 %v454_v26, %s1069_s27 }
  0x46   : > { %459 = vrot.lane.b32.xlu2 %v419_v14, %s1069_s27 }
  0x4b   : > { %521 = vrot.lane.b32.xlu1 %v506_v30, %s1070_s28 }
  0x4c   : > { %519 = vrot.lane.b32.xlu0 %v454_v26, %s1070_s28 }
  0x4e   : > { %487 = vrot.lane.b32.xlu2 %v476_v31, %s1068_s26 }
  0x53   : > { %485 = vrot.lane.b32.xlu1 %v475_v32, %s1068_s26 }
  0x54   : > { %461 = vrot.lane.b32.xlu0 %v1156_v28, %s1069_s27  ;;  %v994_v28 = vld [vmem:[%s1345_s2 + $0x10] sm:$0xff] }
  0x55   : > { %1007 = vmatpush.bf16.msra.mxu2 %v994_v28  ;;  %720 = vmatpush.bf16.msra.mxu0 %v994_v28 }
  0x59   : > { %1008 = vmatpush.bf16.msra.mxu2 %v993_v36  ;;  %721 = vmatpush.bf16.msra.mxu0 %v993_v36 }
  0x5d   : > { %1009 = vmatpush.bf16.msra.mxu2 %v992_v38  ;;  %722 = vmatpush.bf16.msra.mxu0 %v992_v38 }
  0x70   : > { %v490_v37 = vpop.permute.xlu2 %489 }
  0x78   : > { %v492_v39 = vpop.permute.xlu2 %491 }
  0x80   : > { %v456_v42 = vpop.permute.xlu2 %455 }
  0x81   : > { %v526_v9 = vsel %vm523_vm0, %v341_v5, %v456_v42 }
  0x88   : > { %v484_v53 = vpop.permute.xlu2 %483 }
  0x8d   : > { %v464_v40 = vpop.permute.xlu1 %463 }
  0x8e   : > { %v1239_v41 = vpop.permute.xlu0 %511  ;;  %v538_v50 = vsel %vm523_vm0, %v1130_v0, %v464_v40 }
  0x8f   : > { %v595_v45 = vunpack.c.l.b16 %v1239_v41  ;;  %v558_v54 = vsel %vm548_vm2, %v538_v50, %v490_v37 }
  0x90   : > { %v468_v1 = vpop.permute.xlu2 %467 }
  0x91   : > { %v544_v27 = vsel %vm523_vm0, %v1151_v15, %v468_v1 }
  0x95   : > { %v466_v43 = vpop.permute.xlu1 %465 }
  0x96   : > { %v1241_v44 = vpop.permute.xlu0 %513  ;;  %v541_v48 = vsel %vm523_vm0, %v1144_v7, %v466_v43 }
  0x97   : > { %v597_v46 = vunpack.c.l.b16 %v1241_v44  ;;  %v560_v51 = vsel %vm548_vm2, %v541_v48, %v492_v39 }
  0x99   : > { %v633_v47 = vpack.c.b16 %v597_v46, %v595_v45 }
  0x9b   : > { %983 = vmatmul.msk.bf16.vlgmr.msra.gmra.mxu3 %vm702_vm1, %v633_v47 }
  0x9d   : > { %v518_v52 = vpop.permute.xlu1 %517 }
  0x9e   : > { %v577_v55 = vsel %vm565_vm3, %v560_v51, %v518_v52  ;;  %v516_v56 = vpop.permute.xlu0 %515  ;;  %v601_v0 = vunpack.c.l.b16 %v518_v52 }
  0x9f   : > { %v600_v57 = vunpack.c.l.b16 %v577_v55  ;;  %v575_v7 = vsel %vm565_vm3, %v558_v54, %v516_v56  ;;  %v599_v61 = vunpack.c.l.b16 %v516_v56  ;;  %v1294_v54 = vld [vmem:[%s1347_s4] ss:$0 sm:$0xff] }
  0xa0   : > { %v598_v58 = vunpack.c.l.b16 %v575_v7 }
  0xa1   : > { %v635_v4 = vpack.c.b16 %v601_v0, %v599_v61 }
  0xa2   : > { %v634_v60 = vpack.c.b16 %v600_v57, %v598_v58 }
  0xa4   : > { %733 = vmatmul.bf16.vlgmr.msra.gmra.mxu2 %v634_v60 }
  0xa5   : > { %v482_v62 = vpop.permute.xlu1 %481 }
  0xa6   : > { %v458_v63 = vpop.permute.xlu0 %457  ;;  %v550_v12 = vsel %vm548_vm2, %v526_v9, %v482_v62 }
  0xa7   : > { %v529_v8 = vsel %vm523_vm0, %v1164_v35, %v458_v63  ;;  %v496_v35 = vpop.permute.xlu2 %495 }
  0xa8   : > { %v552_v10 = vsel %vm548_vm2, %v529_v8, %v484_v53 }
  0xab   : > { %984 = vmatmul.msk.bf16.gmra.mxu3 %vm702_vm1, %v635_v4 }
  0xad   : > { %v510_v11 = vpop.permute.xlu1 %509 }
  0xae   : > { %v569_v13 = vsel %vm565_vm3, %v552_v10, %v510_v11  ;;  %v593_v14 = vunpack.c.l.b16 %v510_v11  ;;  %v508_v16 = vpop.permute.xlu0 %507 }
  0xaf   : > { %v592_v17 = vunpack.c.l.b16 %v569_v13  ;;  %v567_v18 = vsel %vm565_vm3, %v550_v12, %v508_v16  ;;  %v591_v19 = vunpack.c.l.b16 %v508_v16  ;;  %v460_v26 = vpop.permute.xlu2 %459 }
  0xb0   : > { %v590_v20 = vunpack.c.l.b16 %v567_v18  ;;  %v532_v15 = vsel %vm523_vm0, %v1172_v49, %v460_v26 }
  0xb1   : > { %v631_v21 = vpack.c.b16 %v593_v14, %v591_v19 }
  0xb2   : > { %v630_v22 = vpack.c.b16 %v592_v17, %v590_v20 }
  0xb3   : > { %982 = vmatmul.msk.bf16.vlgmr.msra.gmra.mxu1 %vm702_vm1, %v631_v21 }
  0xb4   : > { %723 = vmatmul.bf16.vlgmr.msra.gmra.mxu0 %v630_v22 }
  0xb5   : > { %v494_v23 = vpop.permute.xlu1 %493 }
  0xb6   : > { %v470_v24 = vpop.permute.xlu0 %469  ;;  %v562_v31 = vsel %vm548_vm2, %v544_v27, %v494_v23 }
  0xb7   : > { %v547_v25 = vsel %vm523_vm0, %v1180_v59, %v470_v24  ;;  %v488_v39 = vpop.permute.xlu2 %487 }
  0xb8   : > { %v564_v29 = vsel %vm548_vm2, %v547_v25, %v496_v35 }
  0xbd   : > { %v522_v30 = vpop.permute.xlu1 %521 }
  0xbe   : > { %v581_v32 = vsel %vm565_vm3, %v564_v29, %v522_v30  ;;  %v605_v33 = vunpack.c.l.b16 %v522_v30  ;;  %v520_v3 = vpop.permute.xlu0 %519 }
  0xbf   : > { %v604_v34 = vunpack.c.l.b16 %v581_v32  ;;  %v579_v6 = vsel %vm565_vm3, %v562_v31, %v520_v3  ;;  %v603_v28 = vunpack.c.l.b16 %v520_v3 }
  0xc0   : > { %v602_v36 = vunpack.c.l.b16 %v579_v6 }
  0xc1   : > { %v637_v37 = vpack.c.b16 %v605_v33, %v603_v28 }
  0xc2   : > { %v636_v59 = vpack.c.b16 %v604_v34, %v602_v36 }
  0xc3   : > { %985 = vmatmul.msk.bf16.gmra.mxu3 %vm702_vm1, %v637_v37 }
  0xc4   : > { %738 = vmatmul.bf16.gmra.mxu2 %v636_v59 }
  0xc5   : > { %v486_v38 = vpop.permute.xlu1 %485 }
  0xc6   : > { %v554_v40 = vsel %vm548_vm2, %v532_v15, %v486_v38  ;;  %v462_v42 = vpop.permute.xlu0 %461 }
  0xc7   : > { %v535_v43 = vsel %vm523_vm0, %v1134_v2, %v462_v42  ;;  %v571_v45 = vsel %vm565_vm3, %v554_v40, %v1239_v41  ;;  %v1288_v2 = vld [vmem:[%s1346_s3] ss:$0 sm:$0xff] }
  0xc8   : > { %v556_v46 = vsel %vm548_vm2, %v535_v43, %v488_v39  ;;  %v594_v47 = vunpack.c.l.b16 %v571_v45 }
  0xc9   : > { %v573_v48 = vsel %vm565_vm3, %v556_v46, %v1241_v44 }
  0xca   : > { %v596_v50 = vunpack.c.l.b16 %v573_v48 }
  0xcc   : > { %v632_v49 = vpack.c.b16 %v596_v50, %v594_v47 }
  0xce   : > { %728 = vmatmul.bf16.gmra.mxu0 %v632_v49 }
 0x11e   : > { %v758_v51 = vpop.f32.mrf.mxu3 }
 0x126   : > { %v1283_v52 = vpop.f32.mrf.mxu3 }
 0x127   : > { %v734_v53 = vpop.f32.mrf.mxu2 }
 0x128   : > { %v735_v41 = vadd.f32 %v1288_v2, %v734_v53 }
 0x12e   : > { %v763_v44 = vpop.f32.mrf.mxu3 }
 0x12f   : > { %v764_v55 = vadd.f32 %v763_v44, %v735_v41  ;;  %v736_v58 = vpop.f32.mrf.mxu2 }
 0x130   : > { %v753_v57 = vpop.f32.mrf.mxu1  ;;  %v737_v63 = vadd.f32 %v1288_v2, %v736_v58 }
 0x131   : > { %vm777_vm4 = vcmp.gt.f32.partialorder %v764_v55, 0.0  ;;  %v789_v56 = vmul.f32 %v1294_v54, %v764_v55  ;;  %v724_v7 = vpop.f32.mrf.mxu0 }
 0x132   : > { %v725_v60 = vadd.f32 %v1288_v2, %v724_v7 }
 0x133   : > { %v797_v0 = vsel %vm777_vm4, %v764_v55, %v789_v56 }
 0x134   : > { %v805_v61 = vpack.c.bf16 %v797_v0, %v797_v0  ;;  %v754_v62 = vadd.f32 %v753_v57, %v725_v60 }
 0x136   : > { %814 = vst.msk [vmem:[%s1302_s14 + $0x10] sm:$0xf] %vm809_vm5, %v805_v61  ;;  %vm773_vm6 = vcmp.gt.f32.partialorder %v754_v62, 0.0  ;;  %v785_v1 = vmul.f32 %v1294_v54, %v754_v62  ;;  %v765_v4 = vpop.f32.mrf.mxu3 }
 0x137   : > { %v766_v5 = vadd.f32 %v765_v4, %v737_v63 }
 0x138   : > { %v793_v8 = vsel %vm773_vm6, %v754_v62, %v785_v1  ;;  %v755_v14 = vpop.f32.mrf.mxu1 }
 0x139   : > { %v801_v9 = vpack.c.bf16 %v793_v8, %v793_v8  ;;  %vm778_vm7 = vcmp.gt.f32.partialorder %v766_v5, 0.0  ;;  %v790_v10 = vmul.f32 %v1294_v54, %v766_v5  ;;  %v726_v11 = vpop.f32.mrf.mxu0 }
 0x13a   : > { %v727_v12 = vadd.f32 %v1288_v2, %v726_v11 }
 0x13b   : > { %810 = vst.msk [vmem:[%s1302_s14] sm:$0xf] %vm809_vm5, %v801_v9  ;;  %v798_v13 = vsel %vm778_vm7, %v766_v5, %v790_v10 }
 0x13c   : > { %v806_v16 = vpack.c.bf16 %v798_v13, %v798_v13  ;;  %v756_v17 = vadd.f32 %v755_v14, %v727_v12 }
 0x13e   : > { %815 = vst.msk [vmem:[%s1302_s14 + $0x14] sm:$0xf] %vm809_vm5, %v806_v16  ;;  %vm774_vm8 = vcmp.gt.f32.partialorder %v756_v17, 0.0  ;;  %v786_v18 = vmul.f32 %v1294_v54, %v756_v17 }
 0x140   : > { %v794_v19 = vsel %vm774_vm8, %v756_v17, %v786_v18 }
 0x141   : > { %v802_v20 = vpack.c.bf16 %v794_v19, %v794_v19 }
 0x143   : > { %811 = vst.msk [vmem:[%s1302_s14 + $0x4] sm:$0xf] %vm809_vm5, %v802_v20 }
 0x146   : > { %v768_v21 = vpop.f32.mrf.mxu3 }
 0x147   : > { %v739_v35 = vpop.f32.mrf.mxu2 }
 0x148   : > { %v740_v22 = vadd.f32 %v1288_v2, %v739_v35 }
 0x14a   : > { %v769_v23 = vadd.f32 %v768_v21, %v740_v22 }
 0x14b   : > { %v729_v24 = vpop.f32.mrf.mxu0 }
 0x14c   : > { %vm779_vm9 = vcmp.gt.f32.partialorder %v769_v23, 0.0  ;;  %v791_v25 = vmul.f32 %v1294_v54, %v769_v23  ;;  %v730_v26 = vadd.f32 %v1288_v2, %v729_v24 }
 0x14e   : > { %v799_v27 = vsel %vm779_vm9, %v769_v23, %v791_v25  ;;  %v759_v29 = vadd.f32 %v758_v51, %v730_v26  ;;  %v770_v3 = vpop.f32.mrf.mxu3 }
 0x14f   : > { %v807_v30 = vpack.c.bf16 %v799_v27, %v799_v27  ;;  %v741_v31 = vpop.f32.mrf.mxu2 }
 0x150   : > { %vm775_vm10 = vcmp.gt.f32.partialorder %v759_v29, 0.0  ;;  %v787_v32 = vmul.f32 %v1294_v54, %v759_v29  ;;  %v742_v33 = vadd.f32 %v1288_v2, %v741_v31 }
 0x151   : > { %816 = vst.msk [vmem:[%s1302_s14 + $0x18] sm:$0xf] %vm809_vm5, %v807_v30 }
 0x152   : > { %v795_v34 = vsel %vm775_vm10, %v759_v29, %v787_v32  ;;  %v771_v6 = vadd.f32 %v770_v3, %v742_v33 }
 0x153   : > { %v803_v28 = vpack.c.bf16 %v795_v34, %v795_v34  ;;  %v731_v36 = vpop.f32.mrf.mxu0 }
 0x154   : > { %vm780_vm11 = vcmp.gt.f32.partialorder %v771_v6, 0.0  ;;  %v792_v37 = vmul.f32 %v1294_v54, %v771_v6  ;;  %v732_v59 = vadd.f32 %v1288_v2, %v731_v36 }
 0x155   : > { %812 = vst.msk [vmem:[%s1302_s14 + $0x8] sm:$0xf] %vm809_vm5, %v803_v28 }
 0x156   : > { %v800_v15 = vsel %vm780_vm11, %v771_v6, %v792_v37  ;;  %v761_v38 = vadd.f32 %v1283_v52, %v732_v59 }
 0x157   : > { %v808_v39 = vpack.c.bf16 %v800_v15, %v800_v15 }
 0x158   : > { %vm776_vm12 = vcmp.gt.f32.partialorder %v761_v38, 0.0  ;;  %v788_v40 = vmul.f32 %v1294_v54, %v761_v38 }
 0x159   : > { %817 = vst.msk [vmem:[%s1302_s14 + $0x1c] sm:$0xf] %vm809_vm5, %v808_v39 }
 0x15a   : > { %v796_v42 = vsel %vm776_vm12, %v761_v38, %v788_v40 }
 0x15b   : > { %v804_v43 = vpack.c.bf16 %v796_v42, %v796_v42 }
 0x15d   : > { %813 = vst.msk [vmem:[%s1302_s14 + $0xc] sm:$0xf] %vm809_vm5, %v804_v43 }
 0x15e PF: > { %s15_s20 = sadd.s32 1, %s1066_s20   ;;  %s1349_s18 = smov %s1062_s19 }
 0x15f   : > { %p12_p5 = scmp.ge.s32.totalorder %s15_s20, 4   ;;  %s1350_s19 = smov %s1352_s21 }
 0x161   :  { %14 = sbr.rel (!%p12_p5) target bundleno = 2 (0x2), region = 73 }

// kernel: ifblock_forward.7
= control target key start
LH: loop header
LB: loop body
LE: loop exit
PB: predicated region body
PF: predicated region fallthrough
CT: control target
= control target key end

     0   :  { %s1061_s18 = smov 0   ;;  %s1063_s19 = smov 0   ;;  %s1296_s0 = inlined_call_operand.vmem [shape: bf16[2,6,6,32], index: 0, kind: input, shape index: {}, may-alias: {0,1}]   ;;  %s1297_s1 = inlined_call_operand.vmem [shape: bf16[2,6,6,32], index: 1, kind: input, shape index: {}, may-alias: {0,1}]   ;;  %s1298_s2 = inlined_call_operand.vmem [shape: bf16[288,20], index: 2, kind: input, shape index: {}]   ;;  %s1299_s3 = inlined_call_operand.vmem [shape: f32[1,20], index: 3, kind: input, shape index: {}]   ;;  %s1300_s4 = inlined_call_operand.vmem [shape: f32[1,20], index: 4, kind: input, shape index: {}]   ;;  %s1301_s5 = inlined_call_operand.vmem [shape: f32[2,16,20], index: 5, kind: output, shape index: {}]  }
   0x1   :  { %s1065_s20 = smov 0  }
   0x2 LB: > { %s27_s21 = sadd.s32 1, %s1022_s19  ;;  %p870_p0 = scmp.ge.s32.totalorder %s1026_s20, 1  ;;  %s1026_s20 = sphi %s1065_s20, %s15_s20   ;;  %s1022_s19 = sphi %s1063_s19, %s1303_s19   ;;  %s1018_s18 = sphi %s1061_s18, %s1302_s18  }
   0x3   : > { %p29_p1 = scmp.ge.s32.totalorder %s27_s21, 2  ;;  %p241_p2 = scmp.lt.s32.totalorder %s1026_s20, 3 }
   0x5   : > { %s1305_s21 = smov (%p29_p1, %s27_s21), 0  ;;  %p242_p3 = pnand %p870_p0, %p241_p2 }
   0x6   : > { %p297_p4 = scmp.lt.s32.totalorder (!%p242_p3), %s1018_s18, 1  ;;  %s1028_s30 = smov (!%p242_p3), 64  }
   0x7   : > { %245 = sbr.rel (%p242_p3) target bundleno = 353 (0x161), region = 40  ;;  %s1029_s6 = smov (!%p242_p3), 32  }
   0x8   : > { %s1030_s7 = smov (!%p242_p3), 96  }
   0xc   : > { %s1307_s18 = smov (!%p297_p4, %s1018_s18), 1  ;;  %v961_v52 = vld [vmem:[%s1298_s2 + $0x38] sm:$0xff]  ;;  %v960_v54 = vld [vmem:[%s1298_s2 + $0x30] sm:$0xff]  ;;  %v959_v59 = vld [vmem:[%s1298_s2 + $0x28] sm:$0xff]  ;;  %vm455_vm0 = vcmask 261120   ;;  %vm468_vm1 = vcmask 523264  }
   0xd   : > { %s972_s22 = smul.u32 24, %s1307_s18  ;;  %v969_v53 = vld [vmem:[%s1298_s2 + $0x78] sm:$0xff]  ;;  %706 = vmatpush.bf16.msra.mxu0 %v961_v52  ;;  %v968_v55 = vld [vmem:[%s1298_s2 + $0x70] sm:$0xff]  ;;  %v967_v60 = vld [vmem:[%s1298_s2 + $0x68] sm:$0xff]  ;;  %vm477_vm2 = vcmask 785408   ;;  %vm526_vm3 = vcmask 1041408  }
   0xe   : > { %720 = vmatpush.bf16.msra.mxu1 %v969_v53  ;;  %v958_v61 = vld [vmem:[%s1298_s2 + $0x20] sm:$0xff]  ;;  %vm529_vm4 = vcmask 1043456   ;;  %vm758_vm6 = vcmask 162816  }
   0xf   : > { %s304_s25 = scalar_lea.vmem %s1296_s0, %s972_s22  ;;  %s952_s26 = sadd.s32 16, %s972_s22  ;;  %v966_v62 = vld [vmem:[%s1298_s2 + $0x60] sm:$0xff] }
  0x10   : > { %v1085_v0 = vld [vmem:[%s304_s25 + $0xc] sm:$0x7]  ;;  %v1087_v1 = vld [vmem:[%s304_s25 + $0x4] sm:$0x7]  ;;  %s320_s29 = scalar_lea.vmem %s1297_s1, %s952_s26  ;;  %v1092_v2 = vld [vmem:[%s304_s25 + $0x8] sm:$0x7] }
  0x11   : > { %v348_v3 = vunpack.c.l.b16 %v1085_v0  ;;  %v346_v4 = vunpack.c.l.b16 %v1087_v1  ;;  %v339_v5 = vld [vmem:[%s320_s29] sm:$0x7]  ;;  %v347_v6 = vunpack.c.l.b16 %v1092_v2  ;;  %v340_v20 = vld [vmem:[%s320_s29 + $0x4] sm:$0x7]  ;;  %707 = vmatpush.bf16.msra.mxu0 %v960_v54 }
  0x12   : > { %v1097_v7 = vld [vmem:[%s304_s25] sm:$0x7]  ;;  %v402_v11 = vunpack.c.l.b16 %v339_v5  ;;  %v429_v23 = vunpack.c.l.b16 %v340_v20  ;;  %721 = vmatpush.bf16.msra.mxu1 %v968_v55  ;;  %v957_v5 = vld [vmem:[%s1298_s2 + $0x18] sm:$0xff] }
  0x13   : > { %v345_v8 = vunpack.c.l.b16 %v1097_v7  ;;  %v1100_v9 = vpack.c.b16 %v348_v3, %v348_v3  ;;  %v350_v10 = vpack.c.b16 %v346_v4, %v346_v4  ;;  %v351_v12 = vpack.c.b16 %v347_v6, %v347_v6  ;;  %v965_v6 = vld [vmem:[%s1298_s2 + $0x58] sm:$0xff]  ;;  %v954_v20 = vld [vmem:[%s1298_s2] sm:$0xff] }
  0x14   : > { %v1109_v16 = vpack.c.b16 %v402_v11, %v402_v11  ;;  %v1122_v26 = vpack.c.b16 %v429_v23, %v429_v23  ;;  %v964_v11 = vld [vmem:[%s1298_s2 + $0x50] sm:$0xff] }
  0x15   : > { %v1103_v13 = vrot.slane %v1100_v9, 1  ;;  %v390_v14 = vrot.slane %v350_v10, 1  ;;  %431 = vrot.lane.b32.xlu2 %v351_v12, %s1028_s30  ;;  %v349_v15 = vpack.c.b16 %v345_v8, %v345_v8  ;;  %v1112_v19 = vrot.slane %v351_v12, 1  ;;  %708 = vmatpush.bf16.msra.mxu0 %v959_v59 }
  0x16   : > { %v419_v18 = vrot.slane %v1109_v16, 1  ;;  %v377_v25 = vshll.u32 %v1100_v9, 16  ;;  %v370_v27 = vshll.u32 %v351_v12, 16  ;;  %v363_v28 = vshll.u32 %v350_v10, 16  ;;  %722 = vmatpush.bf16.msra.mxu1 %v967_v60 }
  0x17   : > { %424 = vrot.lane.b32.xlu1 %v1103_v13, %s1029_s6  ;;  %420 = vrot.lane.b32.xlu0 %v390_v14, %s1029_s6  ;;  %v356_v17 = vshll.u32 %v349_v15, 16  ;;  %v354_v21 = vshrl.u32 %v349_v15, 16  ;;  %v375_v29 = vshrl.u32 %v1100_v9, 16  ;;  %v368_v31 = vshrl.u32 %v351_v12, 16 }
  0x18   : > { %v379_v30 = vrot.slane %v377_v25, 1  ;;  %v372_v32 = vrot.slane %v370_v27, 1  ;;  %v361_v33 = vshrl.u32 %v350_v10, 16  ;;  %v365_v34 = vrot.slane %v363_v28, 1 }
  0x19   : > { %v358_v22 = vrot.slane %v356_v17, 1  ;;  %v415_v36 = vshll.u32 %v1109_v16, 16  ;;  %v413_v39 = vshrl.u32 %v1109_v16, 16  ;;  %v442_v42 = vshll.u32 %v1122_v26, 16  ;;  %709 = vmatpush.bf16.msra.mxu0 %v958_v61 }
  0x1a   : > { %v1130_v35 = vor.u32 %v379_v30, %v375_v29  ;;  %v1133_v37 = vor.u32 %v372_v32, %v368_v31  ;;  %v1135_v38 = vor.u32 %v365_v34, %v361_v33  ;;  %v440_v43 = vshrl.u32 %v1122_v26, 16  ;;  %723 = vmatpush.bf16.msra.mxu1 %v966_v62 }
  0x1b   : > { %v359_v24 = vor.u32 %v358_v22, %v354_v21  ;;  %v417_v40 = vrot.slane %v415_v36, 1  ;;  %v444_v44 = vrot.slane %v442_v42, 1  ;;  %v389_v46 = vrot.slane %v349_v15, 1  ;;  %v971_v15 = vld [vmem:[%s1298_s2 + $0x88] sm:$0xff]  ;;  %v962_v21 = vld [vmem:[%s1298_s2 + $0x40] sm:$0xff] }
  0x1c   : > { %740 = vmatpush.bf16.msra.mxu2 %v971_v15  ;;  %v970_v22 = vld [vmem:[%s1298_s2 + $0x80] sm:$0xff]  ;;  %v519_v30 = vrot.slane %v1112_v19, 4 }
  0x1d   : > { %433 = vrot.lane.b32.xlu2 %v1100_v9, %s1028_s30  ;;  %v1144_v41 = vor.u32 %v417_v40, %v413_v39  ;;  %v445_v45 = vor.u32 %v444_v44, %v440_v43  ;;  %710 = vmatpush.bf16.msra.mxu0 %v957_v5 }
  0x1e   : > { %724 = vmatpush.bf16.msra.mxu1 %v965_v6 }
  0x1f   : > { %426 = vrot.lane.b32.xlu1 %v419_v18, %s1029_s6  ;;  %422 = vrot.lane.b32.xlu0 %v1112_v19, %s1029_s6 }
  0x20   : > { %741 = vmatpush.bf16.msra.mxu2 %v970_v22 }
  0x22   : > { %725 = vmatpush.bf16.msra.mxu1 %v964_v11 }
  0x25   : > { %381 = vrot.lane.b32.xlu2 %v359_v24, %s1029_s6 }
  0x27   : > { %437 = vrot.lane.b32.xlu1 %v1122_v26, %s1028_s30  ;;  %435 = vrot.lane.b32.xlu0 %v1109_v16, %s1028_s30 }
  0x2d   : > { %387 = vrot.lane.b32.xlu2 %v1130_v35, %s1029_s6 }
  0x2f   : > { %385 = vrot.lane.b32.xlu1 %v1133_v37, %s1029_s6  ;;  %383 = vrot.lane.b32.xlu0 %v1135_v38, %s1029_s6  ;;  %s953_s6 = sshll.u32 %s1307_s18, 4 }
  0x30   : > { %s332_s9 = scalar_lea.vmem %s1301_s5, %s953_s6 }
  0x35   : > { %450 = vrot.lane.b32.xlu2 %v1144_v41, %s1030_s7 }
  0x37   : > { %448 = vrot.lane.b32.xlu1 %v1130_v35, %s1030_s7  ;;  %446 = vrot.lane.b32.xlu0 %v1133_v37, %s1030_s7 }
  0x3d   : > { %395 = vrot.lane.b32.xlu2 %v390_v14, %s1028_s30  ;;  %v963_v14 = vld [vmem:[%s1298_s2 + $0x48] sm:$0xff] }
  0x3e   : > { %726 = vmatpush.bf16.msra.mxu1 %v963_v14  ;;  %v1003_v14 = vld [vmem:[%s1300_s4] ss:$0 sm:$0xff] }
  0x3f   : > { %452 = vrot.lane.b32.xlu0 %v445_v45, %s1030_s7  ;;  %393 = vrot.lane.b32.xlu1 %v389_v46, %s1028_s30 }
  0x42   : > { %727 = vmatpush.bf16.msra.mxu1 %v962_v21 }
  0x45   : > { %404 = vrot.lane.b32.xlu2 %v350_v10, %s1030_s7  ;;  %v956_v10 = vld [vmem:[%s1298_s2 + $0x10] sm:$0xff] }
  0x46   : > { %711 = vmatpush.bf16.msra.mxu0 %v956_v10 }
  0x47   : > { %397 = vrot.lane.b32.xlu0 %v1112_v19, %s1028_s30  ;;  %399 = vrot.lane.b32.xlu1 %v1103_v13, %s1028_s30 }
  0x4d   : > { %410 = vrot.lane.b32.xlu2 %v1109_v16, %s1030_s7 }
  0x4f   : > { %406 = vrot.lane.b32.xlu0 %v351_v12, %s1030_s7  ;;  %408 = vrot.lane.b32.xlu1 %v1100_v9, %s1030_s7  ;;  %v955_v12 = vld [vmem:[%s1298_s2 + $0x8] sm:$0xff] }
  0x50   : > { %712 = vmatpush.bf16.msra.mxu0 %v955_v12 }
  0x54   : > { %713 = vmatpush.bf16.msra.mxu0 %v954_v20 }
  0x6f   : > { %v432_v47 = vpop.permute.xlu2 %431 }
  0x77   : > { %v1159_v48 = vpop.permute.xlu2 %433 }
  0x7f   : > { %v382_v49 = vpop.permute.xlu2 %381 }
  0x80   : > { %v458_v31 = vsel %vm455_vm0, %v1097_v7, %v382_v49 }
  0x87   : > { %v1177_v58 = vpop.permute.xlu2 %387 }
  0x88   : > { %v467_v44 = vsel %vm455_vm0, %v1085_v0, %v1177_v58 }
  0x89   : > { %v1161_v50 = vpop.permute.xlu1 %424  ;;  %v421_v51 = vpop.permute.xlu0 %420 }
  0x8a   : > { %v488_v25 = vsel %vm455_vm0, %v1135_v38, %v421_v51 }
  0x8b   : > { %v499_v27 = vsel %vm468_vm1, %v488_v25, %v432_v47  ;;  %v875_v47 = vrot.slane %v1122_v26, 5 }
  0x8f   : > { %v1191_v4 = vpop.permute.xlu2 %450 }
  0x91   : > { %v427_v56 = vpop.permute.xlu1 %426  ;;  %v1175_v57 = vpop.permute.xlu0 %422 }
  0x92   : > { %v497_v40 = vsel %vm455_vm0, %v1144_v41, %v427_v56  ;;  %v494_v41 = vsel %vm455_vm0, %v1130_v35, %v1161_v50  ;;  %v491_v49 = vsel %vm455_vm0, %v1133_v37, %v1175_v57  ;;  %v521_v56 = vrot.slane %v1103_v13, 4 }
  0x93   : > { %v501_v26 = vsel %vm468_vm1, %v491_v49, %v1159_v48  ;;  %v523_v57 = vrot.slane %v419_v18, 4 }
  0x97   : > { %v396_v17 = vpop.permute.xlu2 %395 }
  0x99   : > { %v438_v63 = vpop.permute.xlu1 %437  ;;  %v436_v3 = vpop.permute.xlu0 %435 }
  0x9a   : > { %v505_v19 = vsel %vm468_vm1, %v497_v40, %v438_v63  ;;  %v503_v53 = vsel %vm468_vm1, %v494_v41, %v436_v3 }
  0x9b   : > { %v511_v35 = vsel %vm477_vm2, %v503_v53, %v1191_v4 }
  0x9c   : > { %v522_v58 = vrot.slane %v511_v35, 6 }
  0x9f   : > { %v405_v28 = vpop.permute.xlu2 %404 }
  0xa1   : > { %v1199_v8 = vpop.permute.xlu1 %385  ;;  %v384_v9 = vpop.permute.xlu0 %383 }
  0xa2   : > { %v461_v37 = vsel %vm455_vm0, %v1087_v1, %v384_v9  ;;  %v464_v48 = vsel %vm455_vm0, %v1092_v2, %v1199_v8  ;;  %v1002_v8 = vld [vmem:[%s1299_s3] ss:$0 sm:$0xff] }
  0xa3   : > { %v472_v59 = vsel %vm468_vm1, %v461_v37, %v396_v17 }
  0xa7   : > { %v411_v43 = vpop.permute.xlu2 %410 }
  0xa9   : > { %v449_v23 = vpop.permute.xlu1 %448  ;;  %v447_v24 = vpop.permute.xlu0 %446 }
  0xaa   : > { %v507_v29 = vsel %vm477_vm2, %v499_v27, %v447_v24  ;;  %v509_v50 = vsel %vm477_vm2, %v501_v26, %v449_v23 }
  0xab   : > { %v518_v34 = vrot.slane %v507_v29, 6  ;;  %v520_v60 = vrot.slane %v509_v50, 6 }
  0xb1   : > { %v453_v32 = vpop.permute.xlu0 %452  ;;  %v394_v33 = vpop.permute.xlu1 %393 }
  0xb2   : > { %v470_v36 = vsel %vm468_vm1, %v458_v31, %v394_v33  ;;  %v513_v7 = vsel %vm477_vm2, %v505_v19, %v453_v32 }
  0xb3   : > { %v479_v38 = vsel %vm477_vm2, %v470_v36, %v405_v28  ;;  %v524_v51 = vrot.slane %v513_v7, 6 }
  0xb4   : > { %v528_v39 = vsel %vm526_vm3, %v479_v38, %v518_v34 }
  0xb5   : > { %v531_v42 = vsel %vm529_vm4, %v528_v39, %v519_v30 }
  0xb6   : > { %584 = vst [vmem:[#allocation1] ss:$4 sm:$0xff] %v531_v42 }
  0xb9   : > { %v398_v45 = vpop.permute.xlu0 %397  ;;  %v400_v46 = vpop.permute.xlu1 %399 }
  0xba   : > { %v476_v52 = vsel %vm468_vm1, %v467_v44, %v400_v46  ;;  %v474_v61 = vsel %vm468_vm1, %v464_v48, %v398_v45 }
  0xbb   : > { %v485_v54 = vsel %vm477_vm2, %v476_v52, %v411_v43 }
  0xbc   : > { %v541_v0 = vsel %vm526_vm3, %v485_v54, %v524_v51 }
  0xbd   : > { %v543_v55 = vsel %vm529_vm4, %v541_v0, %v875_v47 }
  0xbe   : > { %590 = vst [vmem:[#allocation1 + $0x3] ss:$4 sm:$0xff] %v543_v55 }
  0xc1   : > { %v407_v62 = vpop.permute.xlu0 %406  ;;  %v409_v1 = vpop.permute.xlu1 %408 }
  0xc2   : > { %v481_v63 = vsel %vm477_vm2, %v472_v59, %v407_v62  ;;  %v483_v3 = vsel %vm477_vm2, %v474_v61, %v409_v1 }
  0xc3   : > { %v533_v13 = vsel %vm526_vm3, %v481_v63, %v520_v60  ;;  %v537_v16 = vsel %vm526_vm3, %v483_v3, %v522_v58 }
  0xc4   : > { %v535_v18 = vsel %vm529_vm4, %v533_v13, %v521_v56  ;;  %v539_v2 = vsel %vm529_vm4, %v537_v16, %v523_v57 }
  0xc5   : > { %586 = vst [vmem:[#allocation1 + $0x1] ss:$4 sm:$0xff] %v535_v18 }
  0xc6   : > { %588 = vst [vmem:[#allocation1 + $0x2] ss:$4 sm:$0xff] %v539_v2 }
  0xcd   : > { %v591_v4 = vld.sshfl [vmem:[#allocation1] sm:$0xff pattern:$0x73625140]  ;;  %v592_v5 = vld.sshfl [vmem:[#allocation1 + $0x8] sm:$0xff pattern:$0x73625140] }
  0xce   : > { %714 = vmatmul.bf16.vlgmr.msra.gmra.mxu0 %v591_v4  ;;  %728 = vmatmul.bf16.vlgmr.msra.gmra.mxu1 %v592_v5  ;;  %v593_v6 = vld.sshfl [vmem:[#allocation1 + $0x10] sm:$0xff pattern:$0x73625140] }
  0xcf   : > { %948 = vmatmul.msk.bf16.vlgmr.msra.gmra.mxu2 %vm455_vm0, %v593_v6 }
 0x14b   : > { %v715_v9 = vpop.f32.mrf.mxu0  ;;  %v729_v11 = vpop.f32.mrf.mxu1 }
 0x14c   : > { %v716_v10 = vadd.f32 %v1002_v8, %v715_v9 }
 0x14e   : > { %v730_v12 = vadd.f32 %v729_v11, %v716_v10 }
 0x152   : > { %v743_v15 = vpop.f32.mrf.mxu2 }
 0x153   : > { %v744_v17 = vadd.f32 %v743_v15, %v730_v12  ;;  %v717_v20 = vpop.f32.mrf.mxu0  ;;  %v731_v24 = vpop.f32.mrf.mxu1 }
 0x154   : > { %v718_v22 = vadd.f32 %v1002_v8, %v717_v20 }
 0x155   : > { %vm748_vm5 = vcmp.gt.f32.partialorder %v744_v17, 0.0  ;;  %v754_v21 = vmul.f32 %v1003_v14, %v744_v17 }
 0x156   : > { %v732_v25 = vadd.f32 %v731_v24, %v718_v22 }
 0x157   : > { %v756_v23 = vsel %vm748_vm5, %v744_v17, %v754_v21 }
 0x158   : > { %759 = vst.msk [vmem:[%s332_s9] sm:$0xff] %vm758_vm6, %v756_v23 }
 0x15a   : > { %v745_v27 = vpop.f32.mrf.mxu2 }
 0x15b   : > { %v746_v28 = vadd.f32 %v745_v27, %v732_v25 }
 0x15d   : > { %vm749_vm7 = vcmp.gt.f32.partialorder %v746_v28, 0.0  ;;  %v755_v29 = vmul.f32 %v1003_v14, %v746_v28 }
 0x15f   : > { %v757_v30 = vsel %vm749_vm7, %v746_v28, %v755_v29 }
 0x160   : > { %760 = vst.msk [vmem:[%s332_s9 + $0x8] sm:$0xff] %vm758_vm6, %v757_v30 }
 0x161 PF: > { %s15_s20 = sadd.s32 1, %s1026_s20   ;;  %s1302_s18 = smov %s1022_s19 }
 0x162   : > { %p12_p5 = scmp.ge.s32.totalorder %s15_s20, 4   ;;  %s1303_s19 = smov %s1305_s21 }
 0x164   :  { %14 = sbr.rel (!%p12_p5) target bundleno = 2 (0x2), region = 76 }

// kernel: ifblock_forward.6
= control target key start
LH: loop header
LB: loop body
LE: loop exit
PB: predicated region body
PF: predicated region fallthrough
CT: control target
= control target key end

     0   :  { %s6448_s15 = smov 0   ;;  %s7765_s0 = inlined_call_operand.vmem [shape: bf16[2,4,4,32], index: 0, kind: input, shape index: {}]   ;;  %s7766_s1 = inlined_call_operand.vmem [shape: bf16[8,288,32], index: 1, kind: input, shape index: {}]   ;;  %s7767_s2 = inlined_call_operand.vmem [shape: f32[8,1,32], index: 2, kind: input, shape index: {}]   ;;  %s7768_s3 = inlined_call_operand.vmem [shape: f32[8,1,32], index: 3, kind: input, shape index: {}]   ;;  %s7769_s4 = inlined_call_operand.vmem [shape: bf16[2,4,4,32], index: 4, kind: output, shape index: {}]  }
   0x1 LB: > { %s5344_s16 = sadd.s32 4294967295, %s6417_s15   ;;  %p5348_p0 = scmp.ge.s32.totalorder %s6417_s15, 1  ;;  %s6417_s15 = sphi %s6448_s15, %s14_s15  }
   0x2   : > { %p162_p1 = scmp.lt.s32.totalorder %s6417_s15, 3 }
   0x4   : > { %p163_p2 = pnand %p5348_p0, %p162_p1 }
   0x5   : > { %p188_p3 = scmp.lt.s32.totalorder (!%p163_p2), %s5344_s16, 1  ;;  %s6420_s21 = smov (!%p163_p2), 64  }
   0x6   : > { %166 = sbr.rel (%p163_p2) target bundleno = 2738 (0xab2), region = 36  ;;  %s6421_s22 = smov (!%p163_p2), 96  }
   0x7   : > { %s6422_s23 = smov (!%p163_p2), 32  }
   0xb   : > { %vm199_vm0 = vcmask 256000   ;;  %v6419_v0 = vmov 0   ;;  %s7773_s16 = smov (!%p188_p3, %s5344_s16), 1  ;;  %vm255_vm1 = vsmask.f32 2306  ;;  %vm546_vm3 = vcmask 261120  }
   0xc   : > { %205 = vst.msk [vmem:[#allocation2 + $0x14] sm:$0x7] %vm199_vm0, %v6419_v0  ;;  %s6237_s17 = sshll.u32 %s7773_s16, 3  ;;  %vm6485_vm2 = vmand %vm199_vm0, %vm255_vm1  ;;  %vm559_vm4 = vcmask 523264   ;;  %vm568_vm5 = vcmask 785408   ;;  %vm617_vm6 = vcmask 1041408  }
   0xd   : > { %201 = vst.msk [vmem:[#allocation2 + $0x4] sm:$0x7] %vm199_vm0, %v6419_v0  ;;  %s192_s20 = scalar_lea.vmem %s7765_s0, %s6237_s17  ;;  %vm620_vm7 = vcmask 1043456   ;;  %s197_s14 = scalar_lea.vmem %s7769_s4, %s6237_s17 }
   0xe   : > { %202 = vst.msk [vmem:[#allocation2 + $0x8] sm:$0x7] %vm199_vm0, %v6419_v0  ;;  %v6470_v1 = vld [vmem:[%s192_s20 + $0x6] sm:$0x3]  ;;  %v6472_v2 = vld [vmem:[%s192_s20] sm:$0x3] }
   0xf   : > { %203 = vst.msk [vmem:[#allocation2 + $0xc] sm:$0x7] %vm199_vm0, %v6419_v0  ;;  %v6474_v3 = vld [vmem:[%s192_s20 + $0x2] sm:$0x3]  ;;  %v6478_v8 = vld [vmem:[%s192_s20 + $0x4] sm:$0x3] }
  0x10   : > { %204 = vst.msk [vmem:[#allocation2 + $0x10] sm:$0x7] %vm199_vm0, %v6419_v0 }
  0x11   : > { %200 = vst.msk [vmem:[#allocation2] sm:$0x7] %vm199_vm0, %v6419_v0 }
  0x12   : > { %223 = vst [vmem:[#allocation1 + $0x30] ss:$2 sm:$0xff] %v6470_v1 }
  0x13   : > { %v297_v4 = vld [vmem:[#allocation2 + $0x14] sm:$0x3]  ;;  %211 = vst [vmem:[#allocation1] ss:$2 sm:$0xff] %v6472_v2 }
  0x14   : > { %v301_v5 = vld [vmem:[#allocation2 + $0x14] sm:$0x7]  ;;  %v469_v6 = vunpack.c.l.b16 %v297_v4  ;;  %215 = vst [vmem:[#allocation1 + $0x10] ss:$2 sm:$0xff] %v6474_v3  ;;  %v257_v42 = vld [vmem:[#allocation2 + $0x4] sm:$0x7] }
  0x15   : > { %v489_v7 = vunpack.c.l.b16 %v301_v5  ;;  %219 = vst [vmem:[#allocation1 + $0x20] ss:$2 sm:$0xff] %v6478_v8  ;;  %v260_v47 = vld [vmem:[#allocation2 + $0x8] sm:$0x7] }
  0x16   : > { %v473_v9 = vpack.c.b16 %v469_v6, %v469_v6  ;;  %v263_v50 = vld [vmem:[#allocation2 + $0xc] sm:$0x7] }
  0x17   : > { %v493_v10 = vpack.c.b16 %v489_v7, %v489_v7  ;;  %v266_v32 = vld [vmem:[#allocation2 + $0x10] sm:$0x7] }
  0x18   : > { %480 = vrot.lane.b32.xlu1 %v473_v9, %s6420_s21  ;;  %v273_v13 = vld [vmem:[#allocation2] sm:$0x7] }
  0x19   : > { %v516_v11 = vshrl.u32 %v493_v10, 16  ;;  %v518_v12 = vshll.u32 %v493_v10, 16  ;;  %v277_v14 = vld [vmem:[#allocation2] sm:$0x6]  ;;  %v310_v15 = vunpack.c.l.b16 %v273_v13 }
  0x1a   : > { %v358_v16 = vunpack.c.l.b16 %v277_v14  ;;  %v224_v18 = vld.sshfl [vmem:[#allocation1 + $0x30] sm:$0xff pattern:$0x75643120]  ;;  %v212_v23 = vld.sshfl [vmem:[#allocation1] sm:$0xff pattern:$0x75643120] }
  0x1b   : > { %v520_v17 = vrot.slane %v518_v12, 1  ;;  %v314_v19 = vpack.c.b16 %v310_v15, %v310_v15  ;;  %v243_v21 = vshrl.u32 %v224_v18, 16  ;;  %v246_v22 = vshll.u32 %v224_v18, 16  ;;  %v216_v25 = vld.sshfl [vmem:[#allocation1 + $0x10] sm:$0xff pattern:$0x75643120] }
  0x1c   : > { %v362_v20 = vpack.c.b16 %v358_v16, %v358_v16  ;;  %v225_v26 = vshrl.u32 %v212_v23, 16  ;;  %v228_v27 = vshll.u32 %v212_v23, 16  ;;  %v231_v34 = vshrl.u32 %v216_v25, 16  ;;  %v220_v36 = vld.sshfl [vmem:[#allocation1 + $0x20] sm:$0xff pattern:$0x75643120] }
  0x1d   : > { %v521_v24 = vor.u32 %v520_v17, %v516_v11  ;;  %v319_v28 = vshrl.u32 %v314_v19, 16  ;;  %v321_v29 = vshll.u32 %v314_v19, 16  ;;  %v245_v31 = vrot.slane %v243_v21, 7 }
  0x1e   : > { %v366_v30 = vrot.slane %v362_v20, 1  ;;  %v234_v35 = vshll.u32 %v216_v25, 16  ;;  %v227_v37 = vrot.slane %v225_v26, 7  ;;  %v237_v40 = vshrl.u32 %v220_v36, 16 }
  0x1f   : > { %528 = vrot.lane.b32.xlu0 %v521_v24, %s6421_s22  ;;  %v323_v38 = vrot.slane %v321_v29, 1  ;;  %v248_v39 = vor.u32 %v246_v22, %v245_v31  ;;  %v240_v41 = vshll.u32 %v220_v36, 16  ;;  %v233_v43 = vrot.slane %v231_v34, 7 }
  0x20   : > { %370 = vrot.lane.b32.xlu1 %v366_v30, %s6420_s21  ;;  %v230_v44 = vor.u32 %v228_v27, %v227_v37  ;;  %v239_v48 = vrot.slane %v237_v40, 7 }
  0x21   : > { %v324_v45 = vor.u32 %v323_v38, %v319_v28  ;;  %v267_v46 = vsel %vm6485_vm2, %v248_v39, %v266_v32  ;;  %v236_v49 = vor.u32 %v234_v35, %v233_v43 }
  0x22   : > { %268 = vst [vmem:[#allocation2 + $0x10] sm:$0x7] %v267_v46  ;;  %v258_v51 = vsel %vm6485_vm2, %v230_v44, %v257_v42  ;;  %v242_v52 = vor.u32 %v240_v41, %v239_v48 }
  0x23   : > { %346 = vrot.lane.b32.xlu2 %v324_v45, %s6422_s23  ;;  %259 = vst [vmem:[#allocation2 + $0x4] sm:$0x7] %v258_v51  ;;  %v261_v53 = vsel %vm6485_vm2, %v236_v49, %v260_v47 }
  0x24   : > { %262 = vst [vmem:[#allocation2 + $0x8] sm:$0x7] %v261_v53  ;;  %v264_v54 = vsel %vm6485_vm2, %v242_v52, %v263_v50 }
  0x25   : > { %265 = vst [vmem:[#allocation2 + $0xc] sm:$0x7] %v264_v54 }
  0x29   : > { %v296_v55 = vld [vmem:[#allocation2 + $0x10] sm:$0x3] }
  0x2a   : > { %v468_v56 = vunpack.c.l.b16 %v296_v55  ;;  %v289_v57 = vld [vmem:[#allocation2 + $0x4] sm:$0x6]  ;;  %v292_v63 = vld [vmem:[#allocation2 + $0x10] sm:$0x6] }
  0x2b   : > { %v442_v58 = vunpack.c.l.b16 %v289_v57  ;;  %v294_v60 = vld [vmem:[#allocation2 + $0x8] sm:$0x3]  ;;  %v274_v10 = vld [vmem:[#allocation2 + $0x4] sm:$0x7]  ;;  %v445_v12 = vunpack.c.l.b16 %v292_v63  ;;  %v300_v38 = vld [vmem:[#allocation2 + $0x10] sm:$0x7] }
  0x2c   : > { %v472_v59 = vpack.c.b16 %v468_v56, %v468_v56  ;;  %v466_v61 = vunpack.c.l.b16 %v294_v60  ;;  %v291_v62 = vld [vmem:[#allocation2 + $0xc] sm:$0x6]  ;;  %v275_v0 = vld [vmem:[#allocation2 + $0x8] sm:$0x7]  ;;  %v278_v18 = vld [vmem:[#allocation2 + $0x4] sm:$0x6]  ;;  %v311_v20 = vunpack.c.l.b16 %v274_v10  ;;  %v488_v45 = vunpack.c.l.b16 %v300_v38 }
  0x2d   : > { %v444_v4 = vunpack.c.l.b16 %v291_v62  ;;  %v295_v5 = vld [vmem:[#allocation2 + $0xc] sm:$0x3]  ;;  %v446_v6 = vpack.c.b16 %v442_v58, %v442_v58  ;;  %v290_v9 = vld [vmem:[#allocation2 + $0x8] sm:$0x6]  ;;  %v312_v13 = vunpack.c.l.b16 %v275_v0  ;;  %v449_v21 = vpack.c.b16 %v445_v12, %v445_v12  ;;  %v281_v12 = vld [vmem:[#allocation2 + $0x4] sm:$0x3] }
  0x2e   : > { %478 = vrot.lane.b32.xlu0 %v472_v59, %s6420_s21  ;;  %v470_v7 = vpack.c.b16 %v466_v61, %v466_v61  ;;  %v467_v14 = vunpack.c.l.b16 %v295_v5  ;;  %v443_v17 = vunpack.c.l.b16 %v290_v9  ;;  %v276_v19 = vld [vmem:[#allocation2 + $0xc] sm:$0x7]  ;;  %v359_v24 = vunpack.c.l.b16 %v278_v18  ;;  %v298_v29 = vld [vmem:[#allocation2 + $0x8] sm:$0x7] }
  0x2f   : > { %v448_v11 = vpack.c.b16 %v444_v4, %v444_v4  ;;  %v450_v16 = vrot.slane %v446_v6, 1  ;;  %v316_v22 = vpack.c.b16 %v312_v13, %v312_v13  ;;  %v313_v25 = vunpack.c.l.b16 %v276_v19  ;;  %v299_v26 = vld [vmem:[#allocation2 + $0xc] sm:$0x7]  ;;  %v279_v63 = vld [vmem:[#allocation2 + $0x8] sm:$0x6] }
  0x30   : > { %474 = vrot.lane.b32.xlu2 %v470_v7, %s6420_s21  ;;  %v471_v23 = vpack.c.b16 %v467_v14, %v467_v14  ;;  %v447_v27 = vpack.c.b16 %v443_v17, %v443_v17  ;;  %v315_v28 = vpack.c.b16 %v311_v20, %v311_v20  ;;  %v453_v30 = vrot.slane %v449_v21, 1  ;;  %v280_v60 = vld [vmem:[#allocation2 + $0xc] sm:$0x6]  ;;  %v282_v18 = vld [vmem:[#allocation2 + $0x8] sm:$0x3] }
  0x31   : > { %v452_v15 = vrot.slane %v448_v11, 1  ;;  %v335_v31 = vshll.u32 %v316_v22, 16  ;;  %v487_v32 = vunpack.c.l.b16 %v299_v26  ;;  %v363_v34 = vpack.c.b16 %v359_v24, %v359_v24  ;;  %v6245_v38 = vld [vmem:[%s7766_s1 + $0x30] sm:$0xff] }
  0x32   : > { %v317_v35 = vpack.c.b16 %v313_v25, %v313_v25  ;;  %v451_v36 = vrot.slane %v447_v27, 1  ;;  %v328_v37 = vshll.u32 %v315_v28, 16  ;;  %v486_v39 = vunpack.c.l.b16 %v298_v29 }
  0x33   : > { %458 = vrot.lane.b32.xlu1 %v452_v15, %s6422_s23  ;;  %v333_v40 = vshrl.u32 %v316_v22, 16  ;;  %v337_v41 = vrot.slane %v335_v31, 1  ;;  %v491_v42 = vpack.c.b16 %v487_v32, %v487_v32  ;;  %v367_v43 = vrot.slane %v363_v34, 1  ;;  %v284_v22 = vld [vmem:[#allocation2 + $0x10] sm:$0x3] }
  0x34   : > { %v342_v44 = vshll.u32 %v317_v35, 16  ;;  %v326_v46 = vshrl.u32 %v315_v28, 16  ;;  %v330_v47 = vrot.slane %v328_v37, 1  ;;  %v490_v48 = vpack.c.b16 %v486_v39, %v486_v39  ;;  %v6253_v39 = vld [vmem:[%s7766_s1 + $0x70] sm:$0xff] }
  0x35   : > { %v338_v49 = vor.u32 %v337_v41, %v333_v40  ;;  %v504_v50 = vshll.u32 %v491_v42, 16  ;;  %v340_v51 = vshrl.u32 %v317_v35, 16  ;;  %v492_v53 = vpack.c.b16 %v488_v45, %v488_v45  ;;  %v6246_v35 = vld [vmem:[%s7766_s1 + $0x38] sm:$0xff]  ;;  %v285_v41 = vld [vmem:[#allocation2 + $0x4] sm:$0x7] }
  0x36   : > { %454 = vrot.lane.b32.xlu0 %v450_v16, %s6422_s23  ;;  %v344_v52 = vrot.slane %v342_v44, 1  ;;  %v331_v54 = vor.u32 %v330_v47, %v326_v46  ;;  %v497_v55 = vshll.u32 %v490_v48, 16  ;;  %v502_v56 = vshrl.u32 %v491_v42, 16  ;;  %v283_v16 = vld [vmem:[#allocation2 + $0xc] sm:$0x3]  ;;  %797 = vmatpush.bf16.msra.mxu0 %v6246_v35  ;;  %v6252_v44 = vld [vmem:[%s7766_s1 + $0x68] sm:$0xff] }
  0x37   : > { %v506_v57 = vrot.slane %v504_v50, 1  ;;  %v511_v59 = vshll.u32 %v492_v53, 16  ;;  %v495_v61 = vshrl.u32 %v490_v48, 16  ;;  %v361_v4 = vunpack.c.l.b16 %v280_v60  ;;  %v288_v42 = vld [vmem:[#allocation2 + $0x10] sm:$0x7]  ;;  %v6251_v50 = vld [vmem:[%s7766_s1 + $0x60] sm:$0xff] }
  0x38   : > { %476 = vrot.lane.b32.xlu2 %v471_v23, %s6420_s21  ;;  %v345_v58 = vor.u32 %v344_v52, %v340_v51  ;;  %v499_v62 = vrot.slane %v497_v55, 1  ;;  %v509_v5 = vshrl.u32 %v492_v53, 16  ;;  %v360_v9 = vunpack.c.l.b16 %v279_v63  ;;  %v6250_v55 = vld [vmem:[%s7766_s1 + $0x58] sm:$0xff]  ;;  %v6241_v63 = vld [vmem:[%s7766_s1 + $0x10] sm:$0xff] }
  0x39   : > { %v507_v0 = vor.u32 %v506_v57, %v502_v56  ;;  %v513_v6 = vrot.slane %v511_v59, 1  ;;  %v365_v10 = vpack.c.b16 %v361_v4, %v361_v4  ;;  %v382_v15 = vunpack.c.l.b16 %v281_v12  ;;  %v287_v56 = vld [vmem:[#allocation2 + $0xc] sm:$0x7]  ;;  %v286_v59 = vld [vmem:[#allocation2 + $0x8] sm:$0x7] }
  0x3a   : > { %v500_v7 = vor.u32 %v499_v62, %v495_v61  ;;  %v364_v13 = vpack.c.b16 %v360_v9, %v360_v9  ;;  %v384_v19 = vunpack.c.l.b16 %v283_v16  ;;  %v383_v21 = vunpack.c.l.b16 %v282_v18  ;;  %798 = vmatpush.bf16.msra.mxu0 %v6245_v38 }
  0x3b   : > { %460 = vrot.lane.b32.xlu1 %v453_v30, %s6422_s23  ;;  %v514_v11 = vor.u32 %v513_v6, %v509_v5  ;;  %v369_v14 = vrot.slane %v365_v10, 1  ;;  %v386_v20 = vpack.c.b16 %v382_v15, %v382_v15  ;;  %v385_v24 = vunpack.c.l.b16 %v284_v22  ;;  %v6256_v15 = vld [vmem:[%s7766_s1 + $0x88] sm:$0xff] }
  0x3c   : > { %v368_v17 = vrot.slane %v364_v13, 1  ;;  %v388_v23 = vpack.c.b16 %v384_v19, %v384_v19  ;;  %v387_v25 = vpack.c.b16 %v383_v21, %v383_v21  ;;  %v402_v47 = vunpack.c.l.b16 %v285_v41  ;;  %v6240_v13 = vld [vmem:[%s7766_s1 + $0x8] sm:$0xff]  ;;  %v305_v21 = vld [vmem:[#allocation2 + $0x14] sm:$0x6]  ;;  %831 = vmatpush.bf16.msra.mxu3 %v6256_v15 }
  0x3d   : > { %v389_v26 = vpack.c.b16 %v385_v24, %v385_v24  ;;  %v405_v48 = vunpack.c.l.b16 %v288_v42  ;;  %v404_v61 = vunpack.c.l.b16 %v287_v56  ;;  %v403_v4 = vunpack.c.l.b16 %v286_v59  ;;  %v6247_v24 = vld [vmem:[%s7766_s1 + $0x40] sm:$0xff]  ;;  %v930_v41 = vld [vmem:[#allocation2 + $0x14] sm:$0x3] }
  0x3e   : > { %456 = vrot.lane.b32.xlu0 %v451_v36, %s6422_s23  ;;  %v6254_v36 = vld [vmem:[%s7766_s1 + $0x78] sm:$0xff]  ;;  %v406_v51 = vpack.c.b16 %v402_v47, %v402_v47  ;;  %v1102_v47 = vunpack.c.l.b16 %v930_v41 }
  0x3f   : > { %811 = vmatpush.bf16.msra.mxu1 %v6254_v36  ;;  %v409_v52 = vpack.c.b16 %v405_v48, %v405_v48  ;;  %v408_v12 = vpack.c.b16 %v404_v61, %v404_v61  ;;  %v407_v16 = vpack.c.b16 %v403_v4, %v403_v4  ;;  %v304_v61 = vld [vmem:[#allocation2 + $0x10] sm:$0x6] }
  0x40   : > { %372 = vrot.lane.b32.xlu2 %v367_v43, %s6420_s21  ;;  %v6244_v43 = vld [vmem:[%s7766_s1 + $0x28] sm:$0xff]  ;;  %v411_v5 = vshrl.u32 %v406_v51, 16 }
  0x41   : > { %799 = vmatpush.bf16.msra.mxu0 %v6244_v43  ;;  %v434_v60 = vshll.u32 %v409_v52, 16  ;;  %v427_v22 = vshll.u32 %v408_v12, 16  ;;  %v420_v35 = vshll.u32 %v407_v16, 16 }
  0x43   : > { %350 = vrot.lane.b32.xlu1 %v338_v49, %s6422_s23  ;;  %812 = vmatpush.bf16.msra.mxu1 %v6253_v39  ;;  %v6243_v49 = vld [vmem:[%s7766_s1 + $0x20] sm:$0xff]  ;;  %v436_v9 = vrot.slane %v434_v60, 1 }
  0x45   : > { %800 = vmatpush.bf16.msra.mxu0 %v6243_v49  ;;  %v425_v49 = vshrl.u32 %v408_v12, 16 }
  0x46   : > { %348 = vrot.lane.b32.xlu0 %v331_v54, %s6422_s23  ;;  %v6242_v54 = vld [vmem:[%s7766_s1 + $0x18] sm:$0xff] }
  0x47   : > { %813 = vmatpush.bf16.msra.mxu1 %v6252_v44  ;;  %v537_v44 = vunpack.c.l.b16 %v305_v21 }
  0x48   : > { %352 = vrot.lane.b32.xlu2 %v345_v58, %s6422_s23  ;;  %v413_v58 = vshll.u32 %v406_v51, 16  ;;  %v418_v51 = vshrl.u32 %v407_v16, 16 }
  0x49   : > { %801 = vmatpush.bf16.msra.mxu0 %v6242_v54  ;;  %v541_v60 = vpack.c.b16 %v537_v44, %v537_v44 }
  0x4a   : > { %v415_v6 = vrot.slane %v413_v58, 1 }
  0x4b   : > { %524 = vrot.lane.b32.xlu1 %v507_v0, %s6421_s22  ;;  %814 = vmatpush.bf16.msra.mxu1 %v6251_v50  ;;  %v6249_v0 = vld [vmem:[%s7766_s1 + $0x50] sm:$0xff]  ;;  %v429_v50 = vrot.slane %v427_v22, 1 }
  0x4c   : > { %v416_v18 = vor.u32 %v415_v6, %v411_v5  ;;  %v303_v5 = vld [vmem:[#allocation2 + $0xc] sm:$0x6] }
  0x4d   : > { %802 = vmatpush.bf16.msra.mxu0 %v6241_v63  ;;  %v272_v63 = vld [vmem:[#allocation2 + $0xc] sm:$0x3]  ;;  %v535_v16 = vunpack.c.l.b16 %v303_v5 }
  0x4e   : > { %522 = vrot.lane.b32.xlu0 %v500_v7, %s6421_s22  ;;  %v432_v7 = vshrl.u32 %v409_v52, 16 }
  0x4f   : > { %815 = vmatpush.bf16.msra.mxu1 %v6250_v55  ;;  %v1106_v55 = vpack.c.b16 %v1102_v47, %v1102_v47 }
  0x50   : > { %526 = vrot.lane.b32.xlu2 %v514_v11, %s6421_s22  ;;  %v302_v11 = vld [vmem:[#allocation2 + $0x8] sm:$0x6] }
  0x51   : > { %v534_v19 = vunpack.c.l.b16 %v302_v11  ;;  %803 = vmatpush.bf16.msra.mxu0 %v6240_v13  ;;  %v5356_v13 = vrot.slane %v541_v60, 5 }
  0x53   : > { %376 = vrot.lane.b32.xlu1 %v369_v14, %s6420_s21  ;;  %816 = vmatpush.bf16.msra.mxu1 %v6249_v0  ;;  %v6248_v14 = vld [vmem:[%s7766_s1 + $0x48] sm:$0xff]  ;;  %v538_v39 = vpack.c.b16 %v534_v19, %v534_v19 }
  0x55   : > { %v5353_v56 = vrot.slane %v538_v39, 5 }
  0x56   : > { %374 = vrot.lane.b32.xlu0 %v368_v17, %s6420_s21 }
  0x57   : > { %817 = vmatpush.bf16.msra.mxu1 %v6248_v14 }
  0x58   : > { %390 = vrot.lane.b32.xlu2 %v386_v20, %s6421_s22  ;;  %v437_v20 = vor.u32 %v436_v9, %v432_v7  ;;  %v536_v9 = vunpack.c.l.b16 %v304_v61 }
  0x5b   : > { %394 = vrot.lane.b32.xlu1 %v388_v23, %s6421_s22  ;;  %v6239_v23 = vld [vmem:[%s7766_s1] sm:$0xff]  ;;  %818 = vmatpush.bf16.msra.mxu1 %v6247_v24  ;;  %v270_v24 = vld [vmem:[#allocation2 + $0x4] sm:$0x3] }
  0x5c   : > { %804 = vmatpush.bf16.msra.mxu0 %v6239_v23 }
  0x5e   : > { %392 = vrot.lane.b32.xlu0 %v387_v25, %s6421_s22  ;;  %v6255_v25 = vld [vmem:[%s7766_s1 + $0x80] sm:$0xff] }
  0x5f   : > { %832 = vmatpush.bf16.msra.mxu3 %v6255_v25 }
  0x60   : > { %396 = vrot.lane.b32.xlu2 %v389_v26, %s6421_s22  ;;  %v269_v26 = vld [vmem:[#allocation2] sm:$0x3] }
  0x63   : > { %1113 = vrot.lane.b32.xlu1 %v1106_v55, %s6420_s21 }
  0x7d   : > { %v6520_v27 = vpop.permute.xlu2 %346 }
  0x7e   : > { %v549_v48 = vsel %vm546_vm3, %v269_v26, %v6520_v27 }
  0x8a   : > { %v6522_v28 = vpop.permute.xlu2 %474  ;;  %v6524_v29 = vpop.permute.xlu1 %480 }
  0x91   : > { %v6528_v31 = vpop.permute.xlu0 %528 }
  0x92   : > { %v6526_v30 = vpop.permute.xlu2 %476  ;;  %v6530_v32 = vpop.permute.xlu1 %370 }
  0x93   : > { %v561_v27 = vsel %vm559_vm4, %v549_v48, %v6530_v32 }
  0x9a   : > { %v6532_v34 = vpop.permute.xlu2 %372 }
  0xa0   : > { %v6540_v37 = vpop.permute.xlu0 %478 }
  0xa2   : > { %v6556_v46 = vpop.permute.xlu2 %352 }
  0xa3   : > { %v558_v11 = vsel %vm546_vm3, %v272_v63, %v6556_v46  ;;  %v540_v46 = vpack.c.b16 %v536_v9, %v536_v9 }
  0xa5   : > { %v6548_v40 = vpop.permute.xlu1 %458  ;;  %v5355_v39 = vrot.slane %v540_v46, 5 }
  0xa8   : > { %v455_v45 = vpop.permute.xlu0 %454 }
  0xa9   : > { %v579_v36 = vsel %vm546_vm3, %v416_v18, %v455_v45  ;;  %v422_v45 = vrot.slane %v420_v35, 1  ;;  %v271_v18 = vld [vmem:[#allocation2 + $0x8] sm:$0x3]  ;;  %v539_v35 = vpack.c.b16 %v535_v16, %v535_v16 }
  0xaa   : > { %v6572_v62 = vpop.permute.xlu2 %526  ;;  %v590_v52 = vsel %vm559_vm4, %v579_v36, %v6522_v28  ;;  %v430_v28 = vor.u32 %v429_v50, %v425_v49 }
  0xab   : > { %v423_v6 = vor.u32 %v422_v45, %v418_v51  ;;  %v5354_v44 = vrot.slane %v539_v35, 5 }
  0xac   : > { %v585_v14 = vsel %vm546_vm3, %v430_v28, %v6548_v40 }
  0xad   : > { %v461_v53 = vpop.permute.xlu1 %460  ;;  %v594_v23 = vsel %vm559_vm4, %v585_v14, %v6540_v37  ;;  %v6396_v14 = vld [vmem:[%s7768_s3] ss:$0 sm:$0xff] }
  0xae   : > { %v588_v42 = vsel %vm546_vm3, %v437_v20, %v461_v53  ;;  %v602_v25 = vsel %vm568_vm5, %v594_v23, %v6572_v62 }
  0xaf   : > { %v596_v53 = vsel %vm559_vm4, %v588_v42, %v6524_v29  ;;  %v613_v41 = vrot.slane %v602_v25, 6 }
  0xb0   : > { %v6570_v57 = vpop.permute.xlu0 %456  ;;  %v604_v29 = vsel %vm568_vm5, %v596_v53, %v6528_v31 }
  0xb1   : > { %v615_v15 = vrot.slane %v604_v29, 6  ;;  %v582_v21 = vsel %vm546_vm3, %v423_v6, %v6570_v57 }
  0xb2   : > { %v391_v38 = vpop.permute.xlu2 %390  ;;  %v592_v57 = vsel %vm559_vm4, %v582_v21, %v6526_v30 }
  0xb3   : > { %v570_v0 = vsel %vm568_vm5, %v561_v27, %v391_v38  ;;  %v934_v27 = vld [vmem:[#allocation2 + $0x14] sm:$0x7] }
  0xb4   : > { %v1122_v60 = vunpack.c.l.b16 %v934_v27 }
  0xb5   : > { %v6580_v10 = vpop.permute.xlu1 %350 }
  0xb6   : > { %v555_v26 = vsel %vm546_vm3, %v271_v18, %v6580_v10  ;;  %v1126_v63 = vpack.c.b16 %v1122_v60, %v1122_v60 }
  0xb8   : > { %v6591_v17 = vpop.permute.xlu0 %348  ;;  %v1151_v29 = vshll.u32 %v1126_v63, 16  ;;  %v1149_v5 = vshrl.u32 %v1126_v63, 16 }
  0xb9   : > { %v552_v38 = vsel %vm546_vm3, %v270_v24, %v6591_v17 }
  0xba   : > { %v397_v32 = vpop.permute.xlu2 %396  ;;  %v563_v30 = vsel %vm559_vm4, %v552_v38, %v6532_v34  ;;  %v1153_v6 = vrot.slane %v1151_v29, 1  ;;  %v891_v38 = vld [vmem:[#allocation2 + $0x4] sm:$0x7] }
  0xbd   : > { %v525_v43 = vpop.permute.xlu1 %524 }
  0xbe   : > { %v600_v37 = vsel %vm568_vm5, %v592_v57, %v525_v43 }
  0xbf   : > { %v611_v47 = vrot.slane %v600_v37, 6 }
  0xc0   : > { %v523_v54 = vpop.permute.xlu0 %522 }
  0xc1   : > { %v598_v58 = vsel %vm568_vm5, %v590_v52, %v523_v54  ;;  %v911_v54 = vld [vmem:[#allocation2] sm:$0x6] }
  0xc2   : > { %v609_v59 = vrot.slane %v598_v58, 6  ;;  %v991_v55 = vunpack.c.l.b16 %v911_v54 }
  0xc4   : > { %v619_v4 = vsel %vm617_vm6, %v570_v0, %v609_v59  ;;  %v995_v34 = vpack.c.b16 %v991_v55, %v991_v55 }
  0xc5   : > { %v622_v7 = vsel %vm620_vm7, %v619_v4, %v5353_v56  ;;  %v377_v12 = vpop.permute.xlu1 %376  ;;  %v907_v56 = vld [vmem:[#allocation2] sm:$0x7] }
  0xc6   : > { %675 = vst [vmem:[#allocation1] ss:$4 sm:$0xff] %v622_v7  ;;  %v567_v31 = vsel %vm559_vm4, %v558_v11, %v377_v12  ;;  %v999_v53 = vrot.slane %v995_v34, 1  ;;  %v943_v58 = vunpack.c.l.b16 %v907_v56  ;;  %v1154_v7 = vor.u32 %v1153_v6, %v1149_v5 }
  0xc7   : > { %v576_v19 = vsel %vm568_vm5, %v567_v31, %v397_v32  ;;  %v6395_v32 = vld [vmem:[%s7767_s2] ss:$0 sm:$0xff] }
  0xc8   : > { %v375_v20 = vpop.permute.xlu0 %374  ;;  %v632_v22 = vsel %vm617_vm6, %v576_v19, %v615_v15  ;;  %1003 = vrot.lane.b32.xlu1 %v999_v53, %s6420_s21  ;;  %v947_v59 = vpack.c.b16 %v943_v58, %v943_v58  ;;  %1161 = vrot.lane.b32.xlu0 %v1154_v7, %s6421_s22  ;;  %v900_v53 = vld [vmem:[#allocation2 + $0x10] sm:$0x7] }
  0xc9   : > { %v634_v40 = vsel %vm620_vm7, %v632_v22, %v5356_v13  ;;  %v565_v36 = vsel %vm559_vm4, %v555_v26, %v375_v20 }
  0xca   : > { %681 = vst [vmem:[#allocation1 + $0x3] ss:$4 sm:$0xff] %v634_v40  ;;  %v954_v61 = vshll.u32 %v947_v59, 16  ;;  %v952_v28 = vshrl.u32 %v947_v59, 16 }
  0xcc   : > { %v956_v0 = vrot.slane %v954_v61, 1 }
  0xcd   : > { %v395_v42 = vpop.permute.xlu1 %394 }
  0xce   : > { %v574_v62 = vsel %vm568_vm5, %v565_v36, %v395_v42  ;;  %v957_v4 = vor.u32 %v956_v0, %v952_v28 }
  0xcf   : > { %v628_v10 = vsel %vm617_vm6, %v574_v62, %v613_v41  ;;  %v894_v62 = vld [vmem:[#allocation2 + $0x8] sm:$0x7] }
  0xd0   : > { %v393_v48 = vpop.permute.xlu0 %392  ;;  %v630_v49 = vsel %vm620_vm7, %v628_v10, %v5355_v39  ;;  %979 = vrot.lane.b32.xlu2 %v957_v4, %s6422_s23 }
  0xd1   : > { %v572_v50 = vsel %vm568_vm5, %v563_v30, %v393_v48  ;;  %679 = vst [vmem:[#allocation1 + $0x2] ss:$4 sm:$0xff] %v630_v49 }
  0xd2   : > { %v624_v17 = vsel %vm617_vm6, %v572_v50, %v611_v47 }
  0xd3   : > { %v626_v43 = vsel %vm620_vm7, %v624_v17, %v5354_v44 }
  0xd4   : > { %677 = vst [vmem:[#allocation1 + $0x1] ss:$4 sm:$0xff] %v626_v43 }
  0xdb   : > { %v682_v51 = vld.sshfl [vmem:[#allocation1] sm:$0xff pattern:$0x73625140]  ;;  %v683_v45 = vld.sshfl [vmem:[#allocation1 + $0x8] sm:$0xff pattern:$0x73625140] }
  0xdc   : > { %v684_v52 = vld.sshfl [vmem:[#allocation1 + $0x10] sm:$0xff pattern:$0x73625140]  ;;  %805 = vmatmul.bf16.vlgmr.msra.gmra.mxu0 %v682_v51  ;;  %819 = vmatmul.bf16.vlgmr.msra.gmra.mxu1 %v683_v45 }
  0xdd   : > { %5429 = vmatmul.msk.bf16.vlgmr.msra.gmra.mxu3 %vm546_vm3, %v684_v52  ;;  %v897_v52 = vld [vmem:[#allocation2 + $0xc] sm:$0x7] }
 0x159   : > { %v806_v9 = vpop.f32.mrf.mxu0  ;;  %v820_v12 = vpop.f32.mrf.mxu1 }
 0x15a   : > { %v807_v11 = vadd.f32 %v6395_v32, %v806_v9 }
 0x15c   : > { %v821_v13 = vadd.f32 %v820_v12, %v807_v11 }
 0x160   : > { %v834_v15 = vpop.f32.mrf.mxu3 }
 0x161   : > { %v835_v31 = vadd.f32 %v834_v15, %v821_v13  ;;  %v808_v16 = vpop.f32.mrf.mxu0  ;;  %v822_v46 = vpop.f32.mrf.mxu1 }
 0x162   : > { %v809_v19 = vadd.f32 %v6395_v32, %v808_v16 }
 0x163   : > { %vm839_vm8 = vcmp.gt.f32.partialorder %v835_v31, 0.0  ;;  %v845_v18 = vmul.f32 %v6396_v14, %v835_v31 }
 0x164   : > { %v823_v23 = vadd.f32 %v822_v46, %v809_v19 }
 0x165   : > { %v847_v20 = vsel %vm839_vm8, %v835_v31, %v845_v18 }
 0x166   : > { %v851_v21 = vrot.slane %v847_v20, 4  ;;  %v855_v22 = vpack.c.bf16 %v847_v20, %v847_v20 }
 0x168   : > { %v856_v24 = vpack.c.bf16 %v851_v21, %v851_v21  ;;  %v860_v40 = vshrl.u32 %v855_v22, 16  ;;  %v836_v25 = vpop.f32.mrf.mxu3  ;;  %v863_v57 = vshll.u32 %v855_v22, 16 }
 0x169   : > { %v837_v26 = vadd.f32 %v836_v25, %v823_v23 }
 0x16a   : > { %v862_v35 = vrot.slane %v860_v40, 7  ;;  %v867_v36 = vshrl.u32 %v856_v24, 16  ;;  %v870_v42 = vshll.u32 %v856_v24, 16 }
 0x16b   : > { %vm840_vm9 = vcmp.gt.f32.partialorder %v837_v26, 0.0  ;;  %v846_v37 = vmul.f32 %v6396_v14, %v837_v26 }
 0x16c   : > { %v865_v39 = vor.u32 %v863_v57, %v862_v35  ;;  %v869_v41 = vrot.slane %v867_v36, 7 }
 0x16d   : > { %v848_v44 = vsel %vm840_vm9, %v837_v26, %v846_v37 }
 0x16e   : > { %v872_v47 = vor.u32 %v870_v42, %v869_v41  ;;  %v892_v10 = vsel %vm6485_vm2, %v865_v39, %v891_v38  ;;  %v852_v48 = vrot.slane %v848_v44, 4  ;;  %v857_v30 = vpack.c.bf16 %v848_v44, %v848_v44 }
 0x16f   : > { %893 = vst [vmem:[#allocation2 + $0x4] sm:$0x7] %v892_v10 }
 0x170   : > { %v895_v49 = vsel %vm6485_vm2, %v872_v47, %v894_v62  ;;  %v858_v50 = vpack.c.bf16 %v852_v48, %v852_v48  ;;  %v874_v17 = vshrl.u32 %v857_v30, 16  ;;  %v877_v51 = vshll.u32 %v857_v30, 16 }
 0x171   : > { %896 = vst [vmem:[#allocation2 + $0x8] sm:$0x7] %v895_v49 }
 0x172   : > { %v876_v43 = vrot.slane %v874_v17, 7  ;;  %v881_v45 = vshrl.u32 %v858_v50, 16  ;;  %v884_v34 = vshll.u32 %v858_v50, 16 }
 0x174   : > { %v879_v54 = vor.u32 %v877_v51, %v876_v43  ;;  %v883_v55 = vrot.slane %v881_v45, 7 }
 0x176   : > { %v886_v56 = vor.u32 %v884_v34, %v883_v55  ;;  %v898_v58 = vsel %vm6485_vm2, %v879_v54, %v897_v52  ;;  %v915_v27 = vld [vmem:[#allocation2 + $0x4] sm:$0x3] }
 0x177   : > { %v923_v59 = vld [vmem:[#allocation2 + $0x4] sm:$0x6]  ;;  %899 = vst [vmem:[#allocation2 + $0xc] sm:$0x7] %v898_v58  ;;  %v1015_v61 = vunpack.c.l.b16 %v915_v27 }
 0x178   : > { %v912_v60 = vld [vmem:[#allocation2 + $0x4] sm:$0x6]  ;;  %v1075_v63 = vunpack.c.l.b16 %v923_v59  ;;  %v901_v0 = vsel %vm6485_vm2, %v886_v56, %v900_v53  ;;  %v927_v29 = vld [vmem:[#allocation2 + $0x8] sm:$0x3] }
 0x179   : > { %v908_v28 = vld [vmem:[#allocation2 + $0x4] sm:$0x7]  ;;  %v924_v4 = vld [vmem:[#allocation2 + $0x8] sm:$0x6]  ;;  %902 = vst [vmem:[#allocation2 + $0x10] sm:$0x7] %v901_v0  ;;  %v1019_v6 = vpack.c.b16 %v1015_v61, %v1015_v61  ;;  %v1099_v32 = vunpack.c.l.b16 %v927_v29  ;;  %v992_v9 = vunpack.c.l.b16 %v912_v60 }
 0x17a   : > { %v913_v5 = vld [vmem:[#allocation2 + $0x8] sm:$0x6]  ;;  %v1079_v7 = vpack.c.b16 %v1075_v63, %v1075_v63  ;;  %v1076_v12 = vunpack.c.l.b16 %v924_v4  ;;  %v944_v13 = vunpack.c.l.b16 %v908_v28 }
 0x17b   : > { %v909_v11 = vld [vmem:[#allocation2 + $0x8] sm:$0x7]  ;;  %1023 = vrot.lane.b32.xlu2 %v1019_v6, %s6421_s22  ;;  %v1103_v15 = vpack.c.b16 %v1099_v32, %v1099_v32  ;;  %v993_v31 = vunpack.c.l.b16 %v913_v5  ;;  %v996_v18 = vpack.c.b16 %v992_v9, %v992_v9 }
 0x17c   : > { %v1083_v14 = vrot.slane %v1079_v7, 1  ;;  %v945_v16 = vunpack.c.l.b16 %v909_v11  ;;  %v948_v19 = vpack.c.b16 %v944_v13, %v944_v13  ;;  %v1080_v20 = vpack.c.b16 %v1076_v12, %v1076_v12  ;;  %v931_v46 = vld [vmem:[#allocation2 + $0x8] sm:$0x7] }
 0x17d   : > { %1107 = vrot.lane.b32.xlu1 %v1103_v15, %s6420_s21  ;;  %v997_v21 = vpack.c.b16 %v993_v31, %v993_v31  ;;  %v1000_v23 = vrot.slane %v996_v18, 1  ;;  %v1119_v57 = vunpack.c.l.b16 %v931_v46 }
 0x17e   : > { %1087 = vrot.lane.b32.xlu0 %v1083_v14, %s6422_s23  ;;  %v949_v22 = vpack.c.b16 %v945_v16, %v945_v16  ;;  %v928_v24 = vld [vmem:[#allocation2 + $0xc] sm:$0x3]  ;;  %v961_v40 = vshll.u32 %v948_v19, 16  ;;  %v1084_v25 = vrot.slane %v1080_v20, 1  ;;  %v959_v62 = vshrl.u32 %v948_v19, 16 }
 0x17f   : > { %v1001_v26 = vrot.slane %v997_v21, 1  ;;  %v1100_v36 = vunpack.c.l.b16 %v928_v24  ;;  %v925_v37 = vld [vmem:[#allocation2 + $0xc] sm:$0x6]  ;;  %v1123_v42 = vpack.c.b16 %v1119_v57, %v1119_v57  ;;  %v916_v24 = vld [vmem:[#allocation2 + $0x8] sm:$0x3]  ;;  %v980_v57 = vpop.permute.xlu2 %979 }
 0x180   : > { %v968_v35 = vshll.u32 %v949_v22, 16  ;;  %v963_v38 = vrot.slane %v961_v40, 1  ;;  %v910_v39 = vld [vmem:[#allocation2 + $0xc] sm:$0x7]  ;;  %v966_v48 = vshrl.u32 %v949_v22, 16  ;;  %v1077_v30 = vunpack.c.l.b16 %v925_v37  ;;  %v6689_v37 = vpop.permute.xlu0 %1161 }
 0x181   : > { %v914_v44 = vld [vmem:[#allocation2 + $0xc] sm:$0x6]  ;;  %v1104_v10 = vpack.c.b16 %v1100_v36, %v1100_v36  ;;  %v946_v49 = vunpack.c.l.b16 %v910_v39  ;;  %v1130_v43 = vshll.u32 %v1123_v42, 16  ;;  %v933_v55 = vld [vmem:[#allocation2 + $0x10] sm:$0x7]  ;;  %v1128_v27 = vshrl.u32 %v1123_v42, 16  ;;  %v6687_v36 = vpop.permute.xlu1 %1113 }
 0x182   : > { %v970_v41 = vrot.slane %v968_v35, 1  ;;  %v932_v47 = vld [vmem:[#allocation2 + $0xc] sm:$0x7]  ;;  %v964_v50 = vor.u32 %v963_v38, %v959_v62  ;;  %v994_v51 = vunpack.c.l.b16 %v914_v44  ;;  %v1081_v52 = vpack.c.b16 %v1077_v30, %v1077_v30  ;;  %v929_v0 = vld [vmem:[#allocation2 + $0x10] sm:$0x3]  ;;  %v6264_v42 = vld [vmem:[%s7766_s1 + $0xc8] sm:$0xff] }
 0x183   : > { %1005 = vrot.lane.b32.xlu2 %v1000_v23, %s6420_s21  ;;  %v1120_v45 = vunpack.c.l.b16 %v932_v47  ;;  %v950_v54 = vpack.c.b16 %v946_v49, %v946_v49  ;;  %v1132_v34 = vrot.slane %v1130_v43, 1  ;;  %v1121_v60 = vunpack.c.l.b16 %v933_v55  ;;  %v926_v32 = vld [vmem:[#allocation2 + $0x10] sm:$0x6]  ;;  %v917_v31 = vld [vmem:[#allocation2 + $0xc] sm:$0x3]  ;;  %v6272_v62 = vld [vmem:[%s7766_s1 + $0x108] sm:$0xff]  ;;  %1427 = vmatpush.bf16.msrb.mxu3 %v6264_v42 }
 0x184   : > { %v971_v17 = vor.u32 %v970_v41, %v966_v48  ;;  %v998_v53 = vpack.c.b16 %v994_v51, %v994_v51  ;;  %v1085_v58 = vrot.slane %v1081_v52, 1  ;;  %v1101_v6 = vunpack.c.l.b16 %v929_v0  ;;  %v918_v22 = vld [vmem:[#allocation2 + $0x10] sm:$0x3]  ;;  %v919_v47 = vld [vmem:[#allocation2 + $0x4] sm:$0x7]  ;;  %1441 = vmatpush.bf16.msra.mxu2 %v6272_v62  ;;  %v6263_v49 = vld [vmem:[%s7766_s1 + $0xc0] sm:$0xff] }
 0x185   : > { %1089 = vrot.lane.b32.xlu1 %v1084_v25, %s6422_s23  ;;  %v1124_v56 = vpack.c.b16 %v1120_v45, %v1120_v45  ;;  %v975_v59 = vshll.u32 %v950_v54, 16  ;;  %v1133_v61 = vor.u32 %v1132_v34, %v1128_v27  ;;  %v1125_v4 = vpack.c.b16 %v1121_v60, %v1121_v60  ;;  %v6270_v43 = vld [vmem:[%s7766_s1 + $0xf8] sm:$0xff]  ;;  %v921_v55 = vld [vmem:[#allocation2 + $0xc] sm:$0x7]  ;;  %v6260_v0 = vld [vmem:[%s7766_s1 + $0xa8] sm:$0xff] }
 0x186   : > { %1007 = vrot.lane.b32.xlu0 %v1001_v26, %s6420_s21  ;;  %v1002_v63 = vrot.slane %v998_v53, 1  ;;  %v973_v5 = vshrl.u32 %v950_v54, 16  ;;  %v1105_v13 = vpack.c.b16 %v1101_v6, %v1101_v6  ;;  %v1078_v15 = vunpack.c.l.b16 %v926_v32  ;;  %v6261_v60 = vld [vmem:[%s7766_s1 + $0xb0] sm:$0xff]  ;;  %v922_v32 = vld [vmem:[#allocation2 + $0x10] sm:$0x7] }
 0x187   : > { %v1137_v28 = vshll.u32 %v1124_v56, 16  ;;  %v977_v29 = vrot.slane %v975_v59, 1  ;;  %v1135_v11 = vshrl.u32 %v1124_v56, 16  ;;  %v1144_v12 = vshll.u32 %v1125_v4, 16  ;;  %1428 = vmatpush.bf16.msrb.mxu3 %v6263_v49  ;;  %v935_v59 = vld [vmem:[#allocation2 + $0x8] sm:$0x6] }
 0x188   : > { %v1142_v18 = vshrl.u32 %v1125_v4, 16  ;;  %v1082_v19 = vpack.c.b16 %v1078_v15, %v1078_v15  ;;  %v1017_v20 = vunpack.c.l.b16 %v917_v31  ;;  %v1018_v40 = vunpack.c.l.b16 %v918_v22  ;;  %v920_v6 = vld [vmem:[#allocation2 + $0x8] sm:$0x7]  ;;  %v937_v62 = vld [vmem:[#allocation2 + $0x10] sm:$0x6] }
 0x189   : > { %v1139_v7 = vrot.slane %v1137_v28, 1  ;;  %v978_v9 = vor.u32 %v977_v29, %v973_v5  ;;  %v1146_v16 = vrot.slane %v1144_v12, 1  ;;  %v1016_v25 = vunpack.c.l.b16 %v916_v24  ;;  %v1004_v39 = vpop.permute.xlu1 %1003  ;;  %v903_v28 = vld [vmem:[#allocation2] sm:$0x3] }
 0x18a   : > { %v1086_v46 = vrot.slane %v1082_v19, 1  ;;  %v1021_v23 = vpack.c.b16 %v1017_v20, %v1017_v20  ;;  %v1022_v26 = vpack.c.b16 %v1018_v40, %v1018_v40  ;;  %v1035_v30 = vunpack.c.l.b16 %v919_v47  ;;  %v6268_v29 = vld [vmem:[%s7766_s1 + $0xe8] sm:$0xff]  ;;  %v6266_v47 = vld [vmem:[%s7766_s1 + $0xd8] sm:$0xff] }
 0x18b   : > { %1109 = vrot.lane.b32.xlu2 %v1104_v10, %s6420_s21  ;;  %v1140_v14 = vor.u32 %v1139_v7, %v1135_v11  ;;  %v1147_v21 = vor.u32 %v1146_v16, %v1142_v18  ;;  %v1020_v35 = vpack.c.b16 %v1016_v25, %v1016_v25  ;;  %v1037_v53 = vunpack.c.l.b16 %v921_v55 }
 0x18c   : > { %v1039_v51 = vpack.c.b16 %v1035_v30, %v1035_v30  ;;  %v1167_v7 = vunpack.c.l.b16 %v935_v59  ;;  %v1036_v12 = vunpack.c.l.b16 %v920_v6  ;;  %v1038_v31 = vunpack.c.l.b16 %v922_v32  ;;  %v6257_v59 = vld [vmem:[%s7766_s1 + $0x90] sm:$0xff] }
 0x18d   : > { %983 = vrot.lane.b32.xlu1 %v971_v17, %s6422_s23  ;;  %v6262_v17 = vld [vmem:[%s7766_s1 + $0xb8] sm:$0xff]  ;;  %v1041_v4 = vpack.c.b16 %v1037_v53, %v1037_v53 }
 0x18e   : > { %981 = vrot.lane.b32.xlu0 %v964_v50, %s6422_s23  ;;  %v6271_v50 = vld [vmem:[%s7766_s1 + $0x100] sm:$0xff]  ;;  %1429 = vmatpush.bf16.msrb.mxu3 %v6262_v17  ;;  %v1046_v54 = vshll.u32 %v1039_v51, 16  ;;  %v1171_v15 = vpack.c.b16 %v1167_v7, %v1167_v7  ;;  %v1040_v22 = vpack.c.b16 %v1036_v12, %v1036_v12  ;;  %v1042_v25 = vpack.c.b16 %v1038_v31, %v1038_v31  ;;  %v936_v7 = vld [vmem:[#allocation2 + $0xc] sm:$0x6] }
 0x18f   : > { %1442 = vmatpush.bf16.msra.mxu2 %v6271_v50  ;;  %v6273_v50 = vld [vmem:[%s7766_s1 + $0x110] sm:$0xff] }
 0x190   : > { %v1048_v56 = vrot.slane %v1046_v54, 1  ;;  %v5430_v40 = vrot.slane %v1171_v15, 5  ;;  %v1053_v30 = vshll.u32 %v1040_v22, 16  ;;  %v1067_v49 = vshll.u32 %v1042_v25, 16  ;;  %v906_v12 = vld [vmem:[#allocation2 + $0xc] sm:$0x3] }
 0x191   : > { %v1169_v54 = vunpack.c.l.b16 %v937_v62  ;;  %v1065_v6 = vshrl.u32 %v1042_v25, 16 }
 0x192   : > { %1430 = vmatpush.bf16.msrb.mxu3 %v6261_v60  ;;  %v6265_v60 = vld [vmem:[%s7766_s1 + $0xd0] sm:$0xff] }
 0x193   : > { %1091 = vrot.lane.b32.xlu2 %v1085_v58, %s6422_s23  ;;  %1443 = vmatpush.bf16.msra.mxu2 %v6270_v43 }
 0x195   : > { %1009 = vrot.lane.b32.xlu1 %v1002_v63, %s6420_s21  ;;  %v1044_v63 = vshrl.u32 %v1039_v51, 16  ;;  %v938_v51 = vld [vmem:[#allocation2 + $0x14] sm:$0x6] }
 0x196   : > { %1155 = vrot.lane.b32.xlu0 %v1133_v61, %s6421_s22  ;;  %v6269_v61 = vld [vmem:[%s7766_s1 + $0xf0] sm:$0xff]  ;;  %1431 = vmatpush.bf16.msrb.mxu3 %v6260_v0 }
 0x197   : > { %1444 = vmatpush.bf16.msra.mxu2 %v6269_v61  ;;  %v1049_v5 = vor.u32 %v1048_v56, %v1044_v63  ;;  %v1055_v61 = vrot.slane %v1053_v30, 1  ;;  %v1069_v63 = vrot.slane %v1067_v49, 1  ;;  %v905_v0 = vld [vmem:[#allocation2 + $0x8] sm:$0x3] }
 0x19b   : > { %985 = vrot.lane.b32.xlu2 %v978_v9, %s6422_s23  ;;  %v1181_v9 = vsel %vm546_vm3, %v903_v28, %v980_v57  ;;  %1445 = vmatpush.bf16.msra.mxu2 %v6268_v29  ;;  %v6267_v57 = vld [vmem:[%s7766_s1 + $0xe0] sm:$0xff]  ;;  %v1170_v28 = vunpack.c.l.b16 %v938_v51  ;;  %v1173_v29 = vpack.c.b16 %v1169_v54, %v1169_v54 }
 0x19c   : > { %v1192_v16 = vsel %vm559_vm4, %v1181_v9, %v1004_v39  ;;  %v1058_v39 = vshrl.u32 %v1041_v4, 16  ;;  %v1070_v9 = vor.u32 %v1069_v63, %v1065_v6 }
 0x19d   : > { %1157 = vrot.lane.b32.xlu1 %v1140_v14, %s6421_s22  ;;  %v5432_v31 = vrot.slane %v1173_v29, 5 }
 0x19e   : > { %1111 = vrot.lane.b32.xlu0 %v1105_v13, %s6420_s21  ;;  %v1060_v13 = vshll.u32 %v1041_v4, 16 }
 0x19f   : > { %1446 = vmatpush.bf16.msra.mxu2 %v6267_v57 }
 0x1a0   : > { %v1062_v24 = vrot.slane %v1060_v13, 1 }
 0x1a3   : > { %1159 = vrot.lane.b32.xlu2 %v1147_v21, %s6421_s22  ;;  %1447 = vmatpush.bf16.msra.mxu2 %v6266_v47 }
 0x1a5   : > { %1027 = vrot.lane.b32.xlu1 %v1021_v23, %s6421_s22 }
 0x1a6   : > { %1093 = vrot.lane.b32.xlu0 %v1086_v46, %s6422_s23 }
 0x1a7   : > { %1448 = vmatpush.bf16.msra.mxu2 %v6265_v60  ;;  %v1538_v60 = vld [vmem:[#allocation2] sm:$0x7] }
 0x1a8   : > { %v1574_v63 = vunpack.c.l.b16 %v1538_v60 }
 0x1ab   : > { %1029 = vrot.lane.b32.xlu2 %v1022_v26, %s6421_s22 }
 0x1ae   : > { %1025 = vrot.lane.b32.xlu0 %v1020_v35, %s6421_s22  ;;  %v6259_v35 = vld [vmem:[%s7766_s1 + $0xa0] sm:$0xff] }
 0x1af   : > { %1432 = vmatpush.bf16.msrb.mxu3 %v6259_v35 }
 0x1d5   : > { %v1024_v38 = vpop.permute.xlu2 %1023 }
 0x1d6   : > { %v1200_v23 = vsel %vm568_vm5, %v1192_v16, %v1024_v38  ;;  %v6274_v38 = vld [vmem:[%s7766_s1 + $0x118] sm:$0xff] }
 0x1d7   : > { %1461 = vmatpush.bf16.msrb.mxu0 %v6274_v38 }
 0x1db   : > { %1462 = vmatpush.bf16.msrb.mxu0 %v6273_v50 }
 0x1dd   : > { %v6691_v41 = vpop.permute.xlu2 %1005 }
 0x1e5   : > { %v6699_v48 = vpop.permute.xlu2 %1109 }
 0x1ed   : > { %v1092_v34 = vpop.permute.xlu2 %1091 }
 0x1ef   : > { %v1108_v10 = vpop.permute.xlu1 %1107 }
 0x1f0   : > { %v1088_v44 = vpop.permute.xlu0 %1087 }
 0x1f1   : > { %v1209_v11 = vsel %vm546_vm3, %v1049_v5, %v1088_v44  ;;  %v6258_v44 = vld [vmem:[%s7766_s1 + $0x98] sm:$0xff] }
 0x1f2   : > { %v1220_v18 = vsel %vm559_vm4, %v1209_v11, %v1108_v10  ;;  %v1063_v10 = vor.u32 %v1062_v24, %v1058_v39  ;;  %1433 = vmatpush.bf16.msrb.mxu3 %v6258_v44  ;;  %v1174_v11 = vpack.c.b16 %v1170_v28, %v1170_v28 }
 0x1f4   : > { %v1215_v55 = vsel %vm546_vm3, %v1063_v10, %v1092_v34  ;;  %v1051_v34 = vshrl.u32 %v1040_v22, 16 }
 0x1f5   : > { %v6735_v14 = vpop.permute.xlu2 %985 }
 0x1f6   : > { %1434 = vmatpush.bf16.msrb.mxu3 %v6257_v59  ;;  %v1056_v32 = vor.u32 %v1055_v61, %v1051_v34  ;;  %v6397_v59 = vld [vmem:[%s7767_s2 + $0x1] ss:$0 sm:$0xff]  ;;  %v1565_v61 = vld [vmem:[#allocation2 + $0x14] sm:$0x7]  ;;  %v1578_v34 = vpack.c.b16 %v1574_v63, %v1574_v63 }
 0x1f7   : > { %v6713_v45 = vpop.permute.xlu1 %1089  ;;  %v1753_v28 = vunpack.c.l.b16 %v1565_v61 }
 0x1f8   : > { %v6715_v52 = vpop.permute.xlu0 %1007 }
 0x1fd   : > { %v1160_v53 = vpop.permute.xlu2 %1159 }
 0x1ff   : > { %v6719_v27 = vpop.permute.xlu1 %983 }
 0x200   : > { %v6717_v58 = vpop.permute.xlu0 %981  ;;  %v1187_v4 = vsel %vm546_vm3, %v905_v0, %v6719_v27  ;;  %v1190_v27 = vsel %vm546_vm3, %v906_v12, %v6735_v14 }
 0x207   : > { %v6739_v20 = vpop.permute.xlu1 %1009 }
 0x208   : > { %v1156_v19 = vpop.permute.xlu0 %1155 }
 0x209   : > { %v1228_v21 = vsel %vm568_vm5, %v1220_v18, %v1156_v19  ;;  %v1196_v18 = vsel %vm559_vm4, %v1187_v4, %v6715_v52  ;;  %v1168_v19 = vunpack.c.l.b16 %v936_v7  ;;  %v5433_v52 = vrot.slane %v1174_v11, 5 }
 0x20a   : > { %v1239_v46 = vrot.slane %v1228_v21, 6  ;;  %v1212_v21 = vsel %vm546_vm3, %v1056_v32, %v6713_v45  ;;  %v1030_v45 = vpop.permute.xlu2 %1029  ;;  %v1757_v4 = vpack.c.b16 %v1753_v28, %v1753_v28  ;;  %v1583_v7 = vshrl.u32 %v1578_v34, 16  ;;  %v1531_v28 = vld [vmem:[#allocation2 + $0x10] sm:$0x7] }
 0x20b   : > { %v1222_v35 = vsel %vm559_vm4, %v1212_v21, %v6699_v48  ;;  %v1585_v32 = vshll.u32 %v1578_v34, 16 }
 0x20c   : > { %v1248_v26 = vsel %vm617_vm6, %v1200_v23, %v1239_v46  ;;  %v1198_v23 = vsel %vm559_vm4, %v1190_v27, %v6739_v20  ;;  %v1782_v11 = vshll.u32 %v1757_v4, 16 }
 0x20d   : > { %v1250_v42 = vsel %vm620_vm7, %v1248_v26, %v5430_v40  ;;  %v904_v26 = vld [vmem:[#allocation2 + $0x4] sm:$0x3] }
 0x20e   : > { %1305 = vst [vmem:[#allocation1] ss:$4 sm:$0xff] %v1250_v42  ;;  %v1184_v20 = vsel %vm546_vm3, %v904_v26, %v6717_v58  ;;  %v1172_v42 = vpack.c.b16 %v1168_v19, %v1168_v19 }
 0x20f   : > { %v1158_v43 = vpop.permute.xlu1 %1157  ;;  %v1194_v44 = vsel %vm559_vm4, %v1184_v20, %v6691_v41  ;;  %v1542_v41 = vld [vmem:[#allocation2] sm:$0x6] }
 0x210   : > { %v1112_v17 = vpop.permute.xlu0 %1111  ;;  %v1230_v39 = vsel %vm568_vm5, %v1222_v35, %v1158_v43  ;;  %v5431_v47 = vrot.slane %v1172_v42, 5  ;;  %v1561_v43 = vld [vmem:[#allocation2 + $0x14] sm:$0x3] }
 0x211   : > { %v1224_v56 = vsel %vm559_vm4, %v1215_v55, %v1112_v17  ;;  %v1241_v38 = vrot.slane %v1230_v39, 6  ;;  %v1733_v51 = vunpack.c.l.b16 %v1561_v43  ;;  %v1622_v55 = vunpack.c.l.b16 %v1542_v41 }
 0x212   : > { %v1232_v5 = vsel %vm568_vm5, %v1224_v56, %v1160_v53 }
 0x213   : > { %v1243_v13 = vrot.slane %v1232_v5, 6  ;;  %v1737_v54 = vpack.c.b16 %v1733_v51, %v1733_v51  ;;  %v1626_v53 = vpack.c.b16 %v1622_v55, %v1622_v55 }
 0x215   : > { %1744 = vrot.lane.b32.xlu1 %v1737_v54, %s6420_s21  ;;  %v1630_v56 = vrot.slane %v1626_v53, 1  ;;  %v1528_v53 = vld [vmem:[#allocation2 + $0xc] sm:$0x7] }
 0x217   : > { %v1028_v16 = vpop.permute.xlu1 %1027 }
 0x218   : > { %v1094_v15 = vpop.permute.xlu0 %1093  ;;  %v1204_v46 = vsel %vm568_vm5, %v1196_v18, %v1028_v16 }
 0x219   : > { %v1218_v22 = vsel %vm546_vm3, %v1070_v9, %v1094_v15  ;;  %v1256_v40 = vsel %vm617_vm6, %v1204_v46, %v1243_v13  ;;  %v1780_v9 = vshrl.u32 %v1757_v4, 16  ;;  %v6398_v13 = vld [vmem:[%s7768_s3 + $0x1] ss:$0 sm:$0xff]  ;;  %v1587_v15 = vrot.slane %v1585_v32, 1 }
 0x21a   : > { %v1226_v24 = vsel %vm559_vm4, %v1218_v22, %v6687_v36  ;;  %v1258_v14 = vsel %vm620_vm7, %v1256_v40, %v5432_v31  ;;  %v1206_v36 = vsel %vm568_vm5, %v1198_v23, %v1030_v45  ;;  %v1784_v31 = vrot.slane %v1782_v11, 1 }
 0x21b   : > { %v1234_v25 = vsel %vm568_vm5, %v1226_v24, %v6689_v37  ;;  %1309 = vst [vmem:[#allocation1 + $0x2] ss:$4 sm:$0xff] %v1258_v14  ;;  %v1588_v18 = vor.u32 %v1587_v15, %v1583_v7 }
 0x21c   : > { %v1245_v57 = vrot.slane %v1234_v25, 6  ;;  %v1785_v19 = vor.u32 %v1784_v31, %v1780_v9 }
 0x21d   : > { %1634 = vrot.lane.b32.xlu1 %v1630_v56, %s6420_s21  ;;  %1610 = vrot.lane.b32.xlu2 %v1588_v18, %s6422_s23 }
 0x21e   : > { %v1260_v62 = vsel %vm617_vm6, %v1206_v36, %v1245_v57  ;;  %1792 = vrot.lane.b32.xlu0 %v1785_v19, %s6421_s22 }
 0x21f   : > { %v1262_v37 = vsel %vm620_vm7, %v1260_v62, %v5433_v52 }
 0x220   : > { %1311 = vst [vmem:[#allocation1 + $0x3] ss:$4 sm:$0xff] %v1262_v37  ;;  %v1026_v48 = vpop.permute.xlu0 %1025  ;;  %v1522_v37 = vld [vmem:[#allocation2 + $0x4] sm:$0x7] }
 0x221   : > { %v1202_v10 = vsel %vm568_vm5, %v1194_v44, %v1026_v48 }
 0x222   : > { %v1252_v58 = vsel %vm617_vm6, %v1202_v10, %v1241_v38 }
 0x223   : > { %v1254_v30 = vsel %vm620_vm7, %v1252_v58, %v5431_v47  ;;  %v1525_v58 = vld [vmem:[#allocation2 + $0x8] sm:$0x7] }
 0x224   : > { %1307 = vst [vmem:[#allocation1 + $0x1] ss:$4 sm:$0xff] %v1254_v30 }
 0x22b   : > { %v1312_v49 = vld.sshfl [vmem:[#allocation1] sm:$0xff pattern:$0x73625140]  ;;  %v1313_v50 = vld.sshfl [vmem:[#allocation1 + $0x8] sm:$0xff pattern:$0x73625140] }
 0x22c   : > { %v1314_v17 = vld.sshfl [vmem:[#allocation1 + $0x10] sm:$0xff pattern:$0x73625140]  ;;  %1435 = vmatmul.bf16.vlgmr.msrb.gmra.mxu3 %v1312_v49  ;;  %1449 = vmatmul.bf16.vlgmr.msra.gmra.mxu2 %v1313_v50 }
 0x22d   : > { %5543 = vmatmul.msk.bf16.vlgmr.msrb.gmra.mxu0 %vm546_vm3, %v1314_v17 }
 0x2aa   : > { %v1464_v6 = vpop.f32.mrf.mxu0 }
 0x2af   : > { %v1436_v0 = vpop.f32.mrf.mxu3  ;;  %v1450_v29 = vpop.f32.mrf.mxu2 }
 0x2b0   : > { %v1437_v5 = vadd.f32 %v6397_v59, %v1436_v0 }
 0x2b2   : > { %v1451_v12 = vadd.f32 %v1450_v29, %v1437_v5  ;;  %v1466_v26 = vpop.f32.mrf.mxu0 }
 0x2b4   : > { %v1465_v16 = vadd.f32 %v1464_v6, %v1451_v12 }
 0x2b6   : > { %vm1469_vm10 = vcmp.gt.f32.partialorder %v1465_v16, 0.0  ;;  %v1476_v27 = vmul.f32 %v6398_v13, %v1465_v16 }
 0x2b7   : > { %v1438_v21 = vpop.f32.mrf.mxu3  ;;  %v1452_v40 = vpop.f32.mrf.mxu2 }
 0x2b8   : > { %v1478_v22 = vsel %vm1469_vm10, %v1465_v16, %v1476_v27  ;;  %v1439_v46 = vadd.f32 %v6397_v59, %v1438_v21 }
 0x2b9   : > { %v1482_v23 = vrot.slane %v1478_v22, 4  ;;  %v1486_v24 = vpack.c.bf16 %v1478_v22, %v1478_v22 }
 0x2ba   : > { %v1453_v52 = vadd.f32 %v1452_v40, %v1439_v46 }
 0x2bb   : > { %v1487_v25 = vpack.c.bf16 %v1482_v23, %v1482_v23  ;;  %v1491_v14 = vshrl.u32 %v1486_v24, 16  ;;  %v1494_v57 = vshll.u32 %v1486_v24, 16 }
 0x2bc   : > { %v1467_v45 = vadd.f32 %v1466_v26, %v1453_v52 }
 0x2bd   : > { %v1493_v35 = vrot.slane %v1491_v14, 7  ;;  %v1498_v20 = vshrl.u32 %v1487_v25, 16  ;;  %v1501_v62 = vshll.u32 %v1487_v25, 16 }
 0x2be   : > { %vm1470_vm11 = vcmp.gt.f32.partialorder %v1467_v45, 0.0  ;;  %v1477_v36 = vmul.f32 %v6398_v13, %v1467_v45 }
 0x2bf   : > { %v1496_v39 = vor.u32 %v1494_v57, %v1493_v35  ;;  %v1500_v42 = vrot.slane %v1498_v20, 7 }
 0x2c0   : > { %v1479_v38 = vsel %vm1470_vm11, %v1467_v45, %v1477_v36 }
 0x2c1   : > { %v1503_v44 = vor.u32 %v1501_v62, %v1500_v42  ;;  %v1523_v48 = vsel %vm6485_vm2, %v1496_v39, %v1522_v37  ;;  %v1483_v47 = vrot.slane %v1479_v38, 4  ;;  %v1488_v10 = vpack.c.bf16 %v1479_v38, %v1479_v38 }
 0x2c2   : > { %1524 = vst [vmem:[#allocation2 + $0x4] sm:$0x7] %v1523_v48 }
 0x2c3   : > { %v1526_v30 = vsel %vm6485_vm2, %v1503_v44, %v1525_v58  ;;  %v1489_v49 = vpack.c.bf16 %v1483_v47, %v1483_v47  ;;  %v1505_v50 = vshrl.u32 %v1488_v10, 16  ;;  %v1508_v43 = vshll.u32 %v1488_v10, 16 }
 0x2c4   : > { %1527 = vst [vmem:[#allocation2 + $0x8] sm:$0x7] %v1526_v30 }
 0x2c5   : > { %v1507_v17 = vrot.slane %v1505_v50, 7  ;;  %v1512_v51 = vshrl.u32 %v1489_v49, 16  ;;  %v1515_v55 = vshll.u32 %v1489_v49, 16 }
 0x2c7   : > { %v1510_v54 = vor.u32 %v1508_v43, %v1507_v17  ;;  %v1514_v41 = vrot.slane %v1512_v51, 7 }
 0x2c9   : > { %v1517_v56 = vor.u32 %v1515_v55, %v1514_v41  ;;  %v1529_v59 = vsel %vm6485_vm2, %v1510_v54, %v1528_v53  ;;  %v1546_v60 = vld [vmem:[#allocation2 + $0x4] sm:$0x3] }
 0x2ca   : > { %v1554_v61 = vld [vmem:[#allocation2 + $0x4] sm:$0x6]  ;;  %1530 = vst [vmem:[#allocation2 + $0xc] sm:$0x7] %v1529_v59  ;;  %v1646_v0 = vunpack.c.l.b16 %v1546_v60 }
 0x2cb   : > { %v1543_v63 = vld [vmem:[#allocation2 + $0x4] sm:$0x6]  ;;  %v1706_v29 = vunpack.c.l.b16 %v1554_v61  ;;  %v1532_v4 = vsel %vm6485_vm2, %v1517_v56, %v1531_v28  ;;  %v1558_v5 = vld [vmem:[#allocation2 + $0x8] sm:$0x3] }
 0x2cc   : > { %v1539_v34 = vld [vmem:[#allocation2 + $0x4] sm:$0x7]  ;;  %v1555_v6 = vld [vmem:[#allocation2 + $0x8] sm:$0x6]  ;;  %1533 = vst [vmem:[#allocation2 + $0x10] sm:$0x7] %v1532_v4  ;;  %v1650_v32 = vpack.c.b16 %v1646_v0, %v1646_v0  ;;  %v1730_v11 = vunpack.c.l.b16 %v1558_v5  ;;  %v1623_v12 = vunpack.c.l.b16 %v1543_v63 }
 0x2cd   : > { %v1544_v7 = vld [vmem:[#allocation2 + $0x8] sm:$0x6]  ;;  %v1710_v9 = vpack.c.b16 %v1706_v29, %v1706_v29  ;;  %v1707_v15 = vunpack.c.l.b16 %v1555_v6  ;;  %v1575_v31 = vunpack.c.l.b16 %v1539_v34 }
 0x2ce   : > { %v1540_v13 = vld [vmem:[#allocation2 + $0x8] sm:$0x7]  ;;  %1654 = vrot.lane.b32.xlu2 %v1650_v32, %s6421_s22  ;;  %v1734_v18 = vpack.c.b16 %v1730_v11, %v1730_v11  ;;  %v1624_v19 = vunpack.c.l.b16 %v1544_v7  ;;  %v1627_v21 = vpack.c.b16 %v1623_v12, %v1623_v12 }
 0x2cf   : > { %v1714_v16 = vrot.slane %v1710_v9, 1  ;;  %v1576_v27 = vunpack.c.l.b16 %v1540_v13  ;;  %v1579_v22 = vpack.c.b16 %v1575_v31, %v1575_v31  ;;  %v1711_v46 = vpack.c.b16 %v1707_v15, %v1707_v15  ;;  %v1562_v40 = vld [vmem:[#allocation2 + $0x8] sm:$0x7] }
 0x2d0   : > { %1738 = vrot.lane.b32.xlu1 %v1734_v18, %s6420_s21  ;;  %v1628_v23 = vpack.c.b16 %v1624_v19, %v1624_v19  ;;  %v1631_v52 = vrot.slane %v1627_v21, 1  ;;  %v1750_v57 = vunpack.c.l.b16 %v1562_v40 }
 0x2d1   : > { %1718 = vrot.lane.b32.xlu0 %v1714_v16, %s6422_s23  ;;  %v1580_v24 = vpack.c.b16 %v1576_v27, %v1576_v27  ;;  %v1559_v25 = vld [vmem:[#allocation2 + $0xc] sm:$0x3]  ;;  %v1592_v14 = vshll.u32 %v1579_v22, 16  ;;  %v1715_v26 = vrot.slane %v1711_v46, 1  ;;  %v1590_v38 = vshrl.u32 %v1579_v22, 16 }
 0x2d2   : > { %v1632_v45 = vrot.slane %v1628_v23, 1  ;;  %v1731_v20 = vunpack.c.l.b16 %v1559_v25  ;;  %v1556_v39 = vld [vmem:[#allocation2 + $0xc] sm:$0x6]  ;;  %v1754_v37 = vpack.c.b16 %v1750_v57, %v1750_v57  ;;  %v1547_v25 = vld [vmem:[#allocation2 + $0x8] sm:$0x3]  ;;  %v1611_v57 = vpop.permute.xlu2 %1610 }
 0x2d3   : > { %v1599_v35 = vshll.u32 %v1580_v24, 16  ;;  %v1594_v36 = vrot.slane %v1592_v14, 1  ;;  %v1541_v42 = vld [vmem:[#allocation2 + $0xc] sm:$0x7]  ;;  %v1597_v10 = vshrl.u32 %v1580_v24, 16  ;;  %v1708_v58 = vunpack.c.l.b16 %v1556_v39  ;;  %v6846_v39 = vpop.permute.xlu0 %1792 }
 0x2d4   : > { %v1545_v44 = vld [vmem:[#allocation2 + $0xc] sm:$0x6]  ;;  %v1735_v47 = vpack.c.b16 %v1731_v20, %v1731_v20  ;;  %v1577_v30 = vunpack.c.l.b16 %v1541_v42  ;;  %v1761_v17 = vshll.u32 %v1754_v37, 16  ;;  %v1564_v55 = vld [vmem:[#allocation2 + $0x10] sm:$0x7]  ;;  %v1759_v61 = vshrl.u32 %v1754_v37, 16  ;;  %v6842_v20 = vpop.permute.xlu1 %1744 }
 0x2d5   : > { %v1601_v62 = vrot.slane %v1599_v35, 1  ;;  %v1563_v48 = vld [vmem:[#allocation2 + $0xc] sm:$0x7]  ;;  %v1595_v49 = vor.u32 %v1594_v36, %v1590_v38  ;;  %v1625_v43 = vunpack.c.l.b16 %v1545_v44  ;;  %v1712_v54 = vpack.c.b16 %v1708_v58, %v1708_v58  ;;  %v1560_v4 = vld [vmem:[#allocation2 + $0x10] sm:$0x3] }
 0x2d6   : > { %1636 = vrot.lane.b32.xlu2 %v1631_v52, %s6420_s21  ;;  %v1751_v51 = vunpack.c.l.b16 %v1563_v48  ;;  %v1581_v41 = vpack.c.b16 %v1577_v30, %v1577_v30  ;;  %v1763_v53 = vrot.slane %v1761_v17, 1  ;;  %v1752_v28 = vunpack.c.l.b16 %v1564_v55  ;;  %v1557_v11 = vld [vmem:[#allocation2 + $0x10] sm:$0x6]  ;;  %v1548_v19 = vld [vmem:[#allocation2 + $0xc] sm:$0x3]  ;;  %v6288_v17 = vld [vmem:[%s7766_s1 + $0x188] sm:$0xff] }
 0x2d7   : > { %v1602_v50 = vor.u32 %v1601_v62, %v1597_v10  ;;  %v1629_v56 = vpack.c.b16 %v1625_v43, %v1625_v43  ;;  %v1716_v60 = vrot.slane %v1712_v54, 1  ;;  %v1732_v32 = vunpack.c.l.b16 %v1560_v4  ;;  %v1549_v24 = vld [vmem:[#allocation2 + $0x10] sm:$0x3]  ;;  %v1550_v48 = vld [vmem:[#allocation2 + $0x4] sm:$0x7]  ;;  %v6281_v30 = vld [vmem:[%s7766_s1 + $0x150] sm:$0xff] }
 0x2d8   : > { %1720 = vrot.lane.b32.xlu1 %v1715_v26, %s6422_s23  ;;  %v1755_v59 = vpack.c.b16 %v1751_v51, %v1751_v51  ;;  %v1606_v63 = vshll.u32 %v1581_v41, 16  ;;  %v1764_v0 = vor.u32 %v1763_v53, %v1759_v61  ;;  %v1756_v6 = vpack.c.b16 %v1752_v28, %v1752_v28  ;;  %v6282_v37 = vld [vmem:[%s7766_s1 + $0x158] sm:$0xff]  ;;  %v1552_v55 = vld [vmem:[#allocation2 + $0xc] sm:$0x7]  ;;  %v6279_v28 = vld [vmem:[%s7766_s1 + $0x140] sm:$0xff] }
 0x2d9   : > { %1638 = vrot.lane.b32.xlu0 %v1632_v45, %s6420_s21  ;;  %v1633_v29 = vrot.slane %v1629_v56, 1  ;;  %v1604_v7 = vshrl.u32 %v1581_v41, 16  ;;  %v1736_v31 = vpack.c.b16 %v1732_v32, %v1732_v32  ;;  %v1709_v18 = vunpack.c.l.b16 %v1557_v11  ;;  %v6290_v38 = vld [vmem:[%s7766_s1 + $0x198] sm:$0xff]  ;;  %2058 = vmatpush.bf16.msrb.mxu1 %v6282_v37  ;;  %v1534_v4 = vld [vmem:[#allocation2] sm:$0x3] }
 0x2da   : > { %v1768_v34 = vshll.u32 %v1755_v59, 16  ;;  %v1608_v5 = vrot.slane %v1606_v63, 1  ;;  %v1766_v13 = vshrl.u32 %v1755_v59, 16  ;;  %v1775_v15 = vshll.u32 %v1756_v6, 16  ;;  %2072 = vmatpush.bf16.msra.mxu3 %v6290_v38  ;;  %v1566_v63 = vld [vmem:[#allocation2 + $0x8] sm:$0x6] }
 0x2db   : > { %v1773_v21 = vshrl.u32 %v1756_v6, 16  ;;  %v1713_v22 = vpack.c.b16 %v1709_v18, %v1709_v18  ;;  %v1648_v46 = vunpack.c.l.b16 %v1548_v19  ;;  %v1649_v14 = vunpack.c.l.b16 %v1549_v24  ;;  %v6286_v6 = vld [vmem:[%s7766_s1 + $0x178] sm:$0xff] }
 0x2dc   : > { %v1770_v9 = vrot.slane %v1768_v34, 1  ;;  %v1609_v12 = vor.u32 %v1608_v5, %v1604_v7  ;;  %v1777_v27 = vrot.slane %v1775_v15, 1  ;;  %v1647_v26 = vunpack.c.l.b16 %v1547_v25  ;;  %v1635_v42 = vpop.permute.xlu1 %1634  ;;  %v6292_v34 = vld [vmem:[%s7766_s1 + $0x1a8] sm:$0xff]  ;;  %v6278_v5 = vld [vmem:[%s7766_s1 + $0x138] sm:$0xff] }
 0x2dd   : > { %v1717_v40 = vrot.slane %v1713_v22, 1  ;;  %v1652_v52 = vpack.c.b16 %v1648_v46, %v1648_v46  ;;  %v1653_v45 = vpack.c.b16 %v1649_v14, %v1649_v14  ;;  %v1666_v58 = vunpack.c.l.b16 %v1550_v48  ;;  %2059 = vmatpush.bf16.msrb.mxu1 %v6281_v30  ;;  %2092 = vmatpush.bf16.msrb.mxu2 %v6292_v34  ;;  %v6276_v48 = vld [vmem:[%s7766_s1 + $0x128] sm:$0xff] }
 0x2de   : > { %1740 = vrot.lane.b32.xlu2 %v1735_v47, %s6420_s21  ;;  %v1771_v16 = vor.u32 %v1770_v9, %v1766_v13  ;;  %v1778_v23 = vor.u32 %v1777_v27, %v1773_v21  ;;  %v1651_v35 = vpack.c.b16 %v1647_v26, %v1647_v26  ;;  %v1668_v56 = vunpack.c.l.b16 %v1552_v55  ;;  %v1551_v9 = vld [vmem:[#allocation2 + $0x8] sm:$0x7] }
 0x2df   : > { %v1670_v43 = vpack.c.b16 %v1666_v58, %v1666_v58  ;;  %v1798_v11 = vunpack.c.l.b16 %v1566_v63  ;;  %v1812_v13 = vsel %vm546_vm3, %v1534_v4, %v1611_v57  ;;  %v6277_v57 = vld [vmem:[%s7766_s1 + $0x130] sm:$0xff]  ;;  %v6275_v63 = vld [vmem:[%s7766_s1 + $0x120] sm:$0xff] }
 0x2e0   : > { %1614 = vrot.lane.b32.xlu1 %v1602_v50, %s6422_s23  ;;  %v6280_v50 = vld [vmem:[%s7766_s1 + $0x148] sm:$0xff]  ;;  %v1672_v7 = vpack.c.b16 %v1668_v56, %v1668_v56  ;;  %v1823_v21 = vsel %vm559_vm4, %v1812_v13, %v1635_v42  ;;  %v6285_v42 = vld [vmem:[%s7766_s1 + $0x170] sm:$0xff] }
 0x2e1   : > { %1612 = vrot.lane.b32.xlu0 %v1595_v49, %s6422_s23  ;;  %v6289_v49 = vld [vmem:[%s7766_s1 + $0x190] sm:$0xff]  ;;  %2060 = vmatpush.bf16.msrb.mxu1 %v6280_v50  ;;  %v1677_v41 = vshll.u32 %v1670_v43, 16  ;;  %v1802_v19 = vpack.c.b16 %v1798_v11, %v1798_v11 }
 0x2e2   : > { %2073 = vmatpush.bf16.msra.mxu3 %v6289_v49  ;;  %v1689_v37 = vshrl.u32 %v1672_v7, 16  ;;  %v1536_v4 = vld [vmem:[#allocation2 + $0x8] sm:$0x3] }
 0x2e3   : > { %v1679_v59 = vrot.slane %v1677_v41, 1  ;;  %v5545_v26 = vrot.slane %v1802_v19, 5 }
 0x2e5   : > { %2061 = vmatpush.bf16.msrb.mxu1 %v6279_v28  ;;  %v6283_v28 = vld [vmem:[%s7766_s1 + $0x160] sm:$0xff] }
 0x2e6   : > { %1722 = vrot.lane.b32.xlu2 %v1716_v60, %s6422_s23  ;;  %2074 = vmatpush.bf16.msra.mxu3 %v6288_v17 }
 0x2e8   : > { %1640 = vrot.lane.b32.xlu1 %v1633_v29, %s6420_s21  ;;  %v1675_v29 = vshrl.u32 %v1670_v43, 16  ;;  %v1569_v43 = vld [vmem:[#allocation2 + $0x14] sm:$0x6] }
 0x2e9   : > { %1786 = vrot.lane.b32.xlu0 %v1764_v0, %s6421_s22  ;;  %v6287_v0 = vld [vmem:[%s7766_s1 + $0x180] sm:$0xff]  ;;  %2062 = vmatpush.bf16.msrb.mxu1 %v6278_v5  ;;  %v1801_v34 = vunpack.c.l.b16 %v1569_v43 }
 0x2ea   : > { %2075 = vmatpush.bf16.msra.mxu3 %v6287_v0  ;;  %v1680_v32 = vor.u32 %v1679_v59, %v1675_v29 }
 0x2eb   : > { %v1805_v13 = vpack.c.b16 %v1801_v34, %v1801_v34 }
 0x2ed   : > { %2063 = vmatpush.bf16.msrb.mxu1 %v6277_v57 }
 0x2ee   : > { %1616 = vrot.lane.b32.xlu2 %v1609_v12, %s6422_s23  ;;  %v1553_v12 = vld [vmem:[#allocation2 + $0x10] sm:$0x7]  ;;  %2076 = vmatpush.bf16.msra.mxu3 %v6286_v6 }
 0x2ef   : > { %v1669_v27 = vunpack.c.l.b16 %v1553_v12 }
 0x2f0   : > { %1788 = vrot.lane.b32.xlu1 %v1771_v16, %s6421_s22  ;;  %v1691_v16 = vshll.u32 %v1672_v7, 16 }
 0x2f1   : > { %1742 = vrot.lane.b32.xlu0 %v1736_v31, %s6420_s21  ;;  %v1667_v31 = vunpack.c.l.b16 %v1551_v9  ;;  %2064 = vmatpush.bf16.msrb.mxu1 %v6276_v48  ;;  %v1567_v9 = vld [vmem:[#allocation2 + $0xc] sm:$0x6] }
 0x2f2   : > { %v1693_v14 = vrot.slane %v1691_v16, 1  ;;  %2077 = vmatpush.bf16.msra.mxu3 %v6285_v42 }
 0x2f4   : > { %v1694_v58 = vor.u32 %v1693_v14, %v1689_v37 }
 0x2f5   : > { %2065 = vmatpush.bf16.msrb.mxu1 %v6275_v63 }
 0x2f6   : > { %1790 = vrot.lane.b32.xlu2 %v1778_v23, %s6421_s22 }
 0x2f8   : > { %1658 = vrot.lane.b32.xlu1 %v1652_v52, %s6421_s22 }
 0x2f9   : > { %1724 = vrot.lane.b32.xlu0 %v1717_v40, %s6422_s23  ;;  %v1671_v40 = vpack.c.b16 %v1667_v31, %v1667_v31 }
 0x2fb   : > { %v1684_v30 = vshll.u32 %v1671_v40, 16  ;;  %v1682_v6 = vshrl.u32 %v1671_v40, 16 }
 0x2fd   : > { %v1686_v0 = vrot.slane %v1684_v30, 1 }
 0x2fe   : > { %1660 = vrot.lane.b32.xlu2 %v1653_v45, %s6421_s22  ;;  %v1673_v45 = vpack.c.b16 %v1669_v27, %v1669_v27 }
 0x2ff   : > { %v1687_v11 = vor.u32 %v1686_v0, %v1682_v6  ;;  %v2169_v0 = vld [vmem:[#allocation2] sm:$0x7] }
 0x300   : > { %v1698_v49 = vshll.u32 %v1673_v45, 16  ;;  %v2205_v34 = vunpack.c.l.b16 %v2169_v0 }
 0x301   : > { %1656 = vrot.lane.b32.xlu0 %v1651_v35, %s6421_s22 }
 0x302   : > { %v1700_v29 = vrot.slane %v1698_v49, 1 }
 0x328   : > { %v6844_v36 = vpop.permute.xlu2 %1654 }
 0x329   : > { %v1831_v25 = vsel %vm568_vm5, %v1823_v21, %v6844_v36  ;;  %v6291_v36 = vld [vmem:[%s7766_s1 + $0x1a0] sm:$0xff] }
 0x32a   : > { %2093 = vmatpush.bf16.msrb.mxu2 %v6291_v36 }
 0x330   : > { %v6848_v62 = vpop.permute.xlu2 %1636 }
 0x338   : > { %v6856_v10 = vpop.permute.xlu2 %1740 }
 0x340   : > { %v1723_v53 = vpop.permute.xlu2 %1722 }
 0x341   : > { %v1846_v55 = vsel %vm546_vm3, %v1694_v58, %v1723_v53 }
 0x342   : > { %v1739_v47 = vpop.permute.xlu1 %1738 }
 0x343   : > { %v1719_v44 = vpop.permute.xlu0 %1718 }
 0x344   : > { %v1840_v15 = vsel %vm546_vm3, %v1680_v32, %v1719_v44  ;;  %v1568_v44 = vld [vmem:[#allocation2 + $0x10] sm:$0x6]  ;;  %v1696_v32 = vshrl.u32 %v1673_v45, 16  ;;  %v1535_v45 = vld [vmem:[#allocation2 + $0x4] sm:$0x3] }
 0x345   : > { %v1851_v22 = vsel %vm559_vm4, %v1840_v15, %v1739_v47  ;;  %v6284_v47 = vld [vmem:[%s7766_s1 + $0x168] sm:$0xff]  ;;  %v1800_v41 = vunpack.c.l.b16 %v1568_v44  ;;  %v1537_v15 = vld [vmem:[#allocation2 + $0xc] sm:$0x3] }
 0x346   : > { %2078 = vmatpush.bf16.msra.mxu3 %v6284_v47  ;;  %v1701_v12 = vor.u32 %v1700_v29, %v1696_v32  ;;  %v2196_v29 = vld [vmem:[#allocation2 + $0x14] sm:$0x7] }
 0x347   : > { %v1804_v5 = vpack.c.b16 %v1800_v41, %v1800_v41 }
 0x348   : > { %v6895_v18 = vpop.permute.xlu2 %1616 }
 0x349   : > { %v5547_v19 = vrot.slane %v1804_v5, 5  ;;  %v2209_v5 = vpack.c.b16 %v2205_v34, %v2205_v34  ;;  %v2162_v34 = vld [vmem:[#allocation2 + $0x10] sm:$0x7] }
 0x34a   : > { %v6870_v51 = vpop.permute.xlu1 %1720  ;;  %2079 = vmatpush.bf16.msra.mxu3 %v6283_v28  ;;  %v6399_v28 = vld [vmem:[%s7767_s2 + $0x2] ss:$0 sm:$0xff] }
 0x34b   : > { %v6872_v54 = vpop.permute.xlu0 %1638  ;;  %v2214_v32 = vshrl.u32 %v2209_v5, 16 }
 0x350   : > { %v1791_v56 = vpop.permute.xlu2 %1790 }
 0x352   : > { %v6876_v61 = vpop.permute.xlu1 %1614 }
 0x353   : > { %v6874_v60 = vpop.permute.xlu0 %1612  ;;  %v1818_v53 = vsel %vm546_vm3, %v1536_v4, %v6876_v61  ;;  %v1821_v61 = vsel %vm546_vm3, %v1537_v15, %v6895_v18  ;;  %v2384_v4 = vunpack.c.l.b16 %v2196_v29 }
 0x354   : > { %v1827_v21 = vsel %vm559_vm4, %v1818_v53, %v6872_v54 }
 0x355   : > { %v2388_v6 = vpack.c.b16 %v2384_v4, %v2384_v4 }
 0x35a   : > { %v1641_v23 = vpop.permute.xlu1 %1640 }
 0x35b   : > { %v1787_v46 = vpop.permute.xlu0 %1786 }
 0x35c   : > { %v1859_v24 = vsel %vm568_vm5, %v1851_v22, %v1787_v46  ;;  %v1799_v22 = vunpack.c.l.b16 %v1567_v9  ;;  %v1843_v46 = vsel %vm546_vm3, %v1687_v11, %v6870_v51  ;;  %v2216_v9 = vshll.u32 %v2209_v5, 16 }
 0x35d   : > { %v1870_v52 = vrot.slane %v1859_v24, 6  ;;  %v1853_v51 = vsel %vm559_vm4, %v1843_v46, %v6856_v10  ;;  %v2411_v11 = vshrl.u32 %v2388_v6, 16 }
 0x35e   : > { %v1803_v37 = vpack.c.b16 %v1799_v22, %v1799_v22 }
 0x35f   : > { %v1879_v35 = vsel %vm617_vm6, %v1831_v25, %v1870_v52  ;;  %v1829_v52 = vsel %vm559_vm4, %v1821_v61, %v1641_v23  ;;  %v1815_v23 = vsel %vm546_vm3, %v1535_v45, %v6874_v60 }
 0x360   : > { %v1881_v38 = vsel %vm620_vm7, %v1879_v35, %v5545_v26  ;;  %v5548_v26 = vrot.slane %v1805_v13, 5  ;;  %v1661_v35 = vpop.permute.xlu2 %1660  ;;  %v1825_v36 = vsel %vm559_vm4, %v1815_v23, %v6848_v62  ;;  %v5546_v48 = vrot.slane %v1803_v37, 5  ;;  %v2173_v62 = vld [vmem:[#allocation2] sm:$0x6] }
 0x361   : > { %1936 = vst [vmem:[#allocation1] ss:$4 sm:$0xff] %v1881_v38 }
 0x362   : > { %v1789_v17 = vpop.permute.xlu1 %1788 }
 0x363   : > { %v1743_v50 = vpop.permute.xlu0 %1742  ;;  %v1861_v42 = vsel %vm568_vm5, %v1853_v51, %v1789_v17  ;;  %v2192_v17 = vld [vmem:[#allocation2 + $0x14] sm:$0x3] }
 0x364   : > { %v1855_v59 = vsel %vm559_vm4, %v1846_v55, %v1743_v50  ;;  %v1872_v44 = vrot.slane %v1861_v42, 6  ;;  %v2364_v43 = vunpack.c.l.b16 %v2192_v17  ;;  %v2253_v55 = vunpack.c.l.b16 %v2173_v62 }
 0x365   : > { %v1863_v7 = vsel %vm568_vm5, %v1855_v59, %v1791_v56 }
 0x366   : > { %v1874_v31 = vrot.slane %v1863_v7, 6  ;;  %v2368_v41 = vpack.c.b16 %v2364_v43, %v2364_v43  ;;  %v2257_v56 = vpack.c.b16 %v2253_v55, %v2253_v55 }
 0x368   : > { %2375 = vrot.lane.b32.xlu1 %v2368_v41, %s6420_s21  ;;  %v2261_v59 = vrot.slane %v2257_v56, 1  ;;  %v2159_v56 = vld [vmem:[#allocation2 + $0xc] sm:$0x7] }
 0x36a   : > { %v1659_v27 = vpop.permute.xlu1 %1658 }
 0x36b   : > { %v1725_v16 = vpop.permute.xlu0 %1724  ;;  %v1835_v40 = vsel %vm568_vm5, %v1827_v21, %v1659_v27 }
 0x36c   : > { %v1849_v24 = vsel %vm546_vm3, %v1701_v12, %v1725_v16  ;;  %v1887_v14 = vsel %vm617_vm6, %v1835_v40, %v1874_v31  ;;  %v2413_v12 = vshll.u32 %v2388_v6, 16  ;;  %v6400_v31 = vld [vmem:[%s7768_s3 + $0x2] ss:$0 sm:$0xff]  ;;  %v2218_v16 = vrot.slane %v2216_v9, 1 }
 0x36d   : > { %v1857_v25 = vsel %vm559_vm4, %v1849_v24, %v6842_v20  ;;  %v1889_v18 = vsel %vm620_vm7, %v1887_v14, %v5547_v19  ;;  %v1837_v20 = vsel %vm568_vm5, %v1829_v52, %v1661_v35 }
 0x36e   : > { %v1865_v54 = vsel %vm568_vm5, %v1857_v25, %v6846_v39  ;;  %1940 = vst [vmem:[#allocation1 + $0x2] ss:$4 sm:$0xff] %v1889_v18  ;;  %v2415_v19 = vrot.slane %v2413_v12, 1  ;;  %v2219_v22 = vor.u32 %v2218_v16, %v2214_v32 }
 0x36f   : > { %v1876_v57 = vrot.slane %v1865_v54, 6 }
 0x370   : > { %2265 = vrot.lane.b32.xlu1 %v2261_v59, %s6420_s21  ;;  %v2416_v61 = vor.u32 %v2415_v19, %v2411_v11  ;;  %2241 = vrot.lane.b32.xlu2 %v2219_v22, %s6422_s23 }
 0x371   : > { %v1891_v38 = vsel %vm617_vm6, %v1837_v20, %v1876_v57 }
 0x372   : > { %v1893_v39 = vsel %vm620_vm7, %v1891_v38, %v5548_v26  ;;  %2423 = vrot.lane.b32.xlu0 %v2416_v61, %s6421_s22 }
 0x373   : > { %1942 = vst [vmem:[#allocation1 + $0x3] ss:$4 sm:$0xff] %v1893_v39  ;;  %v1657_v10 = vpop.permute.xlu0 %1656  ;;  %v2153_v39 = vld [vmem:[#allocation2 + $0x4] sm:$0x7] }
 0x374   : > { %v1833_v47 = vsel %vm568_vm5, %v1825_v36, %v1657_v10 }
 0x375   : > { %v1883_v60 = vsel %vm617_vm6, %v1833_v47, %v1872_v44 }
 0x376   : > { %v1885_v58 = vsel %vm620_vm7, %v1883_v60, %v5546_v48  ;;  %v2156_v60 = vld [vmem:[#allocation2 + $0x8] sm:$0x7] }
 0x377   : > { %1938 = vst [vmem:[#allocation1 + $0x1] ss:$4 sm:$0xff] %v1885_v58 }
 0x37e   : > { %v1943_v30 = vld.sshfl [vmem:[#allocation1] sm:$0xff pattern:$0x73625140]  ;;  %v1944_v49 = vld.sshfl [vmem:[#allocation1 + $0x8] sm:$0xff pattern:$0x73625140] }
 0x37f   : > { %v1945_v50 = vld.sshfl [vmem:[#allocation1 + $0x10] sm:$0xff pattern:$0x73625140]  ;;  %2066 = vmatmul.bf16.vlgmr.msrb.gmra.mxu1 %v1943_v30  ;;  %2080 = vmatmul.bf16.vlgmr.msra.gmra.mxu3 %v1944_v49 }
 0x380   : > { %5658 = vmatmul.msk.bf16.vlgmr.msrb.gmra.mxu2 %vm546_vm3, %v1945_v50 }
 0x3fc   : > { %v2067_v63 = vpop.f32.mrf.mxu1 }
 0x3fd   : > { %v2068_v53 = vadd.f32 %v6399_v28, %v2067_v63 }
 0x402   : > { %v2081_v7 = vpop.f32.mrf.mxu3 }
 0x403   : > { %v2082_v13 = vadd.f32 %v2081_v7, %v2068_v53  ;;  %v2095_v15 = vpop.f32.mrf.mxu2 }
 0x404   : > { %v2069_v21 = vpop.f32.mrf.mxu1 }
 0x405   : > { %v2096_v27 = vadd.f32 %v2095_v15, %v2082_v13  ;;  %v2070_v40 = vadd.f32 %v6399_v28, %v2069_v21 }
 0x407   : > { %vm2100_vm12 = vcmp.gt.f32.partialorder %v2096_v27, 0.0  ;;  %v2107_v46 = vmul.f32 %v6400_v31, %v2096_v27 }
 0x409   : > { %v2109_v24 = vsel %vm2100_vm12, %v2096_v27, %v2107_v46 }
 0x40a   : > { %v2113_v52 = vrot.slane %v2109_v24, 4  ;;  %v2117_v25 = vpack.c.bf16 %v2109_v24, %v2109_v24  ;;  %v2083_v14 = vpop.f32.mrf.mxu3 }
 0x40b   : > { %v2084_v26 = vadd.f32 %v2083_v14, %v2070_v40  ;;  %v2097_v45 = vpop.f32.mrf.mxu2 }
 0x40c   : > { %v2118_v54 = vpack.c.bf16 %v2113_v52, %v2113_v52  ;;  %v2122_v18 = vshrl.u32 %v2117_v25, 16  ;;  %v2125_v57 = vshll.u32 %v2117_v25, 16 }
 0x40d   : > { %v2098_v35 = vadd.f32 %v2097_v45, %v2084_v26 }
 0x40e   : > { %v2124_v51 = vrot.slane %v2122_v18, 7  ;;  %v2129_v23 = vshrl.u32 %v2118_v54, 16  ;;  %v2132_v38 = vshll.u32 %v2118_v54, 16 }
 0x40f   : > { %vm2101_vm13 = vcmp.gt.f32.partialorder %v2098_v35, 0.0  ;;  %v2108_v20 = vmul.f32 %v6400_v31, %v2098_v35 }
 0x410   : > { %v2127_v42 = vor.u32 %v2125_v57, %v2124_v51  ;;  %v2131_v37 = vrot.slane %v2129_v23, 7 }
 0x411   : > { %v2110_v44 = vsel %vm2101_vm13, %v2098_v35, %v2108_v20 }
 0x412   : > { %v2134_v36 = vor.u32 %v2132_v38, %v2131_v37  ;;  %v2154_v10 = vsel %vm6485_vm2, %v2127_v42, %v2153_v39  ;;  %v2114_v48 = vrot.slane %v2110_v44, 4  ;;  %v2119_v47 = vpack.c.bf16 %v2110_v44, %v2110_v44 }
 0x413   : > { %2155 = vst [vmem:[#allocation2 + $0x4] sm:$0x7] %v2154_v10 }
 0x414   : > { %v2157_v58 = vsel %vm6485_vm2, %v2134_v36, %v2156_v60  ;;  %v2120_v30 = vpack.c.bf16 %v2114_v48, %v2114_v48  ;;  %v2136_v49 = vshrl.u32 %v2119_v47, 16  ;;  %v2139_v17 = vshll.u32 %v2119_v47, 16 }
 0x415   : > { %2158 = vst [vmem:[#allocation2 + $0x8] sm:$0x7] %v2157_v58 }
 0x416   : > { %v2138_v50 = vrot.slane %v2136_v49, 7  ;;  %v2143_v43 = vshrl.u32 %v2120_v30, 16  ;;  %v2146_v55 = vshll.u32 %v2120_v30, 16 }
 0x418   : > { %v2141_v41 = vor.u32 %v2139_v17, %v2138_v50  ;;  %v2145_v62 = vrot.slane %v2143_v43, 7 }
 0x41a   : > { %v2148_v59 = vor.u32 %v2146_v55, %v2145_v62  ;;  %v2160_v63 = vsel %vm6485_vm2, %v2141_v41, %v2159_v56  ;;  %v2177_v28 = vld [vmem:[#allocation2 + $0x4] sm:$0x3] }
 0x41b   : > { %v2185_v0 = vld [vmem:[#allocation2 + $0x4] sm:$0x6]  ;;  %2161 = vst [vmem:[#allocation2 + $0xc] sm:$0x7] %v2160_v63  ;;  %v2277_v4 = vunpack.c.l.b16 %v2177_v28 }
 0x41c   : > { %v2174_v29 = vld [vmem:[#allocation2 + $0x4] sm:$0x6]  ;;  %v2337_v5 = vunpack.c.l.b16 %v2185_v0  ;;  %v2163_v53 = vsel %vm6485_vm2, %v2148_v59, %v2162_v34  ;;  %v2189_v7 = vld [vmem:[#allocation2 + $0x8] sm:$0x3] }
 0x41d   : > { %v2170_v6 = vld [vmem:[#allocation2 + $0x4] sm:$0x7]  ;;  %v2186_v32 = vld [vmem:[#allocation2 + $0x8] sm:$0x6]  ;;  %2164 = vst [vmem:[#allocation2 + $0x10] sm:$0x7] %v2163_v53  ;;  %v2281_v11 = vpack.c.b16 %v2277_v4, %v2277_v4  ;;  %v2361_v13 = vunpack.c.l.b16 %v2189_v7  ;;  %v2254_v15 = vunpack.c.l.b16 %v2174_v29 }
 0x41e   : > { %v2175_v9 = vld [vmem:[#allocation2 + $0x8] sm:$0x6]  ;;  %v2341_v12 = vpack.c.b16 %v2337_v5, %v2337_v5  ;;  %v2338_v16 = vunpack.c.l.b16 %v2186_v32  ;;  %v2206_v19 = vunpack.c.l.b16 %v2170_v6 }
 0x41f   : > { %v2171_v31 = vld [vmem:[#allocation2 + $0x8] sm:$0x7]  ;;  %2285 = vrot.lane.b32.xlu2 %v2281_v11, %s6421_s22  ;;  %v2365_v21 = vpack.c.b16 %v2361_v13, %v2361_v13  ;;  %v2255_v22 = vunpack.c.l.b16 %v2175_v9  ;;  %v2258_v46 = vpack.c.b16 %v2254_v15, %v2254_v15 }
 0x420   : > { %v2345_v27 = vrot.slane %v2341_v12, 1  ;;  %v2207_v61 = vunpack.c.l.b16 %v2171_v31  ;;  %v2210_v24 = vpack.c.b16 %v2206_v19, %v2206_v19  ;;  %v2342_v40 = vpack.c.b16 %v2338_v16, %v2338_v16  ;;  %v2193_v14 = vld [vmem:[#allocation2 + $0x8] sm:$0x7] }
 0x421   : > { %2369 = vrot.lane.b32.xlu1 %v2365_v21, %s6420_s21  ;;  %v2259_v52 = vpack.c.b16 %v2255_v22, %v2255_v22  ;;  %v2262_v26 = vrot.slane %v2258_v46, 1  ;;  %v2381_v57 = vunpack.c.l.b16 %v2193_v14 }
 0x422   : > { %2349 = vrot.lane.b32.xlu0 %v2345_v27, %s6422_s23  ;;  %v2211_v25 = vpack.c.b16 %v2207_v61, %v2207_v61  ;;  %v2190_v54 = vld [vmem:[#allocation2 + $0xc] sm:$0x3]  ;;  %v2223_v18 = vshll.u32 %v2210_v24, 16  ;;  %v2346_v45 = vrot.slane %v2342_v40, 1  ;;  %v2221_v44 = vshrl.u32 %v2210_v24, 16 }
 0x423   : > { %v2263_v35 = vrot.slane %v2259_v52, 1  ;;  %v2362_v23 = vunpack.c.l.b16 %v2190_v54  ;;  %v2187_v42 = vld [vmem:[#allocation2 + $0xc] sm:$0x6]  ;;  %v2385_v39 = vpack.c.b16 %v2381_v57, %v2381_v57  ;;  %v2178_v54 = vld [vmem:[#allocation2 + $0x8] sm:$0x3]  ;;  %v2242_v57 = vpop.permute.xlu2 %2241 }
 0x424   : > { %v2230_v51 = vshll.u32 %v2211_v25, 16  ;;  %v2225_v20 = vrot.slane %v2223_v18, 1  ;;  %v2172_v37 = vld [vmem:[#allocation2 + $0xc] sm:$0x7]  ;;  %v2228_v47 = vshrl.u32 %v2211_v25, 16  ;;  %v2339_v60 = vunpack.c.l.b16 %v2187_v42  ;;  %v7001_v42 = vpop.permute.xlu0 %2423 }
 0x425   : > { %v2176_v36 = vld [vmem:[#allocation2 + $0xc] sm:$0x6]  ;;  %v2366_v48 = vpack.c.b16 %v2362_v23, %v2362_v23  ;;  %v2208_v58 = vunpack.c.l.b16 %v2172_v37  ;;  %v2392_v50 = vshll.u32 %v2385_v39, 16  ;;  %v2195_v55 = vld [vmem:[#allocation2 + $0x10] sm:$0x7]  ;;  %v2390_v0 = vshrl.u32 %v2385_v39, 16  ;;  %v6997_v23 = vpop.permute.xlu1 %2375 }
 0x426   : > { %v2232_v38 = vrot.slane %v2230_v51, 1  ;;  %v2194_v10 = vld [vmem:[#allocation2 + $0xc] sm:$0x7]  ;;  %v2226_v30 = vor.u32 %v2225_v20, %v2221_v44  ;;  %v2256_v17 = vunpack.c.l.b16 %v2176_v36  ;;  %v2343_v41 = vpack.c.b16 %v2339_v60, %v2339_v60  ;;  %v2191_v53 = vld [vmem:[#allocation2 + $0x10] sm:$0x3]  ;;  %v6300_v39 = vld [vmem:[%s7766_s1 + $0x1e8] sm:$0xff] }
 0x427   : > { %2267 = vrot.lane.b32.xlu2 %v2262_v26, %s6420_s21  ;;  %v2382_v43 = vunpack.c.l.b16 %v2194_v10  ;;  %v2212_v62 = vpack.c.b16 %v2208_v58, %v2208_v58  ;;  %v2394_v56 = vrot.slane %v2392_v50, 1  ;;  %v2383_v34 = vunpack.c.l.b16 %v2195_v55  ;;  %v2188_v13 = vld [vmem:[#allocation2 + $0x10] sm:$0x6]  ;;  %v2179_v22 = vld [vmem:[#allocation2 + $0xc] sm:$0x3]  ;;  %v6308_v44 = vld [vmem:[%s7766_s1 + $0x228] sm:$0xff]  ;;  %2689 = vmatpush.bf16.msra.mxu0 %v6300_v39 }
 0x428   : > { %v2233_v49 = vor.u32 %v2232_v38, %v2228_v47  ;;  %v2260_v59 = vpack.c.b16 %v2256_v17, %v2256_v17  ;;  %v2347_v28 = vrot.slane %v2343_v41, 1  ;;  %v2363_v11 = vunpack.c.l.b16 %v2191_v53  ;;  %v2180_v25 = vld [vmem:[#allocation2 + $0x10] sm:$0x3]  ;;  %v2181_v10 = vld [vmem:[#allocation2 + $0x4] sm:$0x7]  ;;  %2703 = vmatpush.bf16.msra.mxu2 %v6308_v44  ;;  %v6299_v58 = vld [vmem:[%s7766_s1 + $0x1e0] sm:$0xff] }
 0x429   : > { %2351 = vrot.lane.b32.xlu1 %v2346_v45, %s6422_s23  ;;  %v2386_v63 = vpack.c.b16 %v2382_v43, %v2382_v43  ;;  %v2237_v29 = vshll.u32 %v2212_v62, 16  ;;  %v2395_v4 = vor.u32 %v2394_v56, %v2390_v0  ;;  %v2387_v32 = vpack.c.b16 %v2383_v34, %v2383_v34  ;;  %v6306_v50 = vld [vmem:[%s7766_s1 + $0x218] sm:$0xff]  ;;  %v2183_v55 = vld [vmem:[#allocation2 + $0xc] sm:$0x7]  ;;  %v6296_v53 = vld [vmem:[%s7766_s1 + $0x1c8] sm:$0xff] }
 0x42a   : > { %2269 = vrot.lane.b32.xlu0 %v2263_v35, %s6420_s21  ;;  %v2264_v5 = vrot.slane %v2260_v59, 1  ;;  %v2235_v9 = vshrl.u32 %v2212_v62, 16  ;;  %v2367_v19 = vpack.c.b16 %v2363_v11, %v2363_v11  ;;  %v2340_v21 = vunpack.c.l.b16 %v2188_v13  ;;  %v6297_v34 = vld [vmem:[%s7766_s1 + $0x1d0] sm:$0xff]  ;;  %v2184_v13 = vld [vmem:[#allocation2 + $0x10] sm:$0x7] }
 0x42b   : > { %v2399_v6 = vshll.u32 %v2386_v63, 16  ;;  %v2239_v7 = vrot.slane %v2237_v29, 1  ;;  %v2397_v31 = vshrl.u32 %v2386_v63, 16  ;;  %v2406_v16 = vshll.u32 %v2387_v32, 16  ;;  %2690 = vmatpush.bf16.msra.mxu0 %v6299_v58  ;;  %v2197_v29 = vld [vmem:[#allocation2 + $0x8] sm:$0x6] }
 0x42c   : > { %v2404_v46 = vshrl.u32 %v2387_v32, 16  ;;  %v2344_v24 = vpack.c.b16 %v2340_v21, %v2340_v21  ;;  %v2279_v40 = vunpack.c.l.b16 %v2179_v22  ;;  %v2280_v18 = vunpack.c.l.b16 %v2180_v25  ;;  %v2182_v11 = vld [vmem:[#allocation2 + $0x8] sm:$0x7]  ;;  %v6303_v21 = vld [vmem:[%s7766_s1 + $0x200] sm:$0xff] }
 0x42d   : > { %v2401_v12 = vrot.slane %v2399_v6, 1  ;;  %v2240_v15 = vor.u32 %v2239_v7, %v2235_v9  ;;  %v2408_v61 = vrot.slane %v2406_v16, 1  ;;  %v2278_v45 = vunpack.c.l.b16 %v2178_v54  ;;  %v2266_v37 = vpop.permute.xlu1 %2265  ;;  %v2165_v6 = vld [vmem:[#allocation2] sm:$0x3]  ;;  %v6293_v58 = vld [vmem:[%s7766_s1 + $0x1b0] sm:$0xff] }
 0x42e   : > { %v2348_v14 = vrot.slane %v2344_v24, 1  ;;  %v2283_v26 = vpack.c.b16 %v2279_v40, %v2279_v40  ;;  %v2284_v35 = vpack.c.b16 %v2280_v18, %v2280_v18  ;;  %v2297_v60 = vunpack.c.l.b16 %v2181_v10  ;;  %v6304_v7 = vld [vmem:[%s7766_s1 + $0x208] sm:$0xff]  ;;  %v6309_v40 = vld [vmem:[%s7766_s1 + $0x230] sm:$0xff] }
 0x42f   : > { %2371 = vrot.lane.b32.xlu2 %v2366_v48, %s6420_s21  ;;  %v2402_v27 = vor.u32 %v2401_v12, %v2397_v31  ;;  %v2409_v52 = vor.u32 %v2408_v61, %v2404_v46  ;;  %v2282_v51 = vpack.c.b16 %v2278_v45, %v2278_v45  ;;  %v2299_v59 = vunpack.c.l.b16 %v2183_v55  ;;  %v2200_v55 = vld [vmem:[#allocation2 + $0x14] sm:$0x6] }
 0x430   : > { %v2301_v17 = vpack.c.b16 %v2297_v60, %v2297_v60  ;;  %v2429_v12 = vunpack.c.l.b16 %v2197_v29  ;;  %v2443_v31 = vsel %vm546_vm3, %v2165_v6, %v2242_v57  ;;  %v2300_v24 = vunpack.c.l.b16 %v2184_v13  ;;  %v2199_v60 = vld [vmem:[#allocation2 + $0x10] sm:$0x6]  ;;  %v2198_v13 = vld [vmem:[#allocation2 + $0xc] sm:$0x6] }
 0x431   : > { %2245 = vrot.lane.b32.xlu1 %v2233_v49, %s6422_s23  ;;  %v6298_v49 = vld [vmem:[%s7766_s1 + $0x1d8] sm:$0xff]  ;;  %v2303_v32 = vpack.c.b16 %v2299_v59, %v2299_v59  ;;  %v2431_v59 = vunpack.c.l.b16 %v2199_v60  ;;  %v2432_v6 = vunpack.c.l.b16 %v2200_v55 }
 0x432   : > { %2243 = vrot.lane.b32.xlu0 %v2226_v30, %s6422_s23  ;;  %v6307_v30 = vld [vmem:[%s7766_s1 + $0x220] sm:$0xff]  ;;  %2691 = vmatpush.bf16.msra.mxu0 %v6298_v49  ;;  %v2308_v62 = vshll.u32 %v2301_v17, 16  ;;  %v2433_v46 = vpack.c.b16 %v2429_v12, %v2429_v12  ;;  %v2304_v44 = vpack.c.b16 %v2300_v24, %v2300_v24  ;;  %v2430_v24 = vunpack.c.l.b16 %v2198_v13 }
 0x433   : > { %2704 = vmatpush.bf16.msra.mxu2 %v6307_v30  ;;  %v2322_v22 = vshll.u32 %v2303_v32, 16  ;;  %v2320_v10 = vshrl.u32 %v2303_v32, 16 }
 0x434   : > { %v2310_v63 = vrot.slane %v2308_v62, 1  ;;  %v5660_v39 = vrot.slane %v2433_v46, 5  ;;  %v2327_v12 = vshrl.u32 %v2304_v44, 16 }
 0x436   : > { %2692 = vmatpush.bf16.msra.mxu0 %v6297_v34 }
 0x437   : > { %2353 = vrot.lane.b32.xlu2 %v2347_v28, %s6422_s23  ;;  %2705 = vmatpush.bf16.msra.mxu2 %v6306_v50  ;;  %v2329_v50 = vshll.u32 %v2304_v44, 16 }
 0x439   : > { %2271 = vrot.lane.b32.xlu1 %v2264_v5, %s6420_s21  ;;  %v2306_v5 = vshrl.u32 %v2301_v17, 16 }
 0x43a   : > { %2417 = vrot.lane.b32.xlu0 %v2395_v4, %s6421_s22  ;;  %v6305_v4 = vld [vmem:[%s7766_s1 + $0x210] sm:$0xff]  ;;  %2693 = vmatpush.bf16.msra.mxu0 %v6296_v53 }
 0x43b   : > { %2706 = vmatpush.bf16.msra.mxu2 %v6305_v4  ;;  %v2311_v9 = vor.u32 %v2310_v63, %v2306_v5  ;;  %v2331_v5 = vrot.slane %v2329_v50, 1  ;;  %v2167_v53 = vld [vmem:[#allocation2 + $0x8] sm:$0x3]  ;;  %v2823_v50 = vld [vmem:[#allocation2 + $0x14] sm:$0x3] }
 0x43f   : > { %2247 = vrot.lane.b32.xlu2 %v2240_v15, %s6422_s23  ;;  %v6310_v15 = vld [vmem:[%s7766_s1 + $0x238] sm:$0xff]  ;;  %2707 = vmatpush.bf16.msra.mxu2 %v6304_v7  ;;  %v2435_v7 = vpack.c.b16 %v2431_v59, %v2431_v59 }
 0x440   : > { %2723 = vmatpush.bf16.msra.mxu1 %v6310_v15 }
 0x441   : > { %2419 = vrot.lane.b32.xlu1 %v2402_v27, %s6421_s22  ;;  %v6295_v27 = vld [vmem:[%s7766_s1 + $0x1c0] sm:$0xff] }
 0x442   : > { %2373 = vrot.lane.b32.xlu0 %v2367_v19, %s6420_s21  ;;  %v2298_v19 = vunpack.c.l.b16 %v2182_v11  ;;  %2694 = vmatpush.bf16.msra.mxu0 %v6295_v27 }
 0x443   : > { %2708 = vmatpush.bf16.msra.mxu2 %v6303_v21  ;;  %v5662_v21 = vrot.slane %v2435_v7, 5 }
 0x444   : > { %v2302_v18 = vpack.c.b16 %v2298_v19, %v2298_v19  ;;  %2724 = vmatpush.bf16.msra.mxu1 %v6309_v40 }
 0x446   : > { %v2315_v49 = vshll.u32 %v2302_v18, 16  ;;  %v2313_v32 = vshrl.u32 %v2302_v18, 16 }
 0x447   : > { %2421 = vrot.lane.b32.xlu2 %v2409_v52, %s6421_s22  ;;  %v2454_v52 = vsel %vm559_vm4, %v2443_v31, %v2266_v37  ;;  %v2324_v37 = vrot.slane %v2322_v22, 1  ;;  %v2436_v31 = vpack.c.b16 %v2432_v6, %v2432_v6 }
 0x448   : > { %v2317_v4 = vrot.slane %v2315_v49, 1 }
 0x449   : > { %2289 = vrot.lane.b32.xlu1 %v2283_v26, %s6421_s22  ;;  %v2325_v30 = vor.u32 %v2324_v37, %v2320_v10 }
 0x44a   : > { %2355 = vrot.lane.b32.xlu0 %v2348_v14, %s6422_s23  ;;  %v2318_v15 = vor.u32 %v2317_v4, %v2313_v32  ;;  %v2800_v4 = vld [vmem:[#allocation2] sm:$0x7] }
 0x44b   : > { %v2836_v6 = vunpack.c.l.b16 %v2800_v4 }
 0x44d   : > { %v2840_v7 = vpack.c.b16 %v2836_v6, %v2836_v6  ;;  %v2793_v6 = vld [vmem:[#allocation2 + $0x10] sm:$0x7] }
 0x44f   : > { %2291 = vrot.lane.b32.xlu2 %v2284_v35, %s6421_s22  ;;  %v6294_v35 = vld [vmem:[%s7766_s1 + $0x1b8] sm:$0xff]  ;;  %v2845_v13 = vshrl.u32 %v2840_v7, 16 }
 0x450   : > { %2695 = vmatpush.bf16.msra.mxu0 %v6294_v35  ;;  %v2166_v35 = vld [vmem:[#allocation2 + $0x4] sm:$0x3] }
 0x452   : > { %2287 = vrot.lane.b32.xlu0 %v2282_v51, %s6421_s22  ;;  %v6302_v51 = vld [vmem:[%s7766_s1 + $0x1f8] sm:$0xff] }
 0x453   : > { %2709 = vmatpush.bf16.msra.mxu2 %v6302_v51 }
 0x454   : > { %2696 = vmatpush.bf16.msra.mxu0 %v6293_v58 }
 0x479   : > { %v6999_v20 = vpop.permute.xlu2 %2285 }
 0x47a   : > { %v2462_v57 = vsel %vm568_vm5, %v2454_v52, %v6999_v20  ;;  %v6301_v20 = vld [vmem:[%s7766_s1 + $0x1f0] sm:$0xff] }
 0x47b   : > { %2710 = vmatpush.bf16.msra.mxu2 %v6301_v20 }
 0x481   : > { %v7003_v38 = vpop.permute.xlu2 %2267 }
 0x489   : > { %v7011_v47 = vpop.permute.xlu2 %2371 }
 0x491   : > { %v7029_v56 = vpop.permute.xlu2 %2353 }
 0x492   : > { %v2477_v63 = vsel %vm546_vm3, %v2325_v30, %v7029_v56  ;;  %v2332_v56 = vor.u32 %v2331_v5, %v2327_v12  ;;  %v2827_v5 = vld [vmem:[#allocation2 + $0x14] sm:$0x7] }
 0x493   : > { %v2370_v48 = vpop.permute.xlu1 %2369 }
 0x494   : > { %v2350_v36 = vpop.permute.xlu0 %2349 }
 0x495   : > { %v2471_v16 = vsel %vm546_vm3, %v2311_v9, %v2350_v36 }
 0x496   : > { %v2482_v25 = vsel %vm559_vm4, %v2471_v16, %v2370_v48  ;;  %v2168_v16 = vld [vmem:[#allocation2 + $0xc] sm:$0x3] }
 0x499   : > { %v7058_v61 = vpop.permute.xlu2 %2247 }
 0x49a   : > { %v2452_v40 = vsel %vm546_vm3, %v2168_v16, %v7058_v61 }
 0x49b   : > { %v7025_v43 = vpop.permute.xlu1 %2351 }
 0x49c   : > { %v7027_v41 = vpop.permute.xlu0 %2269 }
 0x4a1   : > { %v2422_v29 = vpop.permute.xlu2 %2421 }
 0x4a3   : > { %v7033_v0 = vpop.permute.xlu1 %2245 }
 0x4a4   : > { %v7031_v28 = vpop.permute.xlu0 %2243  ;;  %v2449_v9 = vsel %vm546_vm3, %v2167_v53, %v7033_v0  ;;  %v2474_v0 = vsel %vm546_vm3, %v2318_v15, %v7025_v43  ;;  %v3015_v53 = vunpack.c.l.b16 %v2827_v5  ;;  %v2847_v15 = vshll.u32 %v2840_v7, 16 }
 0x4a5   : > { %v2458_v46 = vsel %vm559_vm4, %v2449_v9, %v7027_v41  ;;  %v2484_v43 = vsel %vm559_vm4, %v2474_v0, %v7011_v47 }
 0x4a6   : > { %v3019_v32 = vpack.c.b16 %v3015_v53, %v3015_v53 }
 0x4a9   : > { %v2292_v51 = vpop.permute.xlu2 %2291 }
 0x4ab   : > { %v2272_v26 = vpop.permute.xlu1 %2271 }
 0x4ac   : > { %v2418_v14 = vpop.permute.xlu0 %2417 }
 0x4ad   : > { %v2490_v54 = vsel %vm568_vm5, %v2482_v25, %v2418_v14  ;;  %v2460_v14 = vsel %vm559_vm4, %v2452_v40, %v2272_v26  ;;  %v2446_v26 = vsel %vm546_vm3, %v2166_v35, %v7031_v28 }
 0x4ae   : > { %v2501_v45 = vrot.slane %v2490_v54, 6  ;;  %v2456_v10 = vsel %vm559_vm4, %v2446_v26, %v7003_v38  ;;  %v2804_v38 = vld [vmem:[#allocation2] sm:$0x6] }
 0x4af   : > { %v2884_v55 = vunpack.c.l.b16 %v2804_v38 }
 0x4b0   : > { %v2510_v36 = vsel %vm617_vm6, %v2462_v57, %v2501_v45  ;;  %v5663_v45 = vrot.slane %v2436_v31, 5  ;;  %v3044_v31 = vshll.u32 %v3019_v32, 16 }
 0x4b1   : > { %v2512_v48 = vsel %vm620_vm7, %v2510_v36, %v5660_v39  ;;  %v2434_v39 = vpack.c.b16 %v2430_v24, %v2430_v24  ;;  %v2888_v59 = vpack.c.b16 %v2884_v55, %v2884_v55 }
 0x4b2   : > { %2567 = vst [vmem:[#allocation1] ss:$4 sm:$0xff] %v2512_v48 }
 0x4b3   : > { %v2420_v62 = vpop.permute.xlu1 %2419  ;;  %v5661_v48 = vrot.slane %v2434_v39, 5 }
 0x4b4   : > { %v2374_v17 = vpop.permute.xlu0 %2373  ;;  %v2492_v37 = vsel %vm568_vm5, %v2484_v43, %v2420_v62 }
 0x4b5   : > { %v2486_v34 = vsel %vm559_vm4, %v2477_v63, %v2374_v17  ;;  %v2503_v36 = vrot.slane %v2492_v37, 6  ;;  %v2995_v17 = vunpack.c.l.b16 %v2823_v50  ;;  %v2892_v63 = vrot.slane %v2888_v59, 1  ;;  %v2790_v59 = vld [vmem:[#allocation2 + $0xc] sm:$0x7] }
 0x4b6   : > { %v2494_v11 = vsel %vm568_vm5, %v2486_v34, %v2422_v29  ;;  %v6401_v34 = vld [vmem:[%s7767_s2 + $0x3] ss:$0 sm:$0xff] }
 0x4b7   : > { %v2505_v19 = vrot.slane %v2494_v11, 6  ;;  %v2999_v62 = vpack.c.b16 %v2995_v17, %v2995_v17 }
 0x4b9   : > { %3006 = vrot.lane.b32.xlu1 %v2999_v62, %s6420_s21 }
 0x4bb   : > { %v2290_v22 = vpop.permute.xlu1 %2289 }
 0x4bc   : > { %v2356_v27 = vpop.permute.xlu0 %2355  ;;  %v2466_v25 = vsel %vm568_vm5, %v2458_v46, %v2290_v22 }
 0x4bd   : > { %v2480_v52 = vsel %vm546_vm3, %v2332_v56, %v2356_v27  ;;  %v2518_v18 = vsel %vm617_vm6, %v2466_v25, %v2505_v19  ;;  %v3042_v56 = vshrl.u32 %v3019_v32, 16  ;;  %v6402_v19 = vld [vmem:[%s7768_s3 + $0x3] ss:$0 sm:$0xff]  ;;  %v2849_v27 = vrot.slane %v2847_v15, 1 }
 0x4be   : > { %v2488_v54 = vsel %vm559_vm4, %v2480_v52, %v6997_v23  ;;  %v2520_v61 = vsel %vm620_vm7, %v2518_v18, %v5662_v21  ;;  %v2468_v23 = vsel %vm568_vm5, %v2460_v14, %v2292_v51  ;;  %v3046_v21 = vrot.slane %v3044_v31, 1 }
 0x4bf   : > { %v2496_v41 = vsel %vm568_vm5, %v2488_v54, %v7001_v42  ;;  %2571 = vst [vmem:[#allocation1 + $0x2] ss:$4 sm:$0xff] %v2520_v61  ;;  %v2850_v24 = vor.u32 %v2849_v27, %v2845_v13 }
 0x4c0   : > { %v2507_v57 = vrot.slane %v2496_v41, 6  ;;  %v3047_v40 = vor.u32 %v3046_v21, %v3042_v56 }
 0x4c1   : > { %2896 = vrot.lane.b32.xlu1 %v2892_v63, %s6420_s21  ;;  %2872 = vrot.lane.b32.xlu2 %v2850_v24, %s6422_s23 }
 0x4c2   : > { %v2522_v44 = vsel %vm617_vm6, %v2468_v23, %v2507_v57  ;;  %3054 = vrot.lane.b32.xlu0 %v3047_v40, %s6421_s22 }
 0x4c3   : > { %v2524_v42 = vsel %vm620_vm7, %v2522_v44, %v5663_v45 }
 0x4c4   : > { %2573 = vst [vmem:[#allocation1 + $0x3] ss:$4 sm:$0xff] %v2524_v42  ;;  %v2288_v47 = vpop.permute.xlu0 %2287  ;;  %v2784_v42 = vld [vmem:[#allocation2 + $0x4] sm:$0x7] }
 0x4c5   : > { %v2464_v60 = vsel %vm568_vm5, %v2456_v10, %v2288_v47 }
 0x4c6   : > { %v2514_v28 = vsel %vm617_vm6, %v2464_v60, %v2503_v36 }
 0x4c7   : > { %v2516_v58 = vsel %vm620_vm7, %v2514_v28, %v5661_v48  ;;  %v2787_v28 = vld [vmem:[#allocation2 + $0x8] sm:$0x7] }
 0x4c8   : > { %2569 = vst [vmem:[#allocation1 + $0x1] ss:$4 sm:$0xff] %v2516_v58 }
 0x4cf   : > { %v2574_v20 = vld.sshfl [vmem:[#allocation1] sm:$0xff pattern:$0x73625140]  ;;  %v2575_v30 = vld.sshfl [vmem:[#allocation1 + $0x8] sm:$0xff pattern:$0x73625140] }
 0x4d0   : > { %2697 = vmatmul.bf16.vlgmr.msra.gmra.mxu0 %v2574_v20  ;;  %2711 = vmatmul.bf16.vlgmr.msra.gmra.mxu2 %v2575_v30  ;;  %v2576_v49 = vld.sshfl [vmem:[#allocation1 + $0x10] sm:$0xff pattern:$0x73625140] }
 0x4d1   : > { %5773 = vmatmul.msk.bf16.vlgmr.msra.gmra.mxu1 %vm546_vm3, %v2576_v49 }
 0x54d   : > { %v2698_v29 = vpop.f32.mrf.mxu0 }
 0x54e   : > { %v2699_v9 = vadd.f32 %v6401_v34, %v2698_v29  ;;  %v2726_v11 = vpop.f32.mrf.mxu1 }
 0x553   : > { %v2712_v12 = vpop.f32.mrf.mxu2 }
 0x554   : > { %v2713_v16 = vadd.f32 %v2712_v12, %v2699_v9 }
 0x555   : > { %v2700_v46 = vpop.f32.mrf.mxu0 }
 0x556   : > { %v2727_v22 = vadd.f32 %v2726_v11, %v2713_v16  ;;  %v2701_v25 = vadd.f32 %v6401_v34, %v2700_v46  ;;  %v2728_v35 = vpop.f32.mrf.mxu1 }
 0x558   : > { %vm2731_vm14 = vcmp.gt.f32.partialorder %v2727_v22, 0.0  ;;  %v2738_v0 = vmul.f32 %v6402_v19, %v2727_v22 }
 0x55a   : > { %v2740_v52 = vsel %vm2731_vm14, %v2727_v22, %v2738_v0 }
 0x55b   : > { %v2744_v14 = vrot.slane %v2740_v52, 4  ;;  %v2748_v54 = vpack.c.bf16 %v2740_v52, %v2740_v52  ;;  %v2714_v18 = vpop.f32.mrf.mxu2 }
 0x55c   : > { %v2715_v45 = vadd.f32 %v2714_v18, %v2701_v25 }
 0x55d   : > { %v2749_v41 = vpack.c.bf16 %v2744_v14, %v2744_v14  ;;  %v2753_v61 = vshrl.u32 %v2748_v54, 16  ;;  %v2756_v57 = vshll.u32 %v2748_v54, 16 }
 0x55e   : > { %v2729_v51 = vadd.f32 %v2728_v35, %v2715_v45 }
 0x55f   : > { %v2755_v43 = vrot.slane %v2753_v61, 7  ;;  %v2760_v26 = vshrl.u32 %v2749_v41, 16  ;;  %v2763_v44 = vshll.u32 %v2749_v41, 16 }
 0x560   : > { %vm2732_vm15 = vcmp.gt.f32.partialorder %v2729_v51, 0.0  ;;  %v2739_v23 = vmul.f32 %v6402_v19, %v2729_v51 }
 0x561   : > { %v2758_v37 = vor.u32 %v2756_v57, %v2755_v43  ;;  %v2762_v39 = vrot.slane %v2760_v26, 7 }
 0x562   : > { %v2741_v36 = vsel %vm2732_vm15, %v2729_v51, %v2739_v23 }
 0x563   : > { %v2765_v10 = vor.u32 %v2763_v44, %v2762_v39  ;;  %v2785_v47 = vsel %vm6485_vm2, %v2758_v37, %v2784_v42  ;;  %v2745_v48 = vrot.slane %v2741_v36, 4  ;;  %v2750_v60 = vpack.c.bf16 %v2741_v36, %v2741_v36 }
 0x564   : > { %2786 = vst [vmem:[#allocation2 + $0x4] sm:$0x7] %v2785_v47 }
 0x565   : > { %v2788_v58 = vsel %vm6485_vm2, %v2765_v10, %v2787_v28  ;;  %v2751_v20 = vpack.c.bf16 %v2745_v48, %v2745_v48  ;;  %v2767_v30 = vshrl.u32 %v2750_v60, 16  ;;  %v2770_v50 = vshll.u32 %v2750_v60, 16 }
 0x566   : > { %2789 = vst [vmem:[#allocation2 + $0x8] sm:$0x7] %v2788_v58 }
 0x567   : > { %v2769_v49 = vrot.slane %v2767_v30, 7  ;;  %v2774_v17 = vshrl.u32 %v2751_v20, 16  ;;  %v2777_v55 = vshll.u32 %v2751_v20, 16 }
 0x569   : > { %v2772_v62 = vor.u32 %v2770_v50, %v2769_v49  ;;  %v2776_v38 = vrot.slane %v2774_v17, 7 }
 0x56b   : > { %v2779_v63 = vor.u32 %v2777_v55, %v2776_v38  ;;  %v2791_v29 = vsel %vm6485_vm2, %v2772_v62, %v2790_v59  ;;  %v2808_v34 = vld [vmem:[#allocation2 + $0x4] sm:$0x3] }
 0x56c   : > { %v2816_v4 = vld [vmem:[#allocation2 + $0x4] sm:$0x6]  ;;  %2792 = vst [vmem:[#allocation2 + $0xc] sm:$0x7] %v2791_v29  ;;  %v2908_v53 = vunpack.c.l.b16 %v2808_v34 }
 0x56d   : > { %v2805_v5 = vld [vmem:[#allocation2 + $0x4] sm:$0x6]  ;;  %v2968_v7 = vunpack.c.l.b16 %v2816_v4  ;;  %v2794_v9 = vsel %vm6485_vm2, %v2779_v63, %v2793_v6  ;;  %v2820_v11 = vld [vmem:[#allocation2 + $0x8] sm:$0x3] }
 0x56e   : > { %v2801_v32 = vld [vmem:[#allocation2 + $0x4] sm:$0x7]  ;;  %v2817_v12 = vld [vmem:[#allocation2 + $0x8] sm:$0x6]  ;;  %2795 = vst [vmem:[#allocation2 + $0x10] sm:$0x7] %v2794_v9  ;;  %v2912_v15 = vpack.c.b16 %v2908_v53, %v2908_v53  ;;  %v2992_v31 = vunpack.c.l.b16 %v2820_v11  ;;  %v2885_v16 = vunpack.c.l.b16 %v2805_v5 }
 0x56f   : > { %v2806_v13 = vld [vmem:[#allocation2 + $0x8] sm:$0x6]  ;;  %v2972_v56 = vpack.c.b16 %v2968_v7, %v2968_v7  ;;  %v2969_v27 = vunpack.c.l.b16 %v2817_v12  ;;  %v2837_v21 = vunpack.c.l.b16 %v2801_v32 }
 0x570   : > { %v2802_v19 = vld [vmem:[#allocation2 + $0x8] sm:$0x7]  ;;  %2916 = vrot.lane.b32.xlu2 %v2912_v15, %s6421_s22  ;;  %v2996_v46 = vpack.c.b16 %v2992_v31, %v2992_v31  ;;  %v2886_v24 = vunpack.c.l.b16 %v2806_v13  ;;  %v2889_v0 = vpack.c.b16 %v2885_v16, %v2885_v16 }
 0x571   : > { %v2976_v22 = vrot.slane %v2972_v56, 1  ;;  %v2838_v40 = vunpack.c.l.b16 %v2802_v19  ;;  %v2841_v52 = vpack.c.b16 %v2837_v21, %v2837_v21  ;;  %v2973_v25 = vpack.c.b16 %v2969_v27, %v2969_v27  ;;  %v2824_v18 = vld [vmem:[#allocation2 + $0x8] sm:$0x7] }
 0x572   : > { %3000 = vrot.lane.b32.xlu1 %v2996_v46, %s6420_s21  ;;  %v2890_v14 = vpack.c.b16 %v2886_v24, %v2886_v24  ;;  %v2893_v45 = vrot.slane %v2889_v0, 1  ;;  %v3012_v57 = vunpack.c.l.b16 %v2824_v18 }
 0x573   : > { %2980 = vrot.lane.b32.xlu0 %v2976_v22, %s6422_s23  ;;  %v2842_v54 = vpack.c.b16 %v2838_v40, %v2838_v40  ;;  %v2821_v41 = vld [vmem:[#allocation2 + $0xc] sm:$0x3]  ;;  %v2854_v61 = vshll.u32 %v2841_v52, 16  ;;  %v2977_v35 = vrot.slane %v2973_v25, 1  ;;  %v2852_v36 = vshrl.u32 %v2841_v52, 16 }
 0x574   : > { %v2894_v51 = vrot.slane %v2890_v14, 1  ;;  %v2993_v26 = vunpack.c.l.b16 %v2821_v41  ;;  %v2818_v37 = vld [vmem:[#allocation2 + $0xc] sm:$0x6]  ;;  %v3016_v42 = vpack.c.b16 %v3012_v57, %v3012_v57  ;;  %v2809_v41 = vld [vmem:[#allocation2 + $0x8] sm:$0x3]  ;;  %v2873_v57 = vpop.permute.xlu2 %2872 }
 0x575   : > { %v2861_v43 = vshll.u32 %v2842_v54, 16  ;;  %v2856_v23 = vrot.slane %v2854_v61, 1  ;;  %v2803_v39 = vld [vmem:[#allocation2 + $0xc] sm:$0x7]  ;;  %v2859_v60 = vshrl.u32 %v2842_v54, 16  ;;  %v2970_v28 = vunpack.c.l.b16 %v2818_v37  ;;  %v7159_v37 = vpop.permute.xlu0 %3054 }
 0x576   : > { %v2807_v10 = vld [vmem:[#allocation2 + $0xc] sm:$0x6]  ;;  %v2997_v48 = vpack.c.b16 %v2993_v26, %v2993_v26  ;;  %v2839_v58 = vunpack.c.l.b16 %v2803_v39  ;;  %v3023_v49 = vshll.u32 %v3016_v42, 16  ;;  %v2826_v55 = vld [vmem:[#allocation2 + $0x10] sm:$0x7]  ;;  %v3021_v4 = vshrl.u32 %v3016_v42, 16  ;;  %v7155_v26 = vpop.permute.xlu1 %3006 }
 0x577   : > { %v2863_v44 = vrot.slane %v2861_v43, 1  ;;  %v2825_v47 = vld [vmem:[#allocation2 + $0xc] sm:$0x7]  ;;  %v2857_v20 = vor.u32 %v2856_v23, %v2852_v36  ;;  %v2887_v50 = vunpack.c.l.b16 %v2807_v10  ;;  %v2974_v62 = vpack.c.b16 %v2970_v28, %v2970_v28  ;;  %v2822_v9 = vld [vmem:[#allocation2 + $0x10] sm:$0x3] }
 0x578   : > { %2898 = vrot.lane.b32.xlu2 %v2893_v45, %s6420_s21  ;;  %v3013_v17 = vunpack.c.l.b16 %v2825_v47  ;;  %v2843_v38 = vpack.c.b16 %v2839_v58, %v2839_v58  ;;  %v3025_v59 = vrot.slane %v3023_v49, 1  ;;  %v3014_v6 = vunpack.c.l.b16 %v2826_v55  ;;  %v2819_v31 = vld [vmem:[#allocation2 + $0x10] sm:$0x6]  ;;  %v2810_v24 = vld [vmem:[#allocation2 + $0xc] sm:$0x3]  ;;  %v6324_v49 = vld [vmem:[%s7766_s1 + $0x2a8] sm:$0xff] }
 0x579   : > { %v2864_v30 = vor.u32 %v2863_v44, %v2859_v60  ;;  %v2891_v63 = vpack.c.b16 %v2887_v50, %v2887_v50  ;;  %v2978_v34 = vrot.slane %v2974_v62, 1  ;;  %v2994_v15 = vunpack.c.l.b16 %v2822_v9  ;;  %v2811_v54 = vld [vmem:[#allocation2 + $0x10] sm:$0x3]  ;;  %v2812_v47 = vld [vmem:[#allocation2 + $0x4] sm:$0x7]  ;;  %v6317_v58 = vld [vmem:[%s7766_s1 + $0x270] sm:$0xff] }
 0x57a   : > { %2982 = vrot.lane.b32.xlu1 %v2977_v35, %s6422_s23  ;;  %v3017_v29 = vpack.c.b16 %v3013_v17, %v3013_v17  ;;  %v2868_v5 = vshll.u32 %v2843_v38, 16  ;;  %v3026_v53 = vor.u32 %v3025_v59, %v3021_v4  ;;  %v3018_v12 = vpack.c.b16 %v3014_v6, %v3014_v6  ;;  %v6318_v42 = vld [vmem:[%s7766_s1 + $0x278] sm:$0xff]  ;;  %v2814_v55 = vld [vmem:[#allocation2 + $0xc] sm:$0x7]  ;;  %v6315_v6 = vld [vmem:[%s7766_s1 + $0x260] sm:$0xff] }
 0x57b   : > { %2900 = vrot.lane.b32.xlu0 %v2894_v51, %s6420_s21  ;;  %v2895_v7 = vrot.slane %v2891_v63, 1  ;;  %v2866_v13 = vshrl.u32 %v2843_v38, 16  ;;  %v2998_v21 = vpack.c.b16 %v2994_v15, %v2994_v15  ;;  %v2971_v46 = vunpack.c.l.b16 %v2819_v31  ;;  %v6326_v36 = vld [vmem:[%s7766_s1 + $0x2b8] sm:$0xff]  ;;  %3320 = vmatpush.bf16.msrb.mxu3 %v6318_v42  ;;  %v2813_v15 = vld [vmem:[#allocation2 + $0x8] sm:$0x7] }
 0x57c   : > { %v3030_v32 = vshll.u32 %v3017_v29, 16  ;;  %v2870_v11 = vrot.slane %v2868_v5, 1  ;;  %v3028_v19 = vshrl.u32 %v3017_v29, 16  ;;  %v3037_v27 = vshll.u32 %v3018_v12, 16  ;;  %3334 = vmatpush.bf16.msrb.mxu0 %v6326_v36  ;;  %v2828_v5 = vld [vmem:[#allocation2 + $0x8] sm:$0x6] }
 0x57d   : > { %v3035_v0 = vshrl.u32 %v3018_v12, 16  ;;  %v2975_v52 = vpack.c.b16 %v2971_v46, %v2971_v46  ;;  %v2910_v25 = vunpack.c.l.b16 %v2810_v24  ;;  %v2911_v61 = vunpack.c.l.b16 %v2811_v54  ;;  %v6314_v9 = vld [vmem:[%s7766_s1 + $0x258] sm:$0xff]  ;;  %v6321_v46 = vld [vmem:[%s7766_s1 + $0x290] sm:$0xff] }
 0x57e   : > { %v3032_v56 = vrot.slane %v3030_v32, 1  ;;  %v2871_v16 = vor.u32 %v2870_v11, %v2866_v13  ;;  %v3039_v40 = vrot.slane %v3037_v27, 1  ;;  %v2909_v35 = vunpack.c.l.b16 %v2809_v41  ;;  %v2897_v39 = vpop.permute.xlu1 %2896  ;;  %v2796_v32 = vld [vmem:[#allocation2] sm:$0x3]  ;;  %v6322_v11 = vld [vmem:[%s7766_s1 + $0x298] sm:$0xff] }
 0x57f   : > { %v2979_v18 = vrot.slane %v2975_v52, 1  ;;  %v2914_v45 = vpack.c.b16 %v2910_v25, %v2910_v25  ;;  %v2915_v51 = vpack.c.b16 %v2911_v61, %v2911_v61  ;;  %v2928_v28 = vunpack.c.l.b16 %v2812_v47  ;;  %3321 = vmatpush.bf16.msrb.mxu3 %v6317_v58  ;;  %v2815_v31 = vld [vmem:[#allocation2 + $0x10] sm:$0x7]  ;;  %v6328_v27 = vld [vmem:[%s7766_s1 + $0x2c8] sm:$0xff]  ;;  %v6327_v25 = vld [vmem:[%s7766_s1 + $0x2c0] sm:$0xff] }
 0x580   : > { %3002 = vrot.lane.b32.xlu2 %v2997_v48, %s6420_s21  ;;  %v3033_v22 = vor.u32 %v3032_v56, %v3028_v19  ;;  %v3040_v14 = vor.u32 %v3039_v40, %v3035_v0  ;;  %v2913_v43 = vpack.c.b16 %v2909_v35, %v2909_v35  ;;  %v2930_v63 = vunpack.c.l.b16 %v2814_v55  ;;  %3354 = vmatpush.bf16.msrb.mxu1 %v6328_v27  ;;  %v6311_v58 = vld [vmem:[%s7766_s1 + $0x240] sm:$0xff]  ;;  %v2831_v55 = vld [vmem:[#allocation2 + $0x14] sm:$0x6]  ;;  %v2799_v27 = vld [vmem:[#allocation2 + $0xc] sm:$0x3] }
 0x581   : > { %v2932_v50 = vpack.c.b16 %v2928_v28, %v2928_v28  ;;  %v3060_v56 = vunpack.c.l.b16 %v2828_v5  ;;  %v2931_v52 = vunpack.c.l.b16 %v2815_v31  ;;  %v2830_v28 = vld [vmem:[#allocation2 + $0x10] sm:$0x6]  ;;  %v2829_v31 = vld [vmem:[#allocation2 + $0xc] sm:$0x6] }
 0x582   : > { %2876 = vrot.lane.b32.xlu1 %v2864_v30, %s6422_s23  ;;  %v6316_v30 = vld [vmem:[%s7766_s1 + $0x268] sm:$0xff]  ;;  %v2934_v12 = vpack.c.b16 %v2930_v63, %v2930_v63  ;;  %v3062_v63 = vunpack.c.l.b16 %v2830_v28 }
 0x583   : > { %2874 = vrot.lane.b32.xlu0 %v2857_v20, %s6422_s23  ;;  %v6325_v20 = vld [vmem:[%s7766_s1 + $0x2b0] sm:$0xff]  ;;  %3322 = vmatpush.bf16.msrb.mxu3 %v6316_v30  ;;  %v2939_v38 = vshll.u32 %v2932_v50, 16  ;;  %v3064_v0 = vpack.c.b16 %v3060_v56, %v3060_v56  ;;  %v2935_v36 = vpack.c.b16 %v2931_v52, %v2931_v52  ;;  %v3061_v52 = vunpack.c.l.b16 %v2829_v31 }
 0x584   : > { %3335 = vmatpush.bf16.msrb.mxu0 %v6325_v20  ;;  %v2953_v24 = vshll.u32 %v2934_v12, 16  ;;  %3355 = vmatpush.bf16.msrb.mxu1 %v6327_v25  ;;  %v2951_v47 = vshrl.u32 %v2934_v12, 16 }
 0x585   : > { %v2941_v29 = vrot.slane %v2939_v38, 1  ;;  %v5775_v42 = vrot.slane %v3064_v0, 5  ;;  %v2958_v56 = vshrl.u32 %v2935_v36, 16 }
 0x587   : > { %3323 = vmatpush.bf16.msrb.mxu3 %v6315_v6 }
 0x588   : > { %2984 = vrot.lane.b32.xlu2 %v2978_v34, %s6422_s23  ;;  %3336 = vmatpush.bf16.msrb.mxu0 %v6324_v49  ;;  %v2960_v49 = vshll.u32 %v2935_v36, 16 }
 0x58a   : > { %2902 = vrot.lane.b32.xlu1 %v2895_v7, %s6420_s21  ;;  %v2937_v7 = vshrl.u32 %v2932_v50, 16 }
 0x58b   : > { %3048 = vrot.lane.b32.xlu0 %v3026_v53, %s6421_s22  ;;  %v6323_v53 = vld [vmem:[%s7766_s1 + $0x2a0] sm:$0xff]  ;;  %3324 = vmatpush.bf16.msrb.mxu3 %v6314_v9  ;;  %v2798_v9 = vld [vmem:[#allocation2 + $0x8] sm:$0x3] }
 0x58c   : > { %3337 = vmatpush.bf16.msrb.mxu0 %v6323_v53  ;;  %v2942_v13 = vor.u32 %v2941_v29, %v2937_v7  ;;  %v2962_v7 = vrot.slane %v2960_v49, 1  ;;  %v3454_v49 = vld [vmem:[#allocation2 + $0x14] sm:$0x3] }
 0x590   : > { %2878 = vrot.lane.b32.xlu2 %v2871_v16, %s6422_s23  ;;  %v3074_v16 = vsel %vm546_vm3, %v2796_v32, %v2873_v57  ;;  %3338 = vmatpush.bf16.msrb.mxu0 %v6322_v11  ;;  %v3063_v32 = vunpack.c.l.b16 %v2831_v55  ;;  %v3066_v11 = vpack.c.b16 %v3062_v63, %v3062_v63 }
 0x592   : > { %3050 = vrot.lane.b32.xlu1 %v3033_v22, %s6421_s22  ;;  %v6313_v22 = vld [vmem:[%s7766_s1 + $0x250] sm:$0xff] }
 0x593   : > { %3004 = vrot.lane.b32.xlu0 %v2998_v21, %s6420_s21  ;;  %v2929_v21 = vunpack.c.l.b16 %v2813_v15  ;;  %3325 = vmatpush.bf16.msrb.mxu3 %v6313_v22 }
 0x594   : > { %3339 = vmatpush.bf16.msrb.mxu0 %v6321_v46  ;;  %v5777_v46 = vrot.slane %v3066_v11, 5 }
 0x595   : > { %v2933_v61 = vpack.c.b16 %v2929_v21, %v2929_v21 }
 0x597   : > { %v2946_v30 = vshll.u32 %v2933_v61, 16  ;;  %v2944_v12 = vshrl.u32 %v2933_v61, 16 }
 0x598   : > { %3052 = vrot.lane.b32.xlu2 %v3040_v14, %s6421_s22  ;;  %v3085_v14 = vsel %vm559_vm4, %v3074_v16, %v2897_v39  ;;  %v2955_v39 = vrot.slane %v2953_v24, 1 }
 0x599   : > { %v2948_v53 = vrot.slane %v2946_v30, 1 }
 0x59a   : > { %2920 = vrot.lane.b32.xlu1 %v2914_v45, %s6421_s22  ;;  %v2956_v20 = vor.u32 %v2955_v39, %v2951_v47 }
 0x59b   : > { %2986 = vrot.lane.b32.xlu0 %v2979_v18, %s6422_s23  ;;  %v2949_v16 = vor.u32 %v2948_v53, %v2944_v12  ;;  %v3458_v53 = vld [vmem:[#allocation2 + $0x14] sm:$0x7] }
 0x5a0   : > { %2922 = vrot.lane.b32.xlu2 %v2915_v51, %s6421_s22  ;;  %v6312_v51 = vld [vmem:[%s7766_s1 + $0x248] sm:$0xff] }
 0x5a1   : > { %3326 = vmatpush.bf16.msrb.mxu3 %v6312_v51  ;;  %v2797_v51 = vld [vmem:[#allocation2 + $0x4] sm:$0x3] }
 0x5a3   : > { %2918 = vrot.lane.b32.xlu0 %v2913_v43, %s6421_s22  ;;  %v6320_v43 = vld [vmem:[%s7766_s1 + $0x288] sm:$0xff] }
 0x5a4   : > { %3340 = vmatpush.bf16.msrb.mxu0 %v6320_v43 }
 0x5a5   : > { %3327 = vmatpush.bf16.msrb.mxu3 %v6311_v58 }
 0x5ca   : > { %v7157_v23 = vpop.permute.xlu2 %2916 }
 0x5cb   : > { %v3093_v57 = vsel %vm568_vm5, %v3085_v14, %v7157_v23  ;;  %v6319_v23 = vld [vmem:[%s7766_s1 + $0x280] sm:$0xff] }
 0x5cc   : > { %3341 = vmatpush.bf16.msrb.mxu0 %v6319_v23 }
 0x5d2   : > { %v7161_v44 = vpop.permute.xlu2 %2898 }
 0x5da   : > { %v7169_v60 = vpop.permute.xlu2 %3002 }
 0x5e2   : > { %v7187_v59 = vpop.permute.xlu2 %2984 }
 0x5e3   : > { %v3108_v29 = vsel %vm546_vm3, %v2956_v20, %v7187_v59  ;;  %v2963_v59 = vor.u32 %v2962_v7, %v2958_v56 }
 0x5e4   : > { %v3001_v48 = vpop.permute.xlu1 %3000 }
 0x5e5   : > { %v2981_v10 = vpop.permute.xlu0 %2980 }
 0x5e6   : > { %v3102_v19 = vsel %vm546_vm3, %v2942_v13, %v2981_v10 }
 0x5e7   : > { %v3113_v54 = vsel %vm559_vm4, %v3102_v19, %v3001_v48  ;;  %v3067_v19 = vpack.c.b16 %v3063_v32, %v3063_v32  ;;  %v3646_v32 = vunpack.c.l.b16 %v3458_v53 }
 0x5ea   : > { %v7216_v40 = vpop.permute.xlu2 %2878 }
 0x5eb   : > { %v3083_v25 = vsel %vm546_vm3, %v2799_v27, %v7216_v40 }
 0x5ec   : > { %v7183_v17 = vpop.permute.xlu1 %2982 }
 0x5ed   : > { %v7185_v62 = vpop.permute.xlu0 %2900 }
 0x5f2   : > { %v3053_v5 = vpop.permute.xlu2 %3052 }
 0x5f4   : > { %v7191_v4 = vpop.permute.xlu1 %2876 }
 0x5f5   : > { %v7189_v34 = vpop.permute.xlu0 %2874  ;;  %v3080_v13 = vsel %vm546_vm3, %v2798_v9, %v7191_v4  ;;  %v3105_v4 = vsel %vm546_vm3, %v2949_v16, %v7183_v17 }
 0x5f6   : > { %v3089_v0 = vsel %vm559_vm4, %v3080_v13, %v7185_v62  ;;  %v3115_v17 = vsel %vm559_vm4, %v3105_v4, %v7169_v60  ;;  %v3650_v13 = vpack.c.b16 %v3646_v32, %v3646_v32  ;;  %v3424_v32 = vld [vmem:[#allocation2 + $0x10] sm:$0x7] }
 0x5fa   : > { %v2923_v43 = vpop.permute.xlu2 %2922 }
 0x5fc   : > { %v2903_v45 = vpop.permute.xlu1 %2902 }
 0x5fd   : > { %v3049_v18 = vpop.permute.xlu0 %3048 }
 0x5fe   : > { %v3121_v41 = vsel %vm568_vm5, %v3113_v54, %v3049_v18  ;;  %v3091_v18 = vsel %vm559_vm4, %v3083_v25, %v2903_v45  ;;  %v3077_v45 = vsel %vm546_vm3, %v2797_v51, %v7189_v34 }
 0x5ff   : > { %v3132_v35 = vrot.slane %v3121_v41, 6  ;;  %v3087_v47 = vsel %vm559_vm4, %v3077_v45, %v7161_v44  ;;  %v3435_v44 = vld [vmem:[#allocation2] sm:$0x6] }
 0x600   : > { %v3515_v55 = vunpack.c.l.b16 %v3435_v44 }
 0x601   : > { %v3141_v10 = vsel %vm617_vm6, %v3093_v57, %v3132_v35  ;;  %v5778_v35 = vrot.slane %v3067_v19, 5  ;;  %v3675_v19 = vshll.u32 %v3650_v13, 16 }
 0x602   : > { %v3143_v48 = vsel %vm620_vm7, %v3141_v10, %v5775_v42  ;;  %v3065_v42 = vpack.c.b16 %v3061_v52, %v3061_v52  ;;  %v3519_v63 = vpack.c.b16 %v3515_v55, %v3515_v55 }
 0x603   : > { %3198 = vst [vmem:[#allocation1] ss:$4 sm:$0xff] %v3143_v48 }
 0x604   : > { %v3051_v38 = vpop.permute.xlu1 %3050  ;;  %v5776_v48 = vrot.slane %v3065_v42, 5 }
 0x605   : > { %v3005_v50 = vpop.permute.xlu0 %3004  ;;  %v3123_v39 = vsel %vm568_vm5, %v3115_v17, %v3051_v38 }
 0x606   : > { %v3117_v6 = vsel %vm559_vm4, %v3108_v29, %v3005_v50  ;;  %v3134_v10 = vrot.slane %v3123_v39, 6  ;;  %v3626_v50 = vunpack.c.l.b16 %v3454_v49  ;;  %v3523_v29 = vrot.slane %v3519_v63, 1  ;;  %v3421_v63 = vld [vmem:[#allocation2 + $0xc] sm:$0x7] }
 0x607   : > { %v3125_v15 = vsel %vm568_vm5, %v3117_v6, %v3053_v5  ;;  %v6403_v5 = vld [vmem:[%s7767_s2 + $0x4] ss:$0 sm:$0xff]  ;;  %v3431_v6 = vld [vmem:[#allocation2] sm:$0x7] }
 0x608   : > { %v3136_v21 = vrot.slane %v3125_v15, 6  ;;  %v3630_v38 = vpack.c.b16 %v3626_v50, %v3626_v50  ;;  %v3467_v7 = vunpack.c.l.b16 %v3431_v6 }
 0x60a   : > { %3637 = vrot.lane.b32.xlu1 %v3630_v38, %s6420_s21  ;;  %v3471_v12 = vpack.c.b16 %v3467_v7, %v3467_v7 }
 0x60c   : > { %v2921_v24 = vpop.permute.xlu1 %2920  ;;  %v3476_v31 = vshrl.u32 %v3471_v12, 16  ;;  %v3478_v16 = vshll.u32 %v3471_v12, 16 }
 0x60d   : > { %v2987_v22 = vpop.permute.xlu0 %2986  ;;  %v3097_v54 = vsel %vm568_vm5, %v3089_v0, %v2921_v24 }
 0x60e   : > { %v3111_v14 = vsel %vm546_vm3, %v2963_v59, %v2987_v22  ;;  %v3149_v61 = vsel %vm617_vm6, %v3097_v54, %v3136_v21  ;;  %v3673_v59 = vshrl.u32 %v3650_v13, 16  ;;  %v6404_v21 = vld [vmem:[%s7768_s3 + $0x4] ss:$0 sm:$0xff]  ;;  %v3480_v22 = vrot.slane %v3478_v16, 1 }
 0x60f   : > { %v3119_v41 = vsel %vm559_vm4, %v3111_v14, %v7155_v26  ;;  %v3151_v40 = vsel %vm620_vm7, %v3149_v61, %v5777_v46  ;;  %v3099_v26 = vsel %vm568_vm5, %v3091_v18, %v2923_v43  ;;  %v3677_v46 = vrot.slane %v3675_v19, 1 }
 0x610   : > { %v3127_v62 = vsel %vm568_vm5, %v3119_v41, %v7159_v37  ;;  %3202 = vst [vmem:[#allocation1 + $0x2] ss:$4 sm:$0xff] %v3151_v40  ;;  %v3481_v0 = vor.u32 %v3480_v22, %v3476_v31 }
 0x611   : > { %v3138_v57 = vrot.slane %v3127_v62, 6  ;;  %v3678_v52 = vor.u32 %v3677_v46, %v3673_v59 }
 0x612   : > { %3527 = vrot.lane.b32.xlu1 %v3523_v29, %s6420_s21  ;;  %3503 = vrot.lane.b32.xlu2 %v3481_v0, %s6422_s23 }
 0x613   : > { %v3153_v36 = vsel %vm617_vm6, %v3099_v26, %v3138_v57  ;;  %3685 = vrot.lane.b32.xlu0 %v3678_v52, %s6421_s22 }
 0x614   : > { %v3155_v37 = vsel %vm620_vm7, %v3153_v36, %v5778_v35 }
 0x615   : > { %3204 = vst [vmem:[#allocation1 + $0x3] ss:$4 sm:$0xff] %v3155_v37  ;;  %v2919_v60 = vpop.permute.xlu0 %2918  ;;  %v3415_v37 = vld [vmem:[#allocation2 + $0x4] sm:$0x7] }
 0x616   : > { %v3095_v28 = vsel %vm568_vm5, %v3087_v47, %v2919_v60 }
 0x617   : > { %v3145_v34 = vsel %vm617_vm6, %v3095_v28, %v3134_v10 }
 0x618   : > { %v3147_v58 = vsel %vm620_vm7, %v3145_v34, %v5776_v48  ;;  %v3418_v34 = vld [vmem:[#allocation2 + $0x8] sm:$0x7] }
 0x619   : > { %3200 = vst [vmem:[#allocation1 + $0x1] ss:$4 sm:$0xff] %v3147_v58 }
 0x620   : > { %v3205_v23 = vld.sshfl [vmem:[#allocation1] sm:$0xff pattern:$0x73625140]  ;;  %v3206_v20 = vld.sshfl [vmem:[#allocation1 + $0x8] sm:$0xff pattern:$0x73625140] }
 0x621   : > { %3328 = vmatmul.bf16.vlgmr.msrb.gmra.mxu3 %v3205_v23  ;;  %3342 = vmatmul.bf16.vlgmr.msrb.gmra.mxu0 %v3206_v20  ;;  %v3207_v30 = vld.sshfl [vmem:[#allocation1 + $0x10] sm:$0xff pattern:$0x73625140] }
 0x622   : > { %5888 = vmatmul.msk.bf16.vlgmr.msrb.gmra.mxu1 %vm546_vm3, %v3207_v30 }
 0x69e   : > { %v3343_v9 = vpop.f32.mrf.mxu0 }
 0x69f   : > { %v3357_v56 = vpop.f32.mrf.mxu1 }
 0x6a4   : > { %v3329_v11 = vpop.f32.mrf.mxu3 }
 0x6a5   : > { %v3330_v15 = vadd.f32 %v6403_v5, %v3329_v11 }
 0x6a6   : > { %v3345_v61 = vpop.f32.mrf.mxu0 }
 0x6a7   : > { %v3344_v27 = vadd.f32 %v3343_v9, %v3330_v15  ;;  %v3359_v51 = vpop.f32.mrf.mxu1 }
 0x6a9   : > { %v3358_v24 = vadd.f32 %v3357_v56, %v3344_v27 }
 0x6ab   : > { %vm3362_vm0 = vcmp.gt.f32.partialorder %v3358_v24, 0.0  ;;  %v3369_v25 = vmul.f32 %v6404_v21, %v3358_v24 }
 0x6ac   : > { %v3331_v4 = vpop.f32.mrf.mxu3 }
 0x6ad   : > { %v3371_v14 = vsel %vm3362_vm0, %v3358_v24, %v3369_v25  ;;  %v3332_v54 = vadd.f32 %v6403_v5, %v3331_v4 }
 0x6ae   : > { %v3375_v18 = vrot.slane %v3371_v14, 4  ;;  %v3379_v41 = vpack.c.bf16 %v3371_v14, %v3371_v14 }
 0x6af   : > { %v3346_v35 = vadd.f32 %v3345_v61, %v3332_v54 }
 0x6b0   : > { %v3380_v62 = vpack.c.bf16 %v3375_v18, %v3375_v18  ;;  %v3384_v40 = vshrl.u32 %v3379_v41, 16  ;;  %v3387_v57 = vshll.u32 %v3379_v41, 16 }
 0x6b1   : > { %v3360_v43 = vadd.f32 %v3359_v51, %v3346_v35 }
 0x6b2   : > { %v3386_v17 = vrot.slane %v3384_v40, 7  ;;  %v3391_v45 = vshrl.u32 %v3380_v62, 16  ;;  %v3394_v36 = vshll.u32 %v3380_v62, 16 }
 0x6b3   : > { %vm3363_vm1 = vcmp.gt.f32.partialorder %v3360_v43, 0.0  ;;  %v3370_v26 = vmul.f32 %v6404_v21, %v3360_v43 }
 0x6b4   : > { %v3389_v39 = vor.u32 %v3387_v57, %v3386_v17  ;;  %v3393_v42 = vrot.slane %v3391_v45, 7 }
 0x6b5   : > { %v3372_v10 = vsel %vm3363_vm1, %v3360_v43, %v3370_v26 }
 0x6b6   : > { %v3396_v47 = vor.u32 %v3394_v36, %v3393_v42  ;;  %v3416_v60 = vsel %vm6485_vm2, %v3389_v39, %v3415_v37  ;;  %v3376_v48 = vrot.slane %v3372_v10, 4  ;;  %v3381_v28 = vpack.c.bf16 %v3372_v10, %v3372_v10 }
 0x6b7   : > { %3417 = vst [vmem:[#allocation2 + $0x4] sm:$0x7] %v3416_v60 }
 0x6b8   : > { %v3419_v58 = vsel %vm6485_vm2, %v3396_v47, %v3418_v34  ;;  %v3382_v23 = vpack.c.bf16 %v3376_v48, %v3376_v48  ;;  %v3398_v20 = vshrl.u32 %v3381_v28, 16  ;;  %v3401_v49 = vshll.u32 %v3381_v28, 16 }
 0x6b9   : > { %3420 = vst [vmem:[#allocation2 + $0x8] sm:$0x7] %v3419_v58 }
 0x6ba   : > { %v3400_v30 = vrot.slane %v3398_v20, 7  ;;  %v3405_v50 = vshrl.u32 %v3382_v23, 16  ;;  %v3408_v55 = vshll.u32 %v3382_v23, 16 }
 0x6bc   : > { %v3403_v38 = vor.u32 %v3401_v49, %v3400_v30  ;;  %v3407_v44 = vrot.slane %v3405_v50, 7 }
 0x6be   : > { %v3410_v29 = vor.u32 %v3408_v55, %v3407_v44  ;;  %v3422_v5 = vsel %vm6485_vm2, %v3403_v38, %v3421_v63  ;;  %v3439_v6 = vld [vmem:[#allocation2 + $0x4] sm:$0x3] }
 0x6bf   : > { %v3447_v53 = vld [vmem:[#allocation2 + $0x4] sm:$0x6]  ;;  %3423 = vst [vmem:[#allocation2 + $0xc] sm:$0x7] %v3422_v5  ;;  %v3539_v9 = vunpack.c.l.b16 %v3439_v6 }
 0x6c0   : > { %v3436_v7 = vld [vmem:[#allocation2 + $0x4] sm:$0x6]  ;;  %v3599_v11 = vunpack.c.l.b16 %v3447_v53  ;;  %v3425_v13 = vsel %vm6485_vm2, %v3410_v29, %v3424_v32  ;;  %v3451_v15 = vld [vmem:[#allocation2 + $0x8] sm:$0x3] }
 0x6c1   : > { %v3432_v12 = vld [vmem:[#allocation2 + $0x4] sm:$0x7]  ;;  %v3448_v56 = vld [vmem:[#allocation2 + $0x8] sm:$0x6]  ;;  %3426 = vst [vmem:[#allocation2 + $0x10] sm:$0x7] %v3425_v13  ;;  %v3543_v16 = vpack.c.b16 %v3539_v9, %v3539_v9  ;;  %v3623_v19 = vunpack.c.l.b16 %v3451_v15  ;;  %v3516_v27 = vunpack.c.l.b16 %v3436_v7 }
 0x6c2   : > { %v3437_v31 = vld [vmem:[#allocation2 + $0x8] sm:$0x6]  ;;  %v3603_v59 = vpack.c.b16 %v3599_v11, %v3599_v11  ;;  %v3600_v22 = vunpack.c.l.b16 %v3448_v56  ;;  %v3468_v46 = vunpack.c.l.b16 %v3432_v12 }
 0x6c3   : > { %v3433_v21 = vld [vmem:[#allocation2 + $0x8] sm:$0x7]  ;;  %3547 = vrot.lane.b32.xlu2 %v3543_v16, %s6421_s22  ;;  %v3627_v0 = vpack.c.b16 %v3623_v19, %v3623_v19  ;;  %v3517_v52 = vunpack.c.l.b16 %v3437_v31  ;;  %v3520_v4 = vpack.c.b16 %v3516_v27, %v3516_v27 }
 0x6c4   : > { %v3607_v24 = vrot.slane %v3603_v59, 1  ;;  %v3469_v25 = vunpack.c.l.b16 %v3433_v21  ;;  %v3472_v14 = vpack.c.b16 %v3468_v46, %v3468_v46  ;;  %v3604_v54 = vpack.c.b16 %v3600_v22, %v3600_v22  ;;  %v3455_v61 = vld [vmem:[#allocation2 + $0x8] sm:$0x7] }
 0x6c5   : > { %3631 = vrot.lane.b32.xlu1 %v3627_v0, %s6420_s21  ;;  %v3521_v18 = vpack.c.b16 %v3517_v52, %v3517_v52  ;;  %v3524_v35 = vrot.slane %v3520_v4, 1  ;;  %v3643_v57 = vunpack.c.l.b16 %v3455_v61 }
 0x6c6   : > { %3611 = vrot.lane.b32.xlu0 %v3607_v24, %s6422_s23  ;;  %v3473_v41 = vpack.c.b16 %v3469_v25, %v3469_v25  ;;  %v3452_v62 = vld [vmem:[#allocation2 + $0xc] sm:$0x3]  ;;  %v3485_v40 = vshll.u32 %v3472_v14, 16  ;;  %v3608_v51 = vrot.slane %v3604_v54, 1  ;;  %v3483_v10 = vshrl.u32 %v3472_v14, 16 }
 0x6c7   : > { %v3525_v43 = vrot.slane %v3521_v18, 1  ;;  %v3624_v45 = vunpack.c.l.b16 %v3452_v62  ;;  %v3449_v39 = vld [vmem:[#allocation2 + $0xc] sm:$0x6]  ;;  %v3647_v37 = vpack.c.b16 %v3643_v57, %v3643_v57  ;;  %v3440_v62 = vld [vmem:[#allocation2 + $0x8] sm:$0x3]  ;;  %v3504_v57 = vpop.permute.xlu2 %3503 }
 0x6c8   : > { %v3492_v17 = vshll.u32 %v3473_v41, 16  ;;  %v3487_v26 = vrot.slane %v3485_v40, 1  ;;  %v3434_v42 = vld [vmem:[#allocation2 + $0xc] sm:$0x7]  ;;  %v3490_v28 = vshrl.u32 %v3473_v41, 16  ;;  %v3601_v34 = vunpack.c.l.b16 %v3449_v39  ;;  %v7317_v39 = vpop.permute.xlu0 %3685 }
 0x6c9   : > { %v3438_v47 = vld [vmem:[#allocation2 + $0xc] sm:$0x6]  ;;  %v3628_v48 = vpack.c.b16 %v3624_v45, %v3624_v45  ;;  %v3470_v58 = vunpack.c.l.b16 %v3434_v42  ;;  %v3654_v30 = vshll.u32 %v3647_v37, 16  ;;  %v3457_v55 = vld [vmem:[#allocation2 + $0x10] sm:$0x7]  ;;  %v3652_v53 = vshrl.u32 %v3647_v37, 16  ;;  %v7313_v45 = vpop.permute.xlu1 %3637 }
 0x6ca   : > { %v3494_v36 = vrot.slane %v3492_v17, 1  ;;  %v3456_v60 = vld [vmem:[#allocation2 + $0xc] sm:$0x7]  ;;  %v3488_v23 = vor.u32 %v3487_v26, %v3483_v10  ;;  %v3518_v49 = vunpack.c.l.b16 %v3438_v47  ;;  %v3605_v38 = vpack.c.b16 %v3601_v34, %v3601_v34  ;;  %v3453_v13 = vld [vmem:[#allocation2 + $0x10] sm:$0x3]  ;;  %v6336_v37 = vld [vmem:[%s7766_s1 + $0x308] sm:$0xff] }
 0x6cb   : > { %3529 = vrot.lane.b32.xlu2 %v3524_v35, %s6420_s21  ;;  %v3644_v50 = vunpack.c.l.b16 %v3456_v60  ;;  %v3474_v44 = vpack.c.b16 %v3470_v58, %v3470_v58  ;;  %v3656_v63 = vrot.slane %v3654_v30, 1  ;;  %v3645_v32 = vunpack.c.l.b16 %v3457_v55  ;;  %v3450_v19 = vld [vmem:[#allocation2 + $0x10] sm:$0x6]  ;;  %v3441_v52 = vld [vmem:[#allocation2 + $0xc] sm:$0x3]  ;;  %v6344_v10 = vld [vmem:[%s7766_s1 + $0x348] sm:$0xff]  ;;  %3951 = vmatpush.bf16.msrb.mxu2 %v6336_v37 }
 0x6cc   : > { %v3495_v20 = vor.u32 %v3494_v36, %v3490_v28  ;;  %v3522_v29 = vpack.c.b16 %v3518_v49, %v3518_v49  ;;  %v3609_v6 = vrot.slane %v3605_v38, 1  ;;  %v3625_v16 = vunpack.c.l.b16 %v3453_v13  ;;  %v3442_v41 = vld [vmem:[#allocation2 + $0x10] sm:$0x3]  ;;  %v3443_v60 = vld [vmem:[#allocation2 + $0x4] sm:$0x7]  ;;  %3965 = vmatpush.bf16.msra.mxu1 %v6344_v10  ;;  %v6335_v58 = vld [vmem:[%s7766_s1 + $0x300] sm:$0xff] }
 0x6cd   : > { %3613 = vrot.lane.b32.xlu1 %v3608_v51, %s6422_s23  ;;  %v3648_v5 = vpack.c.b16 %v3644_v50, %v3644_v50  ;;  %v3499_v7 = vshll.u32 %v3474_v44, 16  ;;  %v3657_v9 = vor.u32 %v3656_v63, %v3652_v53  ;;  %v3649_v56 = vpack.c.b16 %v3645_v32, %v3645_v32  ;;  %v6342_v30 = vld [vmem:[%s7766_s1 + $0x338] sm:$0xff]  ;;  %v3445_v55 = vld [vmem:[#allocation2 + $0xc] sm:$0x7]  ;;  %v3427_v13 = vld [vmem:[#allocation2] sm:$0x3] }
 0x6ce   : > { %3531 = vrot.lane.b32.xlu0 %v3525_v43, %s6420_s21  ;;  %v3526_v11 = vrot.slane %v3522_v29, 1  ;;  %v3497_v31 = vshrl.u32 %v3474_v44, 16  ;;  %v3629_v46 = vpack.c.b16 %v3625_v16, %v3625_v16  ;;  %v3602_v0 = vunpack.c.l.b16 %v3450_v19  ;;  %v6333_v32 = vld [vmem:[%s7766_s1 + $0x2f0] sm:$0xff] }
 0x6cf   : > { %v3661_v12 = vshll.u32 %v3648_v5, 16  ;;  %v3501_v15 = vrot.slane %v3499_v7, 1  ;;  %v3659_v21 = vshrl.u32 %v3648_v5, 16  ;;  %v3668_v22 = vshll.u32 %v3649_v56, 16  ;;  %3952 = vmatpush.bf16.msrb.mxu2 %v6335_v58  ;;  %v3459_v7 = vld [vmem:[#allocation2 + $0x8] sm:$0x6] }
 0x6d0   : > { %v3666_v4 = vshrl.u32 %v3649_v56, 16  ;;  %v3606_v14 = vpack.c.b16 %v3602_v0, %v3602_v0  ;;  %v3541_v54 = vunpack.c.l.b16 %v3441_v52  ;;  %v3542_v40 = vunpack.c.l.b16 %v3442_v41  ;;  %v6340_v56 = vld [vmem:[%s7766_s1 + $0x328] sm:$0xff]  ;;  %v6331_v0 = vld [vmem:[%s7766_s1 + $0x2e0] sm:$0xff]  ;;  %v6329_v58 = vld [vmem:[%s7766_s1 + $0x2d0] sm:$0xff] }
 0x6d1   : > { %v3663_v59 = vrot.slane %v3661_v12, 1  ;;  %v3502_v27 = vor.u32 %v3501_v15, %v3497_v31  ;;  %v3670_v25 = vrot.slane %v3668_v22, 1  ;;  %v3540_v51 = vunpack.c.l.b16 %v3440_v62  ;;  %v3528_v42 = vpop.permute.xlu1 %3527  ;;  %v6346_v12 = vld [vmem:[%s7766_s1 + $0x358] sm:$0xff]  ;;  %v6332_v15 = vld [vmem:[%s7766_s1 + $0x2e8] sm:$0xff]  ;;  %v6339_v52 = vld [vmem:[%s7766_s1 + $0x320] sm:$0xff] }
 0x6d2   : > { %v3610_v61 = vrot.slane %v3606_v14, 1  ;;  %v3545_v35 = vpack.c.b16 %v3541_v54, %v3541_v54  ;;  %v3546_v43 = vpack.c.b16 %v3542_v40, %v3542_v40  ;;  %v3559_v34 = vunpack.c.l.b16 %v3443_v60  ;;  %3985 = vmatpush.bf16.msra.mxu3 %v6346_v12 }
 0x6d3   : > { %3633 = vrot.lane.b32.xlu2 %v3628_v48, %s6420_s21  ;;  %v3664_v24 = vor.u32 %v3663_v59, %v3659_v21  ;;  %v3671_v18 = vor.u32 %v3670_v25, %v3666_v4  ;;  %v3544_v17 = vpack.c.b16 %v3540_v51, %v3540_v51  ;;  %v3561_v29 = vunpack.c.l.b16 %v3445_v55  ;;  %v3444_v59 = vld [vmem:[#allocation2 + $0x8] sm:$0x7]  ;;  %v3462_v55 = vld [vmem:[#allocation2 + $0x14] sm:$0x6] }
 0x6d4   : > { %v3563_v49 = vpack.c.b16 %v3559_v34, %v3559_v34  ;;  %v3691_v19 = vunpack.c.l.b16 %v3459_v7  ;;  %v3705_v21 = vsel %vm546_vm3, %v3427_v13, %v3504_v57  ;;  %v3461_v34 = vld [vmem:[#allocation2 + $0x10] sm:$0x6]  ;;  %v3694_v12 = vunpack.c.l.b16 %v3462_v55  ;;  %v3429_v13 = vld [vmem:[#allocation2 + $0x8] sm:$0x3] }
 0x6d5   : > { %3507 = vrot.lane.b32.xlu1 %v3495_v20, %s6422_s23  ;;  %v6334_v20 = vld [vmem:[%s7766_s1 + $0x2f8] sm:$0xff]  ;;  %v3565_v31 = vpack.c.b16 %v3561_v29, %v3561_v29  ;;  %v3693_v29 = vunpack.c.l.b16 %v3461_v34 }
 0x6d6   : > { %3505 = vrot.lane.b32.xlu0 %v3488_v23, %s6422_s23  ;;  %v6343_v23 = vld [vmem:[%s7766_s1 + $0x340] sm:$0xff]  ;;  %3953 = vmatpush.bf16.msrb.mxu2 %v6334_v20  ;;  %v3570_v44 = vshll.u32 %v3563_v49, 16  ;;  %v3695_v14 = vpack.c.b16 %v3691_v19, %v3691_v19  ;;  %v3460_v19 = vld [vmem:[#allocation2 + $0xc] sm:$0x6] }
 0x6d7   : > { %3966 = vmatpush.bf16.msra.mxu1 %v6343_v23  ;;  %v3584_v25 = vshll.u32 %v3565_v31, 16  ;;  %v3582_v60 = vshrl.u32 %v3565_v31, 16 }
 0x6d8   : > { %v3572_v5 = vrot.slane %v3570_v44, 1  ;;  %v5890_v37 = vrot.slane %v3695_v14, 5  ;;  %v3692_v14 = vunpack.c.l.b16 %v3460_v19 }
 0x6da   : > { %3954 = vmatpush.bf16.msrb.mxu2 %v6333_v32 }
 0x6db   : > { %3615 = vrot.lane.b32.xlu2 %v3609_v6, %s6422_s23  ;;  %3967 = vmatpush.bf16.msra.mxu1 %v6342_v30 }
 0x6dd   : > { %3533 = vrot.lane.b32.xlu1 %v3526_v11, %s6420_s21  ;;  %v3568_v11 = vshrl.u32 %v3563_v49, 16 }
 0x6de   : > { %3679 = vrot.lane.b32.xlu0 %v3657_v9, %s6421_s22  ;;  %v6341_v9 = vld [vmem:[%s7766_s1 + $0x330] sm:$0xff]  ;;  %3955 = vmatpush.bf16.msrb.mxu2 %v6332_v15  ;;  %v3697_v15 = vpack.c.b16 %v3693_v29, %v3693_v29 }
 0x6df   : > { %3968 = vmatpush.bf16.msra.mxu1 %v6341_v9  ;;  %v3573_v16 = vor.u32 %v3572_v5, %v3568_v11 }
 0x6e2   : > { %3956 = vmatpush.bf16.msrb.mxu2 %v6331_v0  ;;  %v5892_v0 = vrot.slane %v3697_v15, 5 }
 0x6e3   : > { %3509 = vrot.lane.b32.xlu2 %v3502_v27, %s6422_s23  ;;  %v3446_v27 = vld [vmem:[#allocation2 + $0x10] sm:$0x7]  ;;  %3969 = vmatpush.bf16.msra.mxu1 %v6340_v56 }
 0x6e4   : > { %v3562_v54 = vunpack.c.l.b16 %v3446_v27 }
 0x6e5   : > { %3681 = vrot.lane.b32.xlu1 %v3664_v24, %s6421_s22  ;;  %v3560_v24 = vunpack.c.l.b16 %v3444_v59 }
 0x6e6   : > { %3635 = vrot.lane.b32.xlu0 %v3629_v46, %s6420_s21  ;;  %v6345_v46 = vld [vmem:[%s7766_s1 + $0x350] sm:$0xff]  ;;  %v3566_v10 = vpack.c.b16 %v3562_v54, %v3562_v54 }
 0x6e7   : > { %3986 = vmatpush.bf16.msra.mxu3 %v6345_v46  ;;  %v3564_v40 = vpack.c.b16 %v3560_v24, %v3560_v24  ;;  %3970 = vmatpush.bf16.msra.mxu1 %v6339_v52 }
 0x6e8   : > { %v3591_v30 = vshll.u32 %v3566_v10, 16  ;;  %v3589_v59 = vshrl.u32 %v3566_v10, 16 }
 0x6e9   : > { %v3577_v20 = vshll.u32 %v3564_v40, 16  ;;  %v3575_v56 = vshrl.u32 %v3564_v40, 16 }
 0x6ea   : > { %v3593_v11 = vrot.slane %v3591_v30, 1  ;;  %v4085_v30 = vld [vmem:[#allocation2 + $0x14] sm:$0x3] }
 0x6eb   : > { %3683 = vrot.lane.b32.xlu2 %v3671_v18, %s6421_s22  ;;  %v3716_v18 = vsel %vm559_vm4, %v3705_v21, %v3528_v42  ;;  %v3586_v42 = vrot.slane %v3584_v25, 1  ;;  %v3579_v9 = vrot.slane %v3577_v20, 1  ;;  %v3698_v21 = vpack.c.b16 %v3694_v12, %v3694_v12 }
 0x6ed   : > { %3551 = vrot.lane.b32.xlu1 %v3545_v35, %s6421_s22  ;;  %v3587_v23 = vor.u32 %v3586_v42, %v3582_v60  ;;  %v3580_v27 = vor.u32 %v3579_v9, %v3575_v56  ;;  %v4089_v9 = vld [vmem:[#allocation2 + $0x14] sm:$0x7] }
 0x6ee   : > { %3617 = vrot.lane.b32.xlu0 %v3610_v61, %s6422_s23  ;;  %v4277_v12 = vunpack.c.l.b16 %v4089_v9 }
 0x6f3   : > { %3553 = vrot.lane.b32.xlu2 %v3546_v43, %s6421_s22  ;;  %v6330_v43 = vld [vmem:[%s7766_s1 + $0x2d8] sm:$0xff] }
 0x6f4   : > { %3957 = vmatpush.bf16.msrb.mxu2 %v6330_v43  ;;  %v3428_v43 = vld [vmem:[#allocation2 + $0x4] sm:$0x3] }
 0x6f6   : > { %3549 = vrot.lane.b32.xlu0 %v3544_v17, %s6421_s22  ;;  %v6338_v17 = vld [vmem:[%s7766_s1 + $0x318] sm:$0xff] }
 0x6f7   : > { %3971 = vmatpush.bf16.msra.mxu1 %v6338_v17 }
 0x6f8   : > { %3958 = vmatpush.bf16.msrb.mxu2 %v6329_v58 }
 0x71d   : > { %v7315_v26 = vpop.permute.xlu2 %3547 }
 0x71e   : > { %v3724_v57 = vsel %vm568_vm5, %v3716_v18, %v7315_v26  ;;  %v6337_v26 = vld [vmem:[%s7766_s1 + $0x310] sm:$0xff] }
 0x71f   : > { %3972 = vmatpush.bf16.msra.mxu1 %v6337_v26 }
 0x725   : > { %v7319_v36 = vpop.permute.xlu2 %3529 }
 0x72d   : > { %v7327_v28 = vpop.permute.xlu2 %3633 }
 0x735   : > { %v7345_v63 = vpop.permute.xlu2 %3615 }
 0x736   : > { %v3739_v5 = vsel %vm546_vm3, %v3587_v23, %v7345_v63  ;;  %v3594_v63 = vor.u32 %v3593_v11, %v3589_v59 }
 0x737   : > { %v3632_v48 = vpop.permute.xlu1 %3631 }
 0x738   : > { %v3612_v47 = vpop.permute.xlu0 %3611 }
 0x739   : > { %v3733_v22 = vsel %vm546_vm3, %v3573_v16, %v3612_v47 }
 0x73a   : > { %v3744_v41 = vsel %vm559_vm4, %v3733_v22, %v3632_v48  ;;  %v3430_v22 = vld [vmem:[#allocation2 + $0xc] sm:$0x3] }
 0x73d   : > { %v3510_v4 = vpop.permute.xlu2 %3509 }
 0x73e   : > { %v3714_v54 = vsel %vm546_vm3, %v3430_v22, %v3510_v4 }
 0x73f   : > { %v7341_v50 = vpop.permute.xlu1 %3613 }
 0x740   : > { %v7343_v38 = vpop.permute.xlu0 %3531 }
 0x745   : > { %v3684_v7 = vpop.permute.xlu2 %3683 }
 0x747   : > { %v7349_v53 = vpop.permute.xlu1 %3507 }
 0x748   : > { %v7347_v6 = vpop.permute.xlu0 %3505  ;;  %v3711_v31 = vsel %vm546_vm3, %v3429_v13, %v7349_v53  ;;  %v3736_v53 = vsel %vm546_vm3, %v3580_v27, %v7341_v50 }
 0x749   : > { %v3720_v25 = vsel %vm559_vm4, %v3711_v31, %v7343_v38  ;;  %v3746_v50 = vsel %vm559_vm4, %v3736_v53, %v7327_v28  ;;  %v4281_v31 = vpack.c.b16 %v4277_v12, %v4277_v12  ;;  %v4055_v12 = vld [vmem:[#allocation2 + $0x10] sm:$0x7] }
 0x74d   : > { %v3554_v17 = vpop.permute.xlu2 %3553 }
 0x74f   : > { %v3534_v35 = vpop.permute.xlu1 %3533 }
 0x750   : > { %v3680_v61 = vpop.permute.xlu0 %3679 }
 0x751   : > { %v3752_v62 = vsel %vm568_vm5, %v3744_v41, %v3680_v61  ;;  %v3722_v61 = vsel %vm559_vm4, %v3714_v54, %v3534_v35  ;;  %v3708_v35 = vsel %vm546_vm3, %v3428_v43, %v7347_v6 }
 0x752   : > { %v3763_v51 = vrot.slane %v3752_v62, 6  ;;  %v3718_v60 = vsel %vm559_vm4, %v3708_v35, %v7319_v36  ;;  %v4066_v36 = vld [vmem:[#allocation2] sm:$0x6] }
 0x753   : > { %v4146_v55 = vunpack.c.l.b16 %v4066_v36 }
 0x754   : > { %v3772_v47 = vsel %vm617_vm6, %v3724_v57, %v3763_v51  ;;  %v5893_v51 = vrot.slane %v3698_v21, 5  ;;  %v4306_v21 = vshll.u32 %v4281_v31, 16 }
 0x755   : > { %v3774_v48 = vsel %vm620_vm7, %v3772_v47, %v5890_v37  ;;  %v3696_v37 = vpack.c.b16 %v3692_v14, %v3692_v14  ;;  %v4150_v29 = vpack.c.b16 %v4146_v55, %v4146_v55 }
 0x756   : > { %3829 = vst [vmem:[#allocation1] ss:$4 sm:$0xff] %v3774_v48 }
 0x757   : > { %v3682_v44 = vpop.permute.xlu1 %3681  ;;  %v5891_v48 = vrot.slane %v3696_v37, 5 }
 0x758   : > { %v3636_v49 = vpop.permute.xlu0 %3635  ;;  %v3754_v42 = vsel %vm568_vm5, %v3746_v50, %v3682_v44 }
 0x759   : > { %v3748_v32 = vsel %vm559_vm4, %v3739_v5, %v3636_v49  ;;  %v3765_v47 = vrot.slane %v3754_v42, 6  ;;  %v4257_v49 = vunpack.c.l.b16 %v4085_v30  ;;  %v4154_v5 = vrot.slane %v4150_v29, 1  ;;  %v4052_v29 = vld [vmem:[#allocation2 + $0xc] sm:$0x7] }
 0x75a   : > { %v3756_v16 = vsel %vm568_vm5, %v3748_v32, %v3684_v7  ;;  %v6405_v7 = vld [vmem:[%s7767_s2 + $0x5] ss:$0 sm:$0xff]  ;;  %v4062_v32 = vld [vmem:[#allocation2] sm:$0x7] }
 0x75b   : > { %v3767_v46 = vrot.slane %v3756_v16, 6  ;;  %v4261_v44 = vpack.c.b16 %v4257_v49, %v4257_v49  ;;  %v4098_v11 = vunpack.c.l.b16 %v4062_v32 }
 0x75d   : > { %4268 = vrot.lane.b32.xlu1 %v4261_v44, %s6420_s21  ;;  %v4102_v56 = vpack.c.b16 %v4098_v11, %v4098_v11 }
 0x75f   : > { %v3552_v52 = vpop.permute.xlu1 %3551  ;;  %v4107_v19 = vshrl.u32 %v4102_v56, 16  ;;  %v4109_v27 = vshll.u32 %v4102_v56, 16 }
 0x760   : > { %v3618_v24 = vpop.permute.xlu0 %3617  ;;  %v3728_v41 = vsel %vm568_vm5, %v3720_v25, %v3552_v52 }
 0x761   : > { %v3742_v18 = vsel %vm546_vm3, %v3594_v63, %v3618_v24  ;;  %v3780_v40 = vsel %vm617_vm6, %v3728_v41, %v3767_v46  ;;  %v4304_v63 = vshrl.u32 %v4281_v31, 16  ;;  %v6406_v46 = vld [vmem:[%s7768_s3 + $0x5] ss:$0 sm:$0xff]  ;;  %v4111_v24 = vrot.slane %v4109_v27, 1 }
 0x762   : > { %v3750_v62 = vsel %vm559_vm4, %v3742_v18, %v7313_v45  ;;  %v3782_v4 = vsel %vm620_vm7, %v3780_v40, %v5892_v0  ;;  %v3730_v45 = vsel %vm568_vm5, %v3722_v61, %v3554_v17  ;;  %v4308_v0 = vrot.slane %v4306_v21, 1 }
 0x763   : > { %v3758_v38 = vsel %vm568_vm5, %v3750_v62, %v7317_v39  ;;  %3833 = vst [vmem:[#allocation1 + $0x2] ss:$4 sm:$0xff] %v3782_v4  ;;  %v4112_v25 = vor.u32 %v4111_v24, %v4107_v19 }
 0x764   : > { %v3769_v57 = vrot.slane %v3758_v38, 6  ;;  %v4309_v14 = vor.u32 %v4308_v0, %v4304_v63 }
 0x765   : > { %4158 = vrot.lane.b32.xlu1 %v4154_v5, %s6420_s21  ;;  %4134 = vrot.lane.b32.xlu2 %v4112_v25, %s6422_s23 }
 0x766   : > { %v3784_v10 = vsel %vm617_vm6, %v3730_v45, %v3769_v57  ;;  %4316 = vrot.lane.b32.xlu0 %v4309_v14, %s6421_s22 }
 0x767   : > { %v3786_v39 = vsel %vm620_vm7, %v3784_v10, %v5893_v51 }
 0x768   : > { %3835 = vst [vmem:[#allocation1 + $0x3] ss:$4 sm:$0xff] %v3786_v39  ;;  %v3550_v28 = vpop.permute.xlu0 %3549  ;;  %v4046_v39 = vld [vmem:[#allocation2 + $0x4] sm:$0x7] }
 0x769   : > { %v3726_v34 = vsel %vm568_vm5, %v3718_v60, %v3550_v28 }
 0x76a   : > { %v3776_v6 = vsel %vm617_vm6, %v3726_v34, %v3765_v47 }
 0x76b   : > { %v3778_v58 = vsel %vm620_vm7, %v3776_v6, %v5891_v48  ;;  %v4049_v6 = vld [vmem:[#allocation2 + $0x8] sm:$0x7] }
 0x76c   : > { %3831 = vst [vmem:[#allocation1 + $0x1] ss:$4 sm:$0xff] %v3778_v58 }
 0x773   : > { %v3836_v26 = vld.sshfl [vmem:[#allocation1] sm:$0xff pattern:$0x73625140]  ;;  %v3837_v23 = vld.sshfl [vmem:[#allocation1 + $0x8] sm:$0xff pattern:$0x73625140] }
 0x774   : > { %3959 = vmatmul.bf16.vlgmr.msrb.gmra.mxu2 %v3836_v26  ;;  %3973 = vmatmul.bf16.vlgmr.msra.gmra.mxu1 %v3837_v23  ;;  %v3838_v20 = vld.sshfl [vmem:[#allocation1 + $0x10] sm:$0xff pattern:$0x73625140] }
 0x775   : > { %6003 = vmatmul.msk.bf16.vlgmr.msra.gmra.mxu3 %vm546_vm3, %v3838_v20 }
 0x7f1   : > { %v3974_v13 = vpop.f32.mrf.mxu1 }
 0x7f7   : > { %v3960_v15 = vpop.f32.mrf.mxu2 }
 0x7f8   : > { %v3961_v16 = vadd.f32 %v6405_v7, %v3960_v15  ;;  %v3988_v59 = vpop.f32.mrf.mxu3 }
 0x7f9   : > { %v3976_v40 = vpop.f32.mrf.mxu1 }
 0x7fa   : > { %v3975_v22 = vadd.f32 %v3974_v13, %v3961_v16 }
 0x7fc   : > { %v3989_v52 = vadd.f32 %v3988_v59, %v3975_v22 }
 0x7fe   : > { %vm3993_vm8 = vcmp.gt.f32.partialorder %v3989_v52, 0.0  ;;  %v4000_v54 = vmul.f32 %v6406_v46, %v3989_v52 }
 0x7ff   : > { %v3962_v53 = vpop.f32.mrf.mxu2 }
 0x800   : > { %v4002_v18 = vsel %vm3993_vm8, %v3989_v52, %v4000_v54  ;;  %v3963_v41 = vadd.f32 %v6405_v7, %v3962_v53  ;;  %v3990_v43 = vpop.f32.mrf.mxu3 }
 0x801   : > { %v4006_v61 = vrot.slane %v4002_v18, 4  ;;  %v4010_v62 = vpack.c.bf16 %v4002_v18, %v4002_v18 }
 0x802   : > { %v3977_v51 = vadd.f32 %v3976_v40, %v3963_v41 }
 0x803   : > { %v4011_v38 = vpack.c.bf16 %v4006_v61, %v4006_v61  ;;  %v4015_v4 = vshrl.u32 %v4010_v62, 16  ;;  %v4018_v57 = vshll.u32 %v4010_v62, 16 }
 0x804   : > { %v3991_v17 = vadd.f32 %v3990_v43, %v3977_v51 }
 0x805   : > { %v4017_v50 = vrot.slane %v4015_v4, 7  ;;  %v4022_v35 = vshrl.u32 %v4011_v38, 16  ;;  %v4025_v10 = vshll.u32 %v4011_v38, 16 }
 0x806   : > { %vm3994_vm9 = vcmp.gt.f32.partialorder %v3991_v17, 0.0  ;;  %v4001_v45 = vmul.f32 %v6406_v46, %v3991_v17 }
 0x807   : > { %v4020_v42 = vor.u32 %v4018_v57, %v4017_v50  ;;  %v4024_v37 = vrot.slane %v4022_v35, 7 }
 0x808   : > { %v4003_v47 = vsel %vm3994_vm9, %v3991_v17, %v4001_v45 }
 0x809   : > { %v4027_v60 = vor.u32 %v4025_v10, %v4024_v37  ;;  %v4047_v28 = vsel %vm6485_vm2, %v4020_v42, %v4046_v39  ;;  %v4007_v48 = vrot.slane %v4003_v47, 4  ;;  %v4012_v34 = vpack.c.bf16 %v4003_v47, %v4003_v47 }
 0x80a   : > { %4048 = vst [vmem:[#allocation2 + $0x4] sm:$0x7] %v4047_v28 }
 0x80b   : > { %v4050_v58 = vsel %vm6485_vm2, %v4027_v60, %v4049_v6  ;;  %v4013_v26 = vpack.c.bf16 %v4007_v48, %v4007_v48  ;;  %v4029_v23 = vshrl.u32 %v4012_v34, 16  ;;  %v4032_v30 = vshll.u32 %v4012_v34, 16 }
 0x80c   : > { %4051 = vst [vmem:[#allocation2 + $0x8] sm:$0x7] %v4050_v58 }
 0x80d   : > { %v4031_v20 = vrot.slane %v4029_v23, 7  ;;  %v4036_v49 = vshrl.u32 %v4013_v26, 16  ;;  %v4039_v55 = vshll.u32 %v4013_v26, 16 }
 0x80f   : > { %v4034_v44 = vor.u32 %v4032_v30, %v4031_v20  ;;  %v4038_v36 = vrot.slane %v4036_v49, 7 }
 0x811   : > { %v4041_v5 = vor.u32 %v4039_v55, %v4038_v36  ;;  %v4053_v7 = vsel %vm6485_vm2, %v4034_v44, %v4052_v29  ;;  %v4070_v32 = vld [vmem:[#allocation2 + $0x4] sm:$0x3] }
 0x812   : > { %v4078_v9 = vld [vmem:[#allocation2 + $0x4] sm:$0x6]  ;;  %4054 = vst [vmem:[#allocation2 + $0xc] sm:$0x7] %v4053_v7  ;;  %v4170_v13 = vunpack.c.l.b16 %v4070_v32 }
 0x813   : > { %v4067_v11 = vld [vmem:[#allocation2 + $0x4] sm:$0x6]  ;;  %v4230_v15 = vunpack.c.l.b16 %v4078_v9  ;;  %v4056_v31 = vsel %vm6485_vm2, %v4041_v5, %v4055_v12  ;;  %v4082_v16 = vld [vmem:[#allocation2 + $0x8] sm:$0x3] }
 0x814   : > { %v4063_v56 = vld [vmem:[#allocation2 + $0x4] sm:$0x7]  ;;  %v4079_v59 = vld [vmem:[#allocation2 + $0x8] sm:$0x6]  ;;  %4057 = vst [vmem:[#allocation2 + $0x10] sm:$0x7] %v4056_v31  ;;  %v4174_v27 = vpack.c.b16 %v4170_v13, %v4170_v13  ;;  %v4254_v21 = vunpack.c.l.b16 %v4082_v16  ;;  %v4147_v22 = vunpack.c.l.b16 %v4067_v11 }
 0x815   : > { %v4068_v19 = vld [vmem:[#allocation2 + $0x8] sm:$0x6]  ;;  %v4234_v63 = vpack.c.b16 %v4230_v15, %v4230_v15  ;;  %v4231_v24 = vunpack.c.l.b16 %v4079_v59  ;;  %v4099_v0 = vunpack.c.l.b16 %v4063_v56 }
 0x816   : > { %v4064_v46 = vld [vmem:[#allocation2 + $0x8] sm:$0x7]  ;;  %4178 = vrot.lane.b32.xlu2 %v4174_v27, %s6421_s22  ;;  %v4258_v25 = vpack.c.b16 %v4254_v21, %v4254_v21  ;;  %v4148_v14 = vunpack.c.l.b16 %v4068_v19  ;;  %v4151_v53 = vpack.c.b16 %v4147_v22, %v4147_v22 }
 0x817   : > { %v4238_v52 = vrot.slane %v4234_v63, 1  ;;  %v4100_v54 = vunpack.c.l.b16 %v4064_v46  ;;  %v4103_v18 = vpack.c.b16 %v4099_v0, %v4099_v0  ;;  %v4235_v41 = vpack.c.b16 %v4231_v24, %v4231_v24  ;;  %v4086_v40 = vld [vmem:[#allocation2 + $0x8] sm:$0x7] }
 0x818   : > { %4262 = vrot.lane.b32.xlu1 %v4258_v25, %s6420_s21  ;;  %v4152_v61 = vpack.c.b16 %v4148_v14, %v4148_v14  ;;  %v4155_v51 = vrot.slane %v4151_v53, 1  ;;  %v4274_v57 = vunpack.c.l.b16 %v4086_v40 }
 0x819   : > { %4242 = vrot.lane.b32.xlu0 %v4238_v52, %s6422_s23  ;;  %v4104_v62 = vpack.c.b16 %v4100_v54, %v4100_v54  ;;  %v4083_v38 = vld [vmem:[#allocation2 + $0xc] sm:$0x3]  ;;  %v4116_v4 = vshll.u32 %v4103_v18, 16  ;;  %v4239_v43 = vrot.slane %v4235_v41, 1  ;;  %v4114_v47 = vshrl.u32 %v4103_v18, 16 }
 0x81a   : > { %v4156_v17 = vrot.slane %v4152_v61, 1  ;;  %v4255_v35 = vunpack.c.l.b16 %v4083_v38  ;;  %v4080_v42 = vld [vmem:[#allocation2 + $0xc] sm:$0x6]  ;;  %v4278_v39 = vpack.c.b16 %v4274_v57, %v4274_v57  ;;  %v4071_v38 = vld [vmem:[#allocation2 + $0x8] sm:$0x3]  ;;  %v4135_v57 = vpop.permute.xlu2 %4134 }
 0x81b   : > { %v4123_v50 = vshll.u32 %v4104_v62, 16  ;;  %v4118_v45 = vrot.slane %v4116_v4, 1  ;;  %v4065_v37 = vld [vmem:[#allocation2 + $0xc] sm:$0x7]  ;;  %v4121_v34 = vshrl.u32 %v4104_v62, 16  ;;  %v4232_v6 = vunpack.c.l.b16 %v4080_v42  ;;  %v7472_v42 = vpop.permute.xlu0 %4316 }
 0x81c   : > { %v4069_v60 = vld [vmem:[#allocation2 + $0xc] sm:$0x6]  ;;  %v4259_v48 = vpack.c.b16 %v4255_v35, %v4255_v35  ;;  %v4101_v58 = vunpack.c.l.b16 %v4065_v37  ;;  %v4285_v20 = vshll.u32 %v4278_v39, 16  ;;  %v4088_v55 = vld [vmem:[#allocation2 + $0x10] sm:$0x7]  ;;  %v4283_v9 = vshrl.u32 %v4278_v39, 16  ;;  %v7468_v35 = vpop.permute.xlu1 %4268 }
 0x81d   : > { %v4125_v10 = vrot.slane %v4123_v50, 1  ;;  %v4087_v28 = vld [vmem:[#allocation2 + $0xc] sm:$0x7]  ;;  %v4119_v26 = vor.u32 %v4118_v45, %v4114_v47  ;;  %v4149_v30 = vunpack.c.l.b16 %v4069_v60  ;;  %v4236_v44 = vpack.c.b16 %v4232_v6, %v4232_v6  ;;  %v4084_v31 = vld [vmem:[#allocation2 + $0x10] sm:$0x3] }
 0x81e   : > { %4160 = vrot.lane.b32.xlu2 %v4155_v51, %s6420_s21  ;;  %v4275_v49 = vunpack.c.l.b16 %v4087_v28  ;;  %v4105_v36 = vpack.c.b16 %v4101_v58, %v4101_v58  ;;  %v4287_v29 = vrot.slane %v4285_v20, 1  ;;  %v4276_v12 = vunpack.c.l.b16 %v4088_v55  ;;  %v4081_v21 = vld [vmem:[#allocation2 + $0x10] sm:$0x6]  ;;  %v4072_v14 = vld [vmem:[#allocation2 + $0xc] sm:$0x3]  ;;  %v6360_v20 = vld [vmem:[%s7766_s1 + $0x3c8] sm:$0xff] }
 0x81f   : > { %v4126_v23 = vor.u32 %v4125_v10, %v4121_v34  ;;  %v4153_v5 = vpack.c.b16 %v4149_v30, %v4149_v30  ;;  %v4240_v32 = vrot.slane %v4236_v44, 1  ;;  %v4256_v27 = vunpack.c.l.b16 %v4084_v31  ;;  %v4073_v62 = vld [vmem:[#allocation2 + $0x10] sm:$0x3]  ;;  %v4074_v28 = vld [vmem:[#allocation2 + $0x4] sm:$0x7]  ;;  %v6353_v58 = vld [vmem:[%s7766_s1 + $0x390] sm:$0xff] }
 0x820   : > { %4244 = vrot.lane.b32.xlu1 %v4239_v43, %s6422_s23  ;;  %v4279_v7 = vpack.c.b16 %v4275_v49, %v4275_v49  ;;  %v4130_v11 = vshll.u32 %v4105_v36, 16  ;;  %v4288_v13 = vor.u32 %v4287_v29, %v4283_v9  ;;  %v4280_v59 = vpack.c.b16 %v4276_v12, %v4276_v12  ;;  %v6354_v39 = vld [vmem:[%s7766_s1 + $0x398] sm:$0xff]  ;;  %v4076_v55 = vld [vmem:[#allocation2 + $0xc] sm:$0x7]  ;;  %v6351_v12 = vld [vmem:[%s7766_s1 + $0x380] sm:$0xff] }
 0x821   : > { %4162 = vrot.lane.b32.xlu0 %v4156_v17, %s6420_s21  ;;  %v4157_v15 = vrot.slane %v4153_v5, 1  ;;  %v4128_v19 = vshrl.u32 %v4105_v36, 16  ;;  %v4260_v0 = vpack.c.b16 %v4256_v27, %v4256_v27  ;;  %v4233_v25 = vunpack.c.l.b16 %v4081_v21  ;;  %v6362_v47 = vld [vmem:[%s7766_s1 + $0x3d8] sm:$0xff]  ;;  %4582 = vmatpush.bf16.msra.mxu0 %v6354_v39  ;;  %v4058_v31 = vld [vmem:[#allocation2] sm:$0x3] }
 0x822   : > { %v4292_v56 = vshll.u32 %v4279_v7, 16  ;;  %v4132_v16 = vrot.slane %v4130_v11, 1  ;;  %v4290_v46 = vshrl.u32 %v4279_v7, 16  ;;  %v4299_v24 = vshll.u32 %v4280_v59, 16  ;;  %4596 = vmatpush.bf16.msrb.mxu3 %v6362_v47  ;;  %v4090_v11 = vld [vmem:[#allocation2 + $0x8] sm:$0x6] }
 0x823   : > { %v4297_v53 = vshrl.u32 %v4280_v59, 16  ;;  %v4237_v18 = vpack.c.b16 %v4233_v25, %v4233_v25  ;;  %v4172_v41 = vunpack.c.l.b16 %v4072_v14  ;;  %v4173_v4 = vunpack.c.l.b16 %v4073_v62  ;;  %v6358_v59 = vld [vmem:[%s7766_s1 + $0x3b8] sm:$0xff]  ;;  %v6349_v25 = vld [vmem:[%s7766_s1 + $0x370] sm:$0xff] }
 0x824   : > { %v4294_v63 = vrot.slane %v4292_v56, 1  ;;  %v4133_v22 = vor.u32 %v4132_v16, %v4128_v19  ;;  %v4301_v54 = vrot.slane %v4299_v24, 1  ;;  %v4171_v43 = vunpack.c.l.b16 %v4071_v38  ;;  %v4159_v37 = vpop.permute.xlu1 %4158  ;;  %v6364_v56 = vld [vmem:[%s7766_s1 + $0x3e8] sm:$0xff]  ;;  %v6350_v16 = vld [vmem:[%s7766_s1 + $0x378] sm:$0xff]  ;;  %v6357_v14 = vld [vmem:[%s7766_s1 + $0x3b0] sm:$0xff] }
 0x825   : > { %v4241_v40 = vrot.slane %v4237_v18, 1  ;;  %v4176_v51 = vpack.c.b16 %v4172_v41, %v4172_v41  ;;  %v4177_v17 = vpack.c.b16 %v4173_v4, %v4173_v4  ;;  %v4190_v6 = vunpack.c.l.b16 %v4074_v28  ;;  %4583 = vmatpush.bf16.msra.mxu0 %v6353_v58  ;;  %4616 = vmatpush.bf16.msra.mxu2 %v6364_v56  ;;  %v6347_v58 = vld [vmem:[%s7766_s1 + $0x360] sm:$0xff] }
 0x826   : > { %4264 = vrot.lane.b32.xlu2 %v4259_v48, %s6420_s21  ;;  %v4295_v52 = vor.u32 %v4294_v63, %v4290_v46  ;;  %v4302_v61 = vor.u32 %v4301_v54, %v4297_v53  ;;  %v4175_v50 = vpack.c.b16 %v4171_v43, %v4171_v43  ;;  %v4192_v5 = vunpack.c.l.b16 %v4076_v55  ;;  %v4075_v63 = vld [vmem:[#allocation2 + $0x8] sm:$0x7]  ;;  %v4093_v55 = vld [vmem:[#allocation2 + $0x14] sm:$0x6] }
 0x827   : > { %v4194_v30 = vpack.c.b16 %v4190_v6, %v4190_v6  ;;  %v4322_v21 = vunpack.c.l.b16 %v4090_v11  ;;  %v4336_v46 = vsel %vm546_vm3, %v4058_v31, %v4135_v57  ;;  %v4092_v6 = vld [vmem:[#allocation2 + $0x10] sm:$0x6]  ;;  %v4325_v56 = vunpack.c.l.b16 %v4093_v55  ;;  %v4060_v31 = vld [vmem:[#allocation2 + $0x8] sm:$0x3] }
 0x828   : > { %4138 = vrot.lane.b32.xlu1 %v4126_v23, %s6422_s23  ;;  %v6352_v23 = vld [vmem:[%s7766_s1 + $0x388] sm:$0xff]  ;;  %v4196_v19 = vpack.c.b16 %v4192_v5, %v4192_v5  ;;  %v4324_v5 = vunpack.c.l.b16 %v4092_v6 }
 0x829   : > { %4136 = vrot.lane.b32.xlu0 %v4119_v26, %s6422_s23  ;;  %v6361_v26 = vld [vmem:[%s7766_s1 + $0x3d0] sm:$0xff]  ;;  %4584 = vmatpush.bf16.msra.mxu0 %v6352_v23  ;;  %v4201_v36 = vshll.u32 %v4194_v30, 16  ;;  %v4326_v18 = vpack.c.b16 %v4322_v21, %v4322_v21 }
 0x82a   : > { %4597 = vmatpush.bf16.msrb.mxu3 %v6361_v26  ;;  %v4215_v54 = vshll.u32 %v4196_v19, 16  ;;  %v4213_v28 = vshrl.u32 %v4196_v19, 16  ;;  %v4091_v21 = vld [vmem:[#allocation2 + $0xc] sm:$0x6] }
 0x82b   : > { %v4203_v7 = vrot.slane %v4201_v36, 1  ;;  %v6005_v39 = vrot.slane %v4326_v18, 5  ;;  %v4323_v18 = vunpack.c.l.b16 %v4091_v21 }
 0x82d   : > { %4585 = vmatpush.bf16.msra.mxu0 %v6351_v12 }
 0x82e   : > { %4246 = vrot.lane.b32.xlu2 %v4240_v32, %s6422_s23  ;;  %4598 = vmatpush.bf16.msrb.mxu3 %v6360_v20 }
 0x830   : > { %4164 = vrot.lane.b32.xlu1 %v4157_v15, %s6420_s21  ;;  %v4199_v15 = vshrl.u32 %v4194_v30, 16 }
 0x831   : > { %4310 = vrot.lane.b32.xlu0 %v4288_v13, %s6421_s22  ;;  %v6359_v13 = vld [vmem:[%s7766_s1 + $0x3c0] sm:$0xff]  ;;  %4586 = vmatpush.bf16.msra.mxu0 %v6350_v16  ;;  %v4328_v16 = vpack.c.b16 %v4324_v5, %v4324_v5 }
 0x832   : > { %4599 = vmatpush.bf16.msrb.mxu3 %v6359_v13  ;;  %v4204_v27 = vor.u32 %v4203_v7, %v4199_v15 }
 0x835   : > { %4587 = vmatpush.bf16.msra.mxu0 %v6349_v25  ;;  %v6007_v25 = vrot.slane %v4328_v16, 5 }
 0x836   : > { %4140 = vrot.lane.b32.xlu2 %v4133_v22, %s6422_s23  ;;  %v4077_v22 = vld [vmem:[#allocation2 + $0x10] sm:$0x7]  ;;  %4600 = vmatpush.bf16.msrb.mxu3 %v6358_v59 }
 0x837   : > { %v4193_v41 = vunpack.c.l.b16 %v4077_v22 }
 0x838   : > { %4312 = vrot.lane.b32.xlu1 %v4295_v52, %s6421_s22  ;;  %v4191_v52 = vunpack.c.l.b16 %v4075_v63 }
 0x839   : > { %4266 = vrot.lane.b32.xlu0 %v4260_v0, %s6420_s21  ;;  %v6363_v0 = vld [vmem:[%s7766_s1 + $0x3e0] sm:$0xff]  ;;  %v4197_v47 = vpack.c.b16 %v4193_v41, %v4193_v41 }
 0x83a   : > { %4617 = vmatpush.bf16.msra.mxu2 %v6363_v0  ;;  %v4195_v4 = vpack.c.b16 %v4191_v52, %v4191_v52  ;;  %4601 = vmatpush.bf16.msrb.mxu3 %v6357_v14 }
 0x83b   : > { %v4222_v20 = vshll.u32 %v4197_v47, 16  ;;  %v4220_v63 = vshrl.u32 %v4197_v47, 16 }
 0x83c   : > { %v4208_v23 = vshll.u32 %v4195_v4, 16  ;;  %v4206_v59 = vshrl.u32 %v4195_v4, 16 }
 0x83d   : > { %v4224_v15 = vrot.slane %v4222_v20, 1  ;;  %v4716_v20 = vld [vmem:[#allocation2 + $0x14] sm:$0x3] }
 0x83e   : > { %4314 = vrot.lane.b32.xlu2 %v4302_v61, %s6421_s22  ;;  %v4347_v61 = vsel %vm559_vm4, %v4336_v46, %v4159_v37  ;;  %v4217_v37 = vrot.slane %v4215_v54, 1  ;;  %v4210_v13 = vrot.slane %v4208_v23, 1  ;;  %v4329_v46 = vpack.c.b16 %v4325_v56, %v4325_v56 }
 0x840   : > { %4182 = vrot.lane.b32.xlu1 %v4176_v51, %s6421_s22  ;;  %v4218_v26 = vor.u32 %v4217_v37, %v4213_v28  ;;  %v4211_v22 = vor.u32 %v4210_v13, %v4206_v59  ;;  %v4693_v13 = vld [vmem:[#allocation2] sm:$0x7] }
 0x841   : > { %4248 = vrot.lane.b32.xlu0 %v4241_v40, %s6422_s23  ;;  %v4729_v56 = vunpack.c.l.b16 %v4693_v13 }
 0x843   : > { %v4733_v16 = vpack.c.b16 %v4729_v56, %v4729_v56  ;;  %v4686_v56 = vld [vmem:[#allocation2 + $0x10] sm:$0x7] }
 0x845   : > { %v4740_v21 = vshll.u32 %v4733_v16, 16 }
 0x846   : > { %4184 = vrot.lane.b32.xlu2 %v4177_v17, %s6421_s22  ;;  %v6348_v17 = vld [vmem:[%s7766_s1 + $0x368] sm:$0xff] }
 0x847   : > { %4588 = vmatpush.bf16.msra.mxu0 %v6348_v17  ;;  %v4059_v17 = vld [vmem:[#allocation2 + $0x4] sm:$0x3] }
 0x849   : > { %4180 = vrot.lane.b32.xlu0 %v4175_v50, %s6421_s22  ;;  %v6356_v50 = vld [vmem:[%s7766_s1 + $0x3a8] sm:$0xff] }
 0x84a   : > { %4602 = vmatpush.bf16.msrb.mxu3 %v6356_v50 }
 0x84b   : > { %4589 = vmatpush.bf16.msra.mxu0 %v6347_v58 }
 0x870   : > { %v7470_v45 = vpop.permute.xlu2 %4178 }
 0x871   : > { %v4355_v57 = vsel %vm568_vm5, %v4347_v61, %v7470_v45  ;;  %v6355_v45 = vld [vmem:[%s7766_s1 + $0x3a0] sm:$0xff] }
 0x872   : > { %4603 = vmatpush.bf16.msrb.mxu3 %v6355_v45 }
 0x878   : > { %v7474_v10 = vpop.permute.xlu2 %4160 }
 0x880   : > { %v7482_v34 = vpop.permute.xlu2 %4264 }
 0x888   : > { %v7500_v29 = vpop.permute.xlu2 %4246 }
 0x889   : > { %v4370_v7 = vsel %vm546_vm3, %v4218_v26, %v7500_v29  ;;  %v4225_v29 = vor.u32 %v4224_v15, %v4220_v63  ;;  %v4720_v15 = vld [vmem:[#allocation2 + $0x14] sm:$0x7]  ;;  %v4738_v63 = vshrl.u32 %v4733_v16, 16 }
 0x88a   : > { %v4263_v48 = vpop.permute.xlu1 %4262 }
 0x88b   : > { %v4243_v60 = vpop.permute.xlu0 %4242 }
 0x88c   : > { %v4364_v24 = vsel %vm546_vm3, %v4204_v27, %v4243_v60 }
 0x88d   : > { %v4375_v62 = vsel %vm559_vm4, %v4364_v24, %v4263_v48  ;;  %v4061_v24 = vld [vmem:[#allocation2 + $0xc] sm:$0x3] }
 0x890   : > { %v4141_v53 = vpop.permute.xlu2 %4140 }
 0x891   : > { %v4345_v41 = vsel %vm546_vm3, %v4061_v24, %v4141_v53 }
 0x892   : > { %v7496_v49 = vpop.permute.xlu1 %4244 }
 0x893   : > { %v7498_v44 = vpop.permute.xlu0 %4162 }
 0x898   : > { %v4315_v11 = vpop.permute.xlu2 %4314 }
 0x89a   : > { %v7504_v9 = vpop.permute.xlu1 %4138 }
 0x89b   : > { %v7502_v32 = vpop.permute.xlu0 %4136  ;;  %v4342_v19 = vsel %vm546_vm3, %v4060_v31, %v7504_v9  ;;  %v4367_v9 = vsel %vm546_vm3, %v4211_v22, %v7496_v49  ;;  %v4908_v31 = vunpack.c.l.b16 %v4720_v15 }
 0x89c   : > { %v4351_v54 = vsel %vm559_vm4, %v4342_v19, %v7498_v44  ;;  %v4377_v49 = vsel %vm559_vm4, %v4367_v9, %v7482_v34 }
 0x89d   : > { %v4912_v59 = vpack.c.b16 %v4908_v31, %v4908_v31 }
 0x89f   : > { %v4935_v22 = vshrl.u32 %v4912_v59, 16 }
 0x8a0   : > { %v4185_v50 = vpop.permute.xlu2 %4184 }
 0x8a2   : > { %v4165_v51 = vpop.permute.xlu1 %4164 }
 0x8a3   : > { %v4311_v40 = vpop.permute.xlu0 %4310 }
 0x8a4   : > { %v4383_v38 = vsel %vm568_vm5, %v4375_v62, %v4311_v40  ;;  %v4353_v40 = vsel %vm559_vm4, %v4345_v41, %v4165_v51  ;;  %v4339_v51 = vsel %vm546_vm3, %v4059_v17, %v7502_v32 }
 0x8a5   : > { %v4394_v43 = vrot.slane %v4383_v38, 6  ;;  %v4349_v28 = vsel %vm559_vm4, %v4339_v51, %v7474_v10  ;;  %v4697_v10 = vld [vmem:[#allocation2] sm:$0x6] }
 0x8a6   : > { %v4777_v55 = vunpack.c.l.b16 %v4697_v10 }
 0x8a7   : > { %v4403_v60 = vsel %vm617_vm6, %v4355_v57, %v4394_v43  ;;  %v6008_v43 = vrot.slane %v4329_v46, 5 }
 0x8a8   : > { %v4405_v48 = vsel %vm620_vm7, %v4403_v60, %v6005_v39  ;;  %v4327_v39 = vpack.c.b16 %v4323_v18, %v4323_v18  ;;  %v4781_v5 = vpack.c.b16 %v4777_v55, %v4777_v55 }
 0x8a9   : > { %4460 = vst [vmem:[#allocation1] ss:$4 sm:$0xff] %v4405_v48 }
 0x8aa   : > { %v4313_v36 = vpop.permute.xlu1 %4312  ;;  %v6006_v48 = vrot.slane %v4327_v39, 5 }
 0x8ab   : > { %v4267_v30 = vpop.permute.xlu0 %4266  ;;  %v4385_v37 = vsel %vm568_vm5, %v4377_v49, %v4313_v36 }
 0x8ac   : > { %v4379_v12 = vsel %vm559_vm4, %v4370_v7, %v4267_v30  ;;  %v4396_v60 = vrot.slane %v4385_v37, 6  ;;  %v4888_v30 = vunpack.c.l.b16 %v4716_v20  ;;  %v4785_v7 = vrot.slane %v4781_v5, 1  ;;  %v4683_v5 = vld [vmem:[#allocation2 + $0xc] sm:$0x7] }
 0x8ad   : > { %v4387_v27 = vsel %vm568_vm5, %v4379_v12, %v4315_v11  ;;  %v6407_v12 = vld [vmem:[%s7767_s2 + $0x6] ss:$0 sm:$0xff] }
 0x8ae   : > { %v4398_v0 = vrot.slane %v4387_v27, 6  ;;  %v4892_v36 = vpack.c.b16 %v4888_v30, %v4888_v30 }
 0x8b0   : > { %4899 = vrot.lane.b32.xlu1 %v4892_v36, %s6420_s21 }
 0x8b2   : > { %v4183_v14 = vpop.permute.xlu1 %4182 }
 0x8b3   : > { %v4249_v52 = vpop.permute.xlu0 %4248  ;;  %v4359_v62 = vsel %vm568_vm5, %v4351_v54, %v4183_v14 }
 0x8b4   : > { %v4373_v61 = vsel %vm546_vm3, %v4225_v29, %v4249_v52  ;;  %v4411_v4 = vsel %vm617_vm6, %v4359_v62, %v4398_v0  ;;  %v4937_v29 = vshll.u32 %v4912_v59, 16  ;;  %v6408_v0 = vld [vmem:[%s7768_s3 + $0x6] ss:$0 sm:$0xff]  ;;  %v4742_v52 = vrot.slane %v4740_v21, 1 }
 0x8b5   : > { %v4381_v38 = vsel %vm559_vm4, %v4373_v61, %v7468_v35  ;;  %v4413_v53 = vsel %vm620_vm7, %v4411_v4, %v6007_v25  ;;  %v4361_v35 = vsel %vm568_vm5, %v4353_v40, %v4185_v50 }
 0x8b6   : > { %v4389_v44 = vsel %vm568_vm5, %v4381_v38, %v7472_v42  ;;  %4464 = vst [vmem:[#allocation1 + $0x2] ss:$4 sm:$0xff] %v4413_v53  ;;  %v4939_v25 = vrot.slane %v4937_v29, 1  ;;  %v4743_v18 = vor.u32 %v4742_v52, %v4738_v63 }
 0x8b7   : > { %v4400_v57 = vrot.slane %v4389_v44, 6 }
 0x8b8   : > { %4789 = vrot.lane.b32.xlu1 %v4785_v7, %s6420_s21  ;;  %v4940_v41 = vor.u32 %v4939_v25, %v4935_v22  ;;  %4765 = vrot.lane.b32.xlu2 %v4743_v18, %s6422_s23 }
 0x8b9   : > { %v4415_v47 = vsel %vm617_vm6, %v4361_v35, %v4400_v57 }
 0x8ba   : > { %v4417_v42 = vsel %vm620_vm7, %v4415_v47, %v6008_v43  ;;  %4947 = vrot.lane.b32.xlu0 %v4940_v41, %s6421_s22 }
 0x8bb   : > { %4466 = vst [vmem:[#allocation1 + $0x3] ss:$4 sm:$0xff] %v4417_v42  ;;  %v4181_v34 = vpop.permute.xlu0 %4180  ;;  %v4677_v42 = vld [vmem:[#allocation2 + $0x4] sm:$0x7] }
 0x8bc   : > { %v4357_v6 = vsel %vm568_vm5, %v4349_v28, %v4181_v34 }
 0x8bd   : > { %v4407_v32 = vsel %vm617_vm6, %v4357_v6, %v4396_v60 }
 0x8be   : > { %v4409_v58 = vsel %vm620_vm7, %v4407_v32, %v6006_v48  ;;  %v4680_v32 = vld [vmem:[#allocation2 + $0x8] sm:$0x7] }
 0x8bf   : > { %4462 = vst [vmem:[#allocation1 + $0x1] ss:$4 sm:$0xff] %v4409_v58 }
 0x8c6   : > { %v4467_v45 = vld.sshfl [vmem:[#allocation1] sm:$0xff pattern:$0x73625140]  ;;  %v4468_v26 = vld.sshfl [vmem:[#allocation1 + $0x8] sm:$0xff pattern:$0x73625140] }
 0x8c7   : > { %4590 = vmatmul.bf16.vlgmr.msra.gmra.mxu0 %v4467_v45  ;;  %4604 = vmatmul.bf16.vlgmr.msrb.gmra.mxu3 %v4468_v26  ;;  %v4469_v23 = vld.sshfl [vmem:[#allocation1 + $0x10] sm:$0xff pattern:$0x73625140] }
 0x8c8   : > { %6118 = vmatmul.msk.bf16.vlgmr.msra.gmra.mxu2 %vm546_vm3, %v4469_v23 }
 0x944   : > { %v4591_v11 = vpop.f32.mrf.mxu0 }
 0x945   : > { %v4592_v19 = vadd.f32 %v6407_v12, %v4591_v11 }
 0x94a   : > { %v4605_v27 = vpop.f32.mrf.mxu3 }
 0x94b   : > { %v4606_v46 = vadd.f32 %v4605_v27, %v4592_v19  ;;  %v4619_v24 = vpop.f32.mrf.mxu2 }
 0x94c   : > { %v4593_v54 = vpop.f32.mrf.mxu0 }
 0x94d   : > { %v4620_v14 = vadd.f32 %v4619_v24, %v4606_v46  ;;  %v4594_v62 = vadd.f32 %v6407_v12, %v4593_v54 }
 0x94f   : > { %vm4624_vm10 = vcmp.gt.f32.partialorder %v4620_v14, 0.0  ;;  %v4631_v9 = vmul.f32 %v6408_v0, %v4620_v14 }
 0x951   : > { %v4633_v61 = vsel %vm4624_vm10, %v4620_v14, %v4631_v9 }
 0x952   : > { %v4637_v40 = vrot.slane %v4633_v61, 4  ;;  %v4641_v38 = vpack.c.bf16 %v4633_v61, %v4633_v61  ;;  %v4607_v4 = vpop.f32.mrf.mxu3 }
 0x953   : > { %v4608_v43 = vadd.f32 %v4607_v4, %v4594_v62  ;;  %v4621_v17 = vpop.f32.mrf.mxu2 }
 0x954   : > { %v4642_v44 = vpack.c.bf16 %v4637_v40, %v4637_v40  ;;  %v4646_v53 = vshrl.u32 %v4641_v38, 16  ;;  %v4649_v57 = vshll.u32 %v4641_v38, 16 }
 0x955   : > { %v4622_v50 = vadd.f32 %v4621_v17, %v4608_v43 }
 0x956   : > { %v4648_v49 = vrot.slane %v4646_v53, 7  ;;  %v4653_v51 = vshrl.u32 %v4642_v44, 16  ;;  %v4656_v47 = vshll.u32 %v4642_v44, 16 }
 0x957   : > { %vm4625_vm11 = vcmp.gt.f32.partialorder %v4622_v50, 0.0  ;;  %v4632_v35 = vmul.f32 %v6408_v0, %v4622_v50 }
 0x958   : > { %v4651_v37 = vor.u32 %v4649_v57, %v4648_v49  ;;  %v4655_v39 = vrot.slane %v4653_v51, 7 }
 0x959   : > { %v4634_v60 = vsel %vm4625_vm11, %v4622_v50, %v4632_v35 }
 0x95a   : > { %v4658_v28 = vor.u32 %v4656_v47, %v4655_v39  ;;  %v4678_v34 = vsel %vm6485_vm2, %v4651_v37, %v4677_v42  ;;  %v4638_v48 = vrot.slane %v4634_v60, 4  ;;  %v4643_v6 = vpack.c.bf16 %v4634_v60, %v4634_v60 }
 0x95b   : > { %4679 = vst [vmem:[#allocation2 + $0x4] sm:$0x7] %v4678_v34 }
 0x95c   : > { %v4681_v58 = vsel %vm6485_vm2, %v4658_v28, %v4680_v32  ;;  %v4644_v45 = vpack.c.bf16 %v4638_v48, %v4638_v48  ;;  %v4660_v26 = vshrl.u32 %v4643_v6, 16  ;;  %v4663_v20 = vshll.u32 %v4643_v6, 16 }
 0x95d   : > { %4682 = vst [vmem:[#allocation2 + $0x8] sm:$0x7] %v4681_v58 }
 0x95e   : > { %v4662_v23 = vrot.slane %v4660_v26, 7  ;;  %v4667_v30 = vshrl.u32 %v4644_v45, 16  ;;  %v4670_v55 = vshll.u32 %v4644_v45, 16 }
 0x960   : > { %v4665_v36 = vor.u32 %v4663_v20, %v4662_v23  ;;  %v4669_v10 = vrot.slane %v4667_v30, 7 }
 0x962   : > { %v4672_v7 = vor.u32 %v4670_v55, %v4669_v10  ;;  %v4684_v11 = vsel %vm6485_vm2, %v4665_v36, %v4683_v5  ;;  %v4701_v12 = vld [vmem:[#allocation2 + $0x4] sm:$0x3] }
 0x963   : > { %v4709_v13 = vld [vmem:[#allocation2 + $0x4] sm:$0x6]  ;;  %4685 = vst [vmem:[#allocation2 + $0xc] sm:$0x7] %v4684_v11  ;;  %v4801_v31 = vunpack.c.l.b16 %v4701_v12 }
 0x964   : > { %v4698_v15 = vld [vmem:[#allocation2 + $0x4] sm:$0x6]  ;;  %v4861_v16 = vunpack.c.l.b16 %v4709_v13  ;;  %v4687_v19 = vsel %vm6485_vm2, %v4672_v7, %v4686_v56  ;;  %v4713_v27 = vld [vmem:[#allocation2 + $0x8] sm:$0x3] }
 0x965   : > { %v4694_v59 = vld [vmem:[#allocation2 + $0x4] sm:$0x7]  ;;  %v4710_v63 = vld [vmem:[#allocation2 + $0x8] sm:$0x6]  ;;  %4688 = vst [vmem:[#allocation2 + $0x10] sm:$0x7] %v4687_v19  ;;  %v4805_v22 = vpack.c.b16 %v4801_v31, %v4801_v31  ;;  %v4885_v46 = vunpack.c.l.b16 %v4713_v27  ;;  %v4778_v24 = vunpack.c.l.b16 %v4698_v15 }
 0x966   : > { %v4699_v21 = vld [vmem:[#allocation2 + $0x8] sm:$0x6]  ;;  %v4865_v29 = vpack.c.b16 %v4861_v16, %v4861_v16  ;;  %v4862_v52 = vunpack.c.l.b16 %v4710_v63  ;;  %v4730_v25 = vunpack.c.l.b16 %v4694_v59 }
 0x967   : > { %v4695_v0 = vld [vmem:[#allocation2 + $0x8] sm:$0x7]  ;;  %4809 = vrot.lane.b32.xlu2 %v4805_v22, %s6421_s22  ;;  %v4889_v54 = vpack.c.b16 %v4885_v46, %v4885_v46  ;;  %v4779_v18 = vunpack.c.l.b16 %v4699_v21  ;;  %v4782_v33 = vpack.c.b16 %v4778_v24, %v4778_v24 }
 0x968   : > { %v4869_v14 = vrot.slane %v4865_v29, 1  ;;  %v4731_v41 = vunpack.c.l.b16 %v4695_v0  ;;  %v4734_v9 = vpack.c.b16 %v4730_v25, %v4730_v25  ;;  %v4866_v61 = vpack.c.b16 %v4862_v52, %v4862_v52  ;;  %v4717_v38 = vld [vmem:[#allocation2 + $0x8] sm:$0x7] }
 0x969   : > { %4893 = vrot.lane.b32.xlu1 %v4889_v54, %s6420_s21  ;;  %v4783_v62 = vpack.c.b16 %v4779_v18, %v4779_v18  ;;  %v4786_v4 = vrot.slane %v4782_v33, 1  ;;  %v4905_v49 = vunpack.c.l.b16 %v4717_v38 }
 0x96a   : > { %4873 = vrot.lane.b32.xlu0 %v4869_v14, %s6422_s23  ;;  %v4735_v40 = vpack.c.b16 %v4731_v41, %v4731_v41  ;;  %v4714_v43 = vld [vmem:[#allocation2 + $0xc] sm:$0x3]  ;;  %v4747_v44 = vshll.u32 %v4734_v9, 16  ;;  %v4870_v53 = vrot.slane %v4866_v61, 1  ;;  %v4745_v42 = vshrl.u32 %v4734_v9, 16 }
 0x96b   : > { %v4787_v17 = vrot.slane %v4783_v62, 1  ;;  %v4886_v57 = vunpack.c.l.b16 %v4714_v43  ;;  %v4711_v35 = vld [vmem:[#allocation2 + $0xc] sm:$0x6]  ;;  %v4909_v47 = vpack.c.b16 %v4905_v49, %v4905_v49  ;;  %v7623_v49 = vpop.permute.xlu1 %4899 }
 0x96c   : > { %v4754_v50 = vshll.u32 %v4735_v40, 16  ;;  %v4749_v51 = vrot.slane %v4747_v44, 1  ;;  %v4696_v37 = vld [vmem:[#allocation2 + $0xc] sm:$0x7]  ;;  %v4752_v48 = vshrl.u32 %v4735_v40, 16  ;;  %v4863_v6 = vunpack.c.l.b16 %v4711_v35 }
 0x96d   : > { %v4700_v60 = vld [vmem:[#allocation2 + $0xc] sm:$0x6]  ;;  %v4890_v34 = vpack.c.b16 %v4886_v57, %v4886_v57  ;;  %v4732_v32 = vunpack.c.l.b16 %v4696_v37  ;;  %v4916_v26 = vshll.u32 %v4909_v47, 16  ;;  %v4719_v10 = vld [vmem:[#allocation2 + $0x10] sm:$0x7]  ;;  %v4914_v12 = vshrl.u32 %v4909_v47, 16 }
 0x96e   : > { %v4756_v39 = vrot.slane %v4754_v50, 1  ;;  %v4718_v28 = vld [vmem:[#allocation2 + $0xc] sm:$0x7]  ;;  %v4750_v58 = vor.u32 %v4749_v51, %v4745_v42  ;;  %v4780_v23 = vunpack.c.l.b16 %v4700_v60  ;;  %v4867_v30 = vpack.c.b16 %v4863_v6, %v4863_v6  ;;  %v4715_v59 = vld [vmem:[#allocation2 + $0x10] sm:$0x3]  ;;  %v4766_v50 = vpop.permute.xlu2 %4765  ;;  %v7627_v51 = vpop.permute.xlu0 %4947  ;;  %v6380_v47 = vld [vmem:[%s7766_s1 + $0x468] sm:$0xff] }
 0x96f   : > { %4791 = vrot.lane.b32.xlu2 %v4786_v4, %s6420_s21  ;;  %v4906_v20 = vunpack.c.l.b16 %v4718_v28  ;;  %v4736_v36 = vpack.c.b16 %v4732_v32, %v4732_v32  ;;  %v4918_v55 = vrot.slane %v4916_v26, 1  ;;  %v4907_v15 = vunpack.c.l.b16 %v4719_v10  ;;  %v4712_v29 = vld [vmem:[#allocation2 + $0x10] sm:$0x6]  ;;  %v4703_v54 = vld [vmem:[#allocation2 + $0xc] sm:$0x3]  ;;  %5227 = vmatpush.bf16.msrb.mxu2 %v6380_v47  ;;  %v6371_v6 = vld [vmem:[%s7766_s1 + $0x420] sm:$0xff] }
 0x970   : > { %v4757_v45 = vor.u32 %v4756_v39, %v4752_v48  ;;  %v4784_v5 = vpack.c.b16 %v4780_v23, %v4780_v23  ;;  %v4871_v11 = vrot.slane %v4867_v30, 1  ;;  %v4887_v21 = vunpack.c.l.b16 %v4715_v59  ;;  %v4704_v62 = vld [vmem:[#allocation2 + $0x10] sm:$0x3]  ;;  %v4702_v4 = vld [vmem:[#allocation2 + $0x8] sm:$0x3]  ;;  %v6372_v39 = vld [vmem:[%s7766_s1 + $0x428] sm:$0xff] }
 0x971   : > { %4875 = vrot.lane.b32.xlu1 %v4870_v53, %s6422_s23  ;;  %v4910_v7 = vpack.c.b16 %v4906_v20, %v4906_v20  ;;  %v4761_v13 = vshll.u32 %v4736_v36, 16  ;;  %v4919_v56 = vor.u32 %v4918_v55, %v4914_v12  ;;  %v4911_v27 = vpack.c.b16 %v4907_v15, %v4907_v15  ;;  %v4705_v60 = vld [vmem:[#allocation2 + $0x4] sm:$0x7]  ;;  %5213 = vmatpush.bf16.msrb.mxu1 %v6372_v39  ;;  %v6379_v32 = vld [vmem:[%s7766_s1 + $0x460] sm:$0xff]  ;;  %v4721_v12 = vld [vmem:[#allocation2 + $0x8] sm:$0x6] }
 0x972   : > { %4793 = vrot.lane.b32.xlu0 %v4787_v17, %s6420_s21  ;;  %v4788_v31 = vrot.slane %v4784_v5, 1  ;;  %v4759_v63 = vshrl.u32 %v4736_v36, 16  ;;  %v4891_v52 = vpack.c.b16 %v4887_v21, %v4887_v21  ;;  %v4864_v14 = vunpack.c.l.b16 %v4712_v29  ;;  %v4707_v36 = vld [vmem:[#allocation2 + $0xc] sm:$0x7]  ;;  %v6376_v59 = vld [vmem:[%s7766_s1 + $0x448] sm:$0xff]  ;;  %v6382_v29 = vld [vmem:[%s7766_s1 + $0x478] sm:$0xff] }
 0x973   : > { %v4923_v16 = vshll.u32 %v4910_v7, 16  ;;  %v4763_v19 = vrot.slane %v4761_v13, 1  ;;  %v4921_v24 = vshrl.u32 %v4910_v7, 16  ;;  %v4930_v0 = vshll.u32 %v4911_v27, 16  ;;  %v4790_v35 = vpop.permute.xlu1 %4789  ;;  %5228 = vmatpush.bf16.msrb.mxu2 %v6379_v32  ;;  %v6369_v13 = vld [vmem:[%s7766_s1 + $0x410] sm:$0xff]  ;;  %5247 = vmatpush.bf16.msrb.mxu0 %v6382_v29 }
 0x974   : > { %v4928_v41 = vshrl.u32 %v4911_v27, 16  ;;  %v4868_v33 = vpack.c.b16 %v4864_v14, %v4864_v14  ;;  %v4803_v9 = vunpack.c.l.b16 %v4703_v54  ;;  %v4804_v43 = vunpack.c.l.b16 %v4704_v62  ;;  %v6377_v15 = vld [vmem:[%s7766_s1 + $0x450] sm:$0xff] }
 0x975   : > { %v4925_v22 = vrot.slane %v4923_v16, 1  ;;  %v4764_v46 = vor.u32 %v4763_v19, %v4759_v63  ;;  %v4932_v18 = vrot.slane %v4930_v0, 1  ;;  %v4802_v44 = vunpack.c.l.b16 %v4702_v4  ;;  %5214 = vmatpush.bf16.msrb.mxu1 %v6371_v6  ;;  %v6368_v16 = vld [vmem:[%s7766_s1 + $0x408] sm:$0xff]  ;;  %v4706_v63 = vld [vmem:[#allocation2 + $0x8] sm:$0x7] }
 0x976   : > { %v4872_v40 = vrot.slane %v4868_v33, 1  ;;  %v4807_v38 = vpack.c.b16 %v4803_v9, %v4803_v9  ;;  %v4808_v53 = vpack.c.b16 %v4804_v43, %v4804_v43  ;;  %v4821_v48 = vunpack.c.l.b16 %v4705_v60  ;;  %v6381_v33 = vld [vmem:[%s7766_s1 + $0x470] sm:$0xff] }
 0x977   : > { %4895 = vrot.lane.b32.xlu2 %v4890_v34, %s6420_s21  ;;  %v4926_v25 = vor.u32 %v4925_v22, %v4921_v24  ;;  %v4933_v61 = vor.u32 %v4932_v18, %v4928_v41  ;;  %v4806_v17 = vpack.c.b16 %v4802_v44, %v4802_v44  ;;  %v4823_v55 = vunpack.c.l.b16 %v4707_v36  ;;  %v4708_v22 = vld [vmem:[#allocation2 + $0x10] sm:$0x7]  ;;  %5248 = vmatpush.bf16.msrb.mxu0 %v6381_v33 }
 0x978   : > { %v4825_v26 = vpack.c.b16 %v4821_v48, %v4821_v48  ;;  %v4953_v21 = vunpack.c.l.b16 %v4721_v12  ;;  %v4822_v0 = vunpack.c.l.b16 %v4706_v63  ;;  %v4824_v41 = vunpack.c.l.b16 %v4708_v22  ;;  %v6366_v44 = vld [vmem:[%s7766_s1 + $0x3f8] sm:$0xff]  ;;  %v6365_v48 = vld [vmem:[%s7766_s1 + $0x3f0] sm:$0xff] }
 0x979   : > { %4769 = vrot.lane.b32.xlu1 %v4757_v45, %s6422_s23  ;;  %v6378_v45 = vld [vmem:[%s7766_s1 + $0x458] sm:$0xff]  ;;  %v4827_v19 = vpack.c.b16 %v4823_v55, %v4823_v55 }
 0x97a   : > { %4767 = vrot.lane.b32.xlu0 %v4750_v58, %s6422_s23  ;;  %v6370_v58 = vld [vmem:[%s7766_s1 + $0x418] sm:$0xff]  ;;  %5229 = vmatpush.bf16.msrb.mxu2 %v6378_v45  ;;  %v4832_v30 = vshll.u32 %v4825_v26, 16  ;;  %v4957_v18 = vpack.c.b16 %v4953_v21, %v4953_v21  ;;  %v4826_v4 = vpack.c.b16 %v4822_v0, %v4822_v0  ;;  %v4828_v39 = vpack.c.b16 %v4824_v41, %v4824_v41  ;;  %v4722_v21 = vld [vmem:[#allocation2 + $0xc] sm:$0x6] }
 0x97b   : > { %5215 = vmatpush.bf16.msrb.mxu1 %v6370_v58  ;;  %v4846_v14 = vshll.u32 %v4827_v19, 16 }
 0x97c   : > { %v4834_v5 = vrot.slane %v4832_v30, 1  ;;  %v4839_v32 = vshll.u32 %v4826_v4, 16  ;;  %v4853_v58 = vshll.u32 %v4828_v39, 16  ;;  %v4724_v30 = vld [vmem:[#allocation2 + $0x14] sm:$0x6]  ;;  %v4851_v63 = vshrl.u32 %v4828_v39, 16 }
 0x97e   : > { %5230 = vmatpush.bf16.msrb.mxu2 %v6377_v15  ;;  %v4855_v15 = vrot.slane %v4853_v58, 1 }
 0x97f   : > { %4877 = vrot.lane.b32.xlu2 %v4871_v11, %s6422_s23  ;;  %5216 = vmatpush.bf16.msrb.mxu1 %v6369_v13  ;;  %v4841_v13 = vrot.slane %v4839_v32, 1 }
 0x981   : > { %4795 = vrot.lane.b32.xlu1 %v4788_v31, %s6420_s21  ;;  %v4689_v31 = vld [vmem:[#allocation2] sm:$0x3] }
 0x982   : > { %4941 = vrot.lane.b32.xlu0 %v4919_v56, %s6421_s22  ;;  %v4830_v56 = vshrl.u32 %v4825_v26, 16  ;;  %5231 = vmatpush.bf16.msrb.mxu2 %v6376_v59  ;;  %v4837_v59 = vshrl.u32 %v4826_v4, 16 }
 0x983   : > { %5217 = vmatpush.bf16.msrb.mxu1 %v6368_v16 }
 0x984   : > { %v4835_v27 = vor.u32 %v4834_v5, %v4830_v56  ;;  %v4956_v56 = vunpack.c.l.b16 %v4724_v30  ;;  %v4842_v22 = vor.u32 %v4841_v13, %v4837_v59 }
 0x986   : > { %v4960_v29 = vpack.c.b16 %v4956_v56, %v4956_v56 }
 0x987   : > { %4771 = vrot.lane.b32.xlu2 %v4764_v46, %s6422_s23  ;;  %v4967_v46 = vsel %vm546_vm3, %v4689_v31, %v4766_v50  ;;  %v4848_v50 = vrot.slane %v4846_v14, 1  ;;  %v4691_v31 = vld [vmem:[#allocation2 + $0x8] sm:$0x3] }
 0x988   : > { %v4978_v9 = vsel %vm559_vm4, %v4967_v46, %v4790_v35  ;;  %v6120_v35 = vrot.slane %v4957_v18, 5  ;;  %v4692_v46 = vld [vmem:[#allocation2 + $0xc] sm:$0x3]  ;;  %v4954_v18 = vunpack.c.l.b16 %v4722_v21  ;;  %v6123_v4 = vrot.slane %v4960_v29, 5 }
 0x989   : > { %4943 = vrot.lane.b32.xlu1 %v4926_v25, %s6421_s22  ;;  %v6375_v25 = vld [vmem:[%s7766_s1 + $0x440] sm:$0xff] }
 0x98a   : > { %4897 = vrot.lane.b32.xlu0 %v4891_v52, %s6420_s21  ;;  %v6367_v52 = vld [vmem:[%s7766_s1 + $0x400] sm:$0xff]  ;;  %5232 = vmatpush.bf16.msrb.mxu2 %v6375_v25 }
 0x98b   : > { %5218 = vmatpush.bf16.msrb.mxu1 %v6367_v52 }
 0x98f   : > { %4945 = vrot.lane.b32.xlu2 %v4933_v61, %s6421_s22  ;;  %5219 = vmatpush.bf16.msrb.mxu1 %v6366_v44 }
 0x991   : > { %4813 = vrot.lane.b32.xlu1 %v4807_v38, %s6421_s22 }
 0x992   : > { %4879 = vrot.lane.b32.xlu0 %v4872_v40, %s6422_s23 }
 0x993   : > { %5220 = vmatpush.bf16.msrb.mxu1 %v6365_v48 }
 0x997   : > { %4815 = vrot.lane.b32.xlu2 %v4808_v53, %s6421_s22  ;;  %v6374_v53 = vld [vmem:[%s7766_s1 + $0x438] sm:$0xff] }
 0x998   : > { %5233 = vmatpush.bf16.msrb.mxu2 %v6374_v53 }
 0x99a   : > { %4811 = vrot.lane.b32.xlu0 %v4806_v17, %s6421_s22 }
 0x9c1   : > { %v7625_v57 = vpop.permute.xlu2 %4809 }
 0x9c2   : > { %v4986_v17 = vsel %vm568_vm5, %v4978_v9, %v7625_v57  ;;  %v6373_v57 = vld [vmem:[%s7766_s1 + $0x430] sm:$0xff] }
 0x9c3   : > { %5234 = vmatpush.bf16.msrb.mxu2 %v6373_v57 }
 0x9c9   : > { %v7629_v37 = vpop.permute.xlu2 %4791 }
 0x9d1   : > { %v7637_v34 = vpop.permute.xlu2 %4895 }
 0x9d9   : > { %v7655_v10 = vpop.permute.xlu2 %4877 }
 0x9db   : > { %v4894_v28 = vpop.permute.xlu1 %4893 }
 0x9dc   : > { %v4874_v42 = vpop.permute.xlu0 %4873 }
 0x9dd   : > { %v4995_v24 = vsel %vm546_vm3, %v4835_v27, %v4874_v42  ;;  %v4844_v42 = vshrl.u32 %v4827_v19, 16 }
 0x9de   : > { %v5006_v61 = vsel %vm559_vm4, %v4995_v24, %v4894_v28  ;;  %v4723_v28 = vld [vmem:[#allocation2 + $0x10] sm:$0x6] }
 0x9df   : > { %v4849_v6 = vor.u32 %v4848_v50, %v4844_v42  ;;  %v4955_v36 = vunpack.c.l.b16 %v4723_v28  ;;  %v4958_v50 = vpack.c.b16 %v4954_v18, %v4954_v18 }
 0x9e1   : > { %v7684_v54 = vpop.permute.xlu2 %4771  ;;  %v5001_v55 = vsel %vm546_vm3, %v4849_v6, %v7655_v10  ;;  %v4959_v16 = vpack.c.b16 %v4955_v36, %v4955_v36  ;;  %v4856_v10 = vor.u32 %v4855_v15, %v4851_v63  ;;  %v6121_v42 = vrot.slane %v4958_v50, 5  ;;  %v6410_v36 = vld [vmem:[%s7768_s3 + $0x7] ss:$0 sm:$0xff] }
 0x9e2   : > { %v4976_v41 = vsel %vm546_vm3, %v4692_v46, %v7684_v54  ;;  %v5273_v15 = vunpack.c.l.bf16 %v6474_v3  ;;  %v5274_v3 = vunpack.c.l.bf16 %v6478_v8  ;;  %v5275_v46 = vunpack.c.l.bf16 %v6470_v1 }
 0x9e3   : > { %v7651_v23 = vpop.permute.xlu1 %4875  ;;  %v6122_v52 = vrot.slane %v4959_v16, 5 }
 0x9e4   : > { %v7653_v20 = vpop.permute.xlu0 %4793 }
 0x9e9   : > { %v4946_v5 = vpop.permute.xlu2 %4945 }
 0x9eb   : > { %v7659_v11 = vpop.permute.xlu1 %4769 }
 0x9ec   : > { %v7657_v7 = vpop.permute.xlu0 %4767  ;;  %v4973_v19 = vsel %vm546_vm3, %v4691_v31, %v7659_v11  ;;  %v4998_v11 = vsel %vm546_vm3, %v4842_v22, %v7651_v23 }
 0x9ed   : > { %v4982_v14 = vsel %vm559_vm4, %v4973_v19, %v7653_v20  ;;  %v5008_v23 = vsel %vm559_vm4, %v4998_v11, %v7637_v34 }
 0x9f1   : > { %v4816_v44 = vpop.permute.xlu2 %4815 }
 0x9f3   : > { %v4796_v40 = vpop.permute.xlu1 %4795 }
 0x9f4   : > { %v4942_v62 = vpop.permute.xlu0 %4941 }
 0x9f5   : > { %v5014_v38 = vsel %vm568_vm5, %v5006_v61, %v4942_v62  ;;  %v4984_v61 = vsel %vm559_vm4, %v4976_v41, %v4796_v40 }
 0x9f6   : > { %v5025_v43 = vrot.slane %v5014_v38, 6 }
 0x9f8   : > { %v5034_v47 = vsel %vm617_vm6, %v4986_v17, %v5025_v43  ;;  %v4690_v43 = vld [vmem:[#allocation2 + $0x4] sm:$0x3] }
 0x9f9   : > { %v5036_v60 = vsel %vm620_vm7, %v5034_v47, %v6120_v35  ;;  %v4970_v40 = vsel %vm546_vm3, %v4690_v43, %v7657_v7 }
 0x9fa   : > { %5091 = vst [vmem:[#allocation1] ss:$4 sm:$0xff] %v5036_v60  ;;  %v4980_v47 = vsel %vm559_vm4, %v4970_v40, %v7629_v37  ;;  %v6409_v37 = vld [vmem:[%s7767_s2 + $0x7] ss:$0 sm:$0xff] }
 0x9fb   : > { %v4944_v26 = vpop.permute.xlu1 %4943 }
 0x9fc   : > { %v4898_v45 = vpop.permute.xlu0 %4897  ;;  %v5016_v17 = vsel %vm568_vm5, %v5008_v23, %v4944_v26 }
 0x9fd   : > { %v5010_v12 = vsel %vm559_vm4, %v5001_v55, %v4898_v45  ;;  %v5027_v39 = vrot.slane %v5016_v17, 6 }
 0x9fe   : > { %v5018_v27 = vsel %vm568_vm5, %v5010_v12, %v4946_v5  ;;  %v5272_v5 = vunpack.c.l.bf16 %v6472_v2 }
 0x9ff   : > { %v5029_v24 = vrot.slane %v5018_v27, 6 }
 0xa03   : > { %v4814_v25 = vpop.permute.xlu1 %4813 }
 0xa04   : > { %v4880_v0 = vpop.permute.xlu0 %4879  ;;  %v4990_v9 = vsel %vm568_vm5, %v4982_v14, %v4814_v25 }
 0xa05   : > { %v5004_v33 = vsel %vm546_vm3, %v4856_v10, %v4880_v0  ;;  %v5042_v38 = vsel %vm617_vm6, %v4990_v9, %v5029_v24 }
 0xa06   : > { %v5012_v62 = vsel %vm559_vm4, %v5004_v33, %v7623_v49  ;;  %v5044_v54 = vsel %vm620_vm7, %v5042_v38, %v6122_v52  ;;  %v4992_v49 = vsel %vm568_vm5, %v4984_v61, %v4816_v44 }
 0xa07   : > { %v5020_v20 = vsel %vm568_vm5, %v5012_v62, %v7627_v51  ;;  %5095 = vst [vmem:[#allocation1 + $0x2] ss:$4 sm:$0xff] %v5044_v54 }
 0xa08   : > { %v5031_v53 = vrot.slane %v5020_v20, 6 }
 0xa0a   : > { %v5046_v35 = vsel %vm617_vm6, %v4992_v49, %v5031_v53 }
 0xa0b   : > { %v5048_v51 = vsel %vm620_vm7, %v5046_v35, %v6123_v4 }
 0xa0c   : > { %5097 = vst [vmem:[#allocation1 + $0x3] ss:$4 sm:$0xff] %v5048_v51  ;;  %v4812_v34 = vpop.permute.xlu0 %4811 }
 0xa0d   : > { %v4988_v60 = vsel %vm568_vm5, %v4980_v47, %v4812_v34 }
 0xa0e   : > { %v5038_v7 = vsel %vm617_vm6, %v4988_v60, %v5027_v39 }
 0xa0f   : > { %v5040_v28 = vsel %vm620_vm7, %v5038_v7, %v6121_v42 }
 0xa10   : > { %5093 = vst [vmem:[#allocation1 + $0x1] ss:$4 sm:$0xff] %v5040_v28 }
 0xa17   : > { %v5098_v48 = vld.sshfl [vmem:[#allocation1] sm:$0xff pattern:$0x73625140]  ;;  %v5099_v57 = vld.sshfl [vmem:[#allocation1 + $0x8] sm:$0xff pattern:$0x73625140] }
 0xa18   : > { %5221 = vmatmul.bf16.vlgmr.msrb.gmra.mxu1 %v5098_v48  ;;  %5235 = vmatmul.bf16.vlgmr.msrb.gmra.mxu2 %v5099_v57  ;;  %v5100_v6 = vld.sshfl [vmem:[#allocation1 + $0x10] sm:$0xff pattern:$0x73625140] }
 0xa19   : > { %6233 = vmatmul.msk.bf16.vlgmr.msrb.gmra.mxu0 %vm546_vm3, %v5100_v6  ;;  %vm5284_vm3 = vcmask 254976  }
 0xa95   : > { %v5222_v32 = vpop.f32.mrf.mxu1 }
 0xa96   : > { %v5223_v58 = vadd.f32 %v6409_v37, %v5222_v32  ;;  %v5250_v45 = vpop.f32.mrf.mxu0 }
 0xa9b   : > { %v5236_v26 = vpop.f32.mrf.mxu2 }
 0xa9c   : > { %v5237_v30 = vadd.f32 %v5236_v26, %v5223_v58 }
 0xa9d   : > { %v5224_v12 = vpop.f32.mrf.mxu1 }
 0xa9e   : > { %v5251_v55 = vadd.f32 %v5250_v45, %v5237_v30  ;;  %v5225_v31 = vadd.f32 %v6409_v37, %v5224_v12  ;;  %v5252_v2 = vpop.f32.mrf.mxu0 }
 0xaa0   : > { %vm5255_vm2 = vcmp.gt.f32.partialorder %v5251_v55, 0.0  ;;  %v5262_v13 = vmul.f32 %v6410_v36, %v5251_v55 }
 0xaa2   : > { %v5264_v56 = vsel %vm5255_vm2, %v5251_v55, %v5262_v13 }
 0xaa3   : > { %v5268_v16 = vrot.slane %v5264_v56, 4  ;;  %v5276_v59 = vadd.f32 %v5272_v5, %v5264_v56  ;;  %v5238_v19 = vpop.f32.mrf.mxu2 }
 0xaa4   : > { %v5239_v27 = vadd.f32 %v5238_v19, %v5225_v31 }
 0xaa5   : > { %v5277_v63 = vadd.f32 %v5273_v15, %v5268_v16  ;;  %v5280_v21 = vpack.c.bf16 %v5276_v59, %v5276_v59 }
 0xaa6   : > { %v5253_v22 = vadd.f32 %v5252_v2, %v5239_v27 }
 0xaa7   : > { %v5281_v10 = vpack.c.bf16 %v5277_v63, %v5277_v63  ;;  %5285 = vst.msk [vmem:[%s197_s14] sm:$0x3] %vm5284_vm3, %v5280_v21 }
 0xaa8   : > { %vm5256_vm4 = vcmp.gt.f32.partialorder %v5253_v22, 0.0  ;;  %v5263_v29 = vmul.f32 %v6410_v36, %v5253_v22 }
 0xaa9   : > { %5286 = vst.msk [vmem:[%s197_s14 + $0x2] sm:$0x3] %vm5284_vm3, %v5281_v10 }
 0xaaa   : > { %v5265_v24 = vsel %vm5256_vm4, %v5253_v22, %v5263_v29 }
 0xaab   : > { %v5269_v0 = vrot.slane %v5265_v24, 4  ;;  %v5278_v52 = vadd.f32 %v5274_v3, %v5265_v24 }
 0xaad   : > { %v5279_v25 = vadd.f32 %v5275_v46, %v5269_v0  ;;  %v5282_v14 = vpack.c.bf16 %v5278_v52, %v5278_v52 }
 0xaaf   : > { %v5283_v18 = vpack.c.bf16 %v5279_v25, %v5279_v25  ;;  %5287 = vst.msk [vmem:[%s197_s14 + $0x4] sm:$0x3] %vm5284_vm3, %v5282_v14 }
 0xab1   : > { %5288 = vst.msk [vmem:[%s197_s14 + $0x6] sm:$0x3] %vm5284_vm3, %v5283_v18 }
 0xab2 PF: > { %s14_s15 = sadd.s32 1, %s6417_s15  }
 0xab3   : > { %p11_p4 = scmp.ge.s32.totalorder %s14_s15, 4  }
 0xab5   :  { %13 = sbr.rel (!%p11_p4) target bundleno = 1 (0x1), region = 116 }

</bundles_post_ra>
